<compile_context>
chip_gen: v7x
topology: tpu7x:2x2x1
jax: 0.10.0
libtpu: 0.0.40
codegen_flags: <defaults>
</compile_context>

<pallas_src>
import jax
import jax.numpy as jnp
import numpy as np
from jax import lax
from jax.experimental import pallas as pl
from jax.experimental.pallas import tpu as pltpu

# ---------------- static configuration (matches the module) ----------------
N = 2                 # batch
H = W = 16            # spatial size of the example input
PAD = 8               # unified stage-1 padding
WPAD = H + 2 * PAD    # 32, padded edge length
C_SQ, C_RECT = 20, 2
C_CAT = C_SQ + 2 * C_RECT          # 24 channels after cat
C_OUT = 10
KBIG = 17                          # unified stage-1 window (covers 9x9, 3x17, 17x3)
K1 = 9                             # square conv kernel, pad 4
KV = (3, 17)                       # vertical-filters kernel, pad (1, 8)
KHZ = (17, 3)                      # horizontal-filters kernel, pad (8, 1)
K4 = 9                             # second-stage conv kernel, pad 4
POOL1_OUT = 4                      # MaxPool(8, 4, pad=3) on 16x16 -> 4x4
POOL2_POS = 3                      # MaxPool(4, 4, pad=1) on 4x4 reads rows/cols [0, 3)
NPOS = POOL2_POS * POOL2_POS       # 9 conv4 output positions that matter
KBAND = KBIG * WPAD + 1            # 545: band matrix width, +1 ones column (bias)
# MaxPool(8,4,pad=3) windows on a length-16 axis, clipped to the valid range.
# Clipping == -inf padding here because the pooled tensor is post-ReLU (>= 0).
POOL1_WIN = [(0, 5), (1, 9), (5, 13), (9, 16)]


def _tree_max(vals):
    """Pairwise (tree) max over a list of equal-shaped arrays (depth ceil(log2 n))."""
    vals = list(vals)
    while len(vals) > 1:
        nxt = [jnp.maximum(vals[k], vals[k + 1]) for k in range(0, len(vals) - 1, 2)]
        if len(vals) % 2:
            nxt.append(vals[-1])
        vals = nxt
    return vals[0]


# ------------------------------ the kernel ---------------------------------
def caption_encoder_kernel(a_ref, wband_ref, w4_ref, out_ref):
    # ---- stage 1: 24-filter conv bank as a single banded MXU matmul --------
    # a_ref:    (N*16, 545)  column-band matrix of the pad-8 input (+ ones col)
    # wband:    (545, 16*24) banded weight with the bias folded into row 544
    # output cat[n*16 + j, i*24 + c] = ReLU(conv value at spatial (i, j), ch c)
    cat = jnp.dot(a_ref[...], wband_ref[...],
                  preferred_element_type=jnp.float32,
                  precision=lax.Precision.HIGHEST)              # (32, 384), lane-dense
    cat = jnp.maximum(cat, 0.0)

    # ---- MaxPool(kernel=8, stride=4, pad=3) --------------------------------
    # (a) pool over spatial rows i: lane-group tree maxes over blocks of 24.
    islices = [cat[:, i * C_CAT:(i + 1) * C_CAT] for i in range(H)]   # 16 x (32, 24)
    hv = jnp.concatenate(
        [_tree_max(islices[rs:re]) for (rs, re) in POOL1_WIN], axis=1)  # (32, 96)
    # hv[n*16 + j, r*24 + c] = max over row-window r

    # (b) pool over spatial cols j: sublane-range maxes per batch element, then
    # lane-concatenate so the pooled vector is [n, s*96 + r*24 + c] (matches w4).
    rows = []
    for n in range(N):
        pieces = [jnp.max(hv[n * H + cs: n * H + ce, :], axis=0, keepdims=True)
                  for (cs, ce) in POOL1_WIN]                          # 4 x (1, 96)
        pieces.append(jnp.ones((1, 1), jnp.float32))                  # bias column
        rows.append(jnp.concatenate(pieces, axis=1))                  # (1, 385)
    pooled = jnp.concatenate(rows, axis=0)                            # (N, 385)

    # ---- Conv2d(24 -> 10, 9x9, pad=4) + ReLU as ONE matmul ------------------
    # The 9x9 receptive field with pad 4 covers the whole 4x4 pooled map, so the
    # conv (restricted to the 9 positions the final pool reads) is a dense
    # (384 -> 90) linear map; bias folded into the last weight row.
    y = jnp.dot(pooled, w4_ref[...],
                preferred_element_type=jnp.float32,
                precision=lax.Precision.HIGHEST)                      # (N, 90)
    y = jnp.maximum(y, 0.0)

    # ---- MaxPool(kernel=4, stride=4, pad=1): tree max over 9 positions ------
    out_ref[...] = _tree_max([y[:, p * C_OUT:(p + 1) * C_OUT] for p in range(NPOS)])


# ---------------------------- wrapper-side glue -----------------------------
def prepare_params(params):
    """One-time packing of the module weights (hoisted out of the forward path).

    Returns:
      wband : (545, 384) banded stage-1 weight, bias folded into the last row.
              cat[n*16+j, i*24+c] = sum_{dx,p} xpad[n,p,j+dx] * wband[dx*32+p, i*24+c]
      w4cat : (385, 90) dense conv4 weight restricted to the 9 kept output
              positions, bias folded into the last row; row k = (s*4+r)*24 + ch.
    """
    w1, b1, w2, b2, w3, b3, w4, b4 = [np.asarray(p, np.float32) for p in params]

    # Unified 17x17x24 filter bank (embedding offset = 8 - pad per axis).
    wbig = np.zeros((KBIG, KBIG, C_CAT), np.float32)
    wbig[4:13, 4:13, :C_SQ] = np.transpose(w1, (2, 3, 1, 0)).reshape(K1, K1, C_SQ)
    wbig[7:10, 0:17, C_SQ:C_SQ + C_RECT] = \
        np.transpose(w2, (2, 3, 1, 0)).reshape(KV[0], KV[1], C_RECT)
    wbig[0:17, 7:10, C_SQ + C_RECT:] = \
        np.transpose(w3, (2, 3, 1, 0)).reshape(KHZ[0], KHZ[1], C_RECT)
    bcat = np.concatenate([b1, b2, b3])                              # (24,)

    wband = np.zeros((KBAND, H * C_CAT), np.float32)                 # (545, 384)
    for i in range(H):
        for dx in range(KBIG):
            wband[dx * WPAD + i: dx * WPAD + i + KBIG,
                  i * C_CAT:(i + 1) * C_CAT] = wbig[:, dx, :]
    wband[-1, :] = np.tile(bcat, H)                                  # bias row

    w4cat = np.zeros((POOL1_OUT * POOL1_OUT * C_CAT + 1, NPOS * C_OUT),
                     np.float32)                                     # (385, 90)
    for r in range(POOL1_OUT):
        for s in range(POOL1_OUT):
            for io in range(POOL2_POS):
                for jo in range(POOL2_POS):
                    u, v = r - io + K4 // 2, s - jo + K4 // 2        # taps in [2, 7]
                    w4cat[(s * POOL1_OUT + r) * C_CAT:(s * POOL1_OUT + r + 1) * C_CAT,
                          (io * POOL2_POS + jo) * C_OUT:
                          (io * POOL2_POS + jo + 1) * C_OUT] = w4[:, :, u, v].T
    w4cat[-1, :] = np.tile(b4, NPOS)                                 # bias row
    return jnp.asarray(wband), jnp.asarray(w4cat)


def _build_bands(x_nchw):
    """(N,1,16,16) -> (N*16, 17*32 + 1) column-band matrix of the pad-8 input.

    a[n*16 + j, dx*32 + p] = xpad[n, p, j + dx]; last column is ones (bias).
    Built from static slices + stack (no gather HLO), ~17x inflation (~70 KB)
    instead of the old 289x im2col patch matrix (~592 KB).
    """
    xpad = jnp.pad(x_nchw[:, 0, :, :].astype(jnp.float32),
                   ((0, 0), (PAD, PAD), (PAD, PAD)))                 # (N, 32, 32)
    xq = jnp.transpose(xpad, (0, 2, 1))                              # [n, col, row]
    bands = jnp.stack([xq[:, d:d + H, :] for d in range(KBIG)], axis=2)  # (N,16,17,32)
    a = bands.reshape(N * H, KBIG * WPAD)
    return jnp.concatenate([a, jnp.ones((N * H, 1), jnp.float32)], axis=1)


@jax.jit
def caption_encoder_forward(x_nchw, wband, w4cat):
    """x_nchw: (N, 1, H, W) float32 (PyTorch layout).  Returns (N, 10, 1, 1)."""
    a = _build_bands(x_nchw)
    vmem = pl.BlockSpec(memory_space=pltpu.MemorySpace.VMEM)
    # No grid: whole problem fits easily in VMEM.  For realistic batches (esp.
    # v7x with 2 TensorCores / 64 MiB VMEM) add a batch grid axis here with
    # compiler_params=pltpu.CompilerParams(dimension_semantics=("parallel",)).
    out = pl.pallas_call(
        caption_encoder_kernel,
        out_shape=jax.ShapeDtypeStruct((N, C_OUT), jnp.float32),
        in_specs=[vmem, vmem, vmem],
        out_specs=vmem,
    )(a, wband, w4cat)
    return out.reshape(N, C_OUT, 1, 1)


# ---------------- pure-JAX reference (NCHW, mirrors PyTorch ops) -------------
def reference_forward(x, params):
    w1, b1, w2, b2, w3, b3, w4, b4 = params

    def conv(t, w, b, pad):
        y = lax.conv_general_dilated(
            t, w, window_strides=(1, 1),
            padding=((pad[0], pad[0]), (pad[1], pad[1])),
            dimension_numbers=('NCHW', 'OIHW', 'NCHW'),
            precision=lax.Precision.HIGHEST)
        return y + b.reshape(1, -1, 1, 1)

    def maxpool(t, k, s, p):
        return lax.reduce_window(t, -jnp.inf, lax.max,
                                 (1, 1, k, k), (1, 1, s, s),
                                 ((0, 0), (0, 0), (p, p), (p, p)))

    c1 = conv(x, w1, b1, (4, 4))
    c2 = conv(x, w2, b2, (1, 8))
    c3 = conv(x, w3, b3, (8, 1))
    c0 = jnp.concatenate([c1, c2, c3], axis=1)
    r = jnp.maximum(c0, 0.0)
    m1 = maxpool(r, 8, 4, 3)
    c4 = conv(m1, w4, b4, (4, 4))
    r4 = jnp.maximum(c4, 0.0)
    return maxpool(r4, 4, 4, 1)


if __name__ == "__main__":
    key = jax.random.PRNGKey(0)
    ks = jax.random.split(key, 9)
    params = (
        0.05 * jax.random.normal(ks[0], (C_SQ, 1, K1, K1), jnp.float32),           # squareFilters.weight
        0.05 * jax.random.normal(ks[1], (C_SQ,), jnp.float32),                     # squareFilters.bias
        0.05 * jax.random.normal(ks[2], (C_RECT, KV[0], KV[1]), jnp.float32)[:, None],   # verticalFilters.weight (2,1,3,17)
        0.05 * jax.random.normal(ks[3], (C_RECT,), jnp.float32),                   # verticalFilters.bias
        0.05 * jax.random.normal(ks[4], (C_RECT, KHZ[0], KHZ[1]), jnp.float32)[:, None], # horizontalFilters.weight (2,1,17,3)
        0.05 * jax.random.normal(ks[5], (C_RECT,), jnp.float32),                   # horizontalFilters.bias
        0.05 * jax.random.normal(ks[6], (C_OUT, C_CAT, K4, K4), jnp.float32),      # laterStages conv weight
        0.05 * jax.random.normal(ks[7], (C_OUT,), jnp.float32),                    # laterStages conv bias
    )
    x = jax.random.normal(ks[8], (N, 1, H, W), jnp.float32)

    # Weight packing hoisted out of the forward path (runs once).
    wband, w4cat = prepare_params(params)

    out = caption_encoder_forward(x, wband, w4cat)
    out = jax.block_until_ready(out)

    ref = reference_forward(x, params)
    np.testing.assert_allclose(np.asarray(out), np.asarray(ref),
                               rtol=1e-3, atol=1e-3)
    print("KERNEL_OK")
</pallas_src>

<mosaic_0001>
module attributes {stable_mosaic.version = 11 : i64} {
  func.func @caption_encoder_kernel(%arg0: memref<32x545xf32, #tpu.memory_space<vmem>>, %arg1: memref<545x384xf32, #tpu.memory_space<vmem>>, %arg2: memref<385x90xf32, #tpu.memory_space<vmem>>, %arg3: memref<2x10xf32, #tpu.memory_space<vmem>>) attributes {dimension_semantics = [], scalar_prefetch = 0 : i64, scratch_operands = 0 : i64, tpu.core_type = #tpu.core_type<tc>} {
    %c0 = arith.constant 0 : index
    %c0_0 = arith.constant 0 : index
    %0 = vector.load %arg0[%c0, %c0_0] : memref<32x545xf32, #tpu.memory_space<vmem>>, vector<32x545xf32>
    %c0_1 = arith.constant 0 : index
    %c0_2 = arith.constant 0 : index
    %1 = vector.load %arg1[%c0_1, %c0_2] : memref<545x384xf32, #tpu.memory_space<vmem>>, vector<545x384xf32>
    %cst = arith.constant dense<0.000000e+00> : vector<32x384xf32>
    %2 = tpu.matmul %0, %1, %cst {dimension_numbers = #tpu.dot_dimension_numbers<[1], [0], [0], [1], [0, 0, 1, 1], [], []>, precision = #tpu.contract_precision<fp32>} : vector<32x545xf32>, vector<545x384xf32>, vector<32x384xf32> -> vector<32x384xf32>
    %cst_3 = arith.constant 0.000000e+00 : f32
    %3 = vector.broadcast %cst_3 : f32 to vector<32x384xf32>
    %4 = arith.maximumf %2, %3 : vector<32x384xf32>
    %5 = vector.extract_strided_slice %4 {offsets = [0, 0], sizes = [32, 24], strides = [1, 1]} : vector<32x384xf32> to vector<32x24xf32>
    %6 = vector.extract_strided_slice %4 {offsets = [0, 24], sizes = [32, 24], strides = [1, 1]} : vector<32x384xf32> to vector<32x24xf32>
    %7 = vector.extract_strided_slice %4 {offsets = [0, 48], sizes = [32, 24], strides = [1, 1]} : vector<32x384xf32> to vector<32x24xf32>
    %8 = vector.extract_strided_slice %4 {offsets = [0, 72], sizes = [32, 24], strides = [1, 1]} : vector<32x384xf32> to vector<32x24xf32>
    %9 = vector.extract_strided_slice %4 {offsets = [0, 96], sizes = [32, 24], strides = [1, 1]} : vector<32x384xf32> to vector<32x24xf32>
    %10 = vector.extract_strided_slice %4 {offsets = [0, 120], sizes = [32, 24], strides = [1, 1]} : vector<32x384xf32> to vector<32x24xf32>
    %11 = vector.extract_strided_slice %4 {offsets = [0, 144], sizes = [32, 24], strides = [1, 1]} : vector<32x384xf32> to vector<32x24xf32>
    %12 = vector.extract_strided_slice %4 {offsets = [0, 168], sizes = [32, 24], strides = [1, 1]} : vector<32x384xf32> to vector<32x24xf32>
    %13 = vector.extract_strided_slice %4 {offsets = [0, 192], sizes = [32, 24], strides = [1, 1]} : vector<32x384xf32> to vector<32x24xf32>
    %14 = vector.extract_strided_slice %4 {offsets = [0, 216], sizes = [32, 24], strides = [1, 1]} : vector<32x384xf32> to vector<32x24xf32>
    %15 = vector.extract_strided_slice %4 {offsets = [0, 240], sizes = [32, 24], strides = [1, 1]} : vector<32x384xf32> to vector<32x24xf32>
    %16 = vector.extract_strided_slice %4 {offsets = [0, 264], sizes = [32, 24], strides = [1, 1]} : vector<32x384xf32> to vector<32x24xf32>
    %17 = vector.extract_strided_slice %4 {offsets = [0, 288], sizes = [32, 24], strides = [1, 1]} : vector<32x384xf32> to vector<32x24xf32>
    %18 = vector.extract_strided_slice %4 {offsets = [0, 312], sizes = [32, 24], strides = [1, 1]} : vector<32x384xf32> to vector<32x24xf32>
    %19 = vector.extract_strided_slice %4 {offsets = [0, 336], sizes = [32, 24], strides = [1, 1]} : vector<32x384xf32> to vector<32x24xf32>
    %20 = vector.extract_strided_slice %4 {offsets = [0, 360], sizes = [32, 24], strides = [1, 1]} : vector<32x384xf32> to vector<32x24xf32>
    %21 = arith.maximumf %5, %6 : vector<32x24xf32>
    %22 = arith.maximumf %7, %8 : vector<32x24xf32>
    %23 = arith.maximumf %21, %22 : vector<32x24xf32>
    %24 = arith.maximumf %23, %9 : vector<32x24xf32>
    %25 = arith.maximumf %6, %7 : vector<32x24xf32>
    %26 = arith.maximumf %8, %9 : vector<32x24xf32>
    %27 = arith.maximumf %10, %11 : vector<32x24xf32>
    %28 = arith.maximumf %12, %13 : vector<32x24xf32>
    %29 = arith.maximumf %25, %26 : vector<32x24xf32>
    %30 = arith.maximumf %27, %28 : vector<32x24xf32>
    %31 = arith.maximumf %29, %30 : vector<32x24xf32>
    %32 = arith.maximumf %10, %11 : vector<32x24xf32>
    %33 = arith.maximumf %12, %13 : vector<32x24xf32>
    %34 = arith.maximumf %14, %15 : vector<32x24xf32>
    %35 = arith.maximumf %16, %17 : vector<32x24xf32>
    %36 = arith.maximumf %32, %33 : vector<32x24xf32>
    %37 = arith.maximumf %34, %35 : vector<32x24xf32>
    %38 = arith.maximumf %36, %37 : vector<32x24xf32>
    %39 = arith.maximumf %14, %15 : vector<32x24xf32>
    %40 = arith.maximumf %16, %17 : vector<32x24xf32>
    %41 = arith.maximumf %18, %19 : vector<32x24xf32>
    %42 = arith.maximumf %39, %40 : vector<32x24xf32>
    %43 = arith.maximumf %41, %20 : vector<32x24xf32>
    %44 = arith.maximumf %42, %43 : vector<32x24xf32>
    %45 = tpu.concatenate %24, %31, %38, %44 in 1 : vector<32x24xf32>, vector<32x24xf32>, vector<32x24xf32>, vector<32x24xf32> -> vector<32x96xf32>
    %46 = vector.extract_strided_slice %45 {offsets = [0, 0], sizes = [5, 96], strides = [1, 1]} : vector<32x96xf32> to vector<5x96xf32>
    %cst_4 = arith.constant dense<0xFF800000> : vector<96xf32>
    %47 = vector.multi_reduction <maximumf>, %46, %cst_4 [0] : vector<5x96xf32> to vector<96xf32>
    %48 = vector.shape_cast %47 : vector<96xf32> to vector<1x96xf32>
    %49 = vector.extract_strided_slice %45 {offsets = [1, 0], sizes = [8, 96], strides = [1, 1]} : vector<32x96xf32> to vector<8x96xf32>
    %cst_5 = arith.constant dense<0xFF800000> : vector<96xf32>
    %50 = vector.multi_reduction <maximumf>, %49, %cst_5 [0] : vector<8x96xf32> to vector<96xf32>
    %51 = vector.shape_cast %50 : vector<96xf32> to vector<1x96xf32>
    %52 = vector.extract_strided_slice %45 {offsets = [5, 0], sizes = [8, 96], strides = [1, 1]} : vector<32x96xf32> to vector<8x96xf32>
    %cst_6 = arith.constant dense<0xFF800000> : vector<96xf32>
    %53 = vector.multi_reduction <maximumf>, %52, %cst_6 [0] : vector<8x96xf32> to vector<96xf32>
    %54 = vector.shape_cast %53 : vector<96xf32> to vector<1x96xf32>
    %55 = vector.extract_strided_slice %45 {offsets = [9, 0], sizes = [7, 96], strides = [1, 1]} : vector<32x96xf32> to vector<7x96xf32>
    %cst_7 = arith.constant dense<0xFF800000> : vector<96xf32>
    %56 = vector.multi_reduction <maximumf>, %55, %cst_7 [0] : vector<7x96xf32> to vector<96xf32>
    %57 = vector.shape_cast %56 : vector<96xf32> to vector<1x96xf32>
    %cst_8 = arith.constant 1.000000e+00 : f32
    %58 = vector.broadcast %cst_8 : f32 to vector<1x1xf32>
    %59 = tpu.concatenate %48, %51, %54, %57, %58 in 1 : vector<1x96xf32>, vector<1x96xf32>, vector<1x96xf32>, vector<1x96xf32>, vector<1x1xf32> -> vector<1x385xf32>
    %60 = vector.extract_strided_slice %45 {offsets = [16, 0], sizes = [5, 96], strides = [1, 1]} : vector<32x96xf32> to vector<5x96xf32>
    %cst_9 = arith.constant dense<0xFF800000> : vector<96xf32>
    %61 = vector.multi_reduction <maximumf>, %60, %cst_9 [0] : vector<5x96xf32> to vector<96xf32>
    %62 = vector.shape_cast %61 : vector<96xf32> to vector<1x96xf32>
    %63 = vector.extract_strided_slice %45 {offsets = [17, 0], sizes = [8, 96], strides = [1, 1]} : vector<32x96xf32> to vector<8x96xf32>
    %cst_10 = arith.constant dense<0xFF800000> : vector<96xf32>
    %64 = vector.multi_reduction <maximumf>, %63, %cst_10 [0] : vector<8x96xf32> to vector<96xf32>
    %65 = vector.shape_cast %64 : vector<96xf32> to vector<1x96xf32>
    %66 = vector.extract_strided_slice %45 {offsets = [21, 0], sizes = [8, 96], strides = [1, 1]} : vector<32x96xf32> to vector<8x96xf32>
    %cst_11 = arith.constant dense<0xFF800000> : vector<96xf32>
    %67 = vector.multi_reduction <maximumf>, %66, %cst_11 [0] : vector<8x96xf32> to vector<96xf32>
    %68 = vector.shape_cast %67 : vector<96xf32> to vector<1x96xf32>
    %69 = vector.extract_strided_slice %45 {offsets = [25, 0], sizes = [7, 96], strides = [1, 1]} : vector<32x96xf32> to vector<7x96xf32>
    %cst_12 = arith.constant dense<0xFF800000> : vector<96xf32>
    %70 = vector.multi_reduction <maximumf>, %69, %cst_12 [0] : vector<7x96xf32> to vector<96xf32>
    %71 = vector.shape_cast %70 : vector<96xf32> to vector<1x96xf32>
    %cst_13 = arith.constant 1.000000e+00 : f32
    %72 = vector.broadcast %cst_13 : f32 to vector<1x1xf32>
    %73 = tpu.concatenate %62, %65, %68, %71, %72 in 1 : vector<1x96xf32>, vector<1x96xf32>, vector<1x96xf32>, vector<1x96xf32>, vector<1x1xf32> -> vector<1x385xf32>
    %74 = tpu.concatenate %59, %73 in 0 : vector<1x385xf32>, vector<1x385xf32> -> vector<2x385xf32>
    %c0_14 = arith.constant 0 : index
    %c0_15 = arith.constant 0 : index
    %75 = vector.load %arg2[%c0_14, %c0_15] : memref<385x90xf32, #tpu.memory_space<vmem>>, vector<385x90xf32>
    %cst_16 = arith.constant dense<0.000000e+00> : vector<2x90xf32>
    %76 = tpu.matmul %74, %75, %cst_16 {dimension_numbers = #tpu.dot_dimension_numbers<[1], [0], [0], [1], [0, 0, 1, 1], [], []>, precision = #tpu.contract_precision<fp32>} : vector<2x385xf32>, vector<385x90xf32>, vector<2x90xf32> -> vector<2x90xf32>
    %cst_17 = arith.constant 0.000000e+00 : f32
    %77 = vector.broadcast %cst_17 : f32 to vector<2x90xf32>
    %78 = arith.maximumf %76, %77 : vector<2x90xf32>
    %79 = vector.extract_strided_slice %78 {offsets = [0, 0], sizes = [2, 10], strides = [1, 1]} : vector<2x90xf32> to vector<2x10xf32>
    %80 = vector.extract_strided_slice %78 {offsets = [0, 10], sizes = [2, 10], strides = [1, 1]} : vector<2x90xf32> to vector<2x10xf32>
    %81 = vector.extract_strided_slice %78 {offsets = [0, 20], sizes = [2, 10], strides = [1, 1]} : vector<2x90xf32> to vector<2x10xf32>
    %82 = vector.extract_strided_slice %78 {offsets = [0, 30], sizes = [2, 10], strides = [1, 1]} : vector<2x90xf32> to vector<2x10xf32>
    %83 = vector.extract_strided_slice %78 {offsets = [0, 40], sizes = [2, 10], strides = [1, 1]} : vector<2x90xf32> to vector<2x10xf32>
    %84 = vector.extract_strided_slice %78 {offsets = [0, 50], sizes = [2, 10], strides = [1, 1]} : vector<2x90xf32> to vector<2x10xf32>
    %85 = vector.extract_strided_slice %78 {offsets = [0, 60], sizes = [2, 10], strides = [1, 1]} : vector<2x90xf32> to vector<2x10xf32>
    %86 = vector.extract_strided_slice %78 {offsets = [0, 70], sizes = [2, 10], strides = [1, 1]} : vector<2x90xf32> to vector<2x10xf32>
    %87 = vector.extract_strided_slice %78 {offsets = [0, 80], sizes = [2, 10], strides = [1, 1]} : vector<2x90xf32> to vector<2x10xf32>
    %88 = arith.maximumf %79, %80 : vector<2x10xf32>
    %89 = arith.maximumf %81, %82 : vector<2x10xf32>
    %90 = arith.maximumf %83, %84 : vector<2x10xf32>
    %91 = arith.maximumf %85, %86 : vector<2x10xf32>
    %92 = arith.maximumf %88, %89 : vector<2x10xf32>
    %93 = arith.maximumf %90, %91 : vector<2x10xf32>
    %94 = arith.maximumf %92, %93 : vector<2x10xf32>
    %95 = arith.maximumf %94, %87 : vector<2x10xf32>
    %c0_18 = arith.constant 0 : index
    %c0_19 = arith.constant 0 : index
    %96 = vector.load %arg3[%c0_18, %c0_19] : memref<2x10xf32, #tpu.memory_space<vmem>>, vector<2x10xf32>
    tpu.vector_store %arg3[%c0_18, %c0_19], %95 {strides = array<i32>} : memref<2x10xf32, #tpu.memory_space<vmem>>, vector<2x10xf32>,
    return
  }
}

</mosaic_0001>

<bundles_post_ra>
// kernel: caption_encoder_forward.1
= control target key start
LH: loop header
LB: loop body
LE: loop exit
PB: predicated region body
PF: predicated region fallthrough
CT: control target
= control target key end

     0   :  { %vm255_vm0 = vcmask 1040384   ;;  %v16845_v9 = vmov 0.0   ;;  %vm242_vm1 = vcmask 269312   ;;  %s16841_s0 = inlined_call_operand.vmem [shape: f32[32,545], index: 0, kind: input, shape index: {}]   ;;  %s16842_s1 = inlined_call_operand.vmem [shape: f32[545,384], index: 1, kind: input, shape index: {}]   ;;  %s16843_s2 = inlined_call_operand.vmem [shape: f32[385,90], index: 2, kind: input, shape index: {}]   ;;  %s16844_s3 = inlined_call_operand.hbm [shape: f32[2,10], index: 3, kind: output, shape index: {}]  }
   0x1   :  { %v36_v0 = vld [vmem:[%s16842_s1 + $0x8] sm:$0xff]  ;;  %v39_v1 = vld [vmem:[%s16842_s1 + $0x20] sm:$0xff]  ;;  %v38_v8 = vld [vmem:[%s16842_s1 + $0x18] sm:$0xff]  ;;  %3279 = vmatprep.mubr.f32.mxu1 %v16845_v9 }
   0x2   :  { %v228_v2 = vld [vmem:[%s16842_s1 + $0x608] sm:$0xff]  ;;  %v265_v3 = vand.u32 4294901760, %v36_v0  ;;  %v269_v4 = vand.u32 4294901760, %v39_v1  ;;  %v231_v5 = vld [vmem:[%s16842_s1 + $0x620] sm:$0xff]  ;;  %v271_v12 = vand.u32 4294901760, %v38_v8  ;;  %v230_v14 = vld [vmem:[%s16842_s1 + $0x618] sm:$0xff] }
   0x3   :  { %v3205_v6 = vand.u32 4294901760, %v228_v2  ;;  %v35_v7 = vld [vmem:[%s16842_s1] sm:$0xff]  ;;  %v3209_v10 = vand.u32 4294901760, %v231_v5  ;;  %v42_v15 = vld [vmem:[%s16842_s1 + $0x38] sm:$0xff]  ;;  %v45_v20 = vld [vmem:[%s16842_s1 + $0x50] sm:$0xff]  ;;  %v3211_v30 = vand.u32 4294901760, %v230_v14 }
   0x4   :  { %v267_v11 = vand.u32 4294901760, %v35_v7  ;;  %v227_v13 = vld [vmem:[%s16842_s1 + $0x600] sm:$0xff]  ;;  %v11420_v16 = vpack.c.bf16 %v269_v4, %v265_v3  ;;  %v11422_v17 = vsub.f32 %v36_v0, %v265_v3  ;;  %v11424_v18 = vsub.f32 %v39_v1, %v269_v4  ;;  %v234_v21 = vld [vmem:[%s16842_s1 + $0x638] sm:$0xff]  ;;  %v237_v22 = vld [vmem:[%s16842_s1 + $0x650] sm:$0xff] }
   0x5   :  { %v11426_v19 = vsub.f32 %v228_v2, %v3205_v6  ;;  %v11437_v23 = vpack.c.bf16 %v3209_v10, %v3205_v6  ;;  %v11439_v24 = vsub.f32 %v231_v5, %v3209_v10  ;;  %v41_v27 = vld [vmem:[%s16842_s1 + $0x30] sm:$0xff]  ;;  %v11449_v28 = vsub.f32 %v38_v8, %v271_v12  ;;  %v44_v32 = vld [vmem:[%s16842_s1 + $0x48] sm:$0xff]  ;;  %v51_v44 = vld [vmem:[%s16842_s1 + $0x80] sm:$0xff] }
   0x6   :  { %17667 = vst [vmem:[#allocation5_spill] sm:$0xff] %v11420_v16  ;;  %17668 = vst [vmem:[#allocation6_spill] sm:$0xff] %v11422_v17  ;;  %v11441_v25 = vpack.c.bf16 %v271_v12, %v267_v11  ;;  %v11443_v26 = vsub.f32 %v35_v7, %v267_v11  ;;  %9564 = vmatprep.subr.bf16.mxu0 %v11420_v16  ;;  %v3207_v29 = vand.u32 4294901760, %v227_v13  ;;  %v273_v31 = vand.u32 4294901760, %v42_v15  ;;  %v233_v37 = vld [vmem:[%s16842_s1 + $0x630] sm:$0xff]  ;;  %v236_v38 = vld [vmem:[%s16842_s1 + $0x648] sm:$0xff] }
   0x7   :  { %17669 = vst [vmem:[#allocation7_spill] sm:$0xff] %v11424_v18  ;;  %17670 = vst [vmem:[#allocation8_spill] sm:$0xff] %v11426_v19  ;;  %10332 = vmatprep.subr.bf16.mxu1 %v11437_v23  ;;  %v277_v33 = vand.u32 4294901760, %v45_v20  ;;  %v3213_v34 = vand.u32 4294901760, %v234_v21  ;;  %v3217_v35 = vand.u32 4294901760, %v237_v22  ;;  %v275_v36 = vand.u32 4294901760, %v41_v27 }
   0x8   :  { %17671 = vst [vmem:[#allocation9_spill] sm:$0xff] %v11437_v23  ;;  %17672 = vst [vmem:[#allocation10_spill] sm:$0xff] %v11439_v24  ;;  %9566 = vmatpush1.bf16.msra.mxu0 %v11441_v25  ;;  %v11462_v39 = vpack.c.bf16 %v3211_v30, %v3207_v29  ;;  %v11464_v40 = vsub.f32 %v227_v13, %v3207_v29  ;;  %v11466_v41 = vsub.f32 %v230_v14, %v3211_v30  ;;  %v48_v43 = vld [vmem:[%s16842_s1 + $0x68] sm:$0xff]  ;;  %v47_v54 = vld [vmem:[%s16842_s1 + $0x60] sm:$0xff] }
   0x9   :  { %17673 = vst [vmem:[#allocation11_spill] sm:$0xff] %v11441_v25  ;;  %17674 = vst [vmem:[#allocation12_spill] sm:$0xff] %v11443_v26  ;;  %v11468_v42 = vsub.f32 %v42_v15, %v273_v31  ;;  %v240_v45 = vld [vmem:[%s16842_s1 + $0x668] sm:$0x1]  ;;  %v11479_v46 = vpack.c.bf16 %v277_v33, %v273_v31  ;;  %v11481_v47 = vsub.f32 %v45_v20, %v277_v33  ;;  %v279_v51 = vand.u32 4294901760, %v44_v32  ;;  %v50_v55 = vld [vmem:[%s16842_s1 + $0x78] sm:$0xff] }
   0xa   :  { %17675 = vst [vmem:[#allocation13_spill] sm:$0xff] %v11449_v28  ;;  %17676 = vst [vmem:[#allocation14_spill] sm:$0xff] %v11462_v39  ;;  %v11483_v48 = vpack.c.bf16 %v3217_v35, %v3213_v34  ;;  %v11485_v49 = vsub.f32 %v234_v21, %v3213_v34  ;;  %10334 = vmatpush1.bf16.msra.mxu1 %v11462_v39  ;;  %v11488_v50 = vsub.f32 %v237_v22, %v3217_v35  ;;  %v239_v60 = vld [vmem:[%s16842_s1 + $0x660] sm:$0x1]  ;;  %v85_v1 = vld [vmem:[%s16842_s1 + $0x190] sm:$0xff] }
   0xb   :  { %17677 = vst [vmem:[#allocation15_spill] sm:$0xff] %v11464_v40  ;;  %17678 = vst [vmem:[#allocation16_spill] sm:$0xff] %v11466_v41  ;;  %v11490_v52 = vsub.f32 %v41_v27, %v275_v36  ;;  %v3215_v53 = vand.u32 4294901760, %v233_v37  ;;  %9568 = vmatprep.subr.bf16.mxu0 %v11479_v46  ;;  %v3219_v56 = vand.u32 4294901760, %v236_v38  ;;  %v281_v57 = vand.u32 4294901760, %v48_v43  ;;  %v88_v2 = vld [vmem:[%s16842_s1 + $0x1a8] sm:$0xff] }
   0xc   :  { %17679 = vst [vmem:[#allocation17_spill] sm:$0xff] %v11468_v42  ;;  %17680 = vst [vmem:[#allocation18_spill] sm:$0xff] %v11479_v46  ;;  %10336 = vmatprep.subr.bf16.mxu1 %v11483_v48  ;;  %v285_v58 = vand.u32 4294901760, %v51_v44  ;;  %v11501_v59 = vsel %vm255_vm0, %v240_v45, 0  ;;  %v11506_v61 = vpack.c.bf16 %v279_v51, %v275_v36  ;;  %v11508_v62 = vsub.f32 %v44_v32, %v279_v51  ;;  %v19_v3 = vld [vmem:[%s16841_s0 + $0x20] sm:$0xff]  ;;  %v37_v13 = vld [vmem:[%s16842_s1 + $0x10] sm:$0xff] }
   0xd   :  { %17681 = vst [vmem:[#allocation19_spill] sm:$0xff] %v11481_v47  ;;  %17682 = vst [vmem:[#allocation20_spill] sm:$0xff] %v11483_v48  ;;  %v11510_v63 = vsub.f32 %v233_v37, %v3215_v53  ;;  %v11513_v0 = vand.u32 4294901760, %v11501_v59  ;;  %v11524_v4 = vpack.c.bf16 %v3219_v56, %v3215_v53  ;;  %v11526_v5 = vsub.f32 %v236_v38, %v3219_v56  ;;  %v40_v14 = vld [vmem:[%s16842_s1 + $0x28] sm:$0xff]  ;;  %v54_v27 = vld [vmem:[%s16842_s1 + $0x98] sm:$0xff] }
   0xe   :  { %17683 = vst [vmem:[#allocation21_spill] sm:$0xff] %v11485_v49  ;;  %17684 = vst [vmem:[#allocation22_spill] sm:$0xff] %v11488_v50  ;;  %v11528_v6 = vpack.c.bf16 %v285_v58, %v281_v57  ;;  %v11530_v7 = vsub.f32 %v48_v43, %v281_v57  ;;  %9570 = vmatpush1.bf16.msra.mxu0 %v11506_v61  ;;  %v11533_v8 = vsub.f32 %v51_v44, %v285_v58  ;;  %v57_v29 = vld [vmem:[%s16842_s1 + $0xb0] sm:$0xff]  ;;  %v56_v35 = vld [vmem:[%s16842_s1 + $0xa8] sm:$0xff] }
   0xf   :  { %17685 = vst [vmem:[#allocation23_spill] sm:$0xff] %v11490_v52  ;;  %17686 = vst [vmem:[#allocation24_spill] sm:$0xff] %v11501_v59  ;;  %v283_v10 = vand.u32 4294901760, %v47_v54  ;;  %v287_v11 = vand.u32 4294901760, %v50_v55  ;;  %v11536_v12 = vsel %vm255_vm0, %v239_v60, 0  ;;  %10338 = vmatpush1.bf16.msra.mxu1 %v11524_v4  ;;  %v3970_v20 = vand.u32 4294901760, %v85_v1 }
  0x10   :  { %17687 = vst [vmem:[#allocation25_spill] sm:$0xff] %v11506_v61  ;;  %17688 = vst [vmem:[#allocation26_spill] sm:$0xff] %v11508_v62  ;;  %9572 = vmatprep.subr.bf16.mxu0 %v11528_v6  ;;  %v11547_v15 = vand.u32 4294901760, %v11536_v12  ;;  %v3973_v21 = vand.u32 4294901760, %v88_v2  ;;  %v244_v22 = vsel %vm242_vm1, %v19_v3, 0  ;;  %3222 = vmatprep.subr.mxu1 %v11513_v0  ;;  %v53_v34 = vld [vmem:[%s16842_s1 + $0x90] sm:$0xff] }
  0x11   :  { %17689 = vst [vmem:[#allocation27_spill] sm:$0xff] %v11510_v63  ;;  %17690 = vst [vmem:[#allocation28_spill] sm:$0xff] %v11513_v0  ;;  %v11557_v30 = vpack.c.bf16 %v287_v11, %v283_v10  ;;  %v11559_v31 = vsub.f32 %v47_v54, %v283_v10  ;;  %v11561_v32 = vsub.f32 %v50_v55, %v287_v11  ;;  %v11563_v33 = vand.u32 4294901760, %v244_v22  ;;  %v91_v36 = vld [vmem:[%s16842_s1 + $0x1c0] sm:$0xff]  ;;  %v94_v57 = vld [vmem:[%s16842_s1 + $0x1d8] sm:$0xff] }
  0x12   :  { %17691 = vst [vmem:[#allocation29_spill] sm:$0xff] %v11524_v4  ;;  %17692 = vst [vmem:[#allocation30_spill] sm:$0xff] %v11526_v5  ;;  %v11574_v37 = vpack.c.bf16 %v3973_v21, %v3970_v20  ;;  %v11576_v38 = vsub.f32 %v85_v1, %v3970_v20  ;;  %v11578_v43 = vsub.f32 %v88_v2, %v3973_v21  ;;  %v3922_v45 = vand.u32 4294901760, %v37_v13  ;;  %v43_v10 = vld [vmem:[%s16842_s1 + $0x40] sm:$0xff]  ;;  %v46_v11 = vld [vmem:[%s16842_s1 + $0x58] sm:$0xff] }
  0x13   :  { %17693 = vst [vmem:[#allocation31_spill] sm:$0xff] %v11528_v6  ;;  %17694 = vst [vmem:[#allocation32_spill] sm:$0xff] %v11530_v7  ;;  %9574 = vmatpush1.bf16.msra.mxu0 %v11557_v30  ;;  %v11582_v44 = vsub.f32 %v244_v22, %v11563_v33  ;;  %v3925_v51 = vand.u32 4294901760, %v40_v14  ;;  %v289_v53 = vand.u32 4294901760, %v54_v27  ;;  %3224 = vmatpush1.msra.mxu1 %v11547_v15  ;;  %v293_v54 = vand.u32 4294901760, %v57_v29  ;;  %v60_v20 = vld [vmem:[%s16842_s1 + $0xc8] sm:$0xff] }
  0x14   :  { %17695 = vst [vmem:[#allocation33_spill] sm:$0xff] %v11533_v8  ;;  %17696 = vst [vmem:[#allocation34_spill] sm:$0xff] %v11536_v12  ;;  %v291_v55 = vand.u32 4294901760, %v53_v34  ;;  %v295_v56 = vand.u32 4294901760, %v56_v35  ;;  %v3976_v58 = vand.u32 4294901760, %v91_v36  ;;  %10380 = vmatprep.subr.bf16.mxu1 %v11574_v37  ;;  %v11594_v2 = vsub.f32 %v37_v13, %v3922_v45  ;;  %v59_v39 = vld [vmem:[%s16842_s1 + $0xc0] sm:$0xff] }
  0x15   :  { %17697 = vst [vmem:[#allocation35_spill] sm:$0xff] %v11547_v15  ;;  %17698 = vst [vmem:[#allocation36_spill] sm:$0xff] %v11557_v30  ;;  %v11590_v60 = vand.u32 4294901760, %v11582_v44  ;;  %v11592_v1 = vpack.c.bf16 %v3925_v51, %v3922_v45  ;;  %v11596_v3 = vsub.f32 %v40_v14, %v3925_v51  ;;  %v11607_v21 = vpack.c.bf16 %v293_v54, %v289_v53  ;;  %v63_v45 = vld [vmem:[%s16842_s1 + $0xe0] sm:$0xff]  ;;  %v62_v23 = vld [vmem:[%s16842_s1 + $0xd8] sm:$0xff] }
  0x16   :  { %17699 = vst [vmem:[#allocation37_spill] sm:$0xff] %v11559_v31  ;;  %17700 = vst [vmem:[#allocation38_spill] sm:$0xff] %v11561_v32  ;;  %v11609_v22 = vsub.f32 %v54_v27, %v289_v53  ;;  %v11611_v13 = vsub.f32 %v57_v29, %v293_v54  ;;  %v11613_v14 = vpack.c.bf16 %v295_v56, %v291_v55  ;;  %v3979_v48 = vand.u32 4294901760, %v94_v57  ;;  %v100_v12 = vld [vmem:[%s16842_s1 + $0x208] sm:$0xff]  ;;  %v49_v15 = vld [vmem:[%s16842_s1 + $0x70] sm:$0xff] }
  0x17   :  { %17701 = vst [vmem:[#allocation39_spill] sm:$0xff] %v11563_v33  ;;  %17702 = vst [vmem:[#allocation40_spill] sm:$0xff] %v11574_v37  ;;  %v3283_v51 = vsub.f32 %v11582_v44, %v11590_v60  ;;  %v11620_v9 = vsub.f32 %v53_v34, %v291_v55  ;;  %v11622_v4 = vsub.f32 %v56_v35, %v295_v56  ;;  %9576 = vmatprep.subr.bf16.mxu0 %v11607_v21  ;;  %v97_v34 = vld [vmem:[%s16842_s1 + $0x1f0] sm:$0xff]  ;;  %v68_v19 = vld [vmem:[%s16842_s1 + $0x108] sm:$0xff] }
  0x18   :  { %17703 = vst [vmem:[#allocation41_spill] sm:$0xff] %v11576_v38  ;;  %17704 = vst [vmem:[#allocation42_spill] sm:$0xff] %v11578_v43  ;;  %v11625_v27 = vsub.f32 %v91_v36, %v3976_v58  ;;  %v3928_v29 = vand.u32 4294901760, %v43_v10  ;;  %v3931_v53 = vand.u32 4294901760, %v46_v11  ;;  %v297_v54 = vand.u32 4294901760, %v60_v20  ;;  %9578 = vmatpush1.bf16.msra.mxu0 %v11613_v14  ;;  %v65_v41 = vld [vmem:[%s16842_s1 + $0xf0] sm:$0xff] }
  0x19   :  { %17705 = vst [vmem:[#allocation43_spill] sm:$0xff] %v11582_v44  ;;  %17706 = vst [vmem:[#allocation44_spill] sm:$0xff] %v11590_v60  ;;  %v11636_v35 = vand.u32 4294901760, %v3283_v51  ;;  %v11639_v36 = vpack.c.bf16 %v3979_v48, %v3976_v58  ;;  %v11641_v55 = vsub.f32 %v94_v57, %v3979_v48  ;;  %v301_v56 = vand.u32 4294901760, %v63_v45  ;;  %v52_v51 = vld [vmem:[%s16842_s1 + $0x88] sm:$0xff]  ;;  %v66_v57 = vld [vmem:[%s16842_s1 + $0xf8] sm:$0xff] }
  0x1a   :  { %17707 = vst [vmem:[#allocation45_spill] sm:$0xff] %v11592_v1  ;;  %17708 = vst [vmem:[#allocation46_spill] sm:$0xff] %v11594_v2  ;;  %v11652_v59 = vpack.c.bf16 %v3931_v53, %v3928_v29  ;;  %v11654_v0 = vsub.f32 %v43_v10, %v3928_v29  ;;  %v11656_v58 = vsub.f32 %v46_v11, %v3931_v53  ;;  %v299_v50 = vand.u32 4294901760, %v59_v39  ;;  %v103_v60 = vld [vmem:[%s16842_s1 + $0x220] sm:$0xff]  ;;  %v106_v44 = vld [vmem:[%s16842_s1 + $0x238] sm:$0xff] }
  0x1b   :  { %17709 = vst [vmem:[#allocation47_spill] sm:$0xff] %v11596_v3  ;;  %17710 = vst [vmem:[#allocation48_spill] sm:$0xff] %v11607_v21  ;;  %v11658_v48 = vsub.f32 %v60_v20, %v297_v54  ;;  %3285 = vmatmul.mubr.f32.vlgmr.msra.gmra.mrb[0].mxu1 %v11636_v35  ;;  %v11664_v5 = vpack.c.bf16 %v301_v56, %v297_v54  ;;  %v11666_v63 = vsub.f32 %v63_v45, %v301_v56  ;;  %v69_v20 = vld [vmem:[%s16842_s1 + $0x110] sm:$0xff]  ;;  %v17726_v54 = vmov 0.0   ;;  %v72_v6 = vld [vmem:[%s16842_s1 + $0x128] sm:$0xff] }
  0x1c   :  { %17711 = vst [vmem:[#allocation49_spill] sm:$0xff] %v11609_v22  ;;  %17712 = vst [vmem:[#allocation50_spill] sm:$0xff] %v11611_v13  ;;  %v303_v49 = vand.u32 4294901760, %v62_v23  ;;  %10382 = vmatpush3.bf16.msra.mxu1 %v11592_v1  ;;  %v3982_v10 = vand.u32 4294901760, %v97_v34  ;;  %v3985_v29 = vand.u32 4294901760, %v100_v12  ;;  %v3934_v11 = vand.u32 4294901760, %v49_v15  ;;  %3290 = vmatprep.mubr.f32.mxu1 %v17726_v54 }
  0x1d   :  { %17713 = vst [vmem:[#allocation51_spill] sm:$0xff] %v11613_v14  ;;  %17714 = vst [vmem:[#allocation52_spill] sm:$0xff] %v11620_v9  ;;  %v3937_v53 = vand.u32 4294901760, %v52_v51  ;;  %10384 = vmatprep.subr.bf16.mxu1 %v11639_v36  ;;  %9580 = vmatprep.subr.bf16.mxu0 %v11664_v5  ;;  %v11680_v56 = vsub.f32 %v59_v39, %v299_v50  ;;  %v305_v24 = vand.u32 4294901760, %v66_v57  ;;  %v3988_v21 = vand.u32 4294901760, %v103_v60  ;;  %v74_v61 = vld [vmem:[%s16842_s1 + $0x138] sm:$0xff] }
  0x1e   :  { %17715 = vst [vmem:[#allocation53_spill] sm:$0xff] %v11622_v4  ;;  %17716 = vst [vmem:[#allocation54_spill] sm:$0xff] %v11625_v27  ;;  %v11678_v45 = vpack.c.bf16 %v303_v49, %v299_v50  ;;  %v11682_v40 = vsub.f32 %v62_v23, %v303_v49  ;;  %v11693_v33 = vpack.c.bf16 %v3985_v29, %v3982_v10  ;;  %v55_v49 = vld [vmem:[%s16842_s1 + $0xa0] sm:$0xff]  ;;  %v58_v50 = vld [vmem:[%s16842_s1 + $0xb8] sm:$0xff]  ;;  %v3991_v30 = vand.u32 4294901760, %v106_v44 }
  0x1f   :  { %17717 = vst [vmem:[#allocation55_spill] sm:$0xff] %v11636_v35  ;;  %17718 = vst [vmem:[#allocation56_spill] sm:$0xff] %v11639_v36  ;;  %v11695_v35 = vsub.f32 %v97_v34, %v3982_v10  ;;  %v11697_v39 = vsub.f32 %v100_v12, %v3985_v29  ;;  %v11699_v23 = vpack.c.bf16 %v3937_v53, %v3934_v11  ;;  %v309_v34 = vand.u32 4294901760, %v69_v20  ;;  %v109_v25 = vld [vmem:[%s16842_s1 + $0x250] sm:$0xff]  ;;  %v112_v16 = vld [vmem:[%s16842_s1 + $0x268] sm:$0xff] }
  0x20   :  { %17719 = vst [vmem:[#allocation57_spill] sm:$0xff] %v11641_v55  ;;  %17720 = vst [vmem:[#allocation58_spill] sm:$0xff] %v11652_v59  ;;  %9582 = vmatpush1.bf16.msra.mxu0 %v11678_v45  ;;  %v11710_v14 = vsub.f32 %v52_v51, %v3937_v53  ;;  %v11712_v10 = vsub.f32 %v66_v57, %v305_v24  ;;  %10386 = vmatpush3.bf16.msra.mxu1 %v11652_v59  ;;  %v307_v12 = vand.u32 4294901760, %v65_v41  ;;  %v75_v57 = vld [vmem:[%s16842_s1 + $0x140] sm:$0xff] }
  0x21   :  { %17721 = vst [vmem:[#allocation59_spill] sm:$0xff] %v11654_v0  ;;  %17722 = vst [vmem:[#allocation60_spill] sm:$0xff] %v11656_v58  ;;  %v311_v29 = vand.u32 4294901760, %v68_v19  ;;  %10388 = vmatprep.subr.bf16.mxu1 %v11693_v33  ;;  %v3940_v51 = vand.u32 4294901760, %v55_v49  ;;  %v71_v53 = vld [vmem:[%s16842_s1 + $0x120] sm:$0xff]  ;;  %v313_v36 = vand.u32 4294901760, %v72_v6 }
  0x22   :  { %17723 = vst [vmem:[#allocation61_spill] sm:$0xff] %v11658_v48  ;;  %17724 = vst [vmem:[#allocation62_spill] sm:$0xff] %v11664_v5  ;;  %v11708_v5 = vsub.f32 %v49_v15, %v3934_v11  ;;  %v11721_v15 = vsub.f32 %v69_v20, %v309_v34  ;;  %v3943_v11 = vand.u32 4294901760, %v58_v50  ;;  %v317_v1 = vand.u32 4294901760, %v75_v57 }
  0x23   :  { %17725 = vst [vmem:[#allocation63_spill] sm:$0xff] %v11666_v63  ;;  %17727 = vst [vmem:[#allocation64_spill] sm:$0xff] %v11678_v45  ;;  %v11719_v45 = vpack.c.bf16 %v309_v34, %v305_v24  ;;  %v11732_v46 = vpack.c.bf16 %v311_v29, %v307_v12  ;;  %v11734_v24 = vsub.f32 %v65_v41, %v307_v12  ;;  %v315_v37 = vand.u32 4294901760, %v71_v53 }
  0x24   :  { %17728 = vst [vmem:[#allocation65_spill] sm:$0xff] %v11680_v56  ;;  %17729 = vst [vmem:[#allocation66_spill] sm:$0xff] %v11682_v40  ;;  %v11736_v20 = vsub.f32 %v68_v19, %v311_v29  ;;  %v11738_v34 = vpack.c.bf16 %v3991_v30, %v3988_v21  ;;  %v11750_v41 = vsub.f32 %v103_v60, %v3988_v21  ;;  %10390 = vmatpush3.bf16.msra.mxu1 %v11699_v23  ;;  %v64_v60 = vld [vmem:[%s16842_s1 + $0xe8] sm:$0xff] }
  0x25   :  { %17730 = vst [vmem:[#allocation67_spill] sm:$0xff] %v11693_v33  ;;  %17731 = vst [vmem:[#allocation68_spill] sm:$0xff] %v11695_v35  ;;  %v61_v33 = vld [vmem:[%s16842_s1 + $0xd0] sm:$0xff]  ;;  %9584 = vmatprep.subr.bf16.mxu0 %v11719_v45  ;;  %v11752_v19 = vsub.f32 %v106_v44, %v3991_v30  ;;  %v11754_v12 = vpack.c.bf16 %v3943_v11, %v3940_v51  ;;  %v11756_v29 = vsub.f32 %v55_v49, %v3940_v51  ;;  %v78_v51 = vld [vmem:[%s16842_s1 + $0x158] sm:$0xff] }
  0x26   :  { %17732 = vst [vmem:[#allocation69_spill] sm:$0xff] %v11697_v39  ;;  %17733 = vst [vmem:[#allocation70_spill] sm:$0xff] %v11699_v23  ;;  %9586 = vmatpush1.bf16.msra.mxu0 %v11732_v46  ;;  %v11760_v59 = vsub.f32 %v58_v50, %v3943_v11  ;;  %10392 = vmatprep.subr.bf16.mxu1 %v11738_v34  ;;  %v319_v30 = vand.u32 4294901760, %v74_v61  ;;  %v3994_v44 = vand.u32 4294901760, %v109_v25  ;;  %v3997_v21 = vand.u32 4294901760, %v112_v16  ;;  %v81_v50 = vld [vmem:[%s16842_s1 + $0x170] sm:$0xff] }
  0x27   :  { %17734 = vst [vmem:[#allocation71_spill] sm:$0xff] %v11708_v5  ;;  %17735 = vst [vmem:[#allocation72_spill] sm:$0xff] %v11710_v14  ;;  %v3946_v49 = vand.u32 4294901760, %v61_v33  ;;  %v11772_v11 = vpack.c.bf16 %v317_v1, %v313_v36  ;;  %v11778_v23 = vsub.f32 %v71_v53, %v315_v37 }
  0x28   :  { %17736 = vst [vmem:[#allocation73_spill] sm:$0xff] %v11712_v10  ;;  %17737 = vst [vmem:[#allocation74_spill] sm:$0xff] %v11719_v45  ;;  %v11776_v45 = vsub.f32 %v75_v57, %v317_v1  ;;  %v11793_v1 = vpack.c.bf16 %v3997_v21, %v3994_v44  ;;  %v118_v57 = vld [vmem:[%s16842_s1 + $0x298] sm:$0xff]  ;;  %10394 = vmatpush3.bf16.msra.mxu1 %v11754_v12  ;;  %v11802_v53 = vsub.f32 %v112_v16, %v3997_v21 }
  0x29   :  { %17738 = vst [vmem:[#allocation75_spill] sm:$0xff] %v11721_v15  ;;  %17739 = vst [vmem:[#allocation76_spill] sm:$0xff] %v11732_v46  ;;  %v11774_v46 = vsub.f32 %v72_v6, %v313_v36  ;;  %v11789_v15 = vpack.c.bf16 %v319_v30, %v315_v37  ;;  %v11791_v6 = vsub.f32 %v74_v61, %v319_v30  ;;  %9588 = vmatprep.subr.bf16.mxu0 %v11772_v11  ;;  %v86_v10 = vld [vmem:[%s16842_s1 + $0x198] sm:$0xff] }
  0x2a   :  { %17740 = vst [vmem:[#allocation77_spill] sm:$0xff] %v11734_v24  ;;  %17741 = vst [vmem:[#allocation78_spill] sm:$0xff] %v11736_v20  ;;  %v80_v20 = vld [vmem:[%s16842_s1 + $0x168] sm:$0xff]  ;;  %v115_v24 = vld [vmem:[%s16842_s1 + $0x280] sm:$0xff]  ;;  %v11795_v36 = vsub.f32 %v109_v25, %v3994_v44  ;;  %v321_v37 = vand.u32 4294901760, %v78_v51  ;;  %10396 = vmatprep.subr.bf16.mxu1 %v11793_v1  ;;  %v325_v25 = vand.u32 4294901760, %v81_v50 }
  0x2b   :  { %17742 = vst [vmem:[#allocation79_spill] sm:$0xff] %v11738_v34  ;;  %17743 = vst [vmem:[#allocation80_spill] sm:$0xff] %v11750_v41  ;;  %v77_v34 = vld [vmem:[%s16842_s1 + $0x150] sm:$0xff]  ;;  %9590 = vmatpush1.bf16.msra.mxu0 %v11789_v15  ;;  %v327_v30 = vand.u32 4294901760, %v80_v20  ;;  %v4000_v44 = vand.u32 4294901760, %v115_v24 }
  0x2c   :  { %17744 = vst [vmem:[#allocation81_spill] sm:$0xff] %v11752_v19  ;;  %17745 = vst [vmem:[#allocation82_spill] sm:$0xff] %v11754_v12  ;;  %v323_v61 = vand.u32 4294901760, %v77_v34  ;;  %v24_v12 = vld [vmem:[%s16841_s0 + $0x48] sm:$0xff]  ;;  %v11815_v21 = vsub.f32 %v78_v51, %v321_v37  ;;  %v87_v51 = vld [vmem:[%s16842_s1 + $0x1a0] sm:$0xff] }
  0x2d   :  { %17746 = vst [vmem:[#allocation83_spill] sm:$0xff] %v11756_v29  ;;  %17747 = vst [vmem:[#allocation84_spill] sm:$0xff] %v11760_v59 }
  0x2e   :  { %17748 = vst [vmem:[#allocation85_spill] sm:$0xff] %v11772_v11  ;;  %17749 = vst [vmem:[#allocation86_spill] sm:$0xff] %v11774_v46  ;;  %v70_v11 = vld [vmem:[%s16842_s1 + $0x118] sm:$0xff]  ;;  %v11826_v46 = vpack.c.bf16 %v325_v25, %v321_v37 }
  0x2f   :  { %17750 = vst [vmem:[#allocation87_spill] sm:$0xff] %v11776_v45  ;;  %17751 = vst [vmem:[#allocation88_spill] sm:$0xff] %v11778_v23  ;;  %v3949_v23 = vand.u32 4294901760, %v64_v60  ;;  %v11804_v45 = vsub.f32 %v61_v33, %v3946_v49  ;;  %v4003_v33 = vand.u32 4294901760, %v118_v57 }
  0x30   :  { %17752 = vst [vmem:[#allocation89_spill] sm:$0xff] %v11789_v15  ;;  %17753 = vst [vmem:[#allocation90_spill] sm:$0xff] %v11791_v6  ;;  %v67_v15 = vld [vmem:[%s16842_s1 + $0x100] sm:$0xff] }
  0x31   :  { %17754 = vst [vmem:[#allocation91_spill] sm:$0xff] %v11793_v1  ;;  %17755 = vst [vmem:[#allocation92_spill] sm:$0xff] %v11795_v36  ;;  %v11811_v6 = vpack.c.bf16 %v3949_v23, %v3946_v49  ;;  %v11813_v16 = vsub.f32 %v64_v60, %v3949_v23  ;;  %v84_v1 = vld [vmem:[%s16842_s1 + $0x188] sm:$0xff]  ;;  %v11828_v49 = vsub.f32 %v81_v50, %v325_v25 }
  0x32   :  { %17756 = vst [vmem:[#allocation93_spill] sm:$0xff] %v11802_v53  ;;  %17757 = vst [vmem:[#allocation94_spill] sm:$0xff] %v11804_v45  ;;  %v11830_v23 = vpack.c.bf16 %v327_v30, %v323_v61  ;;  %v11832_v60 = vsub.f32 %v77_v34, %v323_v61  ;;  %v11844_v50 = vsub.f32 %v80_v20, %v327_v30 }
  0x33   :  { %17758 = vst [vmem:[#allocation95_spill] sm:$0xff] %v11811_v6  ;;  %17759 = vst [vmem:[#allocation96_spill] sm:$0xff] %v11813_v16  ;;  %10398 = vmatpush3.bf16.msra.mxu1 %v11811_v6  ;;  %v11846_v37 = vpack.c.bf16 %v4003_v33, %v4000_v44  ;;  %v11848_v34 = vsub.f32 %v115_v24, %v4000_v44  ;;  %v11850_v25 = vsub.f32 %v118_v57, %v4003_v33 }
  0x34   :  { %17760 = vst [vmem:[#allocation97_spill] sm:$0xff] %v11815_v21  ;;  %17761 = vst [vmem:[#allocation98_spill] sm:$0xff] %v11826_v46  ;;  %v83_v21 = vld [vmem:[%s16842_s1 + $0x180] sm:$0xff] }
  0x35   :  { %17762 = vst [vmem:[#allocation99_spill] sm:$0xff] %v11828_v49  ;;  %17763 = vst [vmem:[#allocation100_spill] sm:$0xff] %v11830_v23 }
  0x36   :  { %17764 = vst [vmem:[#allocation101_spill] sm:$0xff] %v11832_v60  ;;  %17765 = vst [vmem:[#allocation102_spill] sm:$0xff] %v11844_v50 }
  0x37   :  { %17766 = vst [vmem:[#allocation103_spill] sm:$0xff] %v11846_v37  ;;  %17767 = vst [vmem:[#allocation104_spill] sm:$0xff] %v11848_v34 }
  0x38   :  { %17768 = vst [vmem:[#allocation105_spill] sm:$0xff] %v11850_v25 }
  0x39   :  { %8 = vsyncpa [#allocation3], 0  ;;  %9592 = vmatprep.subr.bf16.mxu0 %v11826_v46  ;;  %v247_v61 = vsel %vm242_vm1, %v24_v12, 0  ;;  %v3952_v60 = vand.u32 4294901760, %v67_v15  ;;  %v3955_v49 = vand.u32 4294901760, %v70_v11  ;;  %v329_v40 = vand.u32 4294901760, %v84_v1  ;;  %10400 = vmatprep.subr.bf16.mxu1 %v11846_v37 }
  0x3a   :  { %9594 = vmatpush1.bf16.msra.mxu0 %v11830_v23  ;;  %v11856_v20 = vand.u32 4294901760, %v247_v61  ;;  %v333_v30 = vand.u32 4294901760, %v87_v51  ;;  %v331_v6 = vand.u32 4294901760, %v83_v21  ;;  %v335_v24 = vand.u32 4294901760, %v86_v10  ;;  %v121_v57 = vld [vmem:[%s16842_s1 + $0x2b0] sm:$0xff]  ;;  %v124_v12 = vld [vmem:[%s16842_s1 + $0x2c8] sm:$0xff] }
  0x3b   :  { %v11864_v44 = vpack.c.bf16 %v3955_v49, %v3952_v60  ;;  %v11866_v33 = vsub.f32 %v67_v15, %v3952_v60  ;;  %v11868_v23 = vsub.f32 %v70_v11, %v3955_v49  ;;  %v11870_v46 = vsub.f32 %v84_v1, %v329_v40  ;;  %v29_v37 = vld [vmem:[%s16841_s0 + $0x70] sm:$0xff]  ;;  %v76_v56 = vld [vmem:[%s16842_s1 + $0x148] sm:$0xff]  ;;  %v90_v4 = vld [vmem:[%s16842_s1 + $0x1b8] sm:$0xff]  ;;  %s11359_s29 = smov 80   ;;  %s11360_s30 = smov 32  }
  0x3c   :  { %17769 = vst [vmem:[#allocation106_spill] sm:$0xff] %v11856_v20  ;;  %v73_v50 = vld [vmem:[%s16842_s1 + $0x130] sm:$0xff]  ;;  %v11882_v63 = vsub.f32 %v247_v61, %v11856_v20  ;;  %v11884_v15 = vpack.c.bf16 %v333_v30, %v329_v40  ;;  %v11886_v11 = vsub.f32 %v87_v51, %v333_v30  ;;  %v11888_v1 = vpack.c.bf16 %v335_v24, %v331_v6  ;;  %s11362_s4 = smov 56   ;;  %s11368_s19 = smov 108  }
  0x3d   :  { %17770 = vst [vmem:[#allocation107_spill] sm:$0xff] %v11864_v44  ;;  %17771 = vst [vmem:[#allocation108_spill] sm:$0xff] %v11866_v33  ;;  %10402 = vmatpush3.bf16.msra.mxu1 %v11864_v44  ;;  %v11891_v49 = vsub.f32 %v83_v21, %v331_v6  ;;  %v11893_v60 = vsub.f32 %v86_v10, %v335_v24  ;;  %v4009_v48 = vand.u32 4294901760, %v124_v12  ;;  %v250_v40 = vsel %vm242_vm1, %v29_v37, 0  ;;  %v93_v10 = vld [vmem:[%s16842_s1 + $0x1d0] sm:$0xff]  ;;  %v92_v37 = vld [vmem:[%s16842_s1 + $0x1c8] sm:$0xff] }
  0x3e   :  { %17772 = vst [vmem:[#allocation109_spill] sm:$0xff] %v11868_v23  ;;  %17773 = vst [vmem:[#allocation110_spill] sm:$0xff] %v11870_v46  ;;  %v4006_v46 = vand.u32 4294901760, %v121_v57  ;;  %v11899_v61 = vand.u32 4294901760, %v11882_v63  ;;  %9596 = vmatprep.subr.bf16.mxu0 %v11884_v15  ;;  %v3958_v51 = vand.u32 4294901760, %v73_v50  ;;  %v3961_v30 = vand.u32 4294901760, %v76_v56 }
  0x3f   :  { %17774 = vst [vmem:[#allocation111_spill] sm:$0xff] %v11882_v63  ;;  %17775 = vst [vmem:[#allocation112_spill] sm:$0xff] %v11884_v15  ;;  %v89_v6 = vld [vmem:[%s16842_s1 + $0x1b0] sm:$0xff]  ;;  %9598 = vmatpush1.bf16.msra.mxu0 %v11888_v1  ;;  %v11914_v20 = vsub.f32 %v124_v12, %v4009_v48  ;;  %v11916_v15 = vand.u32 4294901760, %v250_v40  ;;  %v127_v44 = vld [vmem:[%s16842_s1 + $0x2e0] sm:$0xff]  ;;  %v343_v22 = vand.u32 4294901760, %v92_v37 }
  0x40   :  { %17776 = vst [vmem:[#allocation113_spill] sm:$0xff] %v11886_v11  ;;  %17777 = vst [vmem:[#allocation114_spill] sm:$0xff] %v11888_v1  ;;  %v11910_v21 = vpack.c.bf16 %v4009_v48, %v4006_v46  ;;  %v11912_v24 = vsub.f32 %v121_v57, %v4006_v46  ;;  %v130_v1 = vld [vmem:[%s16842_s1 + $0x2f8] sm:$0xff]  ;;  %v3294_v46 = vsub.f32 %v11882_v63, %v11899_v61  ;;  %v341_v11 = vand.u32 4294901760, %v93_v10  ;;  %s11369_s20 = smov 48   ;;  %s11370_s21 = smov 88  }
  0x41   :  { %17778 = vst [vmem:[#allocation115_spill] sm:$0xff] %v11891_v49  ;;  %17779 = vst [vmem:[#allocation116_spill] sm:$0xff] %v11893_v60  ;;  %v11929_v57 = vpack.c.bf16 %v3961_v30, %v3958_v51  ;;  %v11931_v48 = vsub.f32 %v73_v50, %v3958_v51  ;;  %v11933_v12 = vsub.f32 %v76_v56, %v3961_v30  ;;  %v337_v49 = vand.u32 4294901760, %v90_v4  ;;  %v34_v56 = vld [vmem:[%s16841_s0 + $0x98] sm:$0xff]  ;;  %s11371_s22 = smov [#allocation2]  }
  0x42   :  { %17780 = vst [vmem:[#allocation117_spill] sm:$0xff] %v11899_v61  ;;  %17781 = vst [vmem:[#allocation118_spill] sm:$0xff] %v11910_v21  ;;  %10404 = vmatprep.subr.bf16.mxu1 %v11910_v21  ;;  %v11937_v60 = vsub.f32 %v250_v40, %v11916_v15  ;;  %v339_v9 = vand.u32 4294901760, %v89_v6  ;;  %v11939_v13 = vand.u32 4294901760, %v3294_v46  ;;  %v4012_v61 = vand.u32 4294901760, %v127_v44  ;;  %v79_v46 = vld [vmem:[%s16842_s1 + $0x160] sm:$0xff] }
  0x43   :  { %17782 = vst [vmem:[#allocation119_spill] sm:$0xff] %v11912_v24  ;;  %17783 = vst [vmem:[#allocation120_spill] sm:$0xff] %v11914_v20  ;;  %10406 = vmatpush3.bf16.msra.mxu1 %v11929_v57  ;;  %v4015_v63 = vand.u32 4294901760, %v130_v1  ;;  %v11948_v51 = vpack.c.bf16 %v341_v11, %v337_v49  ;;  %v11950_v40 = vsub.f32 %v90_v4, %v337_v49  ;;  %vm6773_vm2 = vcmask 850944   ;;  %s8667_s23 = sshll.u32 %s11371_s22, 4  ;;  %s8668_s23 = int_to_ptr.vmem [resolvable:$true] %s8667_s23 }
  0x44   :  { %17784 = vst [vmem:[#allocation121_spill] sm:$0xff] %v11916_v15  ;;  %17785 = vst [vmem:[#allocation122_spill] sm:$0xff] %v11929_v57  ;;  %v11946_v50 = vand.u32 4294901760, %v11937_v60  ;;  %v11952_v30 = vsub.f32 %v93_v10, %v341_v11  ;;  %v82_v15 = vld [vmem:[%s16842_s1 + $0x178] sm:$0xff]  ;;  %v96_v57 = vld [vmem:[%s16842_s1 + $0x1e8] sm:$0xff]  ;;  %3296 = vmatmul.mubr.f32.gmra.mrb[2].mxu1 %v11939_v13  ;;  %v11964_v21 = vpack.c.bf16 %v343_v22, %v339_v9  ;;  %vm6748_vm3 = vcmask 261120   ;;  %p11338_p1 = scmp.lt.s32.totalorder %s8668_s23, %s8668_s23 }
  0x45   :  { %17786 = vst [vmem:[#allocation123_spill] sm:$0xff] %v11931_v48  ;;  %17787 = vst [vmem:[#allocation124_spill] sm:$0xff] %v11933_v12  ;;  %v11966_v4 = vsub.f32 %v89_v6, %v339_v9  ;;  %v11968_v11 = vsub.f32 %v92_v37, %v343_v22  ;;  %v11970_v49 = vpack.c.bf16 %v4015_v63, %v4012_v61  ;;  %v99_v10 = vld [vmem:[%s16842_s1 + $0x200] sm:$0xff]  ;;  %3301 = vmatprep.mubr.f32.mxu1 %v17726_v54  ;;  %vm6923_vm4 = vcmask 195584   ;;  %s11333_s24 = scalar_lea.vmem %s8668_s23, 32 }
  0x46   :  { %17788 = vst [vmem:[#allocation125_spill] sm:$0xff] %v11937_v60  ;;  %17789 = vst [vmem:[#allocation126_spill] sm:$0xff] %v11939_v13  ;;  %v98_v13 = vld [vmem:[%s16842_s1 + $0x1f8] sm:$0xff]  ;;  %v3305_v9 = vsub.f32 %v11937_v60, %v11946_v50  ;;  %9600 = vmatprep.subr.bf16.mxu0 %v11948_v51  ;;  %v11985_v22 = vsub.f32 %v127_v44, %v4012_v61  ;;  %v11987_v6 = vsub.f32 %v130_v1, %v4015_v63  ;;  %v16_v63 = vld [vmem:[%s16841_s0 + $0x8] sm:$0xff]  ;;  %vm6898_vm5 = vcmask 457728   ;;  %p11334_p0 = scmp.ne.s32.totalorder %s8668_s23, %s11333_s24  ;;  %p11339_p2 = scmp.lt.s32.totalorder %s11333_s24, %s11333_s24 }
  0x47   :  { %17790 = vst [vmem:[#allocation127_spill] sm:$0xff] %v11946_v50  ;;  %17791 = vst [vmem:[#allocation128_spill] sm:$0xff] %v11948_v51  ;;  %v253_v37 = vsel %vm242_vm1, %v34_v56, 0  ;;  %9602 = vmatpush1.bf16.msra.mxu0 %v11964_v21  ;;  %10408 = vmatprep.subr.bf16.mxu1 %v11970_v49  ;;  %v345_v32 = vand.u32 4294901760, %v96_v57  ;;  %v349_v50 = vand.u32 4294901760, %v99_v10  ;;  %v351_v51 = vand.u32 4294901760, %v98_v13 }
  0x48   :  { %17792 = vst [vmem:[#allocation129_spill] sm:$0xff] %v11950_v40  ;;  %17793 = vst [vmem:[#allocation130_spill] sm:$0xff] %v11952_v30  ;;  %v95_v30 = vld [vmem:[%s16842_s1 + $0x1e0] sm:$0xff]  ;;  %v3967_v40 = vand.u32 4294901760, %v82_v15  ;;  %v11994_v31 = vand.u32 4294901760, %v3305_v9  ;;  %vm6928_vm6 = vcmask 392192   ;;  %p11340_p3 = por %p11339_p2, %p11338_p1 }
  0x49   :  { %17794 = vst [vmem:[#allocation131_spill] sm:$0xff] %v11964_v21  ;;  %17795 = vst [vmem:[#allocation132_spill] sm:$0xff] %v11966_v4  ;;  %v3964_v4 = vand.u32 4294901760, %v79_v46  ;;  %v347_v60 = vand.u32 4294901760, %v95_v30  ;;  %v15_v9 = vld [vmem:[%s16841_s0] sm:$0xff]  ;;  %v12012_v21 = vpack.c.bf16 %v349_v50, %v345_v32  ;;  %v12016_v8 = vsub.f32 %v99_v10, %v349_v50 }
  0x4a   :  { %17796 = vst [vmem:[#allocation133_spill] sm:$0xff] %v11968_v11  ;;  %17797 = vst [vmem:[#allocation134_spill] sm:$0xff] %v11970_v49  ;;  %v11992_v11 = vand.u32 4294901760, %v253_v37  ;;  %v12006_v56 = vsub.f32 %v82_v15, %v3967_v40  ;;  %3307 = vmatmul.mubr.f32.gmra.mrb[4].mxu1 %v11994_v31  ;;  %v12014_v49 = vsub.f32 %v96_v57, %v345_v32  ;;  %v12032_v32 = vand.u32 4294901760, %v16_v63  ;;  %p11341_p4 = pnand %p11340_p3, %p11334_p0 }
  0x4b   :  { %17798 = vst [vmem:[#allocation135_spill] sm:$0xff] %v11985_v22  ;;  %17799 = vst [vmem:[#allocation136_spill] sm:$0xff] %v11987_v6  ;;  %v12002_v1 = vpack.c.bf16 %v3967_v40, %v3964_v4  ;;  %v12004_v61 = vsub.f32 %v79_v46, %v3964_v4  ;;  %v102_v46 = vld [vmem:[%s16842_s1 + $0x218] sm:$0xff]  ;;  %3312 = vmatprep.mubr.f32.mxu1 %v17726_v54  ;;  %v12028_v40 = vsub.f32 %v95_v30, %v347_v60  ;;  %vm6933_vm7 = vcmask 588800  }
  0x4c   :  { %17800 = vst [vmem:[#allocation137_spill] sm:$0xff] %v11992_v11  ;;  %17801 = vst [vmem:[#allocation138_spill] sm:$0xff] %v11994_v31  ;;  %v12000_v44 = vsub.f32 %v253_v37, %v11992_v11  ;;  %v12018_v37 = vpack.c.bf16 %v351_v51, %v347_v60  ;;  %v12030_v4 = vsub.f32 %v98_v13, %v351_v51  ;;  %9604 = vmatprep.subr.bf16.mxu0 %v12012_v21  ;;  %v105_v11 = vld [vmem:[%s16842_s1 + $0x230] sm:$0xff]  ;;  %vm6938_vm8 = vcmask 782336  }
  0x4d   :  { %17803 = vst [vmem:[#allocation140_spill] sm:$0xff] %v12002_v1  ;;  %17804 = vst [vmem:[#allocation141_spill] sm:$0xff] %v12004_v61  ;;  %10410 = vmatpush3.bf16.msra.mxu1 %v12002_v1  ;;  %v17002_v57 = vand.u32 4294901760, %v11576_v38  ;;  %v12037_v10 = vand.u32 4294901760, %v15_v9  ;;  %v12047_v60 = vsub.f32 %v16_v63, %v12032_v32  ;;  %v353_v30 = vand.u32 4294901760, %v102_v46 }
  0x4e   :  { %17802 = vst [vmem:[#allocation139_spill] sm:$0xff] %v12000_v44  ;;  %17805 = vst [vmem:[#allocation142_spill] sm:$0xff] %v12006_v56  ;;  %v12025_v15 = vand.u32 4294901760, %v12000_v44  ;;  %9606 = vmatpush1.bf16.msra.mxu0 %v12018_v37  ;;  %v17816_v54 = vand.u32 4294901760, %v11578_v43  ;;  %v357_v1 = vand.u32 4294901760, %v105_v11  ;;  %vm6946_vm9 = vcmask 785409  }
  0x4f   :  { %17806 = vst [vmem:[#allocation143_spill] sm:$0xff] %v12012_v21  ;;  %17807 = vst [vmem:[#allocation144_spill] sm:$0xff] %v12014_v49  ;;  %v4194_v50 = vsub.f32 %v11576_v38, %v17002_v57  ;;  %v12057_v21 = vsub.f32 %v15_v9, %v12037_v10  ;;  %v12065_v51 = vand.u32 4294901760, %v12047_v60  ;;  %vm6957_vm10 = vcmask 785413  }
  0x50   :  { %17808 = vst [vmem:[#allocation145_spill] sm:$0xff] %v12016_v8  ;;  %17809 = vst [vmem:[#allocation146_spill] sm:$0xff] %v12018_v37  ;;  %v3316_v13 = vsub.f32 %v12000_v44, %v12025_v15  ;;  %v4201_v31 = vsub.f32 %v11578_v43, %v17816_v54  ;;  %v17821_v37 = vand.u32 4294901760, %v11596_v3  ;;  %v101_v54 = vld [vmem:[%s16842_s1 + $0x210] sm:$0xff]  ;;  %v12082_v49 = vpack.c.bf16 %v357_v1, %v353_v30 }
  0x51   :  { %17810 = vst [vmem:[#allocation147_spill] sm:$0xff] %v12025_v15  ;;  %17811 = vst [vmem:[#allocation148_spill] sm:$0xff] %v12028_v40  ;;  %v17818_v15 = vand.u32 4294901760, %v11594_v2  ;;  %v4195_v9 = vand.u32 4294901760, %v4194_v50  ;;  %v12074_v40 = vand.u32 4294901760, %v12057_v21  ;;  %v17022_v43 = vand.u32 4294901760, %v11625_v27 }
  0x52   :  { %17812 = vst [vmem:[#allocation149_spill] sm:$0xff] %v12030_v4  ;;  %17813 = vst [vmem:[#allocation150_spill] sm:$0xff] %v12032_v32  ;;  %v12062_v63 = vand.u32 4294901760, %v3316_v13  ;;  %v4089_v57 = vsub.f32 %v11596_v3, %v17821_v37  ;;  %v4202_v4 = vand.u32 4294901760, %v4201_v31  ;;  %v104_v13 = vld [vmem:[%s16842_s1 + $0x228] sm:$0xff]  ;;  %v396_v37 = vsub.f32 %v12047_v60, %v12065_v51  ;;  %9608 = vmatprep.subr.bf16.mxu0 %v12082_v49 }
  0x53   :  { %17814 = vst [vmem:[#allocation151_spill] sm:$0xff] %v12037_v10  ;;  %17815 = vst [vmem:[#allocation152_spill] sm:$0xff] %v12047_v60  ;;  %v4082_v44 = vsub.f32 %v11594_v2, %v17818_v15  ;;  %v12084_v10 = vsub.f32 %v102_v46, %v353_v30  ;;  %v402_v31 = vsub.f32 %v12057_v21, %v12074_v40  ;;  %v111_v46 = vld [vmem:[%s16842_s1 + $0x260] sm:$0xff]  ;;  %vm6948_vm11 = vcmask 778240  }
  0x54   :  { %17817 = vst [vmem:[#allocation153_spill] sm:$0xff] %v12057_v21  ;;  %17819 = vst [vmem:[#allocation154_spill] sm:$0xff] %v12062_v63  ;;  %3318 = vmatmul.mubr.f32.gmra.mrb[6].mxu1 %v12062_v63  ;;  %v4090_v8 = vand.u32 4294901760, %v4089_v57  ;;  %v10411_v50 = vpack.c.bf16 %v4202_v4, %v4195_v9  ;;  %v12088_v32 = vsub.f32 %v105_v11, %v357_v1  ;;  %v397_v3 = vand.u32 4294901760, %v396_v37  ;;  %v108_v57 = vld [vmem:[%s16842_s1 + $0x248] sm:$0xff]  ;;  %v107_v30 = vld [vmem:[%s16842_s1 + $0x240] sm:$0xff] }
  0x55   :  { %17820 = vst [vmem:[#allocation155_spill] sm:$0xff] %v12065_v51  ;;  %17822 = vst [vmem:[#allocation156_spill] sm:$0xff] %v12074_v40  ;;  %v4083_v15 = vand.u32 4294901760, %v4082_v44  ;;  %v355_v44 = vand.u32 4294901760, %v101_v54  ;;  %v359_v63 = vand.u32 4294901760, %v104_v13  ;;  %v12098_v4 = vand.u32 4294901760, %v402_v31 }
  0x56   :  { %17823 = vst [vmem:[#allocation157_spill] sm:$0xff] %v12082_v49  ;;  %17824 = vst [vmem:[#allocation158_spill] sm:$0xff] %v12084_v10  ;;  %10412 = vmatprep.subr.bf16.mxu1 %v10411_v50  ;;  %v17031_v1 = vand.u32 4294901760, %v11654_v0  ;;  %v110_v9 = vld [vmem:[%s16842_s1 + $0x258] sm:$0xff]  ;;  %4022 = vmatprep.mubr.f32.mxu1 %v397_v3  ;;  %v17035_v50 = vand.u32 4294901760, %v11656_v58  ;;  %v361_v49 = vand.u32 4294901760, %v108_v57 }
  0x57   :  { %17825 = vst [vmem:[#allocation159_spill] sm:$0xff] %v12088_v32  ;;  %v10413_v2 = vpack.c.bf16 %v4090_v8, %v4083_v15  ;;  %v12100_v11 = vsub.f32 %v101_v54, %v355_v44  ;;  %v17030_v8 = vand.u32 4294901760, %v11641_v55  ;;  %v12110_v15 = vpack.c.bf16 %v359_v63, %v355_v44  ;;  %398 = vmatprep.mubr.f32.mxu0 %v397_v3 }
  0x58   :  { %v12112_v37 = vsub.f32 %v104_v13, %v359_v63  ;;  %v4208_v54 = vsub.f32 %v11625_v27, %v17022_v43  ;;  %4028 = vmatmul.mubr.f32.vlgmr.msra.gmra.mrb[8].mxu1 %v12098_v4  ;;  %v4096_v44 = vsub.f32 %v11654_v0, %v17031_v1  ;;  %v365_v63 = vand.u32 4294901760, %v111_v46  ;;  %v114_v1 = vld [vmem:[%s16842_s1 + $0x278] sm:$0xff] }
  0x59   :  { %17826 = vst [vmem:[#allocation160_spill] sm:$0xff] %v12100_v11  ;;  %17827 = vst [vmem:[#allocation161_spill] sm:$0xff] %v12110_v15  ;;  %v4215_v31 = vsub.f32 %v11641_v55, %v17030_v8  ;;  %10414 = vmatpush3.bf16.msra.mxu1 %v10413_v2  ;;  %9610 = vmatpush1.bf16.msra.mxu0 %v12110_v15  ;;  %v4103_v3 = vsub.f32 %v11656_v58, %v17035_v50  ;;  %v363_v43 = vand.u32 4294901760, %v107_v30  ;;  %vm6986_vm12 = vcmask 785408  }
  0x5a   :  { %17828 = vst [vmem:[#allocation162_spill] sm:$0xff] %v12112_v37  ;;  %v4209_v13 = vand.u32 4294901760, %v4208_v54  ;;  %v367_v40 = vand.u32 4294901760, %v110_v9  ;;  %v4097_v21 = vand.u32 4294901760, %v4096_v44  ;;  %v12129_v37 = vpack.c.bf16 %v365_v63, %v361_v49 }
  0x5b   :  { %v4216_v51 = vand.u32 4294901760, %v4215_v31  ;;  %v12131_v8 = vsub.f32 %v108_v57, %v361_v49  ;;  %v4104_v2 = vand.u32 4294901760, %v4103_v3  ;;  %v12136_v11 = vsub.f32 %v111_v46, %v365_v63  ;;  %v117_v31 = vld [vmem:[%s16842_s1 + $0x290] sm:$0xff] }
  0x5c   :  { %17829 = vst [vmem:[#allocation163_spill] sm:$0xff] %v12129_v37  ;;  %v12138_v54 = vpack.c.bf16 %v367_v40, %v363_v43  ;;  %v12140_v15 = vsub.f32 %v107_v30, %v363_v43  ;;  %v113_v49 = vld [vmem:[%s16842_s1 + $0x270] sm:$0xff]  ;;  %9612 = vmatprep.subr.bf16.mxu0 %v12129_v37  ;;  %v12149_v44 = vsub.f32 %v110_v9, %v367_v40  ;;  %v17041_v46 = vand.u32 4294901760, %v11695_v35  ;;  %v116_v43 = vld [vmem:[%s16842_s1 + $0x288] sm:$0xff] }
  0x5d   :  { %17830 = vst [vmem:[#allocation164_spill] sm:$0xff] %v12131_v8  ;;  %17831 = vst [vmem:[#allocation165_spill] sm:$0xff] %v12136_v11  ;;  %v10415_v57 = vpack.c.bf16 %v4216_v51, %v4209_v13  ;;  %v17044_v63 = vand.u32 4294901760, %v11697_v39  ;;  %v10417_v30 = vpack.c.bf16 %v4104_v2, %v4097_v21  ;;  %v17046_v3 = vand.u32 4294901760, %v11708_v5 }
  0x5e   :  { %17832 = vst [vmem:[#allocation166_spill] sm:$0xff] %v12138_v54  ;;  %17833 = vst [vmem:[#allocation167_spill] sm:$0xff] %v12140_v15  ;;  %9614 = vmatpush1.bf16.msra.mxu0 %v12138_v54  ;;  %v17048_v50 = vand.u32 4294901760, %v11710_v14  ;;  %v369_v51 = vand.u32 4294901760, %v114_v1  ;;  %v4222_v40 = vsub.f32 %v11695_v35, %v17041_v46  ;;  %v373_v13 = vand.u32 4294901760, %v117_v31 }
  0x5f   :  { %17834 = vst [vmem:[#allocation168_spill] sm:$0xff] %v12149_v44  ;;  %10416 = vmatprep.subr.bf16.mxu1 %v10415_v57  ;;  %v4229_v9 = vsub.f32 %v11697_v39, %v17044_v63  ;;  %v371_v37 = vand.u32 4294901760, %v113_v49  ;;  %v4110_v21 = vsub.f32 %v11708_v5, %v17046_v3  ;;  %v375_v54 = vand.u32 4294901760, %v116_v43 }
  0x60   :  { %10418 = vmatpush3.bf16.msra.mxu1 %v10417_v30  ;;  %v4117_v2 = vsub.f32 %v11710_v14, %v17048_v50  ;;  %v12171_v57 = vsub.f32 %v114_v1, %v369_v51  ;;  %v4223_v44 = vand.u32 4294901760, %v4222_v40  ;;  %v12173_v15 = vpack.c.bf16 %v373_v13, %v369_v51  ;;  %v120_v30 = vld [vmem:[%s16842_s1 + $0x2a8] sm:$0xff]  ;;  %v123_v1 = vld [vmem:[%s16842_s1 + $0x2c0] sm:$0xff] }
  0x61   :  { %v4230_v46 = vand.u32 4294901760, %v4229_v9  ;;  %v12175_v11 = vsub.f32 %v117_v31, %v373_v13  ;;  %v4111_v63 = vand.u32 4294901760, %v4110_v21  ;;  %v12180_v3 = vpack.c.bf16 %v375_v54, %v371_v37  ;;  %v119_v51 = vld [vmem:[%s16842_s1 + $0x2a0] sm:$0xff] }
  0x62   :  { %17835 = vst [vmem:[#allocation169_spill] sm:$0xff] %v12171_v57  ;;  %17836 = vst [vmem:[#allocation170_spill] sm:$0xff] %v12173_v15  ;;  %v4118_v8 = vand.u32 4294901760, %v4117_v2  ;;  %v12182_v32 = vsub.f32 %v113_v49, %v371_v37  ;;  %9616 = vmatprep.subr.bf16.mxu0 %v12173_v15  ;;  %v12191_v40 = vsub.f32 %v116_v43, %v375_v54  ;;  %v17053_v9 = vand.u32 4294901760, %v11750_v41  ;;  %v122_v37 = vld [vmem:[%s16842_s1 + $0x2b8] sm:$0xff] }
  0x63   :  { %17837 = vst [vmem:[#allocation171_spill] sm:$0xff] %v12175_v11  ;;  %17838 = vst [vmem:[#allocation172_spill] sm:$0xff] %v12180_v3  ;;  %v10419_v31 = vpack.c.bf16 %v4230_v46, %v4223_v44  ;;  %v17056_v13 = vand.u32 4294901760, %v11752_v19  ;;  %9618 = vmatpush1.bf16.msra.mxu0 %v12180_v3  ;;  %v17058_v21 = vand.u32 4294901760, %v11756_v29  ;;  %v17060_v2 = vand.u32 4294901760, %v11760_v59 }
  0x64   :  { %17839 = vst [vmem:[#allocation173_spill] sm:$0xff] %v12182_v32  ;;  %17840 = vst [vmem:[#allocation174_spill] sm:$0xff] %v12191_v40  ;;  %v10421_v49 = vpack.c.bf16 %v4118_v8, %v4111_v63  ;;  %v377_v44 = vand.u32 4294901760, %v120_v30  ;;  %v4236_v54 = vsub.f32 %v11750_v41, %v17053_v9  ;;  %v381_v43 = vand.u32 4294901760, %v123_v1 }
  0x65   :  { %10420 = vmatprep.subr.bf16.mxu1 %v10419_v31  ;;  %v4243_v46 = vsub.f32 %v11752_v19, %v17056_v13  ;;  %v379_v50 = vand.u32 4294901760, %v119_v51  ;;  %v4124_v8 = vsub.f32 %v11756_v29, %v17058_v21  ;;  %v4131_v63 = vsub.f32 %v11760_v59, %v17060_v2 }
  0x66   :  { %10422 = vmatpush3.bf16.msra.mxu1 %v10421_v49  ;;  %v12213_v31 = vsub.f32 %v120_v30, %v377_v44  ;;  %v383_v3 = vand.u32 4294901760, %v122_v37  ;;  %v4237_v15 = vand.u32 4294901760, %v4236_v54  ;;  %v12215_v40 = vpack.c.bf16 %v381_v43, %v377_v44  ;;  %v126_v49 = vld [vmem:[%s16842_s1 + $0x2d8] sm:$0xff]  ;;  %v129_v30 = vld [vmem:[%s16842_s1 + $0x2f0] sm:$0xff] }
  0x67   :  { %v4244_v9 = vand.u32 4294901760, %v4243_v46  ;;  %v12217_v32 = vsub.f32 %v123_v1, %v381_v43  ;;  %v4125_v13 = vand.u32 4294901760, %v4124_v8  ;;  %v4132_v11 = vand.u32 4294901760, %v4131_v63  ;;  %v125_v44 = vld [vmem:[%s16842_s1 + $0x2d0] sm:$0xff] }
  0x68   :  { %17841 = vst [vmem:[#allocation175_spill] sm:$0xff] %v12213_v31  ;;  %17842 = vst [vmem:[#allocation176_spill] sm:$0xff] %v12215_v40  ;;  %v12222_v21 = vpack.c.bf16 %v383_v3, %v379_v50  ;;  %v12224_v57 = vsub.f32 %v119_v51, %v379_v50  ;;  %9620 = vmatprep.subr.bf16.mxu0 %v12215_v40  ;;  %v12233_v54 = vsub.f32 %v122_v37, %v383_v3  ;;  %v128_v50 = vld [vmem:[%s16842_s1 + $0x2e8] sm:$0xff]  ;;  %vm6988_vm13 = vcmask 523264  }
  0x69   :  { %17843 = vst [vmem:[#allocation177_spill] sm:$0xff] %v12217_v32  ;;  %v10423_v1 = vpack.c.bf16 %v4244_v9, %v4237_v15  ;;  %v17063_v46 = vand.u32 4294901760, %v11795_v36  ;;  %v17066_v43 = vand.u32 4294901760, %v11802_v53  ;;  %v10425_v51 = vpack.c.bf16 %v4132_v11, %v4125_v13 }
  0x6a   :  { %17844 = vst [vmem:[#allocation178_spill] sm:$0xff] %v12222_v21  ;;  %17845 = vst [vmem:[#allocation179_spill] sm:$0xff] %v12224_v57  ;;  %9622 = vmatpush1.bf16.msra.mxu0 %v12222_v21  ;;  %v17068_v8 = vand.u32 4294901760, %v11804_v45  ;;  %v17071_v63 = vand.u32 4294901760, %v11813_v16  ;;  %v385_v15 = vand.u32 4294901760, %v126_v49  ;;  %v389_v37 = vand.u32 4294901760, %v129_v30 }
  0x6b   :  { %17846 = vst [vmem:[#allocation180_spill] sm:$0xff] %v12233_v54  ;;  %10424 = vmatprep.subr.bf16.mxu1 %v10423_v1  ;;  %v4250_v3 = vsub.f32 %v11795_v36, %v17063_v46  ;;  %v4257_v9 = vsub.f32 %v11802_v53, %v17066_v43  ;;  %v387_v2 = vand.u32 4294901760, %v125_v44  ;;  %v391_v21 = vand.u32 4294901760, %v128_v50  ;;  %v21_v46 = vld [vmem:[%s16841_s0 + $0x30] sm:$0xff] }
  0x6c   :  { %10426 = vmatpush3.bf16.msra.mxu1 %v10425_v51  ;;  %v4138_v11 = vsub.f32 %v11804_v45, %v17068_v8  ;;  %v4145_v13 = vsub.f32 %v11813_v16, %v17071_v63  ;;  %v12255_v1 = vsub.f32 %v126_v49, %v385_v15  ;;  %v12260_v54 = vpack.c.bf16 %v389_v37, %v385_v15  ;;  %v20_v8 = vld [vmem:[%s16841_s0 + $0x28] sm:$0xff] }
  0x6d   :  { %v4251_v40 = vand.u32 4294901760, %v4250_v3  ;;  %v4258_v43 = vand.u32 4294901760, %v4257_v9  ;;  %v12262_v51 = vsub.f32 %v129_v30, %v389_v37  ;;  %v12267_v63 = vpack.c.bf16 %v391_v21, %v387_v2 }
  0x6e   :  { %17847 = vst [vmem:[#allocation181_spill] sm:$0xff] %v12255_v1  ;;  %17848 = vst [vmem:[#allocation182_spill] sm:$0xff] %v12260_v54  ;;  %v4139_v57 = vand.u32 4294901760, %v4138_v11  ;;  %v4146_v32 = vand.u32 4294901760, %v4145_v13  ;;  %v12269_v49 = vsub.f32 %v125_v44, %v387_v2  ;;  %9624 = vmatprep.subr.bf16.mxu0 %v12260_v54  ;;  %v12272_v31 = vsub.f32 %v128_v50, %v391_v21 }
  0x6f   :  { %17849 = vst [vmem:[#allocation183_spill] sm:$0xff] %v12262_v51  ;;  %17850 = vst [vmem:[#allocation184_spill] sm:$0xff] %v12267_v63  ;;  %v10427_v1 = vpack.c.bf16 %v4258_v43, %v4251_v40  ;;  %v12274_v3 = vand.u32 4294901760, %v21_v46  ;;  %v17076_v30 = vand.u32 4294901760, %v11848_v34  ;;  %9626 = vmatpush1.bf16.msra.mxu0 %v12267_v63  ;;  %v17074_v9 = vand.u32 4294901760, %v11850_v25  ;;  %v17881_v51 = vld [vmem:[#allocation150_spill] sm:$0xff] }
  0x70   :  { %17851 = vst [vmem:[#allocation185_spill] sm:$0xff] %v12269_v49  ;;  %17852 = vst [vmem:[#allocation186_spill] sm:$0xff] %v12272_v31  ;;  %v10429_v15 = vpack.c.bf16 %v4146_v32, %v4139_v57  ;;  %v12279_v37 = vand.u32 4294901760, %v20_v8  ;;  %v17075_v11 = vand.u32 4294901760, %v11866_v33  ;;  %v17077_v2 = vand.u32 4294901760, %v11868_v23 }
  0x71   :  { %17853 = vst [vmem:[#allocation187_spill] sm:$0xff] %v12274_v3  ;;  %10428 = vmatprep.subr.bf16.mxu1 %v10427_v1  ;;  %v12283_v40 = vsub.f32 %v21_v46, %v12274_v3  ;;  %v4264_v21 = vsub.f32 %v11848_v34, %v17076_v30  ;;  %v17080_v32 = vand.u32 4294901760, %v11422_v17  ;;  %v4271_v57 = vsub.f32 %v11850_v25, %v17074_v9 }
  0x72   :  { %17854 = vst [vmem:[#allocation188_spill] sm:$0xff] %v12279_v37  ;;  %10430 = vmatpush3.bf16.msra.mxu1 %v10429_v15  ;;  %v12294_v44 = vsub.f32 %v20_v8, %v12279_v37  ;;  %v4152_v46 = vsub.f32 %v11866_v33, %v17075_v11  ;;  %v17085_v43 = vand.u32 4294901760, %v11424_v18  ;;  %v4159_v1 = vsub.f32 %v11868_v23, %v17077_v2 }
  0x73   :  { %17855 = vst [vmem:[#allocation189_spill] sm:$0xff] %v12283_v40  ;;  %v12301_v50 = vand.u32 4294901760, %v12283_v40  ;;  %v4265_v13 = vand.u32 4294901760, %v4264_v21  ;;  %v461_v15 = vsub.f32 %v11422_v17, %v17080_v32  ;;  %404 = vmatmul.mubr.f32.vlgmr.msra.gmra.mrb[0].mxu0 %v12098_v4  ;;  %v4272_v8 = vand.u32 4294901760, %v4271_v57  ;;  %v26_v21 = vld [vmem:[%s16841_s0 + $0x58] sm:$0xff] }
  0x74   :  { %17856 = vst [vmem:[#allocation190_spill] sm:$0xff] %v12294_v44  ;;  %v12311_v9 = vand.u32 4294901760, %v12294_v44  ;;  %v4153_v11 = vand.u32 4294901760, %v4152_v46  ;;  %v473_v30 = vsub.f32 %v11424_v18, %v17085_v43  ;;  %v4160_v63 = vand.u32 4294901760, %v4159_v1  ;;  %v25_v43 = vld [vmem:[%s16841_s0 + $0x50] sm:$0xff] }
  0x75   :  { %17857 = vst [vmem:[#allocation191_spill] sm:$0xff] %v12301_v50  ;;  %v412_v2 = vsub.f32 %v12283_v40, %v12301_v50  ;;  %v462_v32 = vand.u32 4294901760, %v461_v15  ;;  %v17094_v4 = vand.u32 4294901760, %v11443_v26  ;;  %v10431_v57 = vpack.c.bf16 %v4272_v8, %v4265_v13 }
  0x76   :  { %17858 = vst [vmem:[#allocation192_spill] sm:$0xff] %v12311_v9  ;;  %v418_v54 = vsub.f32 %v12294_v44, %v12311_v9  ;;  %v474_v46 = vand.u32 4294901760, %v473_v30  ;;  %v17093_v17 = vand.u32 4294901760, %v11449_v28  ;;  %v10433_v31 = vpack.c.bf16 %v4160_v63, %v4153_v11 }
  0x77   :  { %v413_v18 = vand.u32 4294901760, %v412_v2  ;;  %v467_v1 = vsub.f32 %v11443_v26, %v17094_v4  ;;  %v12331_v15 = vand.u32 4294901760, %v26_v21  ;;  %10432 = vmatprep.subr.bf16.mxu1 %v10431_v57  ;;  %v17095_v9 = vand.u32 4294901760, %v11912_v24 }
  0x78   :  { %v419_v13 = vand.u32 4294901760, %v418_v54  ;;  %v9627_v8 = vpack.c.bf16 %v474_v46, %v462_v32  ;;  %v479_v30 = vsub.f32 %v11449_v28, %v17093_v17  ;;  %10434 = vmatpush3.bf16.msra.mxu1 %v10433_v31  ;;  %v17096_v11 = vand.u32 4294901760, %v11914_v20 }
  0x79   :  { %17859 = vst [vmem:[#allocation193_spill] sm:$0xff] %v12331_v15  ;;  %4037 = vmatprep.mubr.f32.mxu1 %v413_v18  ;;  %v468_v50 = vand.u32 4294901760, %v467_v1  ;;  %v12338_v63 = vsub.f32 %v26_v21, %v12331_v15  ;;  %v12341_v2 = vand.u32 4294901760, %v25_v43  ;;  %v4278_v32 = vsub.f32 %v11912_v24, %v17095_v9  ;;  %414 = vmatprep.mubr.f32.mxu0 %v413_v18 }
  0x7a   :  { %4043 = vmatmul.mubr.f32.gmra.mrb[10].mxu1 %v419_v13  ;;  %9628 = vmatprep.subr.bf16.mxu0 %v9627_v8  ;;  %v480_v54 = vand.u32 4294901760, %v479_v30  ;;  %v17099_v57 = vand.u32 4294901760, %v11931_v48  ;;  %v17100_v46 = vand.u32 4294901760, %v11933_v12  ;;  %v4285_v21 = vsub.f32 %v11914_v20, %v17096_v11 }
  0x7b   :  { %17860 = vst [vmem:[#allocation194_spill] sm:$0xff] %v12338_v63  ;;  %17861 = vst [vmem:[#allocation195_spill] sm:$0xff] %v12341_v2  ;;  %v12349_v31 = vand.u32 4294901760, %v12338_v63  ;;  %v12355_v1 = vsub.f32 %v25_v43, %v12341_v2  ;;  %v17105_v8 = vand.u32 4294901760, %v11468_v42  ;;  %v4279_v17 = vand.u32 4294901760, %v4278_v32  ;;  %420 = vmatmul.mubr.f32.gmra.mrb[2].mxu0 %v419_v13  ;;  %v31_v13 = vld [vmem:[%s16841_s0 + $0x80] sm:$0xff] }
  0x7c   :  { %v9629_v30 = vpack.c.bf16 %v480_v54, %v468_v50  ;;  %v4166_v4 = vsub.f32 %v11931_v48, %v17099_v57  ;;  %v4173_v9 = vsub.f32 %v11933_v12, %v17100_v46  ;;  %v4286_v28 = vand.u32 4294901760, %v4285_v21 }
  0x7d   :  { %17862 = vst [vmem:[#allocation196_spill] sm:$0xff] %v12349_v31  ;;  %17863 = vst [vmem:[#allocation197_spill] sm:$0xff] %v12355_v1  ;;  %v428_v11 = vsub.f32 %v12338_v63, %v12349_v31  ;;  %v12367_v43 = vand.u32 4294901760, %v12355_v1  ;;  %v485_v18 = vsub.f32 %v11468_v42, %v17105_v8  ;;  %v17108_v32 = vand.u32 4294901760, %v11481_v47 }
  0x7e   :  { %9630 = vmatpush1.bf16.msra.mxu0 %v9629_v30  ;;  %v4167_v50 = vand.u32 4294901760, %v4166_v4  ;;  %v4174_v54 = vand.u32 4294901760, %v4173_v9  ;;  %v17112_v57 = vand.u32 4294901760, %v11490_v52  ;;  %v10435_v21 = vpack.c.bf16 %v4286_v28, %v4279_v17  ;;  %v30_v30 = vld [vmem:[%s16841_s0 + $0x78] sm:$0xff] }
  0x7f   :  { %17864 = vst [vmem:[#allocation198_spill] sm:$0xff] %v12367_v43  ;;  %v429_v46 = vand.u32 4294901760, %v428_v11  ;;  %v434_v31 = vsub.f32 %v12355_v1, %v12367_v43  ;;  %v486_v26 = vand.u32 4294901760, %v485_v18  ;;  %v497_v9 = vsub.f32 %v11481_v47, %v17108_v32 }
  0x80   :  { %v10437_v4 = vpack.c.bf16 %v4174_v54, %v4167_v50  ;;  %v491_v8 = vsub.f32 %v11490_v52, %v17112_v57  ;;  %v17111_v11 = vand.u32 4294901760, %v11508_v62  ;;  %10436 = vmatprep.subr.bf16.mxu1 %v10435_v21  ;;  %v12389_v28 = vand.u32 4294901760, %v31_v13 }
  0x81   :  { %4052 = vmatprep.mubr.f32.mxu1 %v429_v46  ;;  %v435_v17 = vand.u32 4294901760, %v434_v31  ;;  %v17117_v18 = vand.u32 4294901760, %v11985_v22  ;;  %v17118_v43 = vand.u32 4294901760, %v11987_v6  ;;  %v498_v50 = vand.u32 4294901760, %v497_v9  ;;  %430 = vmatprep.mubr.f32.mxu0 %v429_v46 }
  0x82   :  { %17865 = vst [vmem:[#allocation199_spill] sm:$0xff] %v12389_v28  ;;  %10438 = vmatpush3.bf16.msra.mxu1 %v10437_v4  ;;  %v492_v54 = vand.u32 4294901760, %v491_v8  ;;  %v503_v32 = vsub.f32 %v11508_v62, %v17111_v11  ;;  %v12396_v47 = vand.u32 4294901760, %v30_v30  ;;  %v12399_v21 = vsub.f32 %v31_v13, %v12389_v28 }
  0x83   :  { %4058 = vmatmul.mubr.f32.gmra.mrb[12].mxu1 %v435_v17  ;;  %v4292_v31 = vsub.f32 %v11985_v22, %v17117_v18  ;;  %v4299_v4 = vsub.f32 %v11987_v6, %v17118_v43  ;;  %v17121_v8 = vand.u32 4294901760, %v12004_v61  ;;  %436 = vmatmul.mubr.f32.gmra.mrb[4].mxu0 %v435_v17  ;;  %v9631_v9 = vpack.c.bf16 %v498_v50, %v486_v26 }
  0x84   :  { %17866 = vst [vmem:[#allocation200_spill] sm:$0xff] %v12396_v47  ;;  %17867 = vst [vmem:[#allocation201_spill] sm:$0xff] %v12399_v21  ;;  %v504_v11 = vand.u32 4294901760, %v503_v32  ;;  %v12409_v57 = vsub.f32 %v30_v30, %v12396_v47  ;;  %v17122_v46 = vand.u32 4294901760, %v12006_v56  ;;  %v12413_v13 = vand.u32 4294901760, %v12399_v21 }
  0x85   :  { %v4293_v42 = vand.u32 4294901760, %v4292_v31  ;;  %v4300_v62 = vand.u32 4294901760, %v4299_v4  ;;  %v4180_v18 = vsub.f32 %v12004_v61, %v17121_v8  ;;  %9632 = vmatprep.subr.bf16.mxu0 %v9631_v9  ;;  %v17130_v32 = vand.u32 4294901760, %v11530_v7  ;;  %v17871_v4 = vld [vmem:[#allocation33_spill] sm:$0xff] }
  0x86   :  { %17868 = vst [vmem:[#allocation202_spill] sm:$0xff] %v12409_v57  ;;  %17869 = vst [vmem:[#allocation203_spill] sm:$0xff] %v12413_v13  ;;  %v9633_v43 = vpack.c.bf16 %v504_v11, %v492_v54  ;;  %v12419_v17 = vand.u32 4294901760, %v12409_v57  ;;  %v4187_v26 = vsub.f32 %v12006_v56, %v17122_v46  ;;  %v444_v30 = vsub.f32 %v12399_v21, %v12413_v13  ;;  %v17872_v8 = vld [vmem:[#allocation37_spill] sm:$0xff] }
  0x87   :  { %v10439_v50 = vpack.c.bf16 %v4300_v62, %v4293_v42  ;;  %v4181_v31 = vand.u32 4294901760, %v4180_v18  ;;  %v17133_v52 = vand.u32 4294901760, %v17871_v4  ;;  %v509_v9 = vsub.f32 %v11530_v7, %v17130_v32  ;;  %v17873_v62 = vld [vmem:[#allocation38_spill] sm:$0xff] }
  0x88   :  { %17870 = vst [vmem:[#allocation204_spill] sm:$0xff] %v12419_v17  ;;  %9634 = vmatpush1.bf16.msra.mxu0 %v9633_v43  ;;  %v450_v11 = vsub.f32 %v12409_v57, %v12419_v17  ;;  %v4188_v54 = vand.u32 4294901760, %v4187_v26  ;;  %v17140_v46 = vand.u32 4294901760, %v17872_v8  ;;  %v445_v49 = vand.u32 4294901760, %v444_v30  ;;  %v17874_v43 = vld [vmem:[#allocation42_spill] sm:$0xff]  ;;  %v17877_v57 = vld [vmem:[#allocation49_spill] sm:$0xff] }
  0x89   :  { %10440 = vmatprep.subr.bf16.mxu1 %v10439_v50  ;;  %v521_v42 = vsub.f32 %v17871_v4, %v17133_v52  ;;  %v17143_v18 = vand.u32 4294901760, %v17873_v62  ;;  %v10443_v13 = vpack.c.bf16 %v17874_v43, %v11576_v38  ;;  %v510_v26 = vand.u32 4294901760, %v509_v9  ;;  %v17875_v50 = vld [vmem:[#allocation46_spill] sm:$0xff]  ;;  %v17876_v52 = vld [vmem:[#allocation47_spill] sm:$0xff]  ;;  %v17879_v9 = vld [vmem:[#allocation52_spill] sm:$0xff] }
  0x8a   :  { %v451_v21 = vand.u32 4294901760, %v450_v11  ;;  %v10441_v17 = vpack.c.bf16 %v4188_v54, %v4181_v31  ;;  %v515_v32 = vsub.f32 %v17872_v8, %v17140_v46  ;;  %4067 = vmatprep.mubr.f32.mxu1 %v445_v49  ;;  %v10445_v4 = vpack.c.bf16 %v17876_v52, %v17875_v50  ;;  %446 = vmatprep.mubr.f32.mxu0 %v445_v49  ;;  %v17878_v31 = vld [vmem:[#allocation50_spill] sm:$0xff]  ;;  %v17880_v38 = vld [vmem:[#allocation53_spill] sm:$0xff] }
  0x8b   :  { %v522_v7 = vand.u32 4294901760, %v521_v42  ;;  %v527_v30 = vsub.f32 %v17873_v62, %v17143_v18  ;;  %v17144_v1 = vand.u32 4294901760, %v17877_v57  ;;  %v17147_v54 = vand.u32 4294901760, %v17878_v31 }
  0x8c   :  { %4073 = vmatmul.mubr.f32.gmra.mrb[14].mxu1 %v451_v21  ;;  %v516_v11 = vand.u32 4294901760, %v515_v32  ;;  %v17148_v43 = vand.u32 4294901760, %v17879_v9  ;;  %v17151_v46 = vand.u32 4294901760, %v17880_v38  ;;  %452 = vmatmul.mubr.f32.gmra.mrb[6].mxu0 %v451_v21  ;;  %v10447_v49 = vpack.c.bf16 %v11641_v55, %v11625_v27  ;;  %v17883_v55 = vld [vmem:[#allocation63_spill] sm:$0xff] }
  0x8d   :  { %10442 = vmatpush3.bf16.msra.mxu1 %v10441_v17  ;;  %v9635_v42 = vpack.c.bf16 %v522_v7, %v510_v26  ;;  %v528_v8 = vand.u32 4294901760, %v527_v30  ;;  %4303 = vmatprep.mubr.f32.mxu1 %v17881_v51  ;;  %v533_v18 = vsub.f32 %v17877_v57, %v17144_v1  ;;  %v545_v32 = vsub.f32 %v17878_v31, %v17147_v54  ;;  %v17882_v1 = vld [vmem:[#allocation61_spill] sm:$0xff]  ;;  %v17884_v54 = vld [vmem:[#allocation151_spill] sm:$0xff] }
  0x8e   :  { %10444 = vmatprep.subr.bf16.mxu1 %v10443_v13  ;;  %v539_v21 = vsub.f32 %v17879_v9, %v17148_v43  ;;  %v551_v7 = vsub.f32 %v17880_v38, %v17151_v46  ;;  %v10449_v17 = vpack.c.bf16 %v11656_v58, %v11654_v0  ;;  %v17152_v13 = vand.u32 4294901760, %v17882_v1  ;;  %843 = vmatprep.mubr.f32.mxu0 %v17881_v51  ;;  %v17885_v9 = vld [vmem:[#allocation65_spill] sm:$0xff] }
  0x8f   :  { %9636 = vmatprep.subr.bf16.mxu0 %v9635_v42  ;;  %v9637_v26 = vpack.c.bf16 %v528_v8, %v516_v11  ;;  %v534_v30 = vand.u32 4294901760, %v533_v18  ;;  %v17153_v27 = vand.u32 4294901760, %v17883_v55  ;;  %v546_v52 = vand.u32 4294901760, %v545_v32  ;;  %v17886_v11 = vld [vmem:[#allocation66_spill] sm:$0xff]  ;;  %v17887_v51 = vld [vmem:[#allocation73_spill] sm:$0xff] }
  0x90   :  { %4305 = vmatmul.mubr.f32.vlgmr.msra.gmra.mrb[16].mxu1 %v17884_v54  ;;  %v540_v43 = vand.u32 4294901760, %v539_v21  ;;  %v552_v50 = vand.u32 4294901760, %v551_v7  ;;  %v17156_v31 = vand.u32 4294901760, %v17885_v9  ;;  %v557_v8 = vsub.f32 %v17882_v1, %v17152_v13 }
  0x91   :  { %9638 = vmatpush1.bf16.msra.mxu0 %v9637_v26  ;;  %10446 = vmatpush3.bf16.msra.mxu1 %v10445_v4  ;;  %v569_v18 = vsub.f32 %v17883_v55, %v17153_v27  ;;  %v17158_v42 = vand.u32 4294901760, %v17886_v11  ;;  %v10451_v46 = vpack.c.bf16 %v11697_v39, %v11695_v35  ;;  %v9639_v32 = vpack.c.bf16 %v546_v52, %v534_v30 }
  0x92   :  { %v9641_v21 = vpack.c.bf16 %v552_v50, %v540_v43  ;;  %10448 = vmatprep.subr.bf16.mxu1 %v10447_v49  ;;  %v563_v4 = vsub.f32 %v17885_v9, %v17156_v31  ;;  %v10453_v7 = vpack.c.bf16 %v11710_v14, %v11708_v5  ;;  %v558_v26 = vand.u32 4294901760, %v557_v8  ;;  %4310 = vmatprep.mubr.f32.mxu1 %v12274_v3  ;;  %v17888_v43 = vld [vmem:[#allocation75_spill] sm:$0xff]  ;;  %v17889_v49 = vld [vmem:[#allocation77_spill] sm:$0xff]  ;;  %v17890_v31 = vld [vmem:[#allocation78_spill] sm:$0xff] }
  0x93   :  { %v570_v13 = vand.u32 4294901760, %v569_v18  ;;  %v575_v27 = vsub.f32 %v17886_v11, %v17158_v42  ;;  %v17159_v58 = vand.u32 4294901760, %v17887_v51  ;;  %9640 = vmatprep.subr.bf16.mxu0 %v9639_v32  ;;  %v17162_v50 = vand.u32 4294901760, %v17888_v43  ;;  %v17927_v3 = vld [vmem:[#allocation174_spill] sm:$0xff] }
  0x94   :  { %v564_v52 = vand.u32 4294901760, %v563_v4  ;;  %v17165_v30 = vand.u32 4294901760, %v17889_v49  ;;  %4312 = vmatmul.mubr.f32.gmra.mrb[18].mxu1 %v12279_v37  ;;  %v10455_v32 = vpack.c.bf16 %v11752_v19, %v11750_v41  ;;  %v17893_v19 = vld [vmem:[#allocation87_spill] sm:$0xff]  ;;  %vm7103_vm14 = vcmask 7168  }
  0x95   :  { %9642 = vmatpush1.bf16.msra.mxu0 %v9641_v21  ;;  %10450 = vmatpush3.bf16.msra.mxu1 %v10449_v17  ;;  %v9643_v8 = vpack.c.bf16 %v570_v13, %v558_v26  ;;  %v576_v18 = vand.u32 4294901760, %v575_v27  ;;  %v581_v42 = vsub.f32 %v17887_v51, %v17159_v58  ;;  %v593_v4 = vsub.f32 %v17888_v43, %v17162_v50  ;;  %v17892_v58 = vld [vmem:[#allocation86_spill] sm:$0xff] }
  0x96   :  { %10452 = vmatprep.subr.bf16.mxu1 %v10451_v46  ;;  %v587_v39 = vsub.f32 %v17889_v49, %v17165_v30  ;;  %v17891_v17 = vand.u32 4294901760, %v17890_v31  ;;  %v10457_v13 = vpack.c.bf16 %v11760_v59, %v11756_v29  ;;  %v17167_v46 = vand.u32 4294901760, %v17892_v58  ;;  %4317 = vmatprep.mubr.f32.mxu1 %v12331_v15  ;;  %v17894_v30 = vld [vmem:[#allocation88_spill] sm:$0xff]  ;;  %v17896_v59 = vld [vmem:[#allocation97_spill] sm:$0xff] }
  0x97   :  { %9644 = vmatprep.subr.bf16.mxu0 %v9643_v8  ;;  %v9645_v21 = vpack.c.bf16 %v576_v18, %v564_v52  ;;  %v582_v26 = vand.u32 4294901760, %v581_v42  ;;  %v17168_v41 = vand.u32 4294901760, %v17893_v19  ;;  %v594_v50 = vand.u32 4294901760, %v593_v4  ;;  %v17895_v8 = vld [vmem:[#allocation90_spill] sm:$0xff]  ;;  %v17926_v15 = vld [vmem:[#allocation173_spill] sm:$0xff] }
  0x98   :  { %v599_v27 = vsub.f32 %v17890_v31, %v17891_v17  ;;  %v588_v14 = vand.u32 4294901760, %v587_v39  ;;  %v17171_v35 = vand.u32 4294901760, %v17894_v30  ;;  %4319 = vmatmul.mubr.f32.gmra.mrb[20].mxu1 %v12341_v2  ;;  %v605_v52 = vsub.f32 %v17892_v58, %v17167_v46 }
  0x99   :  { %9646 = vmatpush1.bf16.msra.mxu0 %v9645_v21  ;;  %10454 = vmatpush3.bf16.msra.mxu1 %v10453_v7  ;;  %v617_v42 = vsub.f32 %v17893_v19, %v17168_v41  ;;  %v17173_v18 = vand.u32 4294901760, %v17895_v8  ;;  %v10459_v39 = vpack.c.bf16 %v11802_v53, %v11795_v36  ;;  %v9647_v4 = vpack.c.bf16 %v594_v50, %v582_v26 }
  0x9a   :  { %v600_v5 = vand.u32 4294901760, %v599_v27  ;;  %10456 = vmatprep.subr.bf16.mxu1 %v10455_v32  ;;  %v611_v7 = vsub.f32 %v17894_v30, %v17171_v35  ;;  %v10461_v27 = vpack.c.bf16 %v11813_v16, %v11804_v45  ;;  %v606_v21 = vand.u32 4294901760, %v605_v52  ;;  %4324 = vmatprep.mubr.f32.mxu1 %v12389_v28  ;;  %v17898_v32 = vld [vmem:[#allocation101_spill] sm:$0xff]  ;;  %v17899_v35 = vld [vmem:[#allocation102_spill] sm:$0xff]  ;;  %v17917_v28 = vld [vmem:[#allocation40_spill] sm:$0xff] }
  0x9b   :  { %v618_v46 = vand.u32 4294901760, %v617_v42  ;;  %v623_v41 = vsub.f32 %v17895_v8, %v17173_v18  ;;  %v17174_v29 = vand.u32 4294901760, %v17896_v59  ;;  %9648 = vmatprep.subr.bf16.mxu0 %v9647_v4  ;;  %v17180_v26 = vand.u32 4294901760, %v17898_v32 }
  0x9c   :  { %v9649_v17 = vpack.c.bf16 %v600_v5, %v588_v14  ;;  %v612_v5 = vand.u32 4294901760, %v611_v7  ;;  %v17897_v14 = vld [vmem:[#allocation99_spill] sm:$0xff]  ;;  %4326 = vmatmul.mubr.f32.gmra.mrb[22].mxu1 %v12396_v47  ;;  %v10463_v4 = vpack.c.bf16 %v11850_v25, %v11848_v34  ;;  %v17902_v25 = vld [vmem:[#allocation113_spill] sm:$0xff]  ;;  %vm8659_vm15 = vcmask 74752  }
  0x9d   :  { %v17177_v50 = vand.u32 4294901760, %v17897_v14  ;;  %10458 = vmatpush3.bf16.msra.mxu1 %v10457_v13  ;;  %v9651_v52 = vpack.c.bf16 %v618_v46, %v606_v21  ;;  %v624_v42 = vand.u32 4294901760, %v623_v41  ;;  %v629_v18 = vsub.f32 %v17896_v59, %v17174_v29  ;;  %v17901_v29 = vld [vmem:[#allocation110_spill] sm:$0xff]  ;;  %4461 = vmatprep.mubr.f32.mxu1 %v12047_v60 }
  0x9e   :  { %9650 = vmatpush1.bf16.msra.mxu0 %v9649_v17  ;;  %10460 = vmatprep.subr.bf16.mxu1 %v10459_v39  ;;  %v635_v53 = vsub.f32 %v17898_v32, %v17180_v26  ;;  %v17900_v13 = vand.u32 4294901760, %v17899_v35  ;;  %v10465_v46 = vpack.c.bf16 %v11868_v23, %v11866_v33  ;;  %v17182_v39 = vand.u32 4294901760, %v17901_v29  ;;  %v17903_v26 = vld [vmem:[#allocation115_spill] sm:$0xff]  ;;  %v17905_v23 = vld [vmem:[#allocation129_spill] sm:$0xff] }
  0x9f   :  { %v641_v7 = vsub.f32 %v17897_v14, %v17177_v50  ;;  %9652 = vmatprep.subr.bf16.mxu0 %v9651_v52  ;;  %v9653_v17 = vpack.c.bf16 %v624_v42, %v612_v5  ;;  %v630_v21 = vand.u32 4294901760, %v629_v18  ;;  %v17183_v34 = vand.u32 4294901760, %v17902_v25  ;;  %v17904_v5 = vld [vmem:[#allocation116_spill] sm:$0xff] }
  0xa0   :  { %v647_v41 = vsub.f32 %v17899_v35, %v17900_v13  ;;  %v636_v16 = vand.u32 4294901760, %v635_v53  ;;  %v17188_v36 = vand.u32 4294901760, %v17903_v26  ;;  %v653_v13 = vsub.f32 %v17901_v29, %v17182_v39 }
  0xa1   :  { %v642_v50 = vand.u32 4294901760, %v641_v7  ;;  %10462 = vmatpush3.bf16.msra.mxu1 %v10461_v27  ;;  %v665_v18 = vsub.f32 %v17902_v25, %v17183_v34  ;;  %v17191_v52 = vand.u32 4294901760, %v17904_v5  ;;  %v10467_v42 = vpack.c.bf16 %v11914_v20, %v11912_v24 }
  0xa2   :  { %v648_v45 = vand.u32 4294901760, %v647_v41  ;;  %9654 = vmatpush1.bf16.msra.mxu0 %v9653_v17  ;;  %10464 = vmatprep.subr.bf16.mxu1 %v10463_v4  ;;  %v659_v27 = vsub.f32 %v17903_v26, %v17188_v36  ;;  %v10469_v41 = vpack.c.bf16 %v11933_v12, %v11931_v48  ;;  %v654_v17 = vand.u32 4294901760, %v653_v13  ;;  %v17911_v48 = vld [vmem:[#allocation148_spill] sm:$0xff] }
  0xa3   :  { %v9655_v7 = vpack.c.bf16 %v642_v50, %v630_v21  ;;  %v666_v39 = vand.u32 4294901760, %v665_v18  ;;  %v671_v34 = vsub.f32 %v17904_v5, %v17191_v52  ;;  %v17190_v33 = vand.u32 4294901760, %v17905_v23  ;;  %v17906_v50 = vld [vmem:[#allocation130_spill] sm:$0xff]  ;;  %v17908_v21 = vld [vmem:[#allocation133_spill] sm:$0xff] }
  0xa4   :  { %v9657_v53 = vpack.c.bf16 %v648_v45, %v636_v16  ;;  %v660_v20 = vand.u32 4294901760, %v659_v27  ;;  %v17193_v45 = vand.u32 4294901760, %v17906_v50  ;;  %v17907_v16 = vld [vmem:[#allocation132_spill] sm:$0xff]  ;;  %v17197_v24 = vand.u32 4294901760, %v17908_v21 }
  0xa5   :  { %9656 = vmatprep.subr.bf16.mxu0 %v9655_v7  ;;  %v17198_v4 = vand.u32 4294901760, %v17907_v16  ;;  %10466 = vmatpush3.bf16.msra.mxu1 %v10465_v46  ;;  %v9659_v36 = vpack.c.bf16 %v666_v39, %v654_v17  ;;  %v672_v12 = vand.u32 4294901760, %v671_v34  ;;  %v677_v13 = vsub.f32 %v17905_v23, %v17190_v33  ;;  %v17909_v17 = vld [vmem:[#allocation144_spill] sm:$0xff]  ;;  %v17910_v33 = vld [vmem:[#allocation145_spill] sm:$0xff] }
  0xa6   :  { %9658 = vmatpush1.bf16.msra.mxu0 %v9657_v53  ;;  %v10471_v18 = vpack.c.bf16 %v11987_v6, %v11985_v22  ;;  %10468 = vmatprep.subr.bf16.mxu1 %v10467_v42  ;;  %v689_v7 = vsub.f32 %v17906_v50, %v17193_v45  ;;  %v695_v34 = vsub.f32 %v17908_v21, %v17197_v24  ;;  %v17200_v42 = vand.u32 4294901760, %v17909_v17 }
  0xa7   :  { %v683_v27 = vsub.f32 %v17907_v16, %v17198_v4  ;;  %v10473_v46 = vpack.c.bf16 %v12006_v56, %v12004_v61  ;;  %9660 = vmatprep.subr.bf16.mxu0 %v9659_v36  ;;  %v9661_v39 = vpack.c.bf16 %v672_v12, %v660_v20  ;;  %v678_v53 = vand.u32 4294901760, %v677_v13  ;;  %v17912_v20 = vld [vmem:[#allocation149_spill] sm:$0xff] }
  0xa8   :  { %v17201_v52 = vand.u32 4294901760, %v17910_v33  ;;  %v690_v6 = vand.u32 4294901760, %v689_v7  ;;  %v696_v22 = vand.u32 4294901760, %v695_v34  ;;  %v17202_v60 = vand.u32 4294901760, %v17911_v48 }
  0xa9   :  { %v684_v45 = vand.u32 4294901760, %v683_v27  ;;  %10470 = vmatpush3.bf16.msra.mxu1 %v10469_v41  ;;  %v701_v24 = vsub.f32 %v17909_v17, %v17200_v42  ;;  %v17204_v12 = vand.u32 4294901760, %v17912_v20  ;;  %v17209_v13 = vand.u32 4294901760, %v12084_v10  ;;  %v17913_v41 = vld [vmem:[#allocation159_spill] sm:$0xff] }
  0xaa   :  { %9662 = vmatpush1.bf16.msra.mxu0 %v9661_v39  ;;  %v713_v36 = vsub.f32 %v17910_v33, %v17201_v52  ;;  %v9663_v4 = vpack.c.bf16 %v690_v6, %v678_v53  ;;  %10472 = vmatprep.subr.bf16.mxu1 %v10471_v18  ;;  %v707_v27 = vsub.f32 %v17911_v48, %v17202_v60  ;;  %v17210_v34 = vand.u32 4294901760, %v17913_v41  ;;  %v17915_v53 = vld [vmem:[#allocation162_spill] sm:$0xff] }
  0xab   :  { %v9665_v7 = vpack.c.bf16 %v696_v22, %v684_v45  ;;  %v702_v39 = vand.u32 4294901760, %v701_v24  ;;  %v719_v42 = vsub.f32 %v17912_v20, %v17204_v12  ;;  %v725_v52 = vsub.f32 %v12084_v10, %v17209_v13  ;;  %v17914_v45 = vld [vmem:[#allocation160_spill] sm:$0xff] }
  0xac   :  { %v714_v56 = vand.u32 4294901760, %v713_v36  ;;  %9664 = vmatprep.subr.bf16.mxu0 %v9663_v4  ;;  %v708_v6 = vand.u32 4294901760, %v707_v27  ;;  %v737_v22 = vsub.f32 %v17913_v41, %v17210_v34  ;;  %v17212_v18 = vand.u32 4294901760, %v17914_v45  ;;  %v17916_v12 = vld [vmem:[#allocation164_spill] sm:$0xff]  ;;  %v17918_v34 = vld [vmem:[#allocation165_spill] sm:$0xff] }
  0xad   :  { %v17215_v60 = vand.u32 4294901760, %v17915_v53  ;;  %10474 = vmatpush3.bf16.msra.mxu1 %v10473_v46  ;;  %v720_v36 = vand.u32 4294901760, %v719_v42  ;;  %v726_v61 = vand.u32 4294901760, %v725_v52  ;;  %v17216_v47 = vand.u32 4294901760, %v17916_v12  ;;  %v17919_v52 = vld [vmem:[#allocation167_spill] sm:$0xff] }
  0xae   :  { %9666 = vmatpush1.bf16.msra.mxu0 %v9665_v7  ;;  %v9667_v24 = vpack.c.bf16 %v714_v56, %v702_v39  ;;  %10476 = vmatprep.subr.bf16.mxu1 %v17917_v28  ;;  %v738_v13 = vand.u32 4294901760, %v737_v22  ;;  %v731_v4 = vsub.f32 %v17914_v45, %v17212_v18  ;;  %v17217_v0 = vand.u32 4294901760, %v17918_v34  ;;  %v17920_v7 = vld [vmem:[#allocation168_spill] sm:$0xff]  ;;  %v17921_v22 = vld [vmem:[#allocation153_spill] sm:$0xff] }
  0xaf   :  { %v743_v27 = vsub.f32 %v17915_v53, %v17215_v60  ;;  %v9669_v46 = vpack.c.bf16 %v720_v36, %v708_v6  ;;  %v749_v56 = vsub.f32 %v17916_v12, %v17216_v47  ;;  %v17222_v42 = vand.u32 4294901760, %v17919_v52 }
  0xb0   :  { %9668 = vmatprep.subr.bf16.mxu0 %v9667_v24  ;;  %v17226_v39 = vand.u32 4294901760, %v17920_v7  ;;  %4464 = vmatmul.mubr.f32.vlgmr.msra.gmra.mrb[24].mxu1 %v17921_v22  ;;  %v9671_v28 = vpack.c.bf16 %v738_v13, %v726_v61  ;;  %v732_v18 = vand.u32 4294901760, %v731_v4  ;;  %v761_v60 = vsub.f32 %v17918_v34, %v17217_v0  ;;  %v17922_v24 = vld [vmem:[#allocation45_spill] sm:$0xff]  ;;  %v17924_v4 = vld [vmem:[#allocation56_spill] sm:$0xff]  ;;  %v17925_v0 = vld [vmem:[#allocation171_spill] sm:$0xff] }
  0xb1   :  { %v744_v2 = vand.u32 4294901760, %v743_v27  ;;  %10478 = vmatpush3.bf16.msra.mxu1 %v17922_v24  ;;  %v750_v6 = vand.u32 4294901760, %v749_v56  ;;  %v755_v36 = vsub.f32 %v17919_v52, %v17222_v42  ;;  %v17923_v22 = vld [vmem:[#allocation169_spill] sm:$0xff]  ;;  %v17230_v24 = vand.u32 4294901760, %v17926_v15  ;;  %4470 = vmatprep.mubr.f32.mxu1 %v12283_v40 }
  0xb2   :  { %9670 = vmatpush1.bf16.msra.mxu0 %v9669_v46  ;;  %v767_v47 = vsub.f32 %v17920_v7, %v17226_v39  ;;  %v17227_v61 = vand.u32 4294901760, %v17923_v22  ;;  %10480 = vmatprep.subr.bf16.mxu1 %v17924_v4  ;;  %v762_v27 = vand.u32 4294901760, %v761_v60  ;;  %v17229_v46 = vand.u32 4294901760, %v17925_v0 }
  0xb3   :  { %9672 = vmatprep.subr.bf16.mxu0 %v9671_v28  ;;  %v9673_v13 = vpack.c.bf16 %v744_v2, %v732_v18  ;;  %v756_v56 = vand.u32 4294901760, %v755_v36  ;;  %v17233_v52 = vand.u32 4294901760, %v17927_v3  ;;  %v779_v60 = vsub.f32 %v17926_v15, %v17230_v24  ;;  %v17928_v28 = vld [vmem:[#allocation175_spill] sm:$0xff] }
  0xb4   :  { %v768_v37 = vand.u32 4294901760, %v767_v47  ;;  %v773_v42 = vsub.f32 %v17923_v22, %v17227_v61  ;;  %v9675_v39 = vpack.c.bf16 %v762_v27, %v750_v6  ;;  %v785_v2 = vsub.f32 %v17925_v0, %v17229_v46  ;;  %4473 = vmatmul.mubr.f32.gmra.mrb[26].mxu1 %v12294_v44  ;;  %v17929_v47 = vld [vmem:[#allocation58_spill] sm:$0xff]  ;;  %v17930_v27 = vld [vmem:[#allocation177_spill] sm:$0xff]  ;;  %v17931_v46 = vld [vmem:[#allocation67_spill] sm:$0xff] }
  0xb5   :  { %v17235_v18 = vand.u32 4294901760, %v17928_v28  ;;  %10482 = vmatpush3.bf16.msra.mxu1 %v17929_v47  ;;  %v791_v6 = vsub.f32 %v17927_v3, %v17233_v52  ;;  %v17237_v40 = vand.u32 4294901760, %v17930_v27  ;;  %v780_v24 = vand.u32 4294901760, %v779_v60  ;;  %v17934_v52 = vld [vmem:[#allocation181_spill] sm:$0xff]  ;;  %4479 = vmatprep.mubr.f32.mxu1 %v12338_v63 }
  0xb6   :  { %9674 = vmatpush1.bf16.msra.mxu0 %v9673_v13  ;;  %v9677_v36 = vpack.c.bf16 %v768_v37, %v756_v56  ;;  %v774_v61 = vand.u32 4294901760, %v773_v42  ;;  %10484 = vmatprep.subr.bf16.mxu1 %v17931_v46  ;;  %v786_v4 = vand.u32 4294901760, %v785_v2  ;;  %v17932_v13 = vld [vmem:[#allocation179_spill] sm:$0xff]  ;;  %v17933_v42 = vld [vmem:[#allocation180_spill] sm:$0xff]  ;;  %v17950_v0 = vld [vmem:[#allocation37_spill] sm:$0xff] }
  0xb7   :  { %9676 = vmatprep.subr.bf16.mxu0 %v9675_v39  ;;  %v797_v44 = vsub.f32 %v17928_v28, %v17235_v18  ;;  %v17239_v15 = vand.u32 4294901760, %v17932_v13  ;;  %v792_v47 = vand.u32 4294901760, %v791_v6  ;;  %v809_v37 = vsub.f32 %v17930_v27, %v17237_v40  ;;  %v17935_v18 = vld [vmem:[#allocation183_spill] sm:$0xff]  ;;  %v17936_v28 = vld [vmem:[#allocation197_spill] sm:$0xff]  ;;  %v17937_v6 = vld [vmem:[#allocation70_spill] sm:$0xff] }
  0xb8   :  { %v17242_v56 = vand.u32 4294901760, %v17933_v42  ;;  %v9679_v39 = vpack.c.bf16 %v786_v4, %v774_v61  ;;  %v17244_v46 = vand.u32 4294901760, %v17935_v18  ;;  %4482 = vmatmul.mubr.f32.gmra.mrb[28].mxu1 %v17936_v28  ;;  %v17938_v61 = vand.u32 4294901760, %v17934_v52  ;;  %v17939_v4 = vld [vmem:[#allocation79_spill] sm:$0xff]  ;;  %v17940_v28 = vld [vmem:[#allocation185_spill] sm:$0xff] }
  0xb9   :  { %v798_v2 = vand.u32 4294901760, %v797_v44  ;;  %v803_v60 = vsub.f32 %v17932_v13, %v17239_v15  ;;  %10486 = vmatpush3.bf16.msra.mxu1 %v17937_v6  ;;  %v9681_v40 = vpack.c.bf16 %v792_v47, %v780_v24  ;;  %v810_v27 = vand.u32 4294901760, %v809_v37  ;;  %v17941_v24 = vld [vmem:[#allocation186_spill] sm:$0xff] }
  0xba   :  { %9678 = vmatpush1.bf16.msra.mxu0 %v9677_v36  ;;  %v815_v3 = vsub.f32 %v17933_v42, %v17242_v56  ;;  %v821_v44 = vsub.f32 %v17934_v52, %v17938_v61  ;;  %10488 = vmatprep.subr.bf16.mxu1 %v17939_v4  ;;  %v833_v36 = vsub.f32 %v17935_v18, %v17244_v46  ;;  %v17246_v63 = vand.u32 4294901760, %v17940_v28  ;;  %v17942_v56 = vld [vmem:[#allocation201_spill] sm:$0xff]  ;;  %v17943_v61 = vld [vmem:[#allocation202_spill] sm:$0xff] }
  0xbb   :  { %9680 = vmatprep.subr.bf16.mxu0 %v9679_v39  ;;  %v804_v15 = vand.u32 4294901760, %v803_v60  ;;  %v17250_v47 = vand.u32 4294901760, %v17941_v24  ;;  %v9683_v37 = vpack.c.bf16 %v810_v27, %v798_v2  ;;  %4488 = vmatprep.mubr.f32.mxu1 %v17942_v56  ;;  %v17944_v46 = vld [vmem:[#allocation82_spill] sm:$0xff]  ;;  %v17945_v27 = vld [vmem:[#allocation23_spill] sm:$0xff] }
  0xbc   :  { %v816_v6 = vand.u32 4294901760, %v815_v3  ;;  %v822_v13 = vand.u32 4294901760, %v821_v44  ;;  %v834_v42 = vand.u32 4294901760, %v833_v36  ;;  %v827_v39 = vsub.f32 %v17940_v28, %v17246_v63  ;;  %4491 = vmatmul.mubr.f32.gmra.mrb[30].mxu1 %v17943_v61  ;;  %v17946_v3 = vld [vmem:[#allocation26_spill] sm:$0xff]  ;;  %v17947_v44 = vld [vmem:[#allocation91_spill] sm:$0xff]  ;;  %v17948_v63 = vld [vmem:[#allocation32_spill] sm:$0xff] }
  0xbd   :  { %v839_v60 = vsub.f32 %v17941_v24, %v17250_v47  ;;  %10490 = vmatpush3.bf16.msra.mxu1 %v17944_v46  ;;  %v9697_v2 = vpack.c.bf16 %v17946_v3, %v17945_v27  ;;  %v17949_v28 = vld [vmem:[#allocation33_spill] sm:$0xff]  ;;  %v9701_v47 = vpack.c.bf16 %v17873_v62, %v17950_v0  ;;  %v17951_v61 = vld [vmem:[#allocation155_spill] sm:$0xff]  ;;  %v17953_v46 = vld [vmem:[#allocation52_spill] sm:$0xff] }
  0xbe   :  { %9682 = vmatpush1.bf16.msra.mxu0 %v9681_v40  ;;  %v9685_v4 = vpack.c.bf16 %v816_v6, %v804_v15  ;;  %10492 = vmatprep.subr.bf16.mxu1 %v17947_v44  ;;  %v9687_v36 = vpack.c.bf16 %v834_v42, %v822_v13  ;;  %v828_v56 = vand.u32 4294901760, %v827_v39  ;;  %v9699_v52 = vpack.c.bf16 %v17949_v28, %v17948_v63  ;;  %v17952_v40 = vld [vmem:[#allocation50_spill] sm:$0xff]  ;;  %v17954_v3 = vld [vmem:[#allocation95_spill] sm:$0xff]  ;;  %v17964_v63 = vld [vmem:[#allocation41_spill] sm:$0xff] }
  0xbf   :  { %9684 = vmatprep.subr.bf16.mxu0 %v9683_v37  ;;  %v840_v18 = vand.u32 4294901760, %v839_v60  ;;  %4595 = vmatprep.mubr.f32.mxu1 %v17951_v61  ;;  %v9703_v15 = vpack.c.bf16 %v17952_v40, %v17877_v57  ;;  %v9705_v37 = vpack.c.bf16 %v17880_v38, %v17953_v46  ;;  %v17955_v39 = vld [vmem:[#allocation103_spill] sm:$0xff]  ;;  %v17956_v60 = vld [vmem:[#allocation6_spill] sm:$0xff]  ;;  %v17959_v46 = vld [vmem:[#allocation12_spill] sm:$0xff]  ;;  %v17965_v42 = vand.u32 4294901760, %v17964_v63 }
  0xc0   :  { %v17957_v62 = vld [vmem:[#allocation7_spill] sm:$0xff]  ;;  %v17962_v57 = vld [vmem:[#allocation17_spill] sm:$0xff]  ;;  %v17973_v63 = vld [vmem:[#allocation174_spill] sm:$0xff] }
  0xc1   :  { %v9689_v6 = vpack.c.bf16 %v840_v18, %v828_v56  ;;  %10494 = vmatpush3.bf16.msra.mxu1 %v17954_v3  ;;  %v9691_v0 = vpack.c.bf16 %v17957_v62, %v17956_v60  ;;  %v17958_v38 = vld [vmem:[#allocation107_spill] sm:$0xff]  ;;  %v17960_v18 = vld [vmem:[#allocation13_spill] sm:$0xff] }
  0xc2   :  { %9686 = vmatpush1.bf16.msra.mxu0 %v9685_v4  ;;  %10496 = vmatprep.subr.bf16.mxu1 %v17955_v39  ;;  %v9693_v40 = vpack.c.bf16 %v17960_v18, %v17959_v46  ;;  %v17961_v4 = vld [vmem:[#allocation118_spill] sm:$0xff]  ;;  %v17963_v13 = vld [vmem:[#allocation19_spill] sm:$0xff] }
  0xc3   :  { %9688 = vmatprep.subr.bf16.mxu0 %v9687_v36  ;;  %v9695_v28 = vpack.c.bf16 %v17963_v13, %v17962_v57  ;;  %v17969_v56 = vld [vmem:[#allocation167_spill] sm:$0xff]  ;;  %v17971_v13 = vld [vmem:[#allocation134_spill] sm:$0xff]  ;;  %v17993_v36 = vld [vmem:[#allocation156_spill] sm:$0xff] }
  0xc4   :  { %v17980_v39 = vld [vmem:[#allocation183_spill] sm:$0xff]  ;;  %v17984_v46 = vld [vmem:[#allocation46_spill] sm:$0xff] }
  0xc5   :  { %10498 = vmatpush3.bf16.msra.mxu1 %v17958_v38  ;;  %v17978_v38 = vld [vmem:[#allocation187_spill] sm:$0xff]  ;;  %v17985_v44 = vand.u32 4294901760, %v17984_v46 }
  0xc6   :  { %9690 = vmatpush1.bf16.msra.mxu0 %v9689_v6  ;;  %10500 = vmatprep.subr.bf16.mxu1 %v17961_v4  ;;  %v17966_v6 = vld [vmem:[#allocation42_spill] sm:$0xff]  ;;  %v17986_v57 = vld [vmem:[#allocation47_spill] sm:$0xff] }
  0xc7   :  { %9692 = vmatprep.subr.bf16.mxu0 %v9691_v0  ;;  %v17967_v27 = vand.u32 4294901760, %v17966_v6  ;;  %v17970_v0 = vld [vmem:[#allocation171_spill] sm:$0xff]  ;;  %v17988_v4 = vld [vmem:[#allocation54_spill] sm:$0xff]  ;;  %v17992_v6 = vld [vmem:[#allocation193_spill] sm:$0xff] }
  0xc8   :  { %v17989_v61 = vand.u32 4294901760, %v17988_v4  ;;  %v17994_v3 = vld [vmem:[#allocation195_spill] sm:$0xff]  ;;  %v18001_v4 = vld [vmem:[#allocation69_spill] sm:$0xff] }
  0xc9   :  { %v10507_v62 = vpack.c.bf16 %v17967_v27, %v17965_v42  ;;  %845 = vmatmul.mubr.f32.vlgmr.msra.gmra.mrb[0].mxu0 %v17884_v54  ;;  %v17968_v42 = vld [vmem:[#allocation122_spill] sm:$0xff] }
  0xca   :  { %9694 = vmatpush1.bf16.msra.mxu0 %v9693_v40  ;;  %10502 = vmatpush3.bf16.msra.mxu1 %v17968_v42  ;;  %v17987_v40 = vand.u32 4294901760, %v17986_v57  ;;  %v17990_v42 = vld [vmem:[#allocation57_spill] sm:$0xff] }
  0xcb   :  { %9696 = vmatprep.subr.bf16.mxu0 %v9695_v28  ;;  %10504 = vmatprep.subr.bf16.mxu1 %v17971_v13  ;;  %v17982_v28 = vld [vmem:[#allocation188_spill] sm:$0xff]  ;;  %v17991_v27 = vand.u32 4294901760, %v17990_v42  ;;  %v18002_v42 = vand.u32 4294901760, %v18001_v4 }
  0xcc   :  { %851 = vmatprep.mubr.f32.mxu0 %v17978_v38  ;;  %v17983_v13 = vld [vmem:[#allocation140_spill] sm:$0xff]  ;;  %v10509_v60 = vpack.c.bf16 %v17987_v40, %v17985_v44  ;;  %v18004_v40 = vld [vmem:[#allocation199_spill] sm:$0xff] }
  0xcd   :  { %853 = vmatmul.mubr.f32.gmra.mrb[2].mxu0 %v17982_v28  ;;  %v10511_v18 = vpack.c.bf16 %v17991_v27, %v17989_v61  ;;  %v18003_v27 = vld [vmem:[#allocation191_spill] sm:$0xff] }
  0xce   :  { %9698 = vmatpush1.bf16.msra.mxu0 %v9697_v2  ;;  %10506 = vmatpush3.bf16.msra.mxu1 %v17983_v13  ;;  %v17995_v2 = vld [vmem:[#allocation59_spill] sm:$0xff]  ;;  %v17997_v13 = vld [vmem:[#allocation60_spill] sm:$0xff] }
  0xcf   :  { %9700 = vmatprep.subr.bf16.mxu0 %v9699_v52  ;;  %10508 = vmatprep.subr.bf16.mxu1 %v10507_v62  ;;  %v17996_v46 = vand.u32 4294901760, %v17995_v2  ;;  %v17998_v57 = vand.u32 4294901760, %v17997_v13  ;;  %v17999_v62 = vld [vmem:[#allocation68_spill] sm:$0xff] }
  0xd0   :  { %859 = vmatprep.mubr.f32.mxu0 %v17992_v6  ;;  %v18000_v52 = vand.u32 4294901760, %v17999_v62  ;;  %v18009_v2 = vld [vmem:[#allocation72_spill] sm:$0xff] }
  0xd1   :  { %4599 = vmatmul.mubr.f32.vlgmr.msra.gmra.mrb[32].mxu1 %v17993_v36  ;;  %861 = vmatmul.mubr.f32.gmra.mrb[4].mxu0 %v17994_v3  ;;  %v10513_v44 = vpack.c.bf16 %v17998_v57, %v17996_v46  ;;  %v18005_v36 = vld [vmem:[#allocation192_spill] sm:$0xff]  ;;  %v18011_v46 = vpack.c.bf16 %v17883_v55, %v17882_v1  ;;  %v18029_v55 = vld [vmem:[#allocation203_spill] sm:$0xff] }
  0xd2   :  { %9702 = vmatpush1.bf16.msra.mxu0 %v9701_v47  ;;  %10510 = vmatpush3.bf16.msra.mxu1 %v10509_v60  ;;  %v10515_v61 = vpack.c.bf16 %v18002_v42, %v18000_v52  ;;  %v18006_v47 = vld [vmem:[#allocation200_spill] sm:$0xff]  ;;  %v18007_v60 = vld [vmem:[#allocation71_spill] sm:$0xff]  ;;  %v18014_v52 = vld [vmem:[#allocation81_spill] sm:$0xff] }
  0xd3   :  { %9704 = vmatprep.subr.bf16.mxu0 %v9703_v15  ;;  %10512 = vmatprep.subr.bf16.mxu1 %v10511_v18  ;;  %v18008_v13 = vand.u32 4294901760, %v18007_v60  ;;  %v18010_v15 = vand.u32 4294901760, %v18009_v2  ;;  %v18012_v57 = vld [vmem:[#allocation80_spill] sm:$0xff]  ;;  %v18015_v4 = vand.u32 4294901760, %v18014_v52  ;;  %v18020_v60 = vld [vmem:[#allocation83_spill] sm:$0xff] }
  0xd4   :  { %4606 = vmatprep.mubr.f32.mxu1 %v18003_v27  ;;  %867 = vmatprep.mubr.f32.mxu0 %v18004_v40  ;;  %v18013_v62 = vand.u32 4294901760, %v18012_v57  ;;  %v18017_v27 = vld [vmem:[#allocation152_spill] sm:$0xff] }
  0xd5   :  { %4610 = vmatmul.mubr.f32.gmra.mrb[34].mxu1 %v18005_v36  ;;  %869 = vmatmul.mubr.f32.gmra.mrb[6].mxu0 %v18006_v47  ;;  %v10517_v18 = vpack.c.bf16 %v18010_v15, %v18008_v13  ;;  %v18016_v36 = vld [vmem:[#allocation196_spill] sm:$0xff]  ;;  %v18021_v13 = vand.u32 4294901760, %v18020_v60 }
  0xd6   :  { %9706 = vmatpush1.bf16.msra.mxu0 %v9705_v37  ;;  %10514 = vmatpush3.bf16.msra.mxu1 %v10513_v44  ;;  %v10519_v42 = vpack.c.bf16 %v18015_v4, %v18013_v62  ;;  %v18018_v37 = vld [vmem:[#allocation198_spill] sm:$0xff]  ;;  %v18019_v44 = vpack.c.bf16 %v17886_v11, %v17885_v9  ;;  %v18022_v2 = vld [vmem:[#allocation84_spill] sm:$0xff] }
  0xd7   :  { %9708 = vmatprep.subr.bf16.mxu0 %v18011_v46  ;;  %10516 = vmatprep.subr.bf16.mxu1 %v10515_v61  ;;  %v18023_v61 = vand.u32 4294901760, %v18022_v2  ;;  %v18024_v46 = vpack.c.bf16 %v17888_v43, %v17887_v51  ;;  %v18025_v57 = vld [vmem:[#allocation92_spill] sm:$0xff]  ;;  %v18041_v43 = vld [vmem:[#allocation150_spill] sm:$0xff] }
  0xd8   :  { %4617 = vmatprep.mubr.f32.mxu1 %v18016_v36  ;;  %1069 = vmatprep.mubr.f32.mxu0 %v18017_v27  ;;  %v18026_v62 = vand.u32 4294901760, %v18025_v57  ;;  %v18027_v27 = vld [vmem:[#allocation93_spill] sm:$0xff]  ;;  %v18030_v11 = vld [vmem:[#allocation204_spill] sm:$0xff] }
  0xd9   :  { %4621 = vmatmul.mubr.f32.gmra.mrb[36].mxu1 %v18018_v37  ;;  %v10521_v15 = vpack.c.bf16 %v18023_v61, %v18021_v13  ;;  %v18028_v52 = vand.u32 4294901760, %v18027_v27  ;;  %v18034_v13 = vld [vmem:[#allocation96_spill] sm:$0xff] }
  0xda   :  { %9710 = vmatpush1.bf16.msra.mxu0 %v18019_v44  ;;  %10518 = vmatpush3.bf16.msra.mxu1 %v10517_v18  ;;  %v18031_v18 = vpack.c.bf16 %v17890_v31, %v17889_v49  ;;  %v18032_v44 = vld [vmem:[#allocation94_spill] sm:$0xff]  ;;  %v18035_v2 = vand.u32 4294901760, %v18034_v13  ;;  %v226_v37 = vld [vmem:[%s16842_s1 + $0x5f8] sm:$0xff] }
  0xdb   :  { %9712 = vmatprep.subr.bf16.mxu0 %v18024_v46  ;;  %10520 = vmatprep.subr.bf16.mxu1 %v10519_v42  ;;  %v10523_v4 = vpack.c.bf16 %v18028_v52, %v18026_v62  ;;  %v18033_v60 = vand.u32 4294901760, %v18032_v44  ;;  %v18036_v42 = vpack.c.bf16 %v17893_v19, %v17892_v58  ;;  %v18037_v46 = vld [vmem:[#allocation104_spill] sm:$0xff]  ;;  %v18039_v62 = vld [vmem:[#allocation105_spill] sm:$0xff] }
  0xdc   :  { %4628 = vmatprep.mubr.f32.mxu1 %v18029_v55  ;;  %v18038_v57 = vand.u32 4294901760, %v18037_v46  ;;  %v18040_v27 = vand.u32 4294901760, %v18039_v62 }
  0xdd   :  { %4632 = vmatmul.mubr.f32.gmra.mrb[38].mxu1 %v18030_v11  ;;  %v10525_v61 = vpack.c.bf16 %v18035_v2, %v18033_v60  ;;  %v18045_v60 = vld [vmem:[#allocation109_spill] sm:$0xff] }
  0xde   :  { %9714 = vmatpush1.bf16.msra.mxu0 %v18031_v18  ;;  %10522 = vmatpush3.bf16.msra.mxu1 %v10521_v15  ;;  %v10527_v52 = vpack.c.bf16 %v18040_v27, %v18038_v57  ;;  %v18042_v15 = vpack.c.bf16 %v17895_v8, %v17894_v30  ;;  %v18043_v18 = vld [vmem:[#allocation108_spill] sm:$0xff]  ;;  %v18046_v13 = vand.u32 4294901760, %v18045_v60  ;;  %v18052_v8 = vpack.c.bf16 %v17899_v35, %v17898_v32  ;;  %v18112_v32 = vld [vmem:[#allocation122_spill] sm:$0xff] }
  0xdf   :  { %9716 = vmatprep.subr.bf16.mxu0 %v18036_v42  ;;  %10524 = vmatprep.subr.bf16.mxu1 %v10523_v4  ;;  %v18044_v44 = vand.u32 4294901760, %v18043_v18  ;;  %v18047_v4 = vpack.c.bf16 %v17897_v14, %v17896_v59  ;;  %v18048_v42 = vld [vmem:[#allocation119_spill] sm:$0xff]  ;;  %v18050_v57 = vld [vmem:[#allocation120_spill] sm:$0xff] }
  0xe0   :  { %4798 = vmatprep.mubr.f32.mxu1 %v18041_v43  ;;  %v18049_v46 = vand.u32 4294901760, %v18048_v42  ;;  %v18051_v62 = vand.u32 4294901760, %v18050_v57  ;;  %v18055_v18 = vld [vmem:[#allocation124_spill] sm:$0xff] }
  0xe1   :  { %v10529_v2 = vpack.c.bf16 %v18046_v13, %v18044_v44  ;;  %v18056_v60 = vand.u32 4294901760, %v18055_v18  ;;  %v18057_v13 = vpack.c.bf16 %v17902_v25, %v17901_v29  ;;  %v18060_v42 = vld [vmem:[#allocation136_spill] sm:$0xff] }
  0xe2   :  { %9718 = vmatpush1.bf16.msra.mxu0 %v18042_v15  ;;  %10526 = vmatpush3.bf16.msra.mxu1 %v10525_v61  ;;  %v10531_v27 = vpack.c.bf16 %v18051_v62, %v18049_v46  ;;  %v18053_v61 = vld [vmem:[#allocation123_spill] sm:$0xff]  ;;  %v18061_v57 = vand.u32 4294901760, %v18060_v42  ;;  %v18062_v62 = vpack.c.bf16 %v17904_v5, %v17903_v26  ;;  %v18073_v42 = vpack.c.bf16 %v17913_v41, %v12084_v10  ;;  %v18103_v5 = vld [vmem:[#allocation5_spill] sm:$0xff] }
  0xe3   :  { %9720 = vmatprep.subr.bf16.mxu0 %v18047_v4  ;;  %10528 = vmatprep.subr.bf16.mxu1 %v10527_v52  ;;  %v18054_v15 = vand.u32 4294901760, %v18053_v61  ;;  %v18058_v52 = vld [vmem:[#allocation135_spill] sm:$0xff]  ;;  %v18065_v61 = vld [vmem:[#allocation142_spill] sm:$0xff] }
  0xe4   :  { %v18059_v4 = vand.u32 4294901760, %v18058_v52  ;;  %v18066_v18 = vand.u32 4294901760, %v18065_v61  ;;  %v18071_v52 = vpack.c.bf16 %v17912_v20, %v17911_v48  ;;  %v18079_v61 = vpack.c.bf16 %v17920_v7, %v17969_v56  ;;  %v18093_v56 = vld [vmem:[#allocation95_spill] sm:$0xff] }
  0xe5   :  { %v10533_v44 = vpack.c.bf16 %v18056_v60, %v18054_v15  ;;  %v18067_v60 = vpack.c.bf16 %v17906_v50, %v17905_v23  ;;  %v18096_v10 = vld [vmem:[#allocation103_spill] sm:$0xff]  ;;  %v208_v23 = vld [vmem:[%s16842_s1 + $0x568] sm:$0xff] }
  0xe6   :  { %9722 = vmatpush1.bf16.msra.mxu0 %v18052_v8  ;;  %10530 = vmatpush3.bf16.msra.mxu1 %v10529_v2  ;;  %v10535_v46 = vpack.c.bf16 %v18061_v57, %v18059_v4  ;;  %v18063_v8 = vld [vmem:[#allocation141_spill] sm:$0xff]  ;;  %v18074_v57 = vld [vmem:[#allocation56_spill] sm:$0xff]  ;;  %v205_v50 = vld [vmem:[%s16842_s1 + $0x550] sm:$0xff]  ;;  %v5027_v35 = vand.u32 4294901760, %v208_v23 }
  0xe7   :  { %9724 = vmatprep.subr.bf16.mxu0 %v18057_v13  ;;  %10532 = vmatprep.subr.bf16.mxu1 %v10531_v27  ;;  %v18064_v2 = vand.u32 4294901760, %v18063_v8  ;;  %v18068_v27 = vpack.c.bf16 %v17908_v21, %v17907_v16  ;;  %v18069_v13 = vpack.c.bf16 %v17910_v33, %v17909_v17  ;;  %v18072_v4 = vld [vmem:[#allocation45_spill] sm:$0xff]  ;;  %v18077_v8 = vpack.c.bf16 %v17918_v34, %v17916_v12  ;;  %v145_v12 = vld [vmem:[%s16842_s1 + $0x370] sm:$0xff] }
  0xe8   :  { %v18102_v21 = vld [vmem:[#allocation107_spill] sm:$0xff]  ;;  %v5024_v29 = vand.u32 4294901760, %v205_v50 }
  0xe9   :  { %v10537_v15 = vpack.c.bf16 %v18066_v18, %v18064_v2  ;;  %v18078_v2 = vld [vmem:[#allocation67_spill] sm:$0xff]  ;;  %v18080_v18 = vld [vmem:[#allocation70_spill] sm:$0xff] }
  0xea   :  { %9726 = vmatpush1.bf16.msra.mxu0 %v18062_v62  ;;  %10534 = vmatpush3.bf16.msra.mxu1 %v10533_v44  ;;  %v18070_v44 = vld [vmem:[#allocation40_spill] sm:$0xff]  ;;  %v18076_v62 = vld [vmem:[#allocation58_spill] sm:$0xff] }
  0xeb   :  { %9728 = vmatprep.subr.bf16.mxu0 %v18067_v60  ;;  %10536 = vmatprep.subr.bf16.mxu1 %v10535_v46  ;;  %v18075_v46 = vpack.c.bf16 %v17915_v53, %v17914_v45  ;;  %v18082_v60 = vld [vmem:[#allocation79_spill] sm:$0xff]  ;;  %v148_v53 = vld [vmem:[%s16842_s1 + $0x388] sm:$0xff] }
  0xec   :  { %v18094_v45 = vld [vmem:[#allocation181_spill] sm:$0xff] }
  0xed   :  { %v18095_v41 = vpack.c.bf16 %v17980_v39, %v18094_v45  ;;  %v199_v39 = vld [vmem:[%s16842_s1 + $0x520] sm:$0xff] }
  0xee   :  { %9730 = vmatpush1.bf16.msra.mxu0 %v18068_v27  ;;  %10538 = vmatpush3.bf16.msra.mxu1 %v10537_v15  ;;  %v18081_v15 = vpack.c.bf16 %v17970_v0, %v17923_v22  ;;  %v181_v27 = vld [vmem:[%s16842_s1 + $0x490] sm:$0xff] }
  0xef   :  { %9732 = vmatprep.subr.bf16.mxu0 %v18069_v13  ;;  %10540 = vmatprep.subr.bf16.mxu1 %v18070_v44  ;;  %v184_v13 = vld [vmem:[%s16842_s1 + $0x4a8] sm:$0xff]  ;;  %v133_v44 = vld [vmem:[%s16842_s1 + $0x310] sm:$0xff] }
  0xf1   :  { %4800 = vmatmul.mubr.f32.vlgmr.msra.gmra.mrb[40].mxu1 %v17884_v54 }
  0xf2   :  { %9734 = vmatpush1.bf16.msra.mxu0 %v18071_v52  ;;  %10542 = vmatpush3.bf16.msra.mxu1 %v18072_v4  ;;  %v136_v52 = vld [vmem:[%s16842_s1 + $0x328] sm:$0xff] }
  0xf3   :  { %9736 = vmatprep.subr.bf16.mxu0 %v18073_v42  ;;  %10544 = vmatprep.subr.bf16.mxu1 %v18074_v57  ;;  %v18083_v4 = vld [vmem:[#allocation173_spill] sm:$0xff]  ;;  %v18085_v57 = vld [vmem:[#allocation82_spill] sm:$0xff] }
  0xf4   :  { %4805 = vmatprep.mubr.f32.mxu1 %v17978_v38  ;;  %v18084_v42 = vpack.c.bf16 %v17973_v63, %v18083_v4  ;;  %v4955_v63 = vand.u32 4294901760, %v136_v52  ;;  %v142_v4 = vld [vmem:[%s16842_s1 + $0x358] sm:$0xff] }
  0xf5   :  { %4807 = vmatmul.mubr.f32.gmra.mrb[42].mxu1 %v17982_v28 }
  0xf6   :  { %9738 = vmatpush1.bf16.msra.mxu0 %v18075_v46  ;;  %10546 = vmatpush3.bf16.msra.mxu1 %v18076_v62  ;;  %v187_v46 = vld [vmem:[%s16842_s1 + $0x4c0] sm:$0xff]  ;;  %v190_v62 = vld [vmem:[%s16842_s1 + $0x4d8] sm:$0xff] }
  0xf7   :  { %9740 = vmatprep.subr.bf16.mxu0 %v18077_v8  ;;  %10548 = vmatprep.subr.bf16.mxu1 %v18078_v2  ;;  %v18086_v8 = vld [vmem:[#allocation177_spill] sm:$0xff]  ;;  %v18087_v2 = vld [vmem:[#allocation175_spill] sm:$0xff]  ;;  %v5006_v0 = vand.u32 4294901760, %v187_v46  ;;  %v5009_v22 = vand.u32 4294901760, %v190_v62 }
  0xf8   :  { %4812 = vmatprep.mubr.f32.mxu1 %v17992_v6 }
  0xf9   :  { %4814 = vmatmul.mubr.f32.gmra.mrb[44].mxu1 %v17994_v3 }
  0xfa   :  { %9742 = vmatpush1.bf16.msra.mxu0 %v18079_v61  ;;  %10550 = vmatpush3.bf16.msra.mxu1 %v18080_v18  ;;  %v18088_v61 = vpack.c.bf16 %v18086_v8, %v18087_v2  ;;  %v18089_v18 = vld [vmem:[#allocation91_spill] sm:$0xff]  ;;  %v18090_v8 = vld [vmem:[#allocation180_spill] sm:$0xff] }
  0xfb   :  { %9744 = vmatprep.subr.bf16.mxu0 %v18081_v15  ;;  %10552 = vmatprep.subr.bf16.mxu1 %v18082_v60  ;;  %v5000_v15 = vand.u32 4294901760, %v181_v27  ;;  %v5003_v60 = vand.u32 4294901760, %v184_v13  ;;  %v18091_v2 = vld [vmem:[#allocation179_spill] sm:$0xff] }
  0xfc   :  { %4819 = vmatprep.mubr.f32.mxu1 %v18004_v40  ;;  %v18092_v7 = vpack.c.bf16 %v18090_v8, %v18091_v2  ;;  %v4961_v8 = vand.u32 4294901760, %v142_v4 }
  0xfd   :  { %4821 = vmatmul.mubr.f32.gmra.mrb[46].mxu1 %v18006_v47  ;;  %v12986_v20 = vpack.c.bf16 %v5003_v60, %v5000_v15 }
  0xfe   :  { %9746 = vmatpush1.bf16.msra.mxu0 %v18084_v42  ;;  %10554 = vmatpush3.bf16.msra.mxu1 %v18085_v57  ;;  %v139_v42 = vld [vmem:[%s16842_s1 + $0x340] sm:$0xff]  ;;  %v4952_v57 = vand.u32 4294901760, %v133_v44 }
  0xff   :  { %9748 = vmatprep.subr.bf16.mxu0 %v18088_v61  ;;  %10556 = vmatprep.subr.bf16.mxu1 %v18089_v18  ;;  %v193_v61 = vld [vmem:[%s16842_s1 + $0x4f0] sm:$0xff]  ;;  %v196_v18 = vld [vmem:[%s16842_s1 + $0x508] sm:$0xff]  ;;  %v4958_v34 = vand.u32 4294901760, %v139_v42  ;;  %18097 = vst [vmem:[#allocation41_spill] sm:$0xff] %v12986_v20 }
 0x100   :  { %4923 = vmatprep.mubr.f32.mxu1 %v18041_v43  ;;  %v12992_v2 = vpack.c.bf16 %v4955_v63, %v4952_v57  ;;  %v12994_v48 = vsub.f32 %v133_v44, %v4952_v57  ;;  %v5012_v33 = vand.u32 4294901760, %v193_v61  ;;  %v5015_v17 = vand.u32 4294901760, %v196_v18  ;;  %v151_v44 = vld [vmem:[%s16842_s1 + $0x3a0] sm:$0xff] }
 0x101   :  { %v18100_v57 = vld [vmem:[#allocation185_spill] sm:$0xff]  ;;  %v13020_v16 = vsub.f32 %v139_v42, %v4958_v34 }
 0x102   :  { %9750 = vmatpush1.bf16.msra.mxu0 %v18092_v7  ;;  %10558 = vmatpush3.bf16.msra.mxu1 %v18093_v56  ;;  %v12988_v7 = vsub.f32 %v181_v27, %v5000_v15  ;;  %v12990_v56 = vsub.f32 %v184_v13, %v5003_v60  ;;  %18098 = vst [vmem:[#allocation42_spill] sm:$0xff] %v12992_v2  ;;  %v4964_v13 = vand.u32 4294901760, %v145_v12  ;;  %v4967_v15 = vand.u32 4294901760, %v148_v53  ;;  %v154_v60 = vld [vmem:[%s16842_s1 + $0x3b8] sm:$0xff] }
 0x103   :  { %9752 = vmatprep.subr.bf16.mxu0 %v18095_v41  ;;  %10560 = vmatprep.subr.bf16.mxu1 %v18096_v10  ;;  %v202_v10 = vld [vmem:[%s16842_s1 + $0x538] sm:$0xff]  ;;  %v13002_v41 = vsub.f32 %v136_v52, %v4955_v63  ;;  %v13004_v27 = vpack.c.bf16 %v5009_v22, %v5006_v0  ;;  %v18101_v45 = vpack.c.bf16 %v17941_v24, %v18100_v57  ;;  %v18104_v24 = vld [vmem:[#allocation118_spill] sm:$0xff]  ;;  %v18149_v36 = vand.u32 4294901760, %v13020_v16 }
 0x104   :  { %v13016_v63 = vsub.f32 %v187_v46, %v5006_v0  ;;  %v13018_v52 = vsub.f32 %v190_v62, %v5009_v22  ;;  %v5018_v22 = vand.u32 4294901760, %v199_v39  ;;  %v5021_v0 = vand.u32 4294901760, %v202_v10  ;;  %v157_v46 = vld [vmem:[%s16842_s1 + $0x3d0] sm:$0xff]  ;;  %v160_v62 = vld [vmem:[%s16842_s1 + $0x3e8] sm:$0xff] }
 0x105   :  { %18099 = vst [vmem:[#allocation46_spill] sm:$0xff] %v13004_v27  ;;  %v13040_v42 = vpack.c.bf16 %v5015_v17, %v5012_v33  ;;  %v13042_v57 = vsub.f32 %v193_v61, %v5012_v33  ;;  %v13051_v26 = vsub.f32 %v196_v18, %v5015_v17  ;;  %v13053_v25 = vpack.c.bf16 %v4967_v15, %v4964_v13  ;;  %v18_v33 = vld [vmem:[%s16841_s0 + $0x18] sm:$0xff]  ;;  %v18113_v17 = vld [vmem:[#allocation18_spill] sm:$0xff] }
 0x106   :  { %9754 = vmatpush1.bf16.msra.mxu0 %v18101_v45  ;;  %10562 = vmatpush3.bf16.msra.mxu1 %v18102_v21  ;;  %v13030_v45 = vpack.c.bf16 %v4961_v8, %v4958_v34  ;;  %v13032_v21 = vsub.f32 %v142_v4, %v4961_v8  ;;  %v211_v34 = vld [vmem:[%s16842_s1 + $0x580] sm:$0xff]  ;;  %v214_v4 = vld [vmem:[%s16842_s1 + $0x598] sm:$0xff]  ;;  %v13060_v14 = vsub.f32 %v145_v12, %v4964_v13  ;;  %v4976_v30 = vand.u32 4294901760, %v157_v46  ;;  %v18114_v18 = vld [vmem:[#allocation134_spill] sm:$0xff] }
 0x107   :  { %9756 = vmatprep.subr.bf16.mxu0 %v18103_v5  ;;  %10564 = vmatprep.subr.bf16.mxu1 %v18104_v24  ;;  %18107 = vst [vmem:[#allocation57_spill] sm:$0xff] %v13040_v42  ;;  %18108 = vst [vmem:[#allocation59_spill] sm:$0xff] %v13042_v57  ;;  %v4970_v5 = vand.u32 4294901760, %v151_v44  ;;  %v4973_v24 = vand.u32 4294901760, %v154_v60  ;;  %v18109_v8 = vld [vmem:[#allocation153_spill] sm:$0xff]  ;;  %v18111_v61 = vld [vmem:[#allocation11_spill] sm:$0xff]  ;;  %v13062_v59 = vsub.f32 %v148_v53, %v4967_v15 }
 0x108   :  { %18105 = vst [vmem:[#allocation47_spill] sm:$0xff] %v13030_v45  ;;  %18106 = vst [vmem:[#allocation54_spill] sm:$0xff] %v13032_v21  ;;  %v13066_v19 = vpack.c.bf16 %v5021_v0, %v5018_v22  ;;  %v13068_v58 = vsub.f32 %v199_v39, %v5018_v22  ;;  %v5030_v31 = vand.u32 4294901760, %v211_v34  ;;  %v5033_v49 = vand.u32 4294901760, %v214_v4  ;;  %v166_v15 = vld [vmem:[%s16842_s1 + $0x418] sm:$0xff]  ;;  %v18118_v39 = vld [vmem:[#allocation189_spill] sm:$0xff] }
 0x109   :  { %1072 = vmatmul.mubr.f32.vlgmr.msra.gmra.mrb[0].mxu0 %v18109_v8  ;;  %18110 = vst [vmem:[#allocation60_spill] sm:$0xff] %v13053_v25  ;;  %v4979_v8 = vand.u32 4294901760, %v160_v62  ;;  %v13073_v12 = vsub.f32 %v202_v10, %v5021_v0  ;;  %v13075_v53 = vpack.c.bf16 %v4973_v24, %v4970_v5  ;;  %v13077_v13 = vsub.f32 %v151_v44, %v4970_v5  ;;  %v18120_v0 = vld [vmem:[#allocation190_spill] sm:$0xff]  ;;  %v18121_v5 = vld [vmem:[#allocation25_spill] sm:$0xff]  ;;  %v18122_v44 = vld [vmem:[#allocation140_spill] sm:$0xff] }
 0x10a   :  { %9758 = vmatpush1.bf16.msra.mxu0 %v18111_v61  ;;  %10566 = vmatpush3.bf16.msra.mxu1 %v18112_v32  ;;  %18115 = vst [vmem:[#allocation68_spill] sm:$0xff] %v13066_v19  ;;  %v163_v32 = vld [vmem:[%s16842_s1 + $0x400] sm:$0xff]  ;;  %v13085_v22 = vsub.f32 %v154_v60, %v4973_v24  ;;  %v13089_v61 = vsub.f32 %v205_v50, %v5024_v29 }
 0x10b   :  { %9760 = vmatprep.subr.bf16.mxu0 %v18113_v17  ;;  %10568 = vmatprep.subr.bf16.mxu1 %v18114_v18  ;;  %18116 = vst [vmem:[#allocation69_spill] sm:$0xff] %v13075_v53  ;;  %v13082_v18 = vand.u32 4294901760, %v18_v33  ;;  %v13087_v17 = vpack.c.bf16 %v5027_v35, %v5024_v29  ;;  %v13091_v10 = vsub.f32 %v208_v23, %v5027_v35  ;;  %v4982_v60 = vand.u32 4294901760, %v163_v32  ;;  %v217_v29 = vld [vmem:[%s16842_s1 + $0x5b0] sm:$0xff]  ;;  %v220_v35 = vld [vmem:[%s16842_s1 + $0x5c8] sm:$0xff] }
 0x10c   :  { %1079 = vmatprep.mubr.f32.mxu0 %v18118_v39  ;;  %v13096_v43 = vpack.c.bf16 %v4979_v8, %v4976_v30  ;;  %v13098_v51 = vsub.f32 %v157_v46, %v4976_v30  ;;  %v13100_v9 = vsub.f32 %v160_v62, %v4979_v8  ;;  %v18124_v23 = vld [vmem:[#allocation31_spill] sm:$0xff]  ;;  %v13110_v50 = vpack.c.bf16 %v5033_v49, %v5030_v31  ;;  %v172_v62 = vld [vmem:[%s16842_s1 + $0x448] sm:$0xff] }
 0x10d   :  { %18117 = vst [vmem:[#allocation71_spill] sm:$0xff] %v13082_v18  ;;  %18119 = vst [vmem:[#allocation72_spill] sm:$0xff] %v13087_v17  ;;  %1082 = vmatmul.mubr.f32.gmra.mrb[2].mxu0 %v18120_v0  ;;  %v13112_v24 = vsub.f32 %v211_v34, %v5030_v31  ;;  %v4985_v30 = vand.u32 4294901760, %v166_v15  ;;  %v169_v46 = vld [vmem:[%s16842_s1 + $0x430] sm:$0xff]  ;;  %v13122_v39 = vsub.f32 %v18_v33, %v13082_v18  ;;  %v5039_v11 = vand.u32 4294901760, %v220_v35  ;;  %v223_v33 = vld [vmem:[%s16842_s1 + $0x5e0] sm:$0xff] }
 0x10e   :  { %9762 = vmatpush1.bf16.msra.mxu0 %v18121_v5  ;;  %10570 = vmatpush3.bf16.msra.mxu1 %v18122_v44  ;;  %18123 = vst [vmem:[#allocation80_spill] sm:$0xff] %v13096_v43  ;;  %18125 = vst [vmem:[#allocation81_spill] sm:$0xff] %v13110_v50  ;;  %v18127_v34 = vld [vmem:[#allocation194_spill] sm:$0xff]  ;;  %v13131_v5 = vsub.f32 %v163_v32, %v4982_v60  ;;  %v18128_v8 = vld [vmem:[#allocation197_spill] sm:$0xff]  ;;  %v4988_v31 = vand.u32 4294901760, %v169_v46  ;;  %v18131_v32 = vand.u32 4294901760, %v12990_v56 }
 0x10f   :  { %9764 = vmatprep.subr.bf16.mxu0 %v18124_v23  ;;  %10572 = vmatprep.subr.bf16.mxu1 %v12986_v20  ;;  %18126 = vst [vmem:[#allocation152_spill] sm:$0xff] %v13122_v39  ;;  %v13129_v23 = vsub.f32 %v214_v4, %v5033_v49  ;;  %v5036_v20 = vand.u32 4294901760, %v217_v29  ;;  %v18129_v0 = vld [vmem:[#allocation36_spill] sm:$0xff]  ;;  %v17_v49 = vld [vmem:[%s16841_s0 + $0x10] sm:$0xff]  ;;  %v18130_v4 = vand.u32 4294901760, %v12988_v7  ;;  %v13158_v1 = vsub.f32 %v166_v15, %v4985_v30 }
 0x110   :  { %1089 = vmatprep.mubr.f32.mxu0 %v18127_v34  ;;  %v4991_v34 = vand.u32 4294901760, %v172_v62  ;;  %v18144_v15 = vand.u32 4294901760, %v13016_v63  ;;  %v18150_v18 = vand.u32 4294901760, %v13032_v21 }
 0x111   :  { %4925 = vmatmul.mubr.f32.vlgmr.msra.gmra.mrb[48].mxu1 %v17884_v54  ;;  %1092 = vmatmul.mubr.f32.gmra.mrb[4].mxu0 %v18128_v8  ;;  %v13146_v44 = vpack.c.bf16 %v18131_v32, %v18130_v4  ;;  %v18133_v54 = vand.u32 4294901760, %v12994_v48  ;;  %v18134_v8 = vand.u32 4294901760, %v13002_v41  ;;  %v13176_v4 = vpack.c.bf16 %v5039_v11, %v5036_v20 }
 0x112   :  { %9766 = vmatpush1.bf16.msra.mxu0 %v18129_v0  ;;  %10574 = vmatpush3.bf16.msra.mxu1 %v12992_v2  ;;  %v18136_v0 = vld [vmem:[#allocation48_spill] sm:$0xff]  ;;  %v13156_v2 = vpack.c.bf16 %v4985_v30, %v4982_v60  ;;  %v13170_v60 = vand.u32 4294901760, %v13122_v39  ;;  %v13178_v32 = vsub.f32 %v217_v29, %v5036_v20  ;;  %v18145_v30 = vand.u32 4294901760, %v13018_v52 }
 0x113   :  { %18132 = vst [vmem:[#allocation83_spill] sm:$0xff] %v13146_v44  ;;  %v13152_v55 = vpack.c.bf16 %v18134_v8, %v18133_v54  ;;  %9768 = vmatprep.subr.bf16.mxu0 %v18136_v0  ;;  %10576 = vmatprep.subr.bf16.mxu1 %v13004_v27  ;;  %v5042_v54 = vand.u32 4294901760, %v223_v33  ;;  %v175_v8 = vld [vmem:[%s16842_s1 + $0x460] sm:$0xff]  ;;  %18140 = vst [vmem:[#allocation94_spill] sm:$0xff] %v13176_v4  ;;  %v13183_v44 = vand.u32 4294901760, %v17_v49 }
 0x114   :  { %18137 = vst [vmem:[#allocation92_spill] sm:$0xff] %v13156_v2  ;;  %4930 = vmatprep.mubr.f32.mxu1 %v17978_v38  ;;  %18138 = vst [vmem:[#allocation93_spill] sm:$0xff] %v13170_v60  ;;  %v18139_v0 = vld [vmem:[#allocation201_spill] sm:$0xff]  ;;  %v18143_v38 = vld [vmem:[#allocation202_spill] sm:$0xff]  ;;  %v13190_v27 = vpack.c.bf16 %v18145_v30, %v18144_v15  ;;  %v13194_v20 = vsub.f32 %v220_v35, %v5039_v11  ;;  %v13196_v29 = vpack.c.bf16 %v4991_v34, %v4988_v31 }
 0x115   :  { %18135 = vst [vmem:[#allocation84_spill] sm:$0xff] %v13152_v55  ;;  %1099 = vmatprep.mubr.f32.mxu0 %v18139_v0  ;;  %4932 = vmatmul.mubr.f32.gmra.mrb[50].mxu1 %v17982_v28  ;;  %18141 = vst [vmem:[#allocation96_spill] sm:$0xff] %v13178_v32  ;;  %v178_v55 = vld [vmem:[%s16842_s1 + $0x478] sm:$0xff]  ;;  %v5045_v28 = vand.u32 4294901760, %v226_v37  ;;  %v18152_v32 = vld [vmem:[#allocation62_spill] sm:$0xff]  ;;  %v13206_v15 = vsub.f32 %v169_v46, %v4988_v31  ;;  %v4994_v30 = vand.u32 4294901760, %v175_v8 }
 0x116   :  { %18142 = vst [vmem:[#allocation104_spill] sm:$0xff] %v13183_v44  ;;  %1102 = vmatmul.mubr.f32.gmra.mrb[6].mxu0 %v18143_v38  ;;  %18146 = vst [vmem:[#allocation105_spill] sm:$0xff] %v13190_v27  ;;  %v18147_v0 = vld [vmem:[#allocation51_spill] sm:$0xff]  ;;  %10578 = vmatpush3.bf16.msra.mxu1 %v13030_v45  ;;  %v13202_v38 = vpack.c.bf16 %v18150_v18, %v18149_v36  ;;  %v4997_v35 = vand.u32 4294901760, %v178_v55  ;;  %v1866_v27 = vsub.f32 %v13122_v39, %v13170_v60  ;;  %v18157_v36 = vld [vmem:[#allocation64_spill] sm:$0xff] }
 0x117   :  { %9770 = vmatpush1.bf16.msra.mxu0 %v18147_v0  ;;  %18148 = vst [vmem:[#allocation108_spill] sm:$0xff] %v13196_v29  ;;  %10580 = vmatprep.subr.bf16.mxu1 %v13040_v42  ;;  %v17310_v0 = vand.u32 4294901760, %v13042_v57  ;;  %v17313_v18 = vand.u32 4294901760, %v13062_v59  ;;  %v13217_v46 = vsub.f32 %v172_v62, %v4991_v34  ;;  %v13219_v31 = vsub.f32 %v223_v33, %v5042_v54  ;;  %v32_v45 = vld [vmem:[%s16841_s0 + $0x88] sm:$0xff] }
 0x118   :  { %18151 = vst [vmem:[#allocation109_spill] sm:$0xff] %v13202_v38  ;;  %9772 = vmatprep.subr.bf16.mxu0 %v18152_v32  ;;  %4937 = vmatprep.mubr.f32.mxu1 %v17992_v6  ;;  %v18153_v32 = vld [vmem:[#allocation155_spill] sm:$0xff]  ;;  %v13222_v11 = vsub.f32 %v17_v49, %v13183_v44  ;;  %v18155_v38 = vand.u32 4294901760, %v13051_v26  ;;  %v18159_v33 = vand.u32 4294901760, %v12990_v56  ;;  %v18160_v49 = vand.u32 4294901760, %v13060_v14 }
 0x119   :  { %1239 = vmatprep.mubr.f32.mxu0 %v18153_v32  ;;  %4939 = vmatmul.mubr.f32.gmra.mrb[52].mxu1 %v17994_v3  ;;  %v18158_v32 = vand.u32 4294901760, %v12988_v7  ;;  %v13255_v60 = vand.u32 4294901760, %v1866_v27  ;;  %v18184_v42 = vand.u32 4294901760, %v13098_v51 }
 0x11a   :  { %18154 = vst [vmem:[#allocation119_spill] sm:$0xff] %v13222_v11  ;;  %v13228_v6 = vpack.c.bf16 %v18155_v38, %v17310_v0  ;;  %10582 = vmatpush3.bf16.msra.mxu1 %v13053_v25  ;;  %v5231_v34 = vsub.f32 %v12990_v56, %v18159_v33  ;;  %v13242_v3 = vpack.c.bf16 %v17313_v18, %v18160_v49  ;;  %v18162_v38 = vld [vmem:[#allocation74_spill] sm:$0xff]  ;;  %v18167_v49 = vand.u32 4294901760, %v13073_v12  ;;  %v27_v25 = vld [vmem:[%s16841_s0 + $0x60] sm:$0xff] }
 0x11b   :  { %9774 = vmatpush1.bf16.msra.mxu0 %v18157_v36  ;;  %v5224_v62 = vsub.f32 %v12988_v7, %v18158_v32  ;;  %10584 = vmatprep.subr.bf16.mxu1 %v13066_v19  ;;  %v13246_v0 = vpack.c.bf16 %v5045_v28, %v5042_v54  ;;  %v13248_v36 = vsub.f32 %v226_v37, %v5045_v28  ;;  %v17318_v32 = vand.u32 4294901760, %v13068_v58  ;;  %v23_v54 = vld [vmem:[%s16841_s0 + $0x40] sm:$0xff] }
 0x11c   :  { %18156 = vst [vmem:[#allocation120_spill] sm:$0xff] %v13228_v6  ;;  %18161 = vst [vmem:[#allocation123_spill] sm:$0xff] %v13242_v3  ;;  %9776 = vmatprep.subr.bf16.mxu0 %v18162_v38  ;;  %4944 = vmatprep.mubr.f32.mxu1 %v18004_v40  ;;  %v13253_v33 = vpack.c.bf16 %v4997_v35, %v4994_v30  ;;  %v13263_v28 = vsub.f32 %v175_v8, %v4994_v30  ;;  %v13266_v37 = vand.u32 4294901760, %v13222_v11  ;;  %v18169_v38 = vld [vmem:[#allocation76_spill] sm:$0xff] }
 0x11d   :  { %18163 = vst [vmem:[#allocation124_spill] sm:$0xff] %v13246_v0  ;;  %18164 = vst [vmem:[#allocation135_spill] sm:$0xff] %v13255_v60  ;;  %4946 = vmatmul.mubr.f32.gmra.mrb[54].mxu1 %v18006_v47  ;;  %v18166_v6 = vand.u32 4294901760, %v12994_v48  ;;  %v13275_v18 = vpack.c.bf16 %v18167_v49, %v17318_v32  ;;  %v5225_v3 = vand.u32 4294901760, %v5224_v62  ;;  %v5232_v8 = vand.u32 4294901760, %v5231_v34  ;;  %v18174_v32 = vld [vmem:[#allocation85_spill] sm:$0xff] }
 0x11e   :  { %18165 = vst [vmem:[#allocation136_spill] sm:$0xff] %v13266_v37  ;;  %10586 = vmatpush3.bf16.msra.mxu1 %v13075_v53  ;;  %v18170_v30 = vand.u32 4294901760, %v13002_v41  ;;  %v18171_v40 = vand.u32 4294901760, %v13077_v13  ;;  %v18172_v19 = vand.u32 4294901760, %v13085_v22  ;;  %v18175_v62 = vand.u32 4294901760, %v13016_v63  ;;  %5052 = vmatprep.mubr.f32.mxu1 %v13255_v60 }
 0x11f   :  { %v5112_v27 = vsub.f32 %v12994_v48, %v18166_v6  ;;  %18168 = vst [vmem:[#allocation141_spill] sm:$0xff] %v13275_v18  ;;  %9778 = vmatpush1.bf16.msra.mxu0 %v18169_v38  ;;  %v22_v6 = vld [vmem:[%s16841_s0 + $0x38] sm:$0xff]  ;;  %10588 = vmatprep.subr.bf16.mxu1 %v13087_v17  ;;  %v13300_v18 = vand.u32 4294901760, %v23_v54  ;;  %v13302_v53 = vsub.f32 %v178_v55, %v4997_v35  ;;  %v28_v55 = vld [vmem:[%s16841_s0 + $0x68] sm:$0xff]  ;;  %v18179_v35 = vand.u32 4294901760, %v13089_v61 }
 0x120   :  { %v5119_v47 = vsub.f32 %v13002_v41, %v18170_v30  ;;  %v13289_v49 = vpack.c.bf16 %v18172_v19, %v18171_v40  ;;  %9780 = vmatprep.subr.bf16.mxu0 %v18174_v32  ;;  %v13296_v34 = vsub.f32 %v13016_v63, %v18175_v62  ;;  %v18177_v19 = vand.u32 4294901760, %v13018_v52  ;;  %v18182_v17 = vld [vmem:[#allocation89_spill] sm:$0xff] }
 0x121   :  { %18176 = vst [vmem:[#allocation40_spill] sm:$0xff] %v13300_v18  ;;  %v1872_v30 = vsub.f32 %v13222_v11, %v13266_v37  ;;  %v13314_v38 = vand.u32 4294901760, %v22_v6  ;;  %v18180_v60 = vand.u32 4294901760, %v13091_v10  ;;  %v13327_v62 = vpack.c.bf16 %v5232_v8, %v5225_v3 }
 0x122   :  { %18173 = vst [vmem:[#allocation142_spill] sm:$0xff] %v13289_v49  ;;  %v13308_v40 = vsub.f32 %v13018_v52, %v18177_v19  ;;  %v5113_v49 = vand.u32 4294901760, %v5112_v27  ;;  %10590 = vmatpush3.bf16.msra.mxu1 %v13096_v43  ;;  %v5120_v32 = vand.u32 4294901760, %v5119_v47  ;;  %v18183_v27 = vand.u32 4294901760, %v13020_v16 }
 0x123   :  { %18178 = vst [vmem:[#allocation45_spill] sm:$0xff] %v13314_v38  ;;  %v13323_v19 = vpack.c.bf16 %v18180_v60, %v18179_v35  ;;  %9782 = vmatpush1.bf16.msra.mxu0 %v18182_v17  ;;  %v18185_v60 = vand.u32 4294901760, %v13100_v9  ;;  %v18187_v17 = vld [vmem:[#allocation98_spill] sm:$0xff]  ;;  %10592 = vmatprep.subr.bf16.mxu1 %v13110_v50  ;;  %v5239_v3 = vand.u32 4294901760, %v13296_v34  ;;  %v13347_v47 = vsub.f32 %v23_v54, %v13300_v18 }
 0x124   :  { %v13332_v37 = vsub.f32 %v13020_v16, %v18183_v27  ;;  %9784 = vmatprep.subr.bf16.mxu0 %v18187_v17  ;;  %v17339_v8 = vand.u32 4294901760, %v13112_v24  ;;  %v17338_v27 = vand.u32 4294901760, %v13129_v23  ;;  %v13356_v17 = vand.u32 4294901760, %v1872_v30  ;;  %v33_v54 = vld [vmem:[%s16841_s0 + $0x90] sm:$0xff]  ;;  %s11361_s0 = smov 112  }
 0x125   :  { %18181 = vst [vmem:[#allocation56_spill] sm:$0xff] %v13323_v19  ;;  %v13341_v35 = vpack.c.bf16 %v18185_v60, %v18184_v42  ;;  %18188 = vst [vmem:[#allocation67_spill] sm:$0xff] %v13347_v47  ;;  %v5246_v19 = vand.u32 4294901760, %v13308_v40  ;;  %v13354_v60 = vand.u32 4294901760, %v28_v55  ;;  %v13361_v34 = vand.u32 4294901760, %v27_v25  ;;  %v18194_v42 = vld [vmem:[#allocation100_spill] sm:$0xff] }
 0x126   :  { %18190 = vst [vmem:[#allocation79_spill] sm:$0xff] %v13356_v17  ;;  %v13370_v40 = vpack.c.bf16 %v17338_v27, %v17339_v8  ;;  %10594 = vmatpush3.bf16.msra.mxu1 %v13156_v2  ;;  %v10605_v30 = vpack.c.bf16 %v5120_v32, %v5113_v49  ;;  %v18195_v43 = vand.u32 4294901760, %v13032_v21  ;;  %v18196_v11 = vand.u32 4294901760, %v13131_v5  ;;  %v18202_v49 = vld [vmem:[#allocation96_spill] sm:$0xff] }
 0x127   :  { %18186 = vst [vmem:[#allocation58_spill] sm:$0xff] %v13341_v35  ;;  %18189 = vst [vmem:[#allocation70_spill] sm:$0xff] %v13354_v60  ;;  %v13359_v35 = vsub.f32 %v22_v6, %v13314_v38  ;;  %9786 = vmatpush1.bf16.msra.mxu0 %v18194_v42  ;;  %v5127_v6 = vand.u32 4294901760, %v13332_v37  ;;  %v18197_v27 = vand.u32 4294901760, %v13158_v1  ;;  %v18199_v42 = vld [vmem:[#allocation112_spill] sm:$0xff]  ;;  %10596 = vmatprep.subr.bf16.mxu1 %v13176_v4  ;;  %v18200_v32 = vand.u32 4294901760, %v13042_v57 }
 0x128   :  { %18192 = vst [vmem:[#allocation91_spill] sm:$0xff] %v13361_v34  ;;  %18193 = vst [vmem:[#allocation95_spill] sm:$0xff] %v13370_v40  ;;  %v5133_v50 = vsub.f32 %v13032_v21, %v18195_v43  ;;  %9788 = vmatprep.subr.bf16.mxu0 %v18199_v42  ;;  %v13393_v43 = vand.u32 4294901760, %v13347_v47  ;;  %v17357_v40 = vand.u32 4294901760, %v18202_v49  ;;  %v17356_v2 = vand.u32 4294901760, %v13194_v20 }
 0x129   :  { %18191 = vst [vmem:[#allocation82_spill] sm:$0xff] %v13359_v35  ;;  %v13385_v8 = vpack.c.bf16 %v18197_v27, %v18196_v11  ;;  %v5252_v37 = vsub.f32 %v13042_v57, %v18200_v32  ;;  %v13398_v39 = vsub.f32 %v28_v55, %v13354_v60  ;;  %v13402_v42 = vand.u32 4294901760, %v33_v54  ;;  %v18209_v60 = vld [vmem:[#allocation114_spill] sm:$0xff] }
 0x12a   :  { %18201 = vst [vmem:[#allocation107_spill] sm:$0xff] %v13393_v43  ;;  %v13408_v32 = vsub.f32 %v27_v25, %v13361_v34  ;;  %v13410_v4 = vand.u32 4294901760, %v32_v45  ;;  %v13416_v55 = vpack.c.bf16 %v17356_v2, %v17357_v40  ;;  %10598 = vmatpush3.bf16.msra.mxu1 %v13196_v29  ;;  %v5134_v27 = vand.u32 4294901760, %v5133_v50  ;;  %v18215_v2 = vld [vmem:[#allocation128_spill] sm:$0xff] }
 0x12b   :  { %18198 = vst [vmem:[#allocation103_spill] sm:$0xff] %v13385_v8  ;;  %18203 = vst [vmem:[#allocation118_spill] sm:$0xff] %v13398_v39  ;;  %v13405_v8 = vand.u32 4294901760, %v13359_v35  ;;  %9790 = vmatpush1.bf16.msra.mxu0 %v18209_v60  ;;  %v18210_v11 = vand.u32 4294901760, %v13051_v26  ;;  %v18211_v25 = vand.u32 4294901760, %v13060_v14  ;;  %v18212_v18 = vand.u32 4294901760, %v13206_v15  ;;  %10600 = vmatprep.subr.bf16.mxu1 %v13246_v0 }
 0x12c   :  { %18204 = vst [vmem:[#allocation153_spill] sm:$0xff] %v13402_v42  ;;  %18206 = vst [vmem:[#allocation134_spill] sm:$0xff] %v13408_v32  ;;  %v18213_v57 = vand.u32 4294901760, %v13217_v46  ;;  %9792 = vmatprep.subr.bf16.mxu0 %v18215_v2  ;;  %v18216_v50 = vand.u32 4294901760, %v13062_v59  ;;  %v13455_v60 = vsub.f32 %v32_v45, %v13410_v4  ;;  %v10607_v2 = vpack.c.bf16 %v5246_v19, %v5239_v3  ;;  %v18228_v45 = vld [vmem:[#allocation143_spill] sm:$0xff] }
 0x12d   :  { %18205 = vst [vmem:[#allocation122_spill] sm:$0xff] %v13405_v8  ;;  %18207 = vst [vmem:[#allocation189_spill] sm:$0xff] %v13410_v4  ;;  %v5259_v38 = vsub.f32 %v13051_v26, %v18210_v11  ;;  %v5140_v34 = vsub.f32 %v13060_v14, %v18211_v25  ;;  %v1882_v11 = vsub.f32 %v13347_v47, %v13393_v43  ;;  %v18221_v25 = vand.u32 4294901760, %v13219_v31 }
 0x12e   :  { %18208 = vst [vmem:[#allocation190_spill] sm:$0xff] %v13416_v55  ;;  %v13430_v21 = vpack.c.bf16 %v18213_v57, %v18212_v18  ;;  %v5147_v40 = vsub.f32 %v13062_v59, %v18216_v50  ;;  %v13442_v55 = vand.u32 4294901760, %v13398_v39  ;;  %v13445_v57 = vsub.f32 %v33_v54, %v13402_v42  ;;  %18220 = vst [vmem:[#allocation202_spill] sm:$0xff] %v13455_v60  ;;  %v18224_v54 = vld [vmem:[#allocation131_spill] sm:$0xff] }
 0x12f   :  { %v1888_v50 = vsub.f32 %v13359_v35, %v13405_v8  ;;  %v18222_v43 = vand.u32 4294901760, %v13248_v36  ;;  %9794 = vmatpush1.bf16.msra.mxu0 %v18224_v54  ;;  %10602 = vmatpush3.bf16.msra.mxu1 %v13253_v33  ;;  %v5253_v18 = vand.u32 4294901760, %v5252_v37  ;;  %v5260_v29 = vand.u32 4294901760, %v5259_v38 }
 0x130   :  { %18214 = vst [vmem:[#allocation140_spill] sm:$0xff] %v13430_v21  ;;  %18217 = vst [vmem:[#allocation194_spill] sm:$0xff] %v13442_v55  ;;  %v13452_v21 = vand.u32 4294901760, %v13408_v32  ;;  %v18225_v8 = vand.u32 4294901760, %v13263_v28  ;;  %v18226_v35 = vand.u32 4294901760, %v13302_v53  ;;  %9796 = vmatprep.subr.bf16.mxu0 %v18228_v45  ;;  %10604 = vmatprep.subr.bf16.mxu1 %v13327_v62  ;;  %v10609_v4 = vpack.c.bf16 %v5134_v27, %v5127_v6 }
 0x131   :  { %18218 = vst [vmem:[#allocation197_spill] sm:$0xff] %v13445_v57  ;;  %v13461_v0 = vpack.c.bf16 %v18222_v43, %v18221_v25  ;;  %v18229_v43 = vand.u32 4294901760, %v13068_v58  ;;  %v18230_v54 = vand.u32 4294901760, %v13073_v12  ;;  %v5141_v38 = vand.u32 4294901760, %v5140_v34  ;;  %v18235_v34 = vld [vmem:[#allocation146_spill] sm:$0xff] }
 0x132   :  { %18219 = vst [vmem:[#allocation201_spill] sm:$0xff] %v13452_v21  ;;  %v13469_v47 = vpack.c.bf16 %v18226_v35, %v18225_v8  ;;  %v13479_v3 = vand.u32 4294901760, %v1882_v11  ;;  %v1898_v35 = vsub.f32 %v13398_v39, %v13442_v55  ;;  %v13484_v8 = vand.u32 4294901760, %v13445_v57  ;;  %5058 = vmatmul.mubr.f32.vlgmr.msra.gmra.mrb[56].mxu1 %v13356_v17 }
 0x133   :  { %18223 = vst [vmem:[#allocation155_spill] sm:$0xff] %v13461_v0  ;;  %v5266_v25 = vsub.f32 %v13068_v58, %v18229_v43  ;;  %v5273_v19 = vsub.f32 %v13073_v12, %v18230_v54  ;;  %v5148_v62 = vand.u32 4294901760, %v5147_v40  ;;  %v13487_v6 = vand.u32 4294901760, %v1888_v50  ;;  %9798 = vmatpush1.bf16.msra.mxu0 %v18235_v34  ;;  %10606 = vmatpush3.bf16.msra.mxu1 %v10605_v30  ;;  %v18238_v50 = vld [vmem:[#allocation157_spill] sm:$0xff] }
 0x134   :  { %18227 = vst [vmem:[#allocation96_spill] sm:$0xff] %v13469_v47  ;;  %18231 = vst [vmem:[#allocation205_spill] sm:$0xff] %v13479_v3  ;;  %v1904_v37 = vsub.f32 %v13408_v32, %v13452_v21  ;;  %v13492_v27 = vand.u32 4294901760, %v13455_v60  ;;  %v10611_v11 = vpack.c.bf16 %v5260_v29, %v5253_v18  ;;  %v18236_v54 = vand.u32 4294901760, %v13077_v13  ;;  %9800 = vmatprep.subr.bf16.mxu0 %v18238_v50 }
 0x135   :  { %18232 = vst [vmem:[#allocation206_spill] sm:$0xff] %v13484_v8  ;;  %18233 = vst [vmem:[#allocation207_spill] sm:$0xff] %v13487_v6  ;;  %v18237_v45 = vand.u32 4294901760, %v13085_v22  ;;  %10608 = vmatprep.subr.bf16.mxu1 %v10607_v2  ;;  %v5267_v17 = vand.u32 4294901760, %v5266_v25  ;;  %v5274_v47 = vand.u32 4294901760, %v5273_v19  ;;  %v18239_v0 = vand.u32 4294901760, %v13089_v61  ;;  %5067 = vmatprep.mubr.f32.mxu1 %v13479_v3 }
 0x136   :  { %18234 = vst [vmem:[#allocation208_spill] sm:$0xff] %v13492_v27  ;;  %v5154_v43 = vsub.f32 %v13077_v13, %v18236_v54  ;;  %v18240_v30 = vand.u32 4294901760, %v13091_v10  ;;  %v18241_v18 = vand.u32 4294901760, %v13098_v51  ;;  %v1914_v2 = vsub.f32 %v13445_v57, %v13484_v8  ;;  %5073 = vmatmul.mubr.f32.gmra.mrb[58].mxu1 %v13487_v6  ;;  %v18248_v8 = vld [vmem:[#allocation163_spill] sm:$0xff] }
 0x137   :  { %v5161_v40 = vsub.f32 %v13085_v22, %v18237_v45  ;;  %v5280_v21 = vsub.f32 %v13089_v61, %v18239_v0  ;;  %v13512_v45 = vand.u32 4294901760, %v1898_v35  ;;  %v10613_v25 = vpack.c.bf16 %v5148_v62, %v5141_v38  ;;  %10610 = vmatpush3.bf16.msra.mxu1 %v10609_v4 }
 0x138   :  { %v5287_v29 = vsub.f32 %v13091_v10, %v18240_v30  ;;  %v5168_v54 = vsub.f32 %v13098_v51, %v18241_v18  ;;  %v18243_v19 = vand.u32 4294901760, %v13100_v9  ;;  %v13520_v50 = vand.u32 4294901760, %v1904_v37  ;;  %v18245_v18 = vld [vmem:[#allocation161_spill] sm:$0xff]  ;;  %10612 = vmatprep.subr.bf16.mxu1 %v10611_v11 }
 0x139   :  { %18242 = vst [vmem:[#allocation209_spill] sm:$0xff] %v13512_v45  ;;  %v1920_v30 = vsub.f32 %v13455_v60, %v13492_v27  ;;  %9802 = vmatpush1.bf16.msra.mxu0 %v18245_v18  ;;  %v5155_v35 = vand.u32 4294901760, %v5154_v43  ;;  %v5162_v3 = vand.u32 4294901760, %v5161_v40  ;;  %v18246_v34 = vand.u32 4294901760, %v13112_v24  ;;  %5082 = vmatprep.mubr.f32.mxu1 %v13512_v45 }
 0x13a   :  { %v5175_v0 = vsub.f32 %v13100_v9, %v18243_v19  ;;  %18244 = vst [vmem:[#allocation210_spill] sm:$0xff] %v13520_v50  ;;  %v18247_v62 = vand.u32 4294901760, %v13129_v23  ;;  %9804 = vmatprep.subr.bf16.mxu0 %v18248_v8  ;;  %v10615_v37 = vpack.c.bf16 %v5274_v47, %v5267_v17  ;;  %v5281_v6 = vand.u32 4294901760, %v5280_v21  ;;  %5088 = vmatmul.mubr.f32.gmra.mrb[60].mxu1 %v13520_v50  ;;  %v18253_v21 = vld [vmem:[#allocation166_spill] sm:$0xff] }
 0x13b   :  { %v5294_v38 = vsub.f32 %v13112_v24, %v18246_v34  ;;  %v5288_v55 = vand.u32 4294901760, %v5287_v29  ;;  %v5169_v27 = vand.u32 4294901760, %v5168_v54  ;;  %v13533_v4 = vand.u32 4294901760, %v1914_v2  ;;  %10614 = vmatpush3.bf16.msra.mxu1 %v10613_v25  ;;  %v18254_v54 = vld [vmem:[#allocation170_spill] sm:$0xff] }
 0x13c   :  { %v5301_v19 = vsub.f32 %v13129_v23, %v18247_v62  ;;  %v5176_v43 = vand.u32 4294901760, %v5175_v0  ;;  %v18250_v40 = vand.u32 4294901760, %v13131_v5  ;;  %v18251_v18 = vand.u32 4294901760, %v13158_v1  ;;  %10616 = vmatprep.subr.bf16.mxu1 %v10615_v37  ;;  %v18260_v37 = vld [vmem:[#allocation176_spill] sm:$0xff] }
 0x13d   :  { %18249 = vst [vmem:[#allocation211_spill] sm:$0xff] %v13533_v4  ;;  %v13542_v11 = vand.u32 4294901760, %v1920_v30  ;;  %9806 = vmatpush1.bf16.msra.mxu0 %v18253_v21  ;;  %v10617_v17 = vpack.c.bf16 %v5162_v3, %v5155_v35  ;;  %v5295_v47 = vand.u32 4294901760, %v5294_v38  ;;  %v10619_v2 = vpack.c.bf16 %v5288_v55, %v5281_v6  ;;  %5097 = vmatprep.mubr.f32.mxu1 %v13533_v4  ;;  %v18257_v3 = vld [vmem:[#allocation172_spill] sm:$0xff] }
 0x13e   :  { %v5182_v34 = vsub.f32 %v13131_v5, %v18250_v40  ;;  %v5189_v62 = vsub.f32 %v13158_v1, %v18251_v18  ;;  %v5302_v29 = vand.u32 4294901760, %v5301_v19  ;;  %9808 = vmatprep.subr.bf16.mxu0 %v18254_v54  ;;  %v18255_v0 = vand.u32 4294901760, %v18202_v49  ;;  %v18275_v54 = vld [vmem:[#allocation13_spill] sm:$0xff] }
 0x13f   :  { %18252 = vst [vmem:[#allocation212_spill] sm:$0xff] %v13542_v11  ;;  %v18256_v18 = vand.u32 4294901760, %v13194_v20  ;;  %v10621_v30 = vpack.c.bf16 %v5176_v43, %v5169_v27  ;;  %5103 = vmatmul.mubr.f32.gmra.mrb[62].mxu1 %v13542_v11  ;;  %v18258_v55 = vand.u32 4294901760, %v13206_v15  ;;  %v18259_v38 = vand.u32 4294901760, %v13217_v46  ;;  %v18267_v11 = vld [vmem:[#allocation182_spill] sm:$0xff] }
 0x140   :  { %v5308_v40 = vsub.f32 %v18202_v49, %v18255_v0  ;;  %v5183_v45 = vand.u32 4294901760, %v5182_v34  ;;  %v5190_v25 = vand.u32 4294901760, %v5189_v62  ;;  %10618 = vmatpush3.bf16.msra.mxu1 %v10617_v17  ;;  %v10623_v35 = vpack.c.bf16 %v5302_v29, %v5295_v47  ;;  %v18263_v29 = vld [vmem:[#allocation71_spill] sm:$0xff] }
 0x141   :  { %v5315_v50 = vsub.f32 %v13194_v20, %v18256_v18  ;;  %9810 = vmatpush1.bf16.msra.mxu0 %v18257_v3  ;;  %v5196_v6 = vsub.f32 %v13206_v15, %v18258_v55  ;;  %v5203_v19 = vsub.f32 %v13217_v46, %v18259_v38  ;;  %10620 = vmatprep.subr.bf16.mxu1 %v10619_v2  ;;  %v18261_v34 = vand.u32 4294901760, %v13219_v31  ;;  %v18264_v18 = vld [vmem:[#allocation178_spill] sm:$0xff]  ;;  %v18273_v3 = vld [vmem:[#allocation12_spill] sm:$0xff] }
 0x142   :  { %9812 = vmatprep.subr.bf16.mxu0 %v18260_v37  ;;  %v5309_v27 = vand.u32 4294901760, %v5308_v40  ;;  %v18262_v17 = vand.u32 4294901760, %v13248_v36  ;;  %5333 = vmatprep.mubr.f32.mxu1 %v18263_v29  ;;  %v10625_v0 = vpack.c.bf16 %v5190_v25, %v5183_v45  ;;  %v18265_v2 = vand.u32 4294901760, %v13263_v28  ;;  %v18270_v37 = vld [vmem:[#allocation7_spill] sm:$0xff] }
 0x143   :  { %v5316_v43 = vand.u32 4294901760, %v5315_v50  ;;  %v5322_v62 = vsub.f32 %v13219_v31, %v18261_v34  ;;  %v5197_v55 = vand.u32 4294901760, %v5196_v6  ;;  %v5204_v38 = vand.u32 4294901760, %v5203_v19  ;;  %v18272_v19 = vld [vmem:[#allocation184_spill] sm:$0xff] }
 0x144   :  { %v5329_v47 = vsub.f32 %v13248_v36, %v18262_v17  ;;  %10622 = vmatpush3.bf16.msra.mxu1 %v10621_v30  ;;  %v5210_v50 = vsub.f32 %v13263_v28, %v18265_v2  ;;  %v18266_v40 = vand.u32 4294901760, %v13302_v53  ;;  %v18268_v17 = vld [vmem:[#allocation6_spill] sm:$0xff]  ;;  %v18271_v45 = vand.u32 4294901760, %v18270_v37  ;;  %v18279_v37 = vld [vmem:[#allocation19_spill] sm:$0xff] }
 0x145   :  { %9814 = vmatpush1.bf16.msra.mxu0 %v18264_v18  ;;  %10624 = vmatprep.subr.bf16.mxu1 %v10623_v35  ;;  %v18269_v4 = vand.u32 4294901760, %v18268_v17  ;;  %v10627_v18 = vpack.c.bf16 %v5316_v43, %v5309_v27  ;;  %v5323_v30 = vand.u32 4294901760, %v5322_v62  ;;  %v18274_v2 = vand.u32 4294901760, %v18273_v3  ;;  %v18277_v35 = vld [vmem:[#allocation17_spill] sm:$0xff]  ;;  %v18281_v62 = vld [vmem:[#allocation156_spill] sm:$0xff] }
 0x146   :  { %v5217_v34 = vsub.f32 %v13302_v53, %v18266_v40  ;;  %9816 = vmatprep.subr.bf16.mxu0 %v18267_v11  ;;  %v5330_v6 = vand.u32 4294901760, %v5329_v47  ;;  %v18276_v21 = vand.u32 4294901760, %v18275_v54  ;;  %v10629_v40 = vpack.c.bf16 %v5204_v38, %v5197_v55  ;;  %v18282_v47 = vld [vmem:[#allocation23_spill] sm:$0xff]  ;;  %v18286_v38 = vld [vmem:[#allocation32_spill] sm:$0xff] }
 0x147   :  { %v9819_v25 = vpack.c.bf16 %v18271_v45, %v18269_v4  ;;  %v5211_v29 = vand.u32 4294901760, %v5210_v50  ;;  %v18278_v17 = vand.u32 4294901760, %v18277_v35  ;;  %v18280_v4 = vand.u32 4294901760, %v18279_v37  ;;  %v18288_v50 = vld [vmem:[#allocation33_spill] sm:$0xff] }
 0x148   :  { %10626 = vmatpush3.bf16.msra.mxu1 %v10625_v0  ;;  %v9821_v8 = vpack.c.bf16 %v18276_v21, %v18274_v2  ;;  %v5218_v11 = vand.u32 4294901760, %v5217_v34  ;;  %v10631_v43 = vpack.c.bf16 %v5330_v6, %v5323_v30  ;;  %v18283_v3 = vand.u32 4294901760, %v18282_v47  ;;  %v18284_v0 = vld [vmem:[#allocation26_spill] sm:$0xff]  ;;  %v18290_v30 = vld [vmem:[#allocation191_spill] sm:$0xff]  ;;  %v18292_v6 = vld [vmem:[#allocation37_spill] sm:$0xff] }
 0x149   :  { %9818 = vmatpush1.bf16.msra.mxu0 %v18272_v19  ;;  %10628 = vmatprep.subr.bf16.mxu1 %v10627_v18  ;;  %v9823_v27 = vpack.c.bf16 %v18280_v4, %v18278_v17  ;;  %v18285_v54 = vand.u32 4294901760, %v18284_v0  ;;  %v18287_v18 = vand.u32 4294901760, %v18286_v38  ;;  %v18289_v34 = vand.u32 4294901760, %v18288_v50  ;;  %v18296_v17 = vld [vmem:[#allocation49_spill] sm:$0xff]  ;;  %v18298_v4 = vld [vmem:[#allocation50_spill] sm:$0xff]  ;;  %v18302_v47 = vld [vmem:[#allocation52_spill] sm:$0xff] }
 0x14a   :  { %9820 = vmatprep.subr.bf16.mxu0 %v9819_v25  ;;  %v10633_v55 = vpack.c.bf16 %v5218_v11, %v5211_v29  ;;  %v10635_v25 = vpack.c.bf16 %v12990_v56, %v12988_v7  ;;  %v18293_v2 = vand.u32 4294901760, %v18292_v6  ;;  %v10637_v35 = vpack.c.bf16 %v13002_v41, %v12994_v48  ;;  %v18304_v41 = vld [vmem:[#allocation53_spill] sm:$0xff]  ;;  %v18311_v50 = vld [vmem:[#allocation59_spill] sm:$0xff] }
 0x14b   :  { %v9825_v21 = vpack.c.bf16 %v18285_v54, %v18283_v3  ;;  %v9827_v45 = vpack.c.bf16 %v18289_v34, %v18287_v18  ;;  %v18297_v37 = vand.u32 4294901760, %v18296_v17  ;;  %v18299_v7 = vand.u32 4294901760, %v18298_v4  ;;  %v18306_v54 = vld [vmem:[#allocation54_spill] sm:$0xff]  ;;  %v18322_v17 = vld [vmem:[#allocation75_spill] sm:$0xff] }
 0x14c   :  { %1243 = vmatmul.mubr.f32.vlgmr.msra.gmra.mrb[0].mxu0 %v18281_v62  ;;  %10630 = vmatpush3.bf16.msra.mxu1 %v10629_v40  ;;  %v18294_v40 = vld [vmem:[#allocation38_spill] sm:$0xff]  ;;  %v18303_v48 = vand.u32 4294901760, %v18302_v47  ;;  %v18305_v3 = vand.u32 4294901760, %v18304_v41  ;;  %v10643_v34 = vpack.c.bf16 %v13051_v26, %v18311_v50  ;;  %v18320_v26 = vld [vmem:[#allocation73_spill] sm:$0xff]  ;;  %v10649_v41 = vpack.c.bf16 %v13085_v22, %v13077_v13 }
 0x14d   :  { %9822 = vmatpush1.bf16.msra.mxu0 %v9821_v8  ;;  %10632 = vmatprep.subr.bf16.mxu1 %v10631_v43  ;;  %v18291_v8 = vld [vmem:[#allocation192_spill] sm:$0xff]  ;;  %v18295_v11 = vand.u32 4294901760, %v18294_v40  ;;  %v9831_v56 = vpack.c.bf16 %v18299_v7, %v18297_v37  ;;  %v18301_v62 = vld [vmem:[#allocation198_spill] sm:$0xff]  ;;  %v18323_v37 = vand.u32 4294901760, %v18322_v17  ;;  %v10647_v7 = vpack.c.bf16 %v13073_v12, %v13068_v58  ;;  %v18333_v12 = vld [vmem:[#allocation87_spill] sm:$0xff] }
 0x14e   :  { %9824 = vmatprep.subr.bf16.mxu0 %v9823_v27  ;;  %1251 = vmatprep.mubr.f32.mxu0 %v18290_v30  ;;  %v10639_v27 = vpack.c.bf16 %v13018_v52, %v13016_v63  ;;  %v18300_v43 = vld [vmem:[#allocation196_spill] sm:$0xff]  ;;  %v9833_v0 = vpack.c.bf16 %v18305_v3, %v18303_v48  ;;  %v18309_v52 = vld [vmem:[#allocation63_spill] sm:$0xff]  ;;  %v18314_v30 = vld [vmem:[#allocation45_spill] sm:$0xff] }
 0x14f   :  { %v9829_v29 = vpack.c.bf16 %v18295_v11, %v18293_v2  ;;  %v18310_v38 = vand.u32 4294901760, %v18309_v52  ;;  %v18318_v2 = vld [vmem:[#allocation66_spill] sm:$0xff]  ;;  %v18340_v50 = vld [vmem:[#allocation97_spill] sm:$0xff] }
 0x150   :  { %1255 = vmatmul.mubr.f32.gmra.mrb[2].mxu0 %v18291_v8  ;;  %10634 = vmatpush3.bf16.msra.mxu1 %v10633_v55  ;;  %v18307_v55 = vld [vmem:[#allocation61_spill] sm:$0xff]  ;;  %v18315_v8 = vld [vmem:[#allocation204_spill] sm:$0xff]  ;;  %v18319_v40 = vand.u32 4294901760, %v18318_v2  ;;  %v18331_v3 = vld [vmem:[#allocation86_spill] sm:$0xff] }
 0x151   :  { %9826 = vmatpush1.bf16.msra.mxu0 %v9825_v21  ;;  %10636 = vmatprep.subr.bf16.mxu1 %v10635_v25  ;;  %v10641_v21 = vpack.c.bf16 %v18306_v54, %v13020_v16  ;;  %v18308_v63 = vand.u32 4294901760, %v18307_v55  ;;  %v18313_v25 = vld [vmem:[#allocation203_spill] sm:$0xff]  ;;  %v18316_v16 = vld [vmem:[#allocation65_spill] sm:$0xff]  ;;  %v18332_v58 = vand.u32 4294901760, %v18331_v3 }
 0x152   :  { %9828 = vmatprep.subr.bf16.mxu0 %v9827_v45  ;;  %1263 = vmatprep.mubr.f32.mxu0 %v18300_v43  ;;  %v18312_v45 = vld [vmem:[#allocation40_spill] sm:$0xff]  ;;  %v18317_v6 = vand.u32 4294901760, %v18316_v16  ;;  %v18326_v43 = vld [vmem:[#allocation91_spill] sm:$0xff]  ;;  %v18335_v55 = vld [vmem:[#allocation189_spill] sm:$0xff] }
 0x153   :  { %5335 = vmatmul.mubr.f32.vlgmr.msra.gmra.mrb[64].mxu1 %v13183_v44  ;;  %v9835_v18 = vpack.c.bf16 %v18310_v38, %v18308_v63  ;;  %v18336_v63 = vld [vmem:[#allocation88_spill] sm:$0xff]  ;;  %v18338_v38 = vld [vmem:[#allocation90_spill] sm:$0xff] }
 0x154   :  { %1267 = vmatmul.mubr.f32.gmra.mrb[4].mxu0 %v18301_v62  ;;  %10638 = vmatpush3.bf16.msra.mxu1 %v10637_v35  ;;  %v9837_v11 = vpack.c.bf16 %v18319_v40, %v18317_v6  ;;  %v18321_v35 = vand.u32 4294901760, %v18320_v26  ;;  %v18327_v62 = vld [vmem:[#allocation77_spill] sm:$0xff]  ;;  %v18337_v52 = vand.u32 4294901760, %v18336_v63  ;;  %v18339_v13 = vand.u32 4294901760, %v18338_v38  ;;  %v18344_v16 = vld [vmem:[#allocation152_spill] sm:$0xff]  ;;  %v18347_v40 = vld [vmem:[#allocation102_spill] sm:$0xff] }
 0x155   :  { %9830 = vmatpush1.bf16.msra.mxu0 %v9829_v29  ;;  %10640 = vmatprep.subr.bf16.mxu1 %v10639_v27  ;;  %v10645_v29 = vpack.c.bf16 %v13062_v59, %v13060_v14  ;;  %v18325_v27 = vld [vmem:[#allocation150_spill] sm:$0xff]  ;;  %v18328_v59 = vand.u32 4294901760, %v18327_v62  ;;  %v18345_v6 = vld [vmem:[#allocation101_spill] sm:$0xff] }
 0x156   :  { %9832 = vmatprep.subr.bf16.mxu0 %v9831_v56  ;;  %5340 = vmatprep.mubr.f32.mxu1 %v18312_v45  ;;  %v9839_v4 = vpack.c.bf16 %v18323_v37, %v18321_v35  ;;  %v18324_v56 = vld [vmem:[#allocation70_spill] sm:$0xff]  ;;  %v9845_v22 = vpack.c.bf16 %v18339_v13, %v18337_v52  ;;  %v18346_v2 = vand.u32 4294901760, %v18345_v6  ;;  %v18351_v35 = vld [vmem:[#allocation113_spill] sm:$0xff] }
 0x157   :  { %1275 = vmatprep.mubr.f32.mxu0 %v18313_v25  ;;  %5342 = vmatmul.mubr.f32.gmra.mrb[66].mxu1 %v18314_v30  ;;  %v18329_v14 = vld [vmem:[#allocation78_spill] sm:$0xff]  ;;  %v18342_v25 = vld [vmem:[#allocation99_spill] sm:$0xff]  ;;  %v18352_v17 = vand.u32 4294901760, %v18351_v35  ;;  %v18371_v38 = vld [vmem:[#allocation149_spill] sm:$0xff] }
 0x158   :  { %1279 = vmatmul.mubr.f32.gmra.mrb[6].mxu0 %v18315_v8  ;;  %10642 = vmatpush3.bf16.msra.mxu1 %v10641_v21  ;;  %v18330_v47 = vand.u32 4294901760, %v18329_v14  ;;  %v10651_v21 = vpack.c.bf16 %v13091_v10, %v13089_v61  ;;  %v18343_v61 = vand.u32 4294901760, %v18342_v25  ;;  %v10655_v8 = vpack.c.bf16 %v13129_v23, %v13112_v24  ;;  %v18353_v24 = vld [vmem:[#allocation115_spill] sm:$0xff] }
 0x159   :  { %9834 = vmatpush1.bf16.msra.mxu0 %v9833_v0  ;;  %10644 = vmatprep.subr.bf16.mxu1 %v10643_v34  ;;  %v18334_v0 = vand.u32 4294901760, %v18333_v12  ;;  %v18341_v34 = vand.u32 4294901760, %v18340_v50  ;;  %v10659_v23 = vpack.c.bf16 %v13194_v20, %v18202_v49  ;;  %v10663_v20 = vpack.c.bf16 %v13248_v36, %v13219_v31  ;;  %v18361_v49 = vld [vmem:[#allocation132_spill] sm:$0xff]  ;;  %v18374_v50 = vld [vmem:[#allocation158_spill] sm:$0xff] }
 0x15a   :  { %9836 = vmatprep.subr.bf16.mxu0 %v9835_v18  ;;  %5347 = vmatprep.mubr.f32.mxu1 %v18324_v56  ;;  %v9841_v48 = vpack.c.bf16 %v18330_v47, %v18328_v59  ;;  %v10653_v18 = vpack.c.bf16 %v13100_v9, %v13098_v51  ;;  %v10657_v51 = vpack.c.bf16 %v13158_v1, %v13131_v5  ;;  %v18349_v9 = vld [vmem:[#allocation110_spill] sm:$0xff]  ;;  %v18357_v5 = vld [vmem:[#allocation129_spill] sm:$0xff]  ;;  %v18362_v3 = vand.u32 4294901760, %v18361_v49  ;;  %v18369_v36 = vld [vmem:[#allocation148_spill] sm:$0xff] }
 0x15b   :  { %1542 = vmatprep.mubr.f32.mxu0 %v18325_v27  ;;  %5349 = vmatmul.mubr.f32.gmra.mrb[68].mxu1 %v18326_v43  ;;  %v9843_v54 = vpack.c.bf16 %v18334_v0, %v18332_v58  ;;  %v9847_v10 = vpack.c.bf16 %v18343_v61, %v18341_v34  ;;  %v18350_v26 = vand.u32 4294901760, %v18349_v9  ;;  %v10661_v1 = vpack.c.bf16 %v13217_v46, %v13206_v15  ;;  %v18359_v47 = vld [vmem:[#allocation130_spill] sm:$0xff]  ;;  %v18363_v58 = vld [vmem:[#allocation133_spill] sm:$0xff]  ;;  %v18365_v46 = vld [vmem:[#allocation144_spill] sm:$0xff] }
 0x15c   :  { %10646 = vmatpush3.bf16.msra.mxu1 %v10645_v29  ;;  %5354 = vmatprep.mubr.f32.mxu1 %v13402_v42  ;;  %v18358_v14 = vand.u32 4294901760, %v18357_v5  ;;  %v18364_v12 = vand.u32 4294901760, %v18363_v58  ;;  %v10665_v15 = vpack.c.bf16 %v13302_v53, %v13263_v28  ;;  %v18370_v31 = vand.u32 4294901760, %v18369_v36  ;;  %v18376_v53 = vld [vmem:[#allocation159_spill] sm:$0xff]  ;;  %v18396_v5 = vld [vmem:[#allocation57_spill] sm:$0xff]  ;;  %v18401_v49 = vld [vmem:[#allocation60_spill] sm:$0xff] }
 0x15d   :  { %9838 = vmatpush1.bf16.msra.mxu0 %v9837_v11  ;;  %10648 = vmatprep.subr.bf16.mxu1 %v10647_v7  ;;  %v18348_v11 = vand.u32 4294901760, %v18347_v40  ;;  %v9851_v37 = vpack.c.bf16 %v18352_v17, %v18350_v26  ;;  %v18355_v7 = vld [vmem:[#allocation116_spill] sm:$0xff]  ;;  %v18372_v13 = vand.u32 4294901760, %v18371_v38  ;;  %v18375_v34 = vand.u32 4294901760, %v18374_v50  ;;  %v18378_v61 = vld [vmem:[#allocation119_spill] sm:$0xff]  ;;  %v18387_v26 = vld [vmem:[#allocation165_spill] sm:$0xff] }
 0x15e   :  { %9840 = vmatprep.subr.bf16.mxu0 %v9839_v4  ;;  %v18354_v4 = vand.u32 4294901760, %v18353_v24  ;;  %v18356_v62 = vand.u32 4294901760, %v18355_v7  ;;  %v9857_v0 = vpack.c.bf16 %v18364_v12, %v18362_v3  ;;  %v18377_v28 = vand.u32 4294901760, %v18376_v53  ;;  %v18391_v24 = vld [vmem:[#allocation47_spill] sm:$0xff]  ;;  %v18402_v3 = vld [vmem:[#allocation173_spill] sm:$0xff]  ;;  %v18404_v12 = vld [vmem:[#allocation174_spill] sm:$0xff] }
 0x15f   :  { %5356 = vmatmul.mubr.f32.gmra.mrb[70].mxu1 %v18335_v55  ;;  %v9849_v29 = vpack.c.bf16 %v18348_v11, %v18346_v2  ;;  %v18382_v2 = vld [vmem:[#allocation162_spill] sm:$0xff]  ;;  %v18388_v35 = vand.u32 4294901760, %v18387_v26  ;;  %v18403_v58 = vand.u32 4294901760, %v18402_v3  ;;  %v18412_v38 = vld [vmem:[#allocation179_spill] sm:$0xff]  ;;  %v18416_v53 = vld [vmem:[#allocation72_spill] sm:$0xff] }
 0x160   :  { %10650 = vmatpush3.bf16.msra.mxu1 %v10649_v41  ;;  %5491 = vmatprep.mubr.f32.mxu1 %v18344_v16  ;;  %v9853_v59 = vpack.c.bf16 %v18356_v62, %v18354_v4  ;;  %v9863_v25 = vpack.c.bf16 %v18377_v28, %v18375_v34  ;;  %v18383_v40 = vand.u32 4294901760, %v18382_v2  ;;  %v18392_v4 = vld [vmem:[#allocation167_spill] sm:$0xff]  ;;  %v18394_v62 = vld [vmem:[#allocation168_spill] sm:$0xff]  ;;  %v18417_v28 = vld [vmem:[#allocation181_spill] sm:$0xff] }
 0x161   :  { %9842 = vmatpush1.bf16.msra.mxu0 %v9841_v48  ;;  %10652 = vmatprep.subr.bf16.mxu1 %v10651_v21  ;;  %v18360_v48 = vand.u32 4294901760, %v18359_v47  ;;  %v18367_v21 = vld [vmem:[#allocation145_spill] sm:$0xff]  ;;  %v18393_v7 = vand.u32 4294901760, %v18392_v4  ;;  %v18425_v26 = vld [vmem:[#allocation186_spill] sm:$0xff]  ;;  %v18437_v3 = vld [vmem:[#allocation188_spill] sm:$0xff] }
 0x162   :  { %9844 = vmatprep.subr.bf16.mxu0 %v9843_v54  ;;  %v18366_v54 = vand.u32 4294901760, %v18365_v46  ;;  %v18368_v63 = vand.u32 4294901760, %v18367_v21  ;;  %v18406_v46 = vld [vmem:[#allocation68_spill] sm:$0xff]  ;;  %v18427_v4 = vld [vmem:[#allocation81_spill] sm:$0xff] }
 0x163   :  { %v9855_v41 = vpack.c.bf16 %v18360_v48, %v18358_v14  ;;  %v18397_v14 = vld [vmem:[#allocation169_spill] sm:$0xff]  ;;  %v18399_v48 = vld [vmem:[#allocation171_spill] sm:$0xff] }
 0x164   :  { %10654 = vmatpush3.bf16.msra.mxu1 %v10653_v18  ;;  %v9859_v52 = vpack.c.bf16 %v18368_v63, %v18366_v54  ;;  %v18373_v18 = vld [vmem:[#allocation41_spill] sm:$0xff]  ;;  %v18398_v47 = vand.u32 4294901760, %v18397_v14  ;;  %v18407_v54 = vld [vmem:[#allocation175_spill] sm:$0xff] }
 0x165   :  { %9846 = vmatpush1.bf16.msra.mxu0 %v9845_v22  ;;  %10656 = vmatprep.subr.bf16.mxu1 %v10655_v8  ;;  %v9861_v22 = vpack.c.bf16 %v18372_v13, %v18370_v31  ;;  %v18380_v8 = vld [vmem:[#allocation160_spill] sm:$0xff]  ;;  %v18408_v21 = vand.u32 4294901760, %v18407_v54  ;;  %v18409_v63 = vld [vmem:[#allocation177_spill] sm:$0xff]  ;;  %v18413_v13 = vand.u32 4294901760, %v18412_v38  ;;  %v18432_v14 = vld [vmem:[#allocation11_spill] sm:$0xff] }
 0x166   :  { %9848 = vmatprep.subr.bf16.mxu0 %v9847_v10  ;;  %v18379_v10 = vld [vmem:[#allocation42_spill] sm:$0xff]  ;;  %v18381_v6 = vand.u32 4294901760, %v18380_v8  ;;  %v18411_v31 = vld [vmem:[#allocation69_spill] sm:$0xff]  ;;  %v18419_v8 = vld [vmem:[#allocation183_spill] sm:$0xff] }
 0x167   :  { %v18442_v54 = vld [vmem:[#allocation136_spill] sm:$0xff]  ;;  %v18447_v38 = vld [vmem:[#allocation105_spill] sm:$0xff] }
 0x168   :  { %10658 = vmatpush3.bf16.msra.mxu1 %v10657_v51  ;;  %v9865_v11 = vpack.c.bf16 %v18383_v40, %v18381_v6  ;;  %v18385_v51 = vld [vmem:[#allocation164_spill] sm:$0xff]  ;;  %v18420_v6 = vand.u32 4294901760, %v18419_v8  ;;  %v18421_v40 = vld [vmem:[#allocation93_spill] sm:$0xff]  ;;  %v13800_v8 = vpop.f32.mrb[0].mxu1 }
 0x169   :  { %9850 = vmatpush1.bf16.msra.mxu0 %v9849_v29  ;;  %10660 = vmatprep.subr.bf16.mxu1 %v10659_v23  ;;  %v18384_v29 = vld [vmem:[#allocation46_spill] sm:$0xff]  ;;  %v18386_v9 = vand.u32 4294901760, %v18385_v51  ;;  %v18423_v51 = vld [vmem:[#allocation185_spill] sm:$0xff]  ;;  %18454 = vst [vmem:[#allocation6_spill] sm:$0xff] %v13800_v8  ;;  %v18481_v8 = vld [vmem:[#allocation100_spill] sm:$0xff] }
 0x16a   :  { %9852 = vmatprep.subr.bf16.mxu0 %v9851_v37  ;;  %v18389_v37 = vld [vmem:[#allocation67_spill] sm:$0xff]  ;;  %v18390_v23 = vld [vmem:[#allocation82_spill] sm:$0xff] }
 0x16b   :  { %v9867_v17 = vpack.c.bf16 %v18388_v35, %v18386_v9  ;;  %v18424_v9 = vand.u32 4294901760, %v18423_v51  ;;  %v18426_v35 = vand.u32 4294901760, %v18425_v26  ;;  %v13804_v51 = vpop.f32.mrb[1].mxu1 }
 0x16c   :  { %10662 = vmatpush3.bf16.msra.mxu1 %v10661_v1  ;;  %18457 = vst [vmem:[#allocation7_spill] sm:$0xff] %v13804_v51  ;;  %v13808_v26 = vpop.f32.mrb[2].mxu1 }
 0x16d   :  { %9854 = vmatpush1.bf16.msra.mxu0 %v9853_v59  ;;  %10664 = vmatprep.subr.bf16.mxu1 %v10663_v20  ;;  %v18395_v59 = vand.u32 4294901760, %v18394_v62  ;;  %v18429_v62 = vld [vmem:[#allocation5_spill] sm:$0xff]  ;;  %18459 = vst [vmem:[#allocation184_spill] sm:$0xff] %v13808_v26 }
 0x16e   :  { %9856 = vmatprep.subr.bf16.mxu0 %v9855_v41  ;;  %v18400_v41 = vand.u32 4294901760, %v18399_v48  ;;  %v18434_v48 = vld [vmem:[#allocation18_spill] sm:$0xff] }
 0x16f   :  { %v9869_v1 = vpack.c.bf16 %v18395_v59, %v18393_v7  ;;  %v18428_v7 = vld [vmem:[#allocation92_spill] sm:$0xff]  ;;  %v18430_v59 = vld [vmem:[#allocation94_spill] sm:$0xff] }
 0x170   :  { %10666 = vmatpush3.bf16.msra.mxu1 %v10665_v15  ;;  %v9871_v20 = vpack.c.bf16 %v18400_v41, %v18398_v47  ;;  %v18433_v47 = vld [vmem:[#allocation108_spill] sm:$0xff] }
 0x171   :  { %9858 = vmatpush1.bf16.msra.mxu0 %v9857_v0  ;;  %10668 = vmatprep.subr.bf16.mxu1 %v18373_v18  ;;  %v18405_v0 = vand.u32 4294901760, %v18404_v12  ;;  %v18435_v41 = vld [vmem:[#allocation124_spill] sm:$0xff]  ;;  %v18439_v12 = vld [vmem:[#allocation31_spill] sm:$0xff] }
 0x172   :  { %9860 = vmatprep.subr.bf16.mxu0 %v9859_v52  ;;  %v18410_v52 = vand.u32 4294901760, %v18409_v63  ;;  %v18444_v63 = vld [vmem:[#allocation36_spill] sm:$0xff] }
 0x173   :  { %5494 = vmatmul.mubr.f32.vlgmr.msra.gmra.mrb[72].mxu1 %v18378_v61  ;;  %v9873_v15 = vpack.c.bf16 %v18405_v0, %v18403_v58  ;;  %v18438_v58 = vld [vmem:[#allocation25_spill] sm:$0xff]  ;;  %v18440_v0 = vld [vmem:[#allocation83_spill] sm:$0xff] }
 0x174   :  { %10670 = vmatpush3.bf16.msra.mxu1 %v18379_v10  ;;  %5500 = vmatprep.mubr.f32.mxu1 %v18389_v37  ;;  %v9875_v36 = vpack.c.bf16 %v18410_v52, %v18408_v21  ;;  %v18443_v21 = vld [vmem:[#allocation195_spill] sm:$0xff]  ;;  %v18445_v52 = vld [vmem:[#allocation84_spill] sm:$0xff] }
 0x175   :  { %9862 = vmatpush1.bf16.msra.mxu0 %v9861_v22  ;;  %10672 = vmatprep.subr.bf16.mxu1 %v18384_v29  ;;  %v18414_v22 = vld [vmem:[#allocation180_spill] sm:$0xff] }
 0x176   :  { %9864 = vmatprep.subr.bf16.mxu0 %v9863_v25  ;;  %v18415_v50 = vand.u32 4294901760, %v18414_v22  ;;  %v18418_v25 = vand.u32 4294901760, %v18417_v28  ;;  %v18449_v22 = vld [vmem:[#allocation199_spill] sm:$0xff] }
 0x177   :  { %5503 = vmatmul.mubr.f32.gmra.mrb[74].mxu1 %v18390_v23  ;;  %v18452_v28 = vld [vmem:[#allocation51_spill] sm:$0xff] }
 0x178   :  { %10674 = vmatpush3.bf16.msra.mxu1 %v18391_v24  ;;  %5509 = vmatprep.mubr.f32.mxu1 %v13398_v39  ;;  %v9877_v34 = vpack.c.bf16 %v18415_v50, %v18413_v13  ;;  %v9879_v2 = vpack.c.bf16 %v18420_v6, %v18418_v25  ;;  %v18448_v13 = vld [vmem:[#allocation107_spill] sm:$0xff]  ;;  %v18450_v50 = vld [vmem:[#allocation122_spill] sm:$0xff]  ;;  %v18453_v25 = vld [vmem:[#allocation109_spill] sm:$0xff] }
 0x179   :  { %9866 = vmatpush1.bf16.msra.mxu0 %v9865_v11  ;;  %10676 = vmatprep.subr.bf16.mxu1 %v18396_v5  ;;  %v18422_v11 = vld [vmem:[#allocation80_spill] sm:$0xff]  ;;  %v18455_v6 = vld [vmem:[#allocation62_spill] sm:$0xff] }
 0x17a   :  { %9868 = vmatprep.subr.bf16.mxu0 %v9867_v17  ;;  %v9881_v17 = vpack.c.bf16 %v18426_v35, %v18424_v9  ;;  %v18458_v9 = vld [vmem:[#allocation194_spill] sm:$0xff]  ;;  %v18460_v35 = vld [vmem:[#allocation201_spill] sm:$0xff] }
 0x17b   :  { %5512 = vmatmul.mubr.f32.gmra.mrb[76].mxu1 %v13408_v32 }
 0x17c   :  { %10678 = vmatpush3.bf16.msra.mxu1 %v18401_v49  ;;  %5518 = vmatprep.mubr.f32.mxu1 %v13445_v57 }
 0x17d   :  { %9870 = vmatpush1.bf16.msra.mxu0 %v9869_v1  ;;  %10680 = vmatprep.subr.bf16.mxu1 %v18406_v46  ;;  %v18431_v1 = vld [vmem:[#allocation151_spill] sm:$0xff] }
 0x17e   :  { %9872 = vmatprep.subr.bf16.mxu0 %v9871_v20  ;;  %v18436_v20 = vld [vmem:[#allocation187_spill] sm:$0xff] }
 0x17f   :  { %5521 = vmatmul.mubr.f32.gmra.mrb[78].mxu1 %v13455_v60 }
 0x180   :  { %10682 = vmatpush3.bf16.msra.mxu1 %v18411_v31  ;;  %5625 = vmatprep.mubr.f32.mxu1 %v18421_v40 }
 0x181   :  { %9874 = vmatpush1.bf16.msra.mxu0 %v9873_v15  ;;  %10684 = vmatprep.subr.bf16.mxu1 %v18416_v53  ;;  %v18441_v15 = vld [vmem:[#allocation193_spill] sm:$0xff] }
 0x182   :  { %9876 = vmatprep.subr.bf16.mxu0 %v9875_v36  ;;  %v18446_v36 = vld [vmem:[#allocation48_spill] sm:$0xff] }
 0x184   :  { %10686 = vmatpush3.bf16.msra.mxu1 %v18422_v11 }
 0x185   :  { %9878 = vmatpush1.bf16.msra.mxu0 %v9877_v34  ;;  %10688 = vmatprep.subr.bf16.mxu1 %v18427_v4  ;;  %v18451_v34 = vld [vmem:[#allocation200_spill] sm:$0xff] }
 0x186   :  { %9880 = vmatprep.subr.bf16.mxu0 %v9879_v2  ;;  %v18456_v2 = vld [vmem:[#allocation120_spill] sm:$0xff] }
 0x188   :  { %10690 = vmatpush3.bf16.msra.mxu1 %v18428_v7 }
 0x189   :  { %9882 = vmatpush1.bf16.msra.mxu0 %v9881_v17  ;;  %10692 = vmatprep.subr.bf16.mxu1 %v18430_v59  ;;  %v13811_v17 = vpop.f32.mrb[3].mxu1 }
 0x18a   :  { %9884 = vmatprep.subr.bf16.mxu0 %v18429_v62  ;;  %18461 = vst [vmem:[#allocation12_spill] sm:$0xff] %v13811_v17  ;;  %v18462_v62 = vld [vmem:[#allocation64_spill] sm:$0xff] }
 0x18c   :  { %1544 = vmatmul.mubr.f32.vlgmr.msra.gmra.mrb[0].mxu0 %v18431_v1  ;;  %10694 = vmatpush3.bf16.msra.mxu1 %v18433_v47 }
 0x18d   :  { %9886 = vmatpush1.bf16.msra.mxu0 %v18432_v14  ;;  %10696 = vmatprep.subr.bf16.mxu1 %v18435_v41  ;;  %v18463_v14 = vld [vmem:[#allocation123_spill] sm:$0xff] }
 0x18e   :  { %9888 = vmatprep.subr.bf16.mxu0 %v18434_v48  ;;  %1550 = vmatprep.mubr.f32.mxu0 %v18436_v20  ;;  %v13815_v48 = vpop.f32.mrb[4].mxu1 }
 0x18f   :  { %18464 = vst [vmem:[#allocation13_spill] sm:$0xff] %v13815_v48  ;;  %v18478_v48 = vld [vmem:[#allocation58_spill] sm:$0xff] }
 0x190   :  { %1552 = vmatmul.mubr.f32.gmra.mrb[2].mxu0 %v18437_v3  ;;  %10698 = vmatpush3.bf16.msra.mxu1 %v13253_v33 }
 0x191   :  { %9890 = vmatpush1.bf16.msra.mxu0 %v18438_v58  ;;  %10700 = vmatprep.subr.bf16.mxu1 %v18440_v0  ;;  %v18465_v58 = vld [vmem:[#allocation74_spill] sm:$0xff]  ;;  %v13819_v0 = vpop.f32.mrb[5].mxu1 }
 0x192   :  { %9892 = vmatprep.subr.bf16.mxu0 %v18439_v12  ;;  %1558 = vmatprep.mubr.f32.mxu0 %v18441_v15  ;;  %v18466_v12 = vld [vmem:[#allocation141_spill] sm:$0xff]  ;;  %18467 = vst [vmem:[#allocation17_spill] sm:$0xff] %v13819_v0 }
 0x193   :  { %5629 = vmatmul.mubr.f32.vlgmr.msra.gmra.mrb[80].mxu1 %v18442_v54 }
 0x194   :  { %1560 = vmatmul.mubr.f32.gmra.mrb[4].mxu0 %v18443_v21  ;;  %10702 = vmatpush3.bf16.msra.mxu1 %v18445_v52  ;;  %v18470_v52 = vld [vmem:[#allocation208_spill] sm:$0xff] }
 0x195   :  { %9894 = vmatpush1.bf16.msra.mxu0 %v18444_v63  ;;  %10704 = vmatprep.subr.bf16.mxu1 %v18447_v38  ;;  %v18468_v63 = vld [vmem:[#allocation206_spill] sm:$0xff]  ;;  %v18472_v38 = vld [vmem:[#allocation76_spill] sm:$0xff] }
 0x196   :  { %9896 = vmatprep.subr.bf16.mxu0 %v18446_v36  ;;  %5636 = vmatprep.mubr.f32.mxu1 %v18448_v13  ;;  %v18489_v13 = vld [vmem:[#allocation131_spill] sm:$0xff] }
 0x197   :  { %1566 = vmatprep.mubr.f32.mxu0 %v18449_v22  ;;  %5640 = vmatmul.mubr.f32.gmra.mrb[82].mxu1 %v18450_v50 }
 0x198   :  { %1568 = vmatmul.mubr.f32.gmra.mrb[6].mxu0 %v18451_v34  ;;  %10706 = vmatpush3.bf16.msra.mxu1 %v18453_v25 }
 0x199   :  { %9898 = vmatpush1.bf16.msra.mxu0 %v18452_v28  ;;  %10708 = vmatprep.subr.bf16.mxu1 %v18456_v2  ;;  %v18473_v28 = vld [vmem:[#allocation142_spill] sm:$0xff]  ;;  %v18475_v2 = vld [vmem:[#allocation56_spill] sm:$0xff] }
 0x19a   :  { %9900 = vmatprep.subr.bf16.mxu0 %v18455_v6  ;;  %5647 = vmatprep.mubr.f32.mxu1 %v18458_v9  ;;  %v18474_v6 = vld [vmem:[#allocation85_spill] sm:$0xff] }
 0x19b   :  { %1703 = vmatprep.mubr.f32.mxu0 %v18325_v27  ;;  %5651 = vmatmul.mubr.f32.gmra.mrb[84].mxu1 %v18460_v35  ;;  %v13822_v27 = vpop.f32.mrb[6].mxu1  ;;  %v18485_v35 = vld [vmem:[#allocation114_spill] sm:$0xff] }
 0x19c   :  { %10710 = vmatpush3.bf16.msra.mxu1 %v18463_v14  ;;  %5658 = vmatprep.mubr.f32.mxu1 %v18468_v63  ;;  %18469 = vst [vmem:[#allocation19_spill] sm:$0xff] %v13822_v27  ;;  %v13825_v36 = vpop.f32.mrb[7].mxu1  ;;  %v18476_v14 = vld [vmem:[#allocation71_spill] sm:$0xff]  ;;  %v18477_v27 = vld [vmem:[#allocation89_spill] sm:$0xff]  ;;  %v18483_v63 = vld [vmem:[#allocation112_spill] sm:$0xff] }
 0x19d   :  { %9902 = vmatpush1.bf16.msra.mxu0 %v18462_v62  ;;  %10712 = vmatprep.subr.bf16.mxu1 %v18466_v12  ;;  %18471 = vst [vmem:[#allocation156_spill] sm:$0xff] %v13825_v36  ;;  %v8707_v25 = vpop.f32.mrb[8].mxu1 }
 0x19e   :  { %9904 = vmatprep.subr.bf16.mxu0 %v18465_v58  ;;  %v8708_v62 = vpop.f32.mrb[9].mxu1 }
 0x19f   :  { %5662 = vmatmul.mubr.f32.gmra.mrb[86].mxu1 %v18470_v52  ;;  %v8709_v58 = vadd.f32 %v8708_v62, %v8707_v25  ;;  %v8710_v12 = vpop.f32.mrb[10].mxu1  ;;  %v18482_v52 = vld [vmem:[#allocation103_spill] sm:$0xff] }
 0x1a0   :  { %10714 = vmatpush3.bf16.msra.mxu1 %v18473_v28  ;;  %5828 = vmatprep.mubr.f32.mxu1 %v18476_v14  ;;  %v8711_v0 = vpop.f32.mrb[11].mxu1  ;;  %v18480_v28 = vld [vmem:[#allocation95_spill] sm:$0xff] }
 0x1a1   :  { %9906 = vmatpush1.bf16.msra.mxu0 %v18472_v38  ;;  %10716 = vmatprep.subr.bf16.mxu1 %v18475_v2  ;;  %v8712_v36 = vadd.f32 %v8711_v0, %v8710_v12  ;;  %v8713_v17 = vpop.f32.mrb[12].mxu1  ;;  %v18479_v38 = vld [vmem:[#allocation98_spill] sm:$0xff] }
 0x1a2   :  { %9908 = vmatprep.subr.bf16.mxu0 %v18474_v6  ;;  %v8714_v26 = vpop.f32.mrb[13].mxu1 }
 0x1a3   :  { %v8715_v6 = vadd.f32 %v8714_v26, %v8713_v17  ;;  %v8716_v51 = vpop.f32.mrb[14].mxu1 }
 0x1a4   :  { %10718 = vmatpush3.bf16.msra.mxu1 %v18478_v48  ;;  %v8717_v2 = vpop.f32.mrb[15].mxu1 }
 0x1a5   :  { %9910 = vmatpush1.bf16.msra.mxu0 %v18477_v27  ;;  %10720 = vmatprep.subr.bf16.mxu1 %v18480_v28  ;;  %v8718_v25 = vadd.f32 %v8717_v2, %v8716_v51  ;;  %v8751_v62 = vpop.f32.mrb[16].mxu1  ;;  %v18484_v27 = vld [vmem:[#allocation190_spill] sm:$0xff]  ;;  %v18486_v28 = vld [vmem:[#allocation140_spill] sm:$0xff] }
 0x1a6   :  { %9912 = vmatprep.subr.bf16.mxu0 %v18479_v38  ;;  %v8752_v48 = vpop.f32.mrb[17].mxu1 }
 0x1a7   :  { %v8753_v0 = vadd.f32 %v8752_v48, %v8751_v62  ;;  %v8754_v12 = vpop.f32.mrb[18].mxu1  ;;  %v18490_v62 = vld [vmem:[#allocation96_spill] sm:$0xff] }
 0x1a8   :  { %10722 = vmatpush3.bf16.msra.mxu1 %v18482_v52  ;;  %v8755_v38 = vpop.f32.mrb[19].mxu1  ;;  %v18488_v52 = vld [vmem:[#allocation155_spill] sm:$0xff] }
 0x1a9   :  { %9914 = vmatpush1.bf16.msra.mxu0 %v18481_v8  ;;  %10724 = vmatprep.subr.bf16.mxu1 %v18484_v27  ;;  %v4307_v26 = vadd.f32 %v8753_v0, %v8709_v58  ;;  %v8756_v17 = vadd.f32 %v8755_v38, %v8754_v12  ;;  %v8757_v9 = vpop.f32.mrb[20].mxu1  ;;  %v18487_v8 = vld [vmem:[#allocation128_spill] sm:$0xff] }
 0x1aa   :  { %9916 = vmatprep.subr.bf16.mxu0 %v18483_v63  ;;  %v8758_v51 = vpop.f32.mrb[21].mxu1 }
 0x1ab   :  { %v4314_v2 = vadd.f32 %v8756_v17, %v8712_v36  ;;  %v8759_v63 = vadd.f32 %v8758_v51, %v8757_v9  ;;  %v8760_v50 = vpop.f32.mrb[22].mxu1  ;;  %v18492_v36 = vld [vmem:[#allocation146_spill] sm:$0xff]  ;;  %v18494_v51 = vld [vmem:[#allocation161_spill] sm:$0xff] }
 0x1ac   :  { %10726 = vmatpush3.bf16.msra.mxu1 %v18486_v28  ;;  %v8761_v27 = vpop.f32.mrb[23].mxu1  ;;  %v18491_v28 = vld [vmem:[#allocation143_spill] sm:$0xff] }
 0x1ad   :  { %9918 = vmatpush1.bf16.msra.mxu0 %v18485_v35  ;;  %10728 = vmatprep.subr.bf16.mxu1 %v18488_v52  ;;  %v4321_v48 = vadd.f32 %v8759_v63, %v8715_v6  ;;  %v8762_v35 = vadd.f32 %v8761_v27, %v8760_v50  ;;  %v8795_v54 = vpop.f32.mrb[24].mxu1  ;;  %v18493_v50 = vld [vmem:[#allocation157_spill] sm:$0xff]  ;;  %v18495_v27 = vld [vmem:[#allocation163_spill] sm:$0xff] }
 0x1ae   :  { %9920 = vmatprep.subr.bf16.mxu0 %v18487_v8  ;;  %v8796_v58 = vpop.f32.mrb[25].mxu1 }
 0x1af   :  { %v4328_v0 = vadd.f32 %v8762_v35, %v8718_v25  ;;  %v8797_v12 = vadd.f32 %v8796_v58, %v8795_v54  ;;  %v8798_v38 = vpop.f32.mrb[26].mxu1  ;;  %v18496_v58 = vld [vmem:[#allocation166_spill] sm:$0xff] }
 0x1b0   :  { %10730 = vmatpush3.bf16.msra.mxu1 %v18490_v62  ;;  %v8799_v9 = vpop.f32.mrb[27].mxu1 }
 0x1b1   :  { %9922 = vmatpush1.bf16.msra.mxu0 %v18489_v13  ;;  %10732 = vmatprep.subr.bf16.mxu1 %v18373_v18  ;;  %v4466_v13 = vadd.f32 %v8797_v12, %v4307_v26  ;;  %v8800_v17 = vadd.f32 %v8799_v9, %v8798_v38  ;;  %v8801_v6 = vpop.f32.mrb[28].mxu1  ;;  %v18497_v38 = vld [vmem:[#allocation170_spill] sm:$0xff] }
 0x1b2   :  { %9924 = vmatprep.subr.bf16.mxu0 %v18491_v28  ;;  %v8802_v8 = vpop.f32.mrb[29].mxu1 }
 0x1b3   :  { %5830 = vmatmul.mubr.f32.vlgmr.msra.gmra.mrb[88].mxu1 %v13183_v44  ;;  %v4475_v18 = vadd.f32 %v8800_v17, %v4314_v2  ;;  %v8803_v54 = vadd.f32 %v8802_v8, %v8801_v6  ;;  %v8804_v25 = vpop.f32.mrb[30].mxu1  ;;  %v18498_v6 = vld [vmem:[#allocation172_spill] sm:$0xff] }
 0x1b4   :  { %10734 = vmatpush3.bf16.msra.mxu1 %v18379_v10  ;;  %5835 = vmatprep.mubr.f32.mxu1 %v18312_v45  ;;  %v8805_v52 = vpop.f32.mrb[31].mxu1  ;;  %v18499_v8 = vld [vmem:[#allocation176_spill] sm:$0xff] }
 0x1b5   :  { %9926 = vmatpush1.bf16.msra.mxu0 %v18492_v36  ;;  %10736 = vmatprep.subr.bf16.mxu1 %v18384_v29  ;;  %v4484_v10 = vadd.f32 %v8803_v54, %v4321_v48  ;;  %v8806_v26 = vadd.f32 %v8805_v52, %v8804_v25  ;;  %v8839_v63 = vpop.f32.mrb[32].mxu1  ;;  %v13892_v25 = vld [vmem:[%s16842_s1 + $0x300] sm:$0xff]  ;;  %v13902_v52 = vld [vmem:[%s16842_s1 + $0x338] sm:$0xff] }
 0x1b6   :  { %9928 = vmatprep.subr.bf16.mxu0 %v18493_v50  ;;  %v8840_v62 = vpop.f32.mrb[33].mxu1 }
 0x1b7   :  { %5837 = vmatmul.mubr.f32.gmra.mrb[90].mxu1 %v18314_v30  ;;  %v4493_v29 = vadd.f32 %v8806_v26, %v4328_v0  ;;  %v8841_v2 = vadd.f32 %v8840_v62, %v8839_v63  ;;  %v8842_v35 = vpop.f32.mrb[34].mxu1  ;;  %v17390_v26 = vand.u32 4294901760, %v13892_v25  ;;  %v13924_v62 = vld [vmem:[%s16842_s1 + $0x348] sm:$0xff] }
 0x1b8   :  { %10738 = vmatpush3.bf16.msra.mxu1 %v18391_v24  ;;  %5842 = vmatprep.mubr.f32.mxu1 %v18324_v56  ;;  %v8843_v28 = vpop.f32.mrb[35].mxu1 }
 0x1b9   :  { %9930 = vmatpush1.bf16.msra.mxu0 %v18494_v51  ;;  %10740 = vmatprep.subr.bf16.mxu1 %v18396_v5  ;;  %v13863_v24 = vadd.f32 %v8841_v2, %v4466_v13  ;;  %v8844_v48 = vadd.f32 %v8843_v28, %v8842_v35  ;;  %v8845_v12 = vpop.f32.mrb[36].mxu1  ;;  %v13871_v5 = vld [vmem:[%s16842_s1 + $0x308] sm:$0xff]  ;;  %v17388_v2 = vand.u32 4294901760, %v13902_v52  ;;  %v229_v28 = vld [vmem:[%s16842_s1 + $0x610] sm:$0xff] }
 0x1ba   :  { %9932 = vmatprep.subr.bf16.mxu0 %v18495_v27  ;;  %v8846_v9 = vpop.f32.mrb[37].mxu1  ;;  %v17392_v54 = vand.u32 4294901760, %v13871_v5  ;;  %v13919_v27 = vld [vmem:[%s16842_s1 + $0x330] sm:$0xff]  ;;  %v18530_v61 = vand.u32 4294901760, %v13871_v5 }
 0x1bb   :  { %5844 = vmatmul.mubr.f32.gmra.mrb[92].mxu1 %v18326_v43  ;;  %v13878_v0 = vadd.f32 %v8844_v48, %v4475_v18  ;;  %v8847_v36 = vadd.f32 %v8846_v9, %v8845_v12  ;;  %v8848_v13 = vpop.f32.mrb[38].mxu1  ;;  %v13950_v48 = vld [vmem:[%s16842_s1 + $0x380] sm:$0xff]  ;;  %v17393_v9 = vand.u32 4294901760, %v13924_v62 }
 0x1bc   :  { %10742 = vmatpush3.bf16.msra.mxu1 %v18401_v49  ;;  %5849 = vmatprep.mubr.f32.mxu1 %v13402_v42  ;;  %v13876_v49 = vld [vmem:[%s16842_s1 + $0x320] sm:$0xff]  ;;  %v8849_v17 = vpop.f32.mrb[39].mxu1 }
 0x1bd   :  { %9934 = vmatpush1.bf16.msra.mxu0 %v18496_v58  ;;  %10744 = vmatprep.subr.bf16.mxu1 %v18406_v46  ;;  %v13883_v46 = vadd.f32 %v8847_v36, %v4484_v10  ;;  %v8850_v50 = vadd.f32 %v8849_v17, %v8848_v13  ;;  %v17391_v18 = vand.u32 4294901760, %v13876_v49  ;;  %v18500_v10 = vld [vmem:[#allocation178_spill] sm:$0xff]  ;;  %v13965_v17 = vld [vmem:[%s16842_s1 + $0x360] sm:$0xff]  ;;  %v18531_v16 = vand.u32 4294901760, %v13876_v49 }
 0x1be   :  { %9936 = vmatprep.subr.bf16.mxu0 %v18497_v38  ;;  %v232_v58 = vld [vmem:[%s16842_s1 + $0x628] sm:$0xff]  ;;  %v17394_v38 = vand.u32 4294901760, %v13919_v27 }
 0x1bf   :  { %5851 = vmatmul.mubr.f32.gmra.mrb[94].mxu1 %v18335_v55  ;;  %v13910_v51 = vadd.f32 %v8850_v50, %v4493_v29  ;;  %v18501_v29 = vld [vmem:[#allocation182_spill] sm:$0xff]  ;;  %v5985_v50 = vand.u32 4294901760, %v232_v58 }
 0x1c0   :  { %10746 = vmatpush3.bf16.msra.mxu1 %v18411_v31  ;;  %v13897_v31 = vld [vmem:[%s16842_s1 + $0x318] sm:$0xff]  ;;  %5953 = vmatprep.mubr.f32.mxu1 %v18476_v14 }
 0x1c1   :  { %9938 = vmatpush1.bf16.msra.mxu0 %v18498_v6  ;;  %10748 = vmatprep.subr.bf16.mxu1 %v18416_v53  ;;  %v13907_v53 = vld [vmem:[%s16842_s1 + $0x350] sm:$0xff]  ;;  %v17389_v63 = vand.u32 4294901760, %v13897_v31  ;;  %v5982_v6 = vand.u32 4294901760, %v229_v28 }
 0x1c2   :  { %9940 = vmatprep.subr.bf16.mxu0 %v18499_v8  ;;  %v17387_v35 = vand.u32 4294901760, %v13907_v53 }
 0x1c3   :  { %v13960_v13 = vpack.c.bf16 %v17389_v63, %v17390_v26 }
 0x1c4   :  { %10750 = vmatpush3.bf16.msra.mxu1 %v18422_v11  ;;  %v13932_v11 = vpack.c.bf16 %v17391_v18, %v17392_v54  ;;  %v8883_v12 = vpop.f32.mrb[40].mxu1  ;;  %v14007_v18 = vpack.c.bf16 %v17393_v9, %v17394_v38  ;;  %v14021_v9 = vld [vmem:[%s16842_s1 + $0x390] sm:$0xff]  ;;  %v14026_v38 = vld [vmem:[%s16842_s1 + $0x3a8] sm:$0xff] }
 0x1c5   :  { %9942 = vmatpush1.bf16.msra.mxu0 %v18500_v10  ;;  %10752 = vmatprep.subr.bf16.mxu1 %v18427_v4  ;;  %v13945_v4 = vld [vmem:[%s16842_s1 + $0x368] sm:$0xff]  ;;  %v8884_v36 = vpop.f32.mrb[41].mxu1  ;;  %18503 = vst [vmem:[#allocation26_spill] sm:$0xff] %v13960_v13  ;;  %v17395_v10 = vand.u32 4294901760, %v13950_v48 }
 0x1c6   :  { %9944 = vmatprep.subr.bf16.mxu0 %v18501_v29  ;;  %18502 = vst [vmem:[#allocation23_spill] sm:$0xff] %v13932_v11  ;;  %v8885_v8 = vadd.f32 %v8884_v36, %v8883_v12  ;;  %v13980_v29 = vld [vmem:[%s16842_s1 + $0x378] sm:$0xff]  ;;  %v235_v36 = vld [vmem:[%s16842_s1 + $0x640] sm:$0xff]  ;;  %18505 = vst [vmem:[#allocation33_spill] sm:$0xff] %v14007_v18 }
 0x1c7   :  { %v13985_v12 = vld [vmem:[%s16842_s1 + $0x398] sm:$0xff]  ;;  %v18508_v40 = vand.u32 4294901760, %v13980_v29 }
 0x1c8   :  { %10754 = vmatpush3.bf16.msra.mxu1 %v18428_v7  ;;  %v17396_v7 = vand.u32 4294901760, %v13945_v4  ;;  %v14000_v63 = vadd.f32 %v8885_v8, %v13863_v24  ;;  %v8886_v26 = vpop.f32.mrb[42].mxu1  ;;  %v14036_v8 = vpack.c.bf16 %v5985_v50, %v5982_v6  ;;  %v14041_v24 = vld [vmem:[%s16842_s1 + $0x3c8] sm:$0xff] }
 0x1c9   :  { %9946 = vmatpush1.bf16.msra.mxu0 %v18272_v19  ;;  %10756 = vmatprep.subr.bf16.mxu1 %v18430_v59  ;;  %v13973_v19 = vpack.c.bf16 %v17387_v35, %v17388_v2  ;;  %v13990_v59 = vld [vmem:[%s16842_s1 + $0x3b0] sm:$0xff]  ;;  %v13995_v35 = vsub.f32 %v229_v28, %v5982_v6  ;;  %v13997_v2 = vsub.f32 %v232_v58, %v5985_v50  ;;  %v238_v28 = vld [vmem:[%s16842_s1 + $0x658] sm:$0xff]  ;;  %v8887_v58 = vpop.f32.mrb[43].mxu1 }
 0x1ca   :  { %9948 = vmatprep.subr.bf16.mxu0 %v13932_v11  ;;  %v8888_v54 = vadd.f32 %v8887_v58, %v8886_v26  ;;  %v14046_v26 = vld [vmem:[%s16842_s1 + $0x3e0] sm:$0xff]  ;;  %v18507_v58 = vand.u32 4294901760, %v13965_v17  ;;  %v14222_v11 = vsub.f32 %v13871_v5, %v18530_v61  ;;  %v14263_v5 = vld [vmem:[%s16842_s1 + $0x468] sm:$0xff] }
 0x1cb   :  { %18504 = vst [vmem:[#allocation32_spill] sm:$0xff] %v13973_v19  ;;  %v18513_v57 = vand.u32 4294901760, %v13995_v35 }
 0x1cc   :  { %1705 = vmatmul.mubr.f32.vlgmr.msra.gmra.mrb[0].mxu0 %v18431_v1  ;;  %10758 = vmatpush3.bf16.msra.mxu1 %v18433_v47  ;;  %v14034_v47 = vpack.c.bf16 %v17395_v10, %v17396_v7  ;;  %v5988_v1 = vand.u32 4294901760, %v235_v36  ;;  %v14052_v6 = vadd.f32 %v8888_v54, %v13878_v0  ;;  %v8889_v50 = vpop.f32.mrb[44].mxu1  ;;  %v18510_v0 = vand.u32 4294901760, %v13985_v12 }
 0x1cd   :  { %9950 = vmatpush1.bf16.msra.mxu0 %v13960_v13  ;;  %10760 = vmatprep.subr.bf16.mxu1 %v18435_v41  ;;  %v5991_v41 = vand.u32 4294901760, %v238_v28  ;;  %v8890_v60 = vpop.f32.mrb[45].mxu1  ;;  %v18511_v54 = vand.u32 4294901760, %v13990_v59  ;;  %v6095_v32 = vsub.f32 %v13995_v35, %v18513_v57  ;;  %v18529_v13 = vld [vmem:[#allocation135_spill] sm:$0xff] }
 0x1ce   :  { %9952 = vmatprep.subr.bf16.mxu0 %v13973_v19  ;;  %18506 = vst [vmem:[#allocation191_spill] sm:$0xff] %v14034_v47  ;;  %1711 = vmatprep.mubr.f32.mxu0 %v18436_v20  ;;  %v14063_v20 = vpack.c.bf16 %v18508_v40, %v18507_v58  ;;  %v8891_v7 = vadd.f32 %v8890_v60, %v8889_v50  ;;  %v14096_v60 = vld [vmem:[%s16842_s1 + $0x410] sm:$0xff] }
 0x1cf   :  { %v14069_v10 = vpack.c.bf16 %v18511_v54, %v18510_v0  ;;  %v14086_v0 = vld [vmem:[%s16842_s1 + $0x3d8] sm:$0xff]  ;;  %v14098_v50 = vsub.f32 %v235_v36, %v5988_v1  ;;  %v14100_v40 = vsub.f32 %v238_v28, %v5991_v41  ;;  %v14102_v58 = vpack.c.bf16 %v5991_v41, %v5988_v1 }
 0x1d0   :  { %1713 = vmatmul.mubr.f32.gmra.mrb[2].mxu0 %v18437_v3  ;;  %10762 = vmatpush3.bf16.msra.mxu1 %v13253_v33  ;;  %18509 = vst [vmem:[#allocation192_spill] sm:$0xff] %v14063_v20  ;;  %v14074_v3 = vld [vmem:[%s16842_s1 + $0x3c0] sm:$0xff]  ;;  %v241_v33 = vld [vmem:[%s16842_s1 + $0x670] sm:$0x1]  ;;  %v14091_v54 = vld [vmem:[%s16842_s1 + $0x3f8] sm:$0xff]  ;;  %v8892_v23 = vpop.f32.mrb[46].mxu1 }
 0x1d1   :  { %9954 = vmatpush1.bf16.msra.mxu0 %v14007_v18  ;;  %18512 = vst [vmem:[#allocation37_spill] sm:$0xff] %v14069_v10  ;;  %10764 = vmatprep.subr.bf16.mxu1 %v14036_v8  ;;  %v14112_v18 = vadd.f32 %v8891_v7, %v13883_v46  ;;  %v18515_v36 = vand.u32 4294901760, %v14021_v9  ;;  %v18516_v28 = vand.u32 4294901760, %v14026_v38  ;;  %v263_v41 = vsel %vm255_vm0, %v241_v33, 0  ;;  %v14150_v7 = vld [vmem:[%s16842_s1 + $0x428] sm:$0xff] }
 0x1d2   :  { %9956 = vmatprep.subr.bf16.mxu0 %v14034_v47  ;;  %v18514_v47 = vand.u32 4294901760, %v13997_v2  ;;  %1719 = vmatprep.mubr.f32.mxu0 %v18441_v15  ;;  %v18519_v15 = vand.u32 4294901760, %v14046_v26  ;;  %v18521_v19 = vand.u32 4294901760, %v14074_v3  ;;  %v18527_v57 = vand.u32 4294901760, %v14098_v50 }
 0x1d3   :  { %5955 = vmatmul.mubr.f32.vlgmr.msra.gmra.mrb[96].mxu1 %v13183_v44  ;;  %v14119_v1 = vpack.c.bf16 %v18516_v28, %v18515_v36  ;;  %v14132_v36 = vld [vmem:[%s16842_s1 + $0x3f0] sm:$0xff]  ;;  %v18518_v28 = vand.u32 4294901760, %v14041_v24  ;;  %v18578_v44 = vand.u32 4294901760, %v14074_v3 }
 0x1d4   :  { %v6102_v39 = vsub.f32 %v13997_v2, %v18514_v47  ;;  %1721 = vmatmul.mubr.f32.gmra.mrb[4].mxu0 %v18443_v21  ;;  %v8893_v47 = vpop.f32.mrb[47].mxu1  ;;  %5960 = vmatprep.mubr.f32.mxu1 %v18312_v45  ;;  %v14137_v21 = vld [vmem:[%s16842_s1 + $0x408] sm:$0xff] }
 0x1d5   :  { %18517 = vst [vmem:[#allocation38_spill] sm:$0xff] %v14119_v1  ;;  %9958 = vmatpush1.bf16.msra.mxu0 %v14063_v20  ;;  %v8894_v33 = vadd.f32 %v8893_v47, %v8892_v23  ;;  %v14144_v46 = vpack.c.bf16 %v18519_v15, %v18518_v28  ;;  %10766 = vmatpush3.bf16.msra.mxu1 %v14036_v8  ;;  %v14155_v23 = vand.u32 4294901760, %v263_v41  ;;  %v14160_v47 = vld [vmem:[%s16842_s1 + $0x440] sm:$0xff]  ;;  %v6096_v15 = vand.u32 4294901760, %v6095_v32 }
 0x1d6   :  { %9960 = vmatprep.subr.bf16.mxu0 %v14069_v10  ;;  %10768 = vmatprep.subr.bf16.mxu1 %v14102_v58  ;;  %v6103_v28 = vand.u32 4294901760, %v6102_v39  ;;  %v18522_v32 = vand.u32 4294901760, %v14086_v0  ;;  %v6109_v20 = vsub.f32 %v14098_v50, %v18527_v57  ;;  %v14227_v57 = vsub.f32 %v13876_v49, %v18531_v16 }
 0x1d7   :  { %18520 = vst [vmem:[#allocation49_spill] sm:$0xff] %v14144_v46  ;;  %1727 = vmatprep.mubr.f32.mxu0 %v18449_v22  ;;  %v14164_v10 = vadd.f32 %v8894_v33, %v13910_v51  ;;  %5962 = vmatmul.mubr.f32.gmra.mrb[98].mxu1 %v18314_v30  ;;  %v18524_v22 = vand.u32 4294901760, %v14091_v54  ;;  %v18525_v51 = vand.u32 4294901760, %v14096_v60  ;;  %v14398_v14 = vsub.f32 %v14074_v3, %v18578_v44  ;;  %v14418_v3 = vld [vmem:[%s16842_s1 + $0x4b0] sm:$0xff] }
 0x1d8   :  { %1729 = vmatmul.mubr.f32.gmra.mrb[6].mxu0 %v18451_v34  ;;  %v14175_v39 = vpack.c.bf16 %v18522_v32, %v18521_v19  ;;  %5967 = vmatprep.mubr.f32.mxu1 %v18324_v56  ;;  %v14188_v34 = vld [vmem:[%s16842_s1 + $0x420] sm:$0xff]  ;;  %v14196_v32 = vld [vmem:[%s16842_s1 + $0x438] sm:$0xff]  ;;  %v18528_v19 = vand.u32 4294901760, %v14100_v40  ;;  %v10771_v37 = vpack.c.bf16 %v6103_v28, %v6096_v15  ;;  %v18534_v15 = vand.u32 4294901760, %v14132_v36  ;;  %v18597_v44 = vld [vmem:[#allocation138_spill] sm:$0xff] }
 0x1d9   :  { %9962 = vmatpush1.bf16.msra.mxu0 %v14119_v1  ;;  %v14182_v33 = vpack.c.bf16 %v18525_v51, %v18524_v22  ;;  %10770 = vmatpush3.bf16.msra.mxu1 %v14102_v58  ;;  %v14201_v22 = vld [vmem:[%s16842_s1 + $0x458] sm:$0xff]  ;;  %v14206_v51 = vld [vmem:[%s16842_s1 + $0x470] sm:$0xff]  ;;  %v14215_v1 = vsub.f32 %v263_v41, %v14155_v23  ;;  %v6110_v49 = vand.u32 4294901760, %v6109_v20  ;;  %v18547_v20 = vand.u32 4294901760, %v13919_v27  ;;  %18579 = vst [vmem:[#allocation99_spill] sm:$0xff] %v14398_v14 }
 0x1da   :  { %18523 = vst [vmem:[#allocation50_spill] sm:$0xff] %v14175_v39  ;;  %9964 = vmatprep.subr.bf16.mxu0 %v14144_v46  ;;  %v6116_v46 = vsub.f32 %v14100_v40, %v18528_v19  ;;  %9475 = vmatprep.subr.mxu1 %v14155_v23  ;;  %v18532_v19 = vand.u32 4294901760, %v13892_v25  ;;  %v18555_v56 = vand.u32 4294901760, %v13965_v17  ;;  %v18593_v14 = vand.u32 4294901760, %v14132_v36 }
 0x1db   :  { %18526 = vst [vmem:[#allocation196_spill] sm:$0xff] %v14182_v33  ;;  %1868 = vmatprep.mubr.f32.mxu0 %v18529_v13  ;;  %5969 = vmatmul.mubr.f32.gmra.mrb[100].mxu1 %v18326_v43  ;;  %v18535_v13 = vand.u32 4294901760, %v14137_v21  ;;  %v14266_v16 = vand.u32 4294901760, %v14215_v1 }
 0x1dc   :  { %v14232_v41 = vsub.f32 %v13892_v25, %v18532_v19  ;;  %5974 = vmatprep.mubr.f32.mxu1 %v13402_v42  ;;  %v18537_v25 = vand.u32 4294901760, %v14150_v7  ;;  %v18538_v19 = vand.u32 4294901760, %v14160_v47  ;;  %v6117_v61 = vand.u32 4294901760, %v6116_v46 }
 0x1dd   :  { %v14239_v28 = vpack.c.bf16 %v18535_v13, %v18534_v15  ;;  %9966 = vmatpush1.bf16.msra.mxu0 %v14175_v39  ;;  %9476 = vmatpush3.msra.mxu1 %v14155_v23  ;;  %v14258_v13 = vld [vmem:[%s16842_s1 + $0x450] sm:$0xff]  ;;  %18540 = vst [vmem:[#allocation54_spill] sm:$0xff] %v14266_v16  ;;  %v18545_v42 = vand.u32 4294901760, %v13907_v53  ;;  %v14286_v46 = vsub.f32 %v13919_v27, %v18547_v20 }
 0x1de   :  { %18533 = vst [vmem:[#allocation198_spill] sm:$0xff] %v14232_v41  ;;  %9968 = vmatprep.subr.bf16.mxu0 %v14182_v33  ;;  %v14252_v15 = vpack.c.bf16 %v18538_v19, %v18537_v25  ;;  %v18541_v25 = vand.u32 4294901760, %v13897_v31  ;;  %v18543_v33 = vand.u32 4294901760, %v13902_v52  ;;  %10772 = vmatprep.subr.bf16.mxu1 %v10771_v37  ;;  %v14316_v30 = vsub.f32 %v13965_v17, %v18555_v56 }
 0x1df   :  { %18536 = vst [vmem:[#allocation52_spill] sm:$0xff] %v14239_v28  ;;  %v14281_v43 = vsub.f32 %v13907_v53, %v18545_v42  ;;  %18548 = vst [vmem:[#allocation203_spill] sm:$0xff] %v14286_v46  ;;  %v18551_v53 = vand.u32 4294901760, %v13945_v4  ;;  %5976 = vmatmul.mubr.f32.gmra.mrb[102].mxu1 %v18335_v55  ;;  %v18568_v55 = vand.u32 4294901760, %v13990_v59  ;;  %v18570_v56 = vand.u32 4294901760, %v14021_v9 }
 0x1e0   :  { %18539 = vst [vmem:[#allocation53_spill] sm:$0xff] %v14252_v15  ;;  %v14271_v19 = vsub.f32 %v13897_v31, %v18541_v25  ;;  %v14276_v39 = vsub.f32 %v13902_v52, %v18543_v33  ;;  %v14291_v31 = vld [vmem:[%s16842_s1 + $0x488] sm:$0xff]  ;;  %v14296_v52 = vld [vmem:[%s16842_s1 + $0x4a0] sm:$0xff]  ;;  %v18549_v33 = vand.u32 4294901760, %v13924_v62  ;;  %v18553_v25 = vand.u32 4294901760, %v13950_v48  ;;  %18556 = vst [vmem:[#allocation73_spill] sm:$0xff] %v14316_v30 }
 0x1e1   :  { %18546 = vst [vmem:[#allocation59_spill] sm:$0xff] %v14281_v43  ;;  %v14306_v27 = vsub.f32 %v13945_v4, %v18551_v53  ;;  %9970 = vmatpush1.bf16.msra.mxu0 %v14239_v28  ;;  %v18560_v53 = vld [vmem:[#allocation55_spill] sm:$0xff]  ;;  %v10775_v28 = vpack.c.bf16 %v6117_v61, %v6110_v49  ;;  %v18566_v49 = vand.u32 4294901760, %v13985_v12  ;;  %v14363_v17 = vsub.f32 %v13990_v59, %v18568_v55 }
 0x1e2   :  { %18542 = vst [vmem:[#allocation61_spill] sm:$0xff] %v14271_v19  ;;  %18544 = vst [vmem:[#allocation63_spill] sm:$0xff] %v14276_v39  ;;  %v14301_v42 = vsub.f32 %v13924_v62, %v18549_v33  ;;  %v14311_v20 = vsub.f32 %v13950_v48, %v18553_v25  ;;  %v18557_v62 = vand.u32 4294901760, %v14188_v34  ;;  %v18558_v33 = vand.u32 4294901760, %v14196_v32  ;;  %9477 = vmatprep.mubr.f32.mxu1 %v18560_v53  ;;  %v14346_v53 = vld [vmem:[%s16842_s1 + $0x498] sm:$0xff] }
 0x1e3   :  { %18552 = vst [vmem:[#allocation65_spill] sm:$0xff] %v14306_v27  ;;  %v18561_v48 = vand.u32 4294901760, %v14201_v22  ;;  %v18562_v25 = vand.u32 4294901760, %v14206_v51  ;;  %9972 = vmatprep.subr.bf16.mxu0 %v14252_v15  ;;  %18569 = vst [vmem:[#allocation86_spill] sm:$0xff] %v14363_v17  ;;  %v14368_v15 = vsub.f32 %v14021_v9, %v18570_v56  ;;  %v18574_v59 = vand.u32 4294901760, %v14041_v24 }
 0x1e4   :  { %18550 = vst [vmem:[#allocation204_spill] sm:$0xff] %v14301_v42  ;;  %18554 = vst [vmem:[#allocation66_spill] sm:$0xff] %v14311_v20  ;;  %v14324_v4 = vpack.c.bf16 %v18558_v33, %v18557_v62  ;;  %v14341_v33 = vld [vmem:[%s16842_s1 + $0x480] sm:$0xff]  ;;  %v14358_v62 = vsub.f32 %v13985_v12, %v18566_v49  ;;  %v14378_v12 = vld [vmem:[%s16842_s1 + $0x4d0] sm:$0xff]  ;;  %v18576_v56 = vand.u32 4294901760, %v14046_v26 }
 0x1e5   :  { %v14331_v45 = vpack.c.bf16 %v18562_v25, %v18561_v48  ;;  %v6123_v48 = vsub.f32 %v14215_v1, %v14266_v16  ;;  %v18564_v25 = vand.u32 4294901760, %v13980_v29  ;;  %18571 = vst [vmem:[#allocation87_spill] sm:$0xff] %v14368_v15  ;;  %v14388_v9 = vsub.f32 %v14041_v24, %v18574_v59  ;;  %v18580_v16 = vld [vmem:[#allocation126_spill] sm:$0xff] }
 0x1e6   :  { %18559 = vst [vmem:[#allocation75_spill] sm:$0xff] %v14324_v4  ;;  %18567 = vst [vmem:[#allocation78_spill] sm:$0xff] %v14358_v62  ;;  %v14393_v49 = vsub.f32 %v14046_v26, %v18576_v56  ;;  %9478 = vmatmul.mubr.f32.vlgmr.msra.gmra.mrb[104].mxu1 %v18580_v16  ;;  %9974 = vmatpush1.bf16.msra.mxu0 %v14324_v4  ;;  %v18583_v24 = vand.u32 4294901760, %v14258_v13  ;;  %v18584_v26 = vand.u32 4294901760, %v14263_v5  ;;  %v18587_v16 = vand.u32 4294901760, %v14296_v52 }
 0x1e7   :  { %18563 = vst [vmem:[#allocation150_spill] sm:$0xff] %v14331_v45  ;;  %v14353_v61 = vsub.f32 %v13980_v29, %v18564_v25  ;;  %v14373_v29 = vld [vmem:[%s16842_s1 + $0x4b8] sm:$0xff]  ;;  %v18572_v25 = vand.u32 4294901760, %v14026_v38  ;;  %18575 = vst [vmem:[#allocation90_spill] sm:$0xff] %v14388_v9  ;;  %10774 = vmatpush3.bf16.msra.mxu1 %v10771_v37  ;;  %9976 = vmatprep.subr.bf16.mxu0 %v14331_v45  ;;  %v18586_v37 = vand.u32 4294901760, %v14291_v31  ;;  %v18589_v56 = vand.u32 4294901760, %v14091_v54 }
 0x1e8   :  { %18577 = vst [vmem:[#allocation97_spill] sm:$0xff] %v14393_v49  ;;  %v14411_v59 = vpack.c.bf16 %v18584_v26, %v18583_v24  ;;  %10776 = vmatprep.subr.bf16.mxu1 %v10775_v28  ;;  %v6124_v24 = vand.u32 4294901760, %v6123_v48  ;;  %v1807_v26 = vand.u32 4294901760, %v14373_v29  ;;  %v18595_v48 = vand.u32 4294901760, %v14137_v21  ;;  %9480 = vmatprep.mubr.f32.mxu1 %v18597_v44  ;;  %v18602_v44 = vld [vmem:[#allocation154_spill] sm:$0xff] }
 0x1e9   :  { %18565 = vst [vmem:[#allocation77_spill] sm:$0xff] %v14353_v61  ;;  %v14383_v55 = vsub.f32 %v14026_v38, %v18572_v25  ;;  %v18581_v38 = vand.u32 4294901760, %v14086_v0  ;;  %v14437_v4 = vsub.f32 %v14091_v54, %v18589_v56  ;;  %v14458_v54 = vld [vmem:[%s16842_s1 + $0x4e8] sm:$0xff] }
 0x1ea   :  { %18585 = vst [vmem:[#allocation102_spill] sm:$0xff] %v14411_v59  ;;  %9481 = vmatmul.mubr.f32.gmra.mrb[106].mxu1 %v18602_v44  ;;  %9978 = vmatpush1.bf16.msra.mxu0 %v14411_v59  ;;  %v10779_v44 = vpack.c.bf16 %v13997_v2, %v13995_v35  ;;  %v18614_v59 = vand.u32 4294901760, %v14206_v51 }
 0x1eb   :  { %18573 = vst [vmem:[#allocation88_spill] sm:$0xff] %v14383_v55  ;;  %v14404_v25 = vsub.f32 %v14086_v0, %v18581_v38  ;;  %v14423_v0 = vld [vmem:[%s16842_s1 + $0x4c8] sm:$0xff]  ;;  %v14430_v38 = vpack.c.bf16 %v18587_v16, %v18586_v37  ;;  %18590 = vst [vmem:[#allocation113_spill] sm:$0xff] %v14437_v4  ;;  %v14447_v37 = vsub.f32 %v14132_v36, %v18593_v14  ;;  %v18598_v14 = vand.u32 4294901760, %v14150_v7 }
 0x1ec   :  { %v14452_v16 = vsub.f32 %v14137_v21, %v18595_v48  ;;  %v18600_v21 = vand.u32 4294901760, %v14160_v47  ;;  %v1809_v48 = vand.u32 4294901760, %v14418_v3  ;;  %10778 = vmatpush3.bf16.msra.mxu1 %v10775_v28  ;;  %v18635_v55 = vand.u32 4294901760, %v14378_v12 }
 0x1ed   :  { %18582 = vst [vmem:[#allocation101_spill] sm:$0xff] %v14404_v25  ;;  %18588 = vst [vmem:[#allocation110_spill] sm:$0xff] %v14430_v38  ;;  %v18591_v25 = vand.u32 4294901760, %v14096_v60  ;;  %v14468_v36 = vsub.f32 %v14150_v7, %v18598_v14  ;;  %v18605_v7 = vand.u32 4294901760, %v14341_v33  ;;  %9980 = vmatprep.subr.bf16.mxu0 %v14430_v38  ;;  %9491 = vmatprep.subr.mxu1 %v6124_v24 }
 0x1ee   :  { %18594 = vst [vmem:[#allocation116_spill] sm:$0xff] %v14447_v37  ;;  %18596 = vst [vmem:[#allocation129_spill] sm:$0xff] %v14452_v16  ;;  %v14473_v56 = vsub.f32 %v14160_v47, %v18600_v21  ;;  %v18606_v47 = vand.u32 4294901760, %v14346_v53  ;;  %v18608_v16 = vand.u32 4294901760, %v14378_v12  ;;  %v14594_v15 = vsub.f32 %v14378_v12, %v18635_v55 }
 0x1ef   :  { %v14442_v45 = vsub.f32 %v14096_v60, %v18591_v25  ;;  %v14463_v60 = vld [vmem:[%s16842_s1 + $0x500] sm:$0xff]  ;;  %v8927_v25 = vpop.f32.mrb[48].mxu1  ;;  %18599 = vst [vmem:[#allocation130_spill] sm:$0xff] %v14468_v36  ;;  %v198_v36 = vld [vmem:[%s16842_s1 + $0x518] sm:$0xff]  ;;  %v18640_v12 = vand.u32 4294901760, %v14423_v0 }
 0x1f0   :  { %18601 = vst [vmem:[#allocation132_spill] sm:$0xff] %v14473_v56  ;;  %v8928_v37 = vpop.f32.mrb[49].mxu1  ;;  %v14488_v14 = vpack.c.bf16 %v18606_v47, %v18605_v7  ;;  %v1819_v28 = vand.u32 4294901760, %v14463_v60  ;;  %v191_v7 = vld [vmem:[%s16842_s1 + $0x4e0] sm:$0xff]  ;;  %v18616_v56 = vld [vmem:[#allocation39_spill] sm:$0xff]  ;;  %9492 = vmatpush3.msra.mxu1 %v6124_v24  ;;  %18636 = vst [vmem:[#allocation168_spill] sm:$0xff] %v14594_v15 }
 0x1f1   :  { %18592 = vst [vmem:[#allocation115_spill] sm:$0xff] %v14442_v45  ;;  %v18603_v45 = vand.u32 4294901760, %v14188_v34  ;;  %v8929_v21 = vadd.f32 %v8928_v37, %v8927_v25  ;;  %v194_v37 = vld [vmem:[%s16842_s1 + $0x4f8] sm:$0xff]  ;;  %v18610_v25 = vand.u32 4294901760, %v14196_v32  ;;  %9493 = vmatprep.mubr.f32.mxu1 %v18616_v56  ;;  %v18624_v56 = vand.u32 4294901760, %v14423_v0  ;;  %10780 = vmatprep.subr.bf16.mxu1 %v10779_v44 }
 0x1f2   :  { %18607 = vst [vmem:[#allocation144_spill] sm:$0xff] %v14488_v14  ;;  %9982 = vmatpush1.bf16.msra.mxu0 %v14488_v14  ;;  %v1823_v14 = vand.u32 4294901760, %v198_v36  ;;  %v14607_v55 = vsub.f32 %v14423_v0, %v18640_v12  ;;  %v14627_v0 = vld [vmem:[%s16842_s1 + $0x578] sm:$0xff]  ;;  %v209_v12 = vld [vmem:[%s16842_s1 + $0x570] sm:$0xff] }
 0x1f3   :  { %v14481_v4 = vsub.f32 %v14188_v34, %v18603_v45  ;;  %v14495_v45 = vpack.c.bf16 %v18608_v16, %v1807_v26  ;;  %v1815_v34 = vand.u32 4294901760, %v14458_v54  ;;  %v14508_v47 = vsub.f32 %v14196_v32, %v18610_v25  ;;  %v201_v32 = vld [vmem:[%s16842_s1 + $0x530] sm:$0xff] }
 0x1f4   :  { %v18612_v16 = vand.u32 4294901760, %v14201_v22  ;;  %v14528_v25 = vadd.f32 %v8929_v21, %v14000_v63  ;;  %v14547_v63 = vpack.c.bf16 %v18624_v56, %v1809_v48  ;;  %v18626_v56 = vand.u32 4294901760, %v14296_v52  ;;  %18641 = vst [vmem:[#allocation171_spill] sm:$0xff] %v14607_v55 }
 0x1f5   :  { %18604 = vst [vmem:[#allocation133_spill] sm:$0xff] %v14481_v4  ;;  %18609 = vst [vmem:[#allocation145_spill] sm:$0xff] %v14495_v45  ;;  %v14518_v4 = vsub.f32 %v14206_v51, %v18614_v59  ;;  %v18620_v51 = vand.u32 4294901760, %v14263_v5  ;;  %9984 = vmatprep.subr.bf16.mxu0 %v14495_v45  ;;  %v14566_v24 = vpack.c.bf16 %v1819_v28, %v1815_v34 }
 0x1f6   :  { %18611 = vst [vmem:[#allocation148_spill] sm:$0xff] %v14508_v47  ;;  %v14513_v38 = vsub.f32 %v14201_v22, %v18612_v16  ;;  %18617 = vst [vmem:[#allocation158_spill] sm:$0xff] %v14528_v25  ;;  %v8930_v22 = vpop.f32.mrb[50].mxu1  ;;  %v18618_v16 = vand.u32 4294901760, %v14258_v13  ;;  %v18634_v25 = vld [vmem:[#allocation106_spill] sm:$0xff]  ;;  %9986 = vmatpush1.bf16.msra.mxu0 %v14547_v63 }
 0x1f7   :  { %18615 = vst [vmem:[#allocation41_spill] sm:$0xff] %v14518_v4  ;;  %v14538_v59 = vsub.f32 %v14263_v5, %v18620_v51  ;;  %v18622_v4 = vand.u32 4294901760, %v14291_v31  ;;  %18625 = vst [vmem:[#allocation162_spill] sm:$0xff] %v14547_v63  ;;  %v8931_v21 = vpop.f32.mrb[51].mxu1  ;;  %v197_v5 = vld [vmem:[%s16842_s1 + $0x510] sm:$0xff]  ;;  %v14563_v51 = vsub.f32 %v14296_v52, %v18626_v56  ;;  %v18631_v56 = vand.u32 4294901760, %v14346_v53  ;;  %9494 = vmatmul.mubr.f32.vlgmr.msra.gmra.mrb[104].mxu1 %v18634_v25 }
 0x1f8   :  { %18613 = vst [vmem:[#allocation149_spill] sm:$0xff] %v14513_v38  ;;  %v14533_v38 = vsub.f32 %v14258_v13, %v18618_v16  ;;  %v10783_v13 = vpack.c.bf16 %v14100_v40, %v14098_v50  ;;  %v1817_v16 = vand.u32 4294901760, %v191_v7  ;;  %18628 = vst [vmem:[#allocation164_spill] sm:$0xff] %v14566_v24  ;;  %v8933_v9 = vpop.f32.mrb[52].mxu1  ;;  %10782 = vmatpush3.bf16.msra.mxu1 %v10779_v44  ;;  %9988 = vmatprep.subr.bf16.mxu0 %v14566_v24  ;;  %v203_v63 = vld [vmem:[%s16842_s1 + $0x540] sm:$0xff]  ;;  %v18652_v24 = vld [vmem:[#allocation43_spill] sm:$0xff] }
 0x1f9   :  { %18621 = vst [vmem:[#allocation42_spill] sm:$0xff] %v14538_v59  ;;  %v14543_v47 = vsub.f32 %v14291_v31, %v18622_v4  ;;  %v14558_v31 = vld [vmem:[%s16842_s1 + $0x528] sm:$0xff]  ;;  %v8932_v4 = vadd.f32 %v8931_v21, %v8930_v22  ;;  %18627 = vst [vmem:[#allocation46_spill] sm:$0xff] %v14563_v51  ;;  %v207_v22 = vld [vmem:[%s16842_s1 + $0x560] sm:$0xff]  ;;  %v18629_v21 = vand.u32 4294901760, %v14341_v33  ;;  %v14582_v45 = vsub.f32 %v14346_v53, %v18631_v56 }
 0x1fa   :  { %18619 = vst [vmem:[#allocation159_spill] sm:$0xff] %v14533_v38  ;;  %v1821_v38 = vand.u32 4294901760, %v194_v37  ;;  %v204_v59 = vld [vmem:[%s16842_s1 + $0x548] sm:$0xff]  ;;  %v14585_v51 = vsub.f32 %v14373_v29, %v1807_v26  ;;  %v1829_v29 = vand.u32 4294901760, %v14558_v31  ;;  %v8934_v26 = vpop.f32.mrb[53].mxu1  ;;  %10784 = vmatprep.subr.bf16.mxu1 %v10783_v13  ;;  %v1835_v56 = vand.u32 4294901760, %v207_v22 }
 0x1fb   :  { %18623 = vst [vmem:[#allocation160_spill] sm:$0xff] %v14543_v47  ;;  %v1827_v47 = vand.u32 4294901760, %v201_v32  ;;  %v14577_v52 = vsub.f32 %v14341_v33, %v18629_v21  ;;  %18632 = vst [vmem:[#allocation47_spill] sm:$0xff] %v14582_v45  ;;  %v14589_v49 = vadd.f32 %v8932_v4, %v14052_v6  ;;  %v14597_v33 = vsub.f32 %v14418_v3, %v1809_v48  ;;  %v18638_v53 = vld [vmem:[#allocation121_spill] sm:$0xff] }
 0x1fc   :  { %18633 = vst [vmem:[#allocation167_spill] sm:$0xff] %v14585_v51  ;;  %9496 = vmatprep.mubr.f32.mxu1 %v18638_v53  ;;  %v1825_v21 = vand.u32 4294901760, %v197_v5  ;;  %v14602_v6 = vpack.c.bf16 %v1821_v38, %v1817_v16  ;;  %v1831_v4 = vand.u32 4294901760, %v204_v59  ;;  %v8935_v51 = vadd.f32 %v8934_v26, %v8933_v9  ;;  %v206_v9 = vld [vmem:[%s16842_s1 + $0x558] sm:$0xff]  ;;  %v14639_v26 = vld [vmem:[%s16842_s1 + $0x590] sm:$0xff]  ;;  %10786 = vmatpush3.bf16.msra.mxu1 %v10783_v13  ;;  %v14669_v13 = vld [vmem:[%s16842_s1 + $0x5c0] sm:$0xff] }
 0x1fd   :  { %18630 = vst [vmem:[#allocation165_spill] sm:$0xff] %v14577_v52  ;;  %18637 = vst [vmem:[#allocation57_spill] sm:$0xff] %v14597_v33  ;;  %v14611_v3 = vsub.f32 %v14458_v54, %v1815_v34  ;;  %v14614_v48 = vsub.f32 %v14463_v60, %v1819_v28  ;;  %v14616_v44 = vpack.c.bf16 %v1827_v47, %v1823_v14  ;;  %v18647_v60 = vld [vmem:[#allocation137_spill] sm:$0xff]  ;;  %9507 = vmatprep.subr.mxu1 %v14215_v1 }
 0x1fe   :  { %18639 = vst [vmem:[#allocation169_spill] sm:$0xff] %v14602_v6  ;;  %v14629_v54 = vsub.f32 %v191_v7, %v1817_v16  ;;  %v14631_v34 = vsub.f32 %v194_v37, %v1821_v38  ;;  %9497 = vmatmul.mubr.f32.gmra.mrb[106].mxu1 %v18647_v60  ;;  %v14634_v28 = vsub.f32 %v198_v36, %v1823_v14  ;;  %v212_v7 = vld [vmem:[%s16842_s1 + $0x588] sm:$0xff]  ;;  %v8936_v37 = vpop.f32.mrb[54].mxu1 }
 0x1ff   :  { %18642 = vst [vmem:[#allocation60_spill] sm:$0xff] %v14611_v3  ;;  %18643 = vst [vmem:[#allocation173_spill] sm:$0xff] %v14614_v48  ;;  %v14648_v38 = vadd.f32 %v8935_v51, %v14112_v18  ;;  %v14650_v36 = vsub.f32 %v201_v32, %v1827_v47  ;;  %v14652_v14 = vpack.c.bf16 %v1829_v29, %v1825_v21  ;;  %9509 = vmatprep.mubr.f32.mxu1 %v18652_v24  ;;  %v218_v51 = vld [vmem:[%s16842_s1 + $0x5b8] sm:$0xff] }
 0x200   :  { %18644 = vst [vmem:[#allocation174_spill] sm:$0xff] %v14616_v44  ;;  %18645 = vst [vmem:[#allocation68_spill] sm:$0xff] %v14629_v54  ;;  %v14654_v16 = vsub.f32 %v197_v5, %v1825_v21  ;;  %9990 = vmatpush1.bf16.msra.mxu0 %v14602_v6  ;;  %v14664_v18 = vpack.c.bf16 %v1835_v56, %v1831_v4  ;;  %v1833_v47 = vand.u32 4294901760, %v203_v63  ;;  %v1837_v32 = vand.u32 4294901760, %v206_v9  ;;  %v215_v5 = vld [vmem:[%s16842_s1 + $0x5a0] sm:$0xff] }
 0x201   :  { %18646 = vst [vmem:[#allocation175_spill] sm:$0xff] %v14631_v34  ;;  %18648 = vst [vmem:[#allocation177_spill] sm:$0xff] %v14634_v28  ;;  %v14660_v28 = vld [vmem:[%s16842_s1 + $0x5a8] sm:$0xff]  ;;  %v8937_v34 = vpop.f32.mrb[55].mxu1  ;;  %9992 = vmatprep.subr.bf16.mxu0 %v14616_v44  ;;  %v14681_v54 = vsub.f32 %v14558_v31, %v1829_v29  ;;  %v14683_v48 = vsub.f32 %v204_v59, %v1831_v4  ;;  %v14685_v3 = vsub.f32 %v207_v22, %v1835_v56 }
 0x202   :  { %18649 = vst [vmem:[#allocation69_spill] sm:$0xff] %v14650_v36  ;;  %18650 = vst [vmem:[#allocation179_spill] sm:$0xff] %v14652_v14  ;;  %v8938_v21 = vadd.f32 %v8937_v34, %v8936_v37  ;;  %v1845_v36 = vand.u32 4294901760, %v212_v7  ;;  %9508 = vmatpush3.msra.mxu1 %v14215_v1  ;;  %v1849_v24 = vand.u32 4294901760, %v215_v5  ;;  %v1853_v6 = vand.u32 4294901760, %v218_v51 }
 0x203   :  { %18651 = vst [vmem:[#allocation180_spill] sm:$0xff] %v14654_v16  ;;  %18653 = vst [vmem:[#allocation72_spill] sm:$0xff] %v14664_v18  ;;  %v1841_v16 = vand.u32 4294901760, %v209_v12  ;;  %10788 = vmatprep.subr.bf16.mxu1 %v14036_v8  ;;  %v14695_v31 = vpack.c.bf16 %v1837_v32, %v1833_v47  ;;  %v14697_v59 = vsub.f32 %v203_v63, %v1833_v47  ;;  %v18658_v1 = vand.u32 4294901760, %v14627_v0  ;;  %v18662_v47 = vld [vmem:[#allocation125_spill] sm:$0xff] }
 0x204   :  { %18654 = vst [vmem:[#allocation181_spill] sm:$0xff] %v14681_v54  ;;  %18655 = vst [vmem:[#allocation183_spill] sm:$0xff] %v14683_v48  ;;  %v14688_v55 = vadd.f32 %v8938_v21, %v14164_v10  ;;  %9994 = vmatpush1.bf16.msra.mxu0 %v14652_v14  ;;  %v14699_v22 = vsub.f32 %v206_v9, %v1837_v32  ;;  %v18657_v10 = vld [vmem:[#allocation111_spill] sm:$0xff]  ;;  %v18659_v29 = vand.u32 4294901760, %v14639_v26  ;;  %v18665_v9 = vand.u32 4294901760, %v14660_v28 }
 0x205   :  { %18656 = vst [vmem:[#allocation80_spill] sm:$0xff] %v14695_v31  ;;  %9510 = vmatmul.mubr.f32.vlgmr.msra.gmra.mrb[104].mxu1 %v18657_v10  ;;  %9996 = vmatprep.subr.bf16.mxu0 %v14664_v18  ;;  %v14709_v56 = vpack.c.bf16 %v1845_v36, %v1841_v16  ;;  %v14714_v21 = vld [vmem:[%s16842_s1 + $0x5d8] sm:$0xff]  ;;  %v14720_v32 = vsub.f32 %v209_v12, %v1841_v16  ;;  %v14731_v10 = vld [vmem:[%s16842_s1 + $0x5f0] sm:$0xff]  ;;  %v18666_v63 = vand.u32 4294901760, %v14669_v13  ;;  %v18677_v14 = vand.u32 4294901760, %v14271_v19 }
 0x206   :  { %v14707_v4 = vpack.c.bf16 %v18659_v29, %v18658_v1  ;;  %10790 = vmatpush3.bf16.msra.mxu1 %v14036_v8  ;;  %9512 = vmatprep.mubr.f32.mxu1 %v18662_v47  ;;  %v14722_v37 = vsub.f32 %v212_v7, %v1845_v36  ;;  %v18663_v1 = vand.u32 4294901760, %v13995_v35  ;;  %v18664_v29 = vand.u32 4294901760, %v13997_v2  ;;  %v14756_v2 = vld [vmem:[%s16842_s1 + $0x5d0] sm:$0xff]  ;;  %v18672_v35 = vld [vmem:[#allocation44_spill] sm:$0xff] }
 0x207   :  { %18661 = vst [vmem:[#allocation186_spill] sm:$0xff] %v14709_v56  ;;  %10792 = vmatprep.subr.bf16.mxu1 %v14102_v58  ;;  %v14738_v12 = vpack.c.bf16 %v18666_v63, %v18665_v9  ;;  %v14740_v7 = vpack.c.bf16 %v1853_v6, %v1849_v24  ;;  %v14745_v36 = vsub.f32 %v215_v5, %v1849_v24  ;;  %v18669_v63 = vld [vmem:[#allocation139_spill] sm:$0xff]  ;;  %v14761_v24 = vld [vmem:[%s16842_s1 + $0x5e8] sm:$0xff]  ;;  %v18670_v5 = vand.u32 4294901760, %v14222_v11  ;;  %s11358_s1 = smov 104  }
 0x208   :  { %18660 = vst [vmem:[#allocation185_spill] sm:$0xff] %v14707_v4  ;;  %v10795_v34 = vpack.c.bf16 %v18664_v29, %v18663_v1  ;;  %9998 = vmatpush1.bf16.msra.mxu0 %v14695_v31  ;;  %v18671_v29 = vand.u32 4294901760, %v14227_v57  ;;  %v18674_v47 = vand.u32 4294901760, %v14098_v50  ;;  %v18681_v50 = vand.u32 4294901760, %v14731_v10 }
 0x209   :  { %18667 = vst [vmem:[#allocation81_spill] sm:$0xff] %v14738_v12  ;;  %18668 = vst [vmem:[#allocation92_spill] sm:$0xff] %v14740_v7  ;;  %10000 = vmatprep.subr.bf16.mxu0 %v14707_v4  ;;  %9513 = vmatmul.mubr.f32.gmra.mrb[106].mxu1 %v18669_v63  ;;  %v1931_v16 = vsub.f32 %v14222_v11, %v18670_v5  ;;  %v14773_v63 = vsub.f32 %v218_v51, %v1853_v6  ;;  %v18675_v4 = vand.u32 4294901760, %v14100_v40 }
 0x20a   :  { %v1943_v1 = vsub.f32 %v14227_v57, %v18671_v29  ;;  %10794 = vmatpush3.bf16.msra.mxu1 %v14102_v58  ;;  %9525 = vmatprep.mubr.f32.mxu1 %v18672_v35  ;;  %v18676_v29 = vand.u32 4294901760, %v14232_v41  ;;  %v1949_v6 = vsub.f32 %v14271_v19, %v18677_v14  ;;  %v18680_v14 = vand.u32 4294901760, %v14714_v21 }
 0x20b   :  { %18673 = vst [vmem:[#allocation5_spill] sm:$0xff] %v14773_v63  ;;  %v10799_v31 = vpack.c.bf16 %v18675_v4, %v18674_v47  ;;  %9523 = vmatprep.subr.mxu1 %v14155_v23  ;;  %v18678_v47 = vand.u32 4294901760, %v14276_v39  ;;  %v1932_v35 = vand.u32 4294901760, %v1931_v16  ;;  %v18685_v16 = vld [vmem:[#allocation117_spill] sm:$0xff]  ;;  %v18686_v4 = vand.u32 4294901760, %v14306_v27 }
 0x20c   :  { %v1937_v9 = vsub.f32 %v14232_v41, %v18676_v29  ;;  %10002 = vmatpush1.bf16.msra.mxu0 %v14709_v56  ;;  %v18679_v29 = vand.u32 4294901760, %v14281_v43  ;;  %v14804_v51 = vpack.c.bf16 %v18681_v50, %v18680_v14  ;;  %v1944_v40 = vand.u32 4294901760, %v1943_v1 }
 0x20d   :  { %v1955_v18 = vsub.f32 %v14276_v39, %v18678_v47  ;;  %10004 = vmatprep.subr.bf16.mxu0 %v14738_v12  ;;  %v18683_v47 = vand.u32 4294901760, %v14286_v46  ;;  %v1950_v14 = vand.u32 4294901760, %v1949_v6  ;;  %v18687_v39 = vand.u32 4294901760, %v14311_v20  ;;  %v8971_v6 = vpop.f32.mrb[56].mxu1 }
 0x20e   :  { %v1967_v5 = vsub.f32 %v14281_v43, %v18679_v29  ;;  %18682 = vst [vmem:[#allocation94_spill] sm:$0xff] %v14804_v51  ;;  %9524 = vmatpush3.msra.mxu1 %v14155_v23  ;;  %v18684_v29 = vand.u32 4294901760, %v14301_v42  ;;  %v1938_v1 = vand.u32 4294901760, %v1937_v9  ;;  %v1979_v43 = vsub.f32 %v14306_v27, %v18686_v4  ;;  %v8972_v41 = vpop.f32.mrb[57].mxu1 }
 0x20f   :  { %v1961_v56 = vsub.f32 %v14286_v46, %v18683_v47  ;;  %10796 = vmatprep.subr.bf16.mxu1 %v10795_v34  ;;  %9526 = vmatmul.mubr.f32.vlgmr.msra.gmra.mrb[104].mxu1 %v18685_v16  ;;  %v1991_v47 = vsub.f32 %v14311_v20, %v18687_v39  ;;  %v18689_v50 = vand.u32 4294901760, %v14761_v24  ;;  %v1956_v16 = vand.u32 4294901760, %v1955_v18  ;;  %v18691_v39 = vld [vmem:[#allocation87_spill] sm:$0xff]  ;;  %v18692_v20 = vld [vmem:[#allocation88_spill] sm:$0xff] }
 0x210   :  { %v1973_v12 = vsub.f32 %v14301_v42, %v18684_v29  ;;  %10798 = vmatpush3.bf16.msra.mxu1 %v10795_v34  ;;  %10006 = vmatpush1.bf16.msra.mxu0 %v14740_v7  ;;  %v18688_v29 = vand.u32 4294901760, %v14756_v2  ;;  %v1968_v9 = vand.u32 4294901760, %v1967_v5  ;;  %v10011_v4 = vpack.c.bf16 %v1944_v40, %v1932_v35  ;;  %v18693_v42 = vld [vmem:[#allocation127_spill] sm:$0xff] }
 0x211   :  { %10800 = vmatprep.subr.bf16.mxu1 %v10799_v31  ;;  %10008 = vmatprep.subr.bf16.mxu0 %v14804_v51  ;;  %v1962_v46 = vand.u32 4294901760, %v1961_v56  ;;  %v18695_v5 = vand.u32 4294901760, %v14353_v61  ;;  %v18696_v35 = vld [vmem:[#allocation147_spill] sm:$0xff]  ;;  %v10013_v40 = vpack.c.bf16 %v1950_v14, %v1938_v1  ;;  %v1980_v27 = vand.u32 4294901760, %v1979_v43  ;;  %v18697_v51 = vld [vmem:[#allocation90_spill] sm:$0xff] }
 0x212   :  { %v14829_v44 = vpack.c.bf16 %v18689_v50, %v18688_v29  ;;  %9528 = vmatprep.mubr.f32.mxu1 %v18693_v42  ;;  %v1974_v19 = vand.u32 4294901760, %v1973_v12  ;;  %v18694_v50 = vand.u32 4294901760, %v14316_v30  ;;  %v1992_v34 = vand.u32 4294901760, %v1991_v47  ;;  %v18699_v42 = vld [vmem:[#allocation97_spill] sm:$0xff] }
 0x213   :  { %v1997_v29 = vsub.f32 %v14353_v61, %v18695_v5  ;;  %9529 = vmatmul.mubr.f32.gmra.mrb[106].mxu1 %v18696_v35  ;;  %v10015_v56 = vpack.c.bf16 %v1968_v9, %v1956_v16  ;;  %v18698_v12 = vand.u32 4294901760, %v14358_v62  ;;  %v8973_v5 = vadd.f32 %v8972_v41, %v8971_v6  ;;  %v18700_v61 = vld [vmem:[#allocation54_spill] sm:$0xff]  ;;  %v18704_v9 = vld [vmem:[#allocation39_spill] sm:$0xff] }
 0x214   :  { %18690 = vst [vmem:[#allocation151_spill] sm:$0xff] %v14829_v44  ;;  %v1985_v18 = vsub.f32 %v14316_v30, %v18694_v50  ;;  %10802 = vmatpush3.bf16.msra.mxu1 %v10799_v31  ;;  %10010 = vmatpush1.bf16.msra.mxu0 %v14829_v44  ;;  %v18701_v43 = vand.u32 4294901760, %v14363_v17  ;;  %v18702_v14 = vand.u32 4294901760, %v18691_v39  ;;  %v18703_v16 = vand.u32 4294901760, %v18692_v20  ;;  %v18705_v6 = vld [vmem:[#allocation158_spill] sm:$0xff]  ;;  %v18706_v35 = vld [vmem:[#allocation79_spill] sm:$0xff] }
 0x215   :  { %v2003_v50 = vsub.f32 %v14358_v62, %v18698_v12  ;;  %9539 = vmatprep.subr.mxu1 %v18700_v61  ;;  %10012 = vmatprep.subr.bf16.mxu0 %v10011_v4  ;;  %v10017_v12 = vpack.c.bf16 %v1974_v19, %v1962_v46  ;;  %v1998_v41 = vand.u32 4294901760, %v1997_v29  ;;  %v14862_v7 = vadd.f32 %v8973_v5, %v18705_v6  ;;  %v8974_v4 = vpop.f32.mrb[58].mxu1  ;;  %v18709_v62 = vld [vmem:[#allocation101_spill] sm:$0xff] }
 0x216   :  { %v2015_v1 = vsub.f32 %v14363_v17, %v18701_v43  ;;  %v2009_v31 = vsub.f32 %v18691_v39, %v18702_v14  ;;  %v2021_v47 = vsub.f32 %v18692_v20, %v18703_v16  ;;  %9541 = vmatprep.mubr.f32.mxu1 %v18704_v9  ;;  %v1986_v30 = vand.u32 4294901760, %v1985_v18  ;;  %v18708_v39 = vld [vmem:[#allocation99_spill] sm:$0xff]  ;;  %v8975_v20 = vpop.f32.mrb[59].mxu1  ;;  %v18711_v18 = vld [vmem:[#allocation113_spill] sm:$0xff] }
 0x217   :  { %1874 = vmatmul.mubr.f32.vlgmr.msra.gmra.mrb[0].mxu0 %v18706_v35  ;;  %v10019_v43 = vpack.c.bf16 %v1992_v34, %v1980_v27  ;;  %v18707_v44 = vand.u32 4294901760, %v18697_v51  ;;  %v18710_v19 = vand.u32 4294901760, %v18699_v42  ;;  %v18712_v35 = vld [vmem:[#allocation115_spill] sm:$0xff]  ;;  %v8976_v34 = vadd.f32 %v8975_v20, %v8974_v4  ;;  %v18715_v27 = vld [vmem:[#allocation129_spill] sm:$0xff]  ;;  %v8977_v17 = vpop.f32.mrb[60].mxu1 }
 0x218   :  { %9540 = vmatpush3.msra.mxu1 %v18700_v61  ;;  %10014 = vmatpush1.bf16.msra.mxu0 %v10013_v40  ;;  %v2016_v5 = vand.u32 4294901760, %v2015_v1  ;;  %v2010_v6 = vand.u32 4294901760, %v2009_v31  ;;  %v2022_v16 = vand.u32 4294901760, %v2021_v47  ;;  %v18713_v61 = vand.u32 4294901760, %v14627_v0  ;;  %v8978_v47 = vpop.f32.mrb[61].mxu1 }
 0x219   :  { %v2027_v14 = vsub.f32 %v18697_v51, %v18707_v44  ;;  %v2039_v46 = vsub.f32 %v18699_v42, %v18710_v19  ;;  %10804 = vmatprep.subr.bf16.mxu1 %v14036_v8  ;;  %9542 = vmatmul.mubr.f32.vlgmr.msra.gmra.mrb[104].mxu1 %v18634_v25  ;;  %v2004_v44 = vand.u32 4294901760, %v2003_v50  ;;  %v18714_v19 = vld [vmem:[#allocation116_spill] sm:$0xff]  ;;  %v14887_v4 = vadd.f32 %v8976_v34, %v14589_v49 }
 0x21a   :  { %v14881_v40 = vsub.f32 %v14627_v0, %v18713_v61  ;;  %10806 = vmatpush3.bf16.msra.mxu1 %v14036_v8  ;;  %10016 = vmatprep.subr.bf16.mxu0 %v10015_v56  ;;  %v10021_v50 = vpack.c.bf16 %v1998_v41, %v1986_v30  ;;  %v18716_v0 = vand.u32 4294901760, %v18708_v39  ;;  %v18717_v8 = vand.u32 4294901760, %v18709_v62  ;;  %v18720_v41 = vld [vmem:[#allocation205_spill] sm:$0xff] }
 0x21b   :  { %10808 = vmatprep.subr.bf16.mxu1 %v14102_v58  ;;  %9544 = vmatprep.mubr.f32.mxu1 %v18638_v53  ;;  %v2028_v1 = vand.u32 4294901760, %v2027_v14  ;;  %v2040_v61 = vand.u32 4294901760, %v2039_v46  ;;  %v18718_v49 = vand.u32 4294901760, %v18711_v18  ;;  %v18719_v20 = vand.u32 4294901760, %v18712_v35  ;;  %v18731_v46 = vld [vmem:[#allocation149_spill] sm:$0xff] }
 0x21c   :  { %v2033_v31 = vsub.f32 %v18708_v39, %v18716_v0  ;;  %v2045_v56 = vsub.f32 %v18709_v62, %v18717_v8  ;;  %10018 = vmatpush1.bf16.msra.mxu0 %v10017_v12  ;;  %1884 = vmatprep.mubr.f32.mxu0 %v18720_v41  ;;  %v8979_v14 = vadd.f32 %v8978_v47, %v8977_v17  ;;  %v18721_v8 = vld [vmem:[#allocation130_spill] sm:$0xff]  ;;  %v18722_v12 = vld [vmem:[#allocation132_spill] sm:$0xff]  ;;  %v18724_v41 = vand.u32 4294901760, %v18715_v27  ;;  %v18727_v62 = vld [vmem:[#allocation207_spill] sm:$0xff] }
 0x21d   :  { %v2051_v34 = vsub.f32 %v18711_v18, %v18718_v49  ;;  %v2063_v30 = vsub.f32 %v18712_v35, %v18719_v20  ;;  %9545 = vmatmul.mubr.f32.gmra.mrb[106].mxu1 %v18647_v60  ;;  %10020 = vmatprep.subr.bf16.mxu0 %v10019_v43  ;;  %v10023_v0 = vpack.c.bf16 %v2016_v5, %v2004_v44  ;;  %v18723_v49 = vand.u32 4294901760, %v18714_v19  ;;  %v18726_v47 = vld [vmem:[#allocation148_spill] sm:$0xff] }
 0x21e   :  { %v10025_v29 = vpack.c.bf16 %v2022_v16, %v2010_v6  ;;  %10810 = vmatpush3.bf16.msra.mxu1 %v14102_v58  ;;  %9557 = vmatprep.mubr.f32.mxu1 %v18704_v9  ;;  %v2069_v17 = vsub.f32 %v18715_v27, %v18724_v41  ;;  %v14916_v43 = vadd.f32 %v8979_v14, %v14648_v38  ;;  %v8980_v16 = vpop.f32.mrb[62].mxu1  ;;  %v2034_v44 = vand.u32 4294901760, %v2033_v31  ;;  %v18725_v6 = vld [vmem:[#allocation133_spill] sm:$0xff] }
 0x21f   :  { %v2057_v20 = vsub.f32 %v18714_v19, %v18723_v49  ;;  %9555 = vmatprep.subr.mxu1 %v14155_v23  ;;  %v2046_v5 = vand.u32 4294901760, %v2045_v56  ;;  %1890 = vmatmul.mubr.f32.gmra.mrb[2].mxu0 %v18727_v62  ;;  %v8981_v9 = vpop.f32.mrb[63].mxu1  ;;  %v10027_v49 = vpack.c.bf16 %v2040_v61, %v2028_v1  ;;  %v2052_v19 = vand.u32 4294901760, %v2051_v34  ;;  %v18728_v41 = vld [vmem:[#allocation209_spill] sm:$0xff] }
 0x220   :  { %10022 = vmatpush1.bf16.msra.mxu0 %v10021_v50  ;;  %v2064_v35 = vand.u32 4294901760, %v2063_v30  ;;  %1900 = vmatprep.mubr.f32.mxu0 %v18728_v41  ;;  %v8982_v38 = vadd.f32 %v8981_v9, %v8980_v16  ;;  %v18729_v14 = vand.u32 4294901760, %v18721_v8  ;;  %v18730_v56 = vand.u32 4294901760, %v18722_v12  ;;  %v18732_v62 = vld [vmem:[#allocation41_spill] sm:$0xff] }
 0x221   :  { %10024 = vmatprep.subr.bf16.mxu0 %v10023_v0  ;;  %v17538_v27 = vand.u32 4294901760, %v18731_v46  ;;  %v18733_v50 = vand.u32 4294901760, %v14639_v26  ;;  %v2058_v9 = vand.u32 4294901760, %v2057_v20  ;;  %v2070_v61 = vand.u32 4294901760, %v2069_v17  ;;  %v18740_v17 = vld [vmem:[#allocation160_spill] sm:$0xff]  ;;  %v18744_v20 = vld [vmem:[#allocation167_spill] sm:$0xff] }
 0x222   :  { %v2075_v31 = vsub.f32 %v18721_v8, %v18729_v14  ;;  %v2087_v58 = vsub.f32 %v18722_v12, %v18730_v56  ;;  %9556 = vmatpush3.msra.mxu1 %v14155_v23  ;;  %v14938_v34 = vadd.f32 %v8982_v38, %v14688_v55  ;;  %v10029_v30 = vpack.c.bf16 %v2046_v5, %v2034_v44  ;;  %v18739_v55 = vld [vmem:[#allocation42_spill] sm:$0xff]  ;;  %v18750_v44 = vld [vmem:[#allocation71_spill] sm:$0xff] }
 0x223   :  { %v14934_v1 = vsub.f32 %v14639_v26, %v18733_v50  ;;  %9558 = vmatmul.mubr.f32.vlgmr.msra.gmra.mrb[104].mxu1 %v18634_v25  ;;  %v18735_v0 = vand.u32 4294901760, %v18725_v6  ;;  %v18736_v41 = vand.u32 4294901760, %v18726_v47  ;;  %v18737_v26 = vld [vmem:[#allocation159_spill] sm:$0xff]  ;;  %v18738_v50 = vld [vmem:[#allocation210_spill] sm:$0xff]  ;;  %v10031_v23 = vpack.c.bf16 %v2064_v35, %v2052_v19 }
 0x224   :  { %1906 = vmatmul.mubr.f32.gmra.mrb[4].mxu0 %v18738_v50  ;;  %9560 = vmatprep.mubr.f32.mxu1 %v18638_v53  ;;  %v18741_v5 = vld [vmem:[#allocation46_spill] sm:$0xff]  ;;  %v2088_v18 = vand.u32 4294901760, %v2087_v58  ;;  %v18742_v56 = vand.u32 4294901760, %v18732_v62  ;;  %v18743_v50 = vld [vmem:[#allocation211_spill] sm:$0xff]  ;;  %v10033_v35 = vpack.c.bf16 %v2070_v61, %v2058_v9  ;;  %v18747_v9 = vand.u32 4294901760, %v18739_v55 }
 0x225   :  { %18734 = vst [vmem:[#allocation11_spill] sm:$0xff] %v14934_v1  ;;  %v2081_v16 = vsub.f32 %v18725_v6, %v18735_v0  ;;  %v2093_v14 = vsub.f32 %v18726_v47, %v18736_v41  ;;  %10026 = vmatpush1.bf16.msra.mxu0 %v10025_v29  ;;  %v2076_v0 = vand.u32 4294901760, %v2075_v31  ;;  %v2099_v41 = vsub.f32 %v18731_v46, %v17538_v27 }
 0x226   :  { %10028 = vmatprep.subr.bf16.mxu0 %v10027_v49  ;;  %v2111_v29 = vsub.f32 %v18732_v62, %v18742_v56  ;;  %1916 = vmatprep.mubr.f32.mxu0 %v18743_v50  ;;  %v18745_v31 = vand.u32 4294901760, %v18737_v26  ;;  %v18746_v56 = vld [vmem:[#allocation212_spill] sm:$0xff]  ;;  %v2117_v61 = vsub.f32 %v18739_v55, %v18747_v9  ;;  %v18748_v50 = vand.u32 4294901760, %v18740_v17 }
 0x227   :  { %9561 = vmatmul.mubr.f32.gmra.mrb[106].mxu1 %v18647_v60  ;;  %v2082_v58 = vand.u32 4294901760, %v2081_v16  ;;  %v2094_v49 = vand.u32 4294901760, %v2093_v14  ;;  %v18749_v16 = vand.u32 4294901760, %v18741_v5  ;;  %v18752_v9 = vand.u32 4294901760, %v14577_v52 }
 0x228   :  { %v2105_v27 = vsub.f32 %v18737_v26, %v18745_v31  ;;  %1922 = vmatmul.mubr.f32.gmra.mrb[6].mxu0 %v18746_v56  ;;  %v2123_v38 = vsub.f32 %v18740_v17, %v18748_v50  ;;  %v18751_v31 = vand.u32 4294901760, %v14660_v28  ;;  %v2100_v56 = vand.u32 4294901760, %v2099_v41  ;;  %v18761_v41 = vld [vmem:[#allocation173_spill] sm:$0xff] }
 0x229   :  { %10030 = vmatpush1.bf16.msra.mxu0 %v10029_v30  ;;  %v2135_v14 = vsub.f32 %v18741_v5, %v18749_v16  ;;  %2313 = vmatprep.mubr.f32.mxu0 %v18750_v44  ;;  %v10035_v30 = vpack.c.bf16 %v2088_v18, %v2076_v0  ;;  %v2112_v19 = vand.u32 4294901760, %v2111_v29  ;;  %v2129_v60 = vsub.f32 %v14577_v52, %v18752_v9  ;;  %v18756_v0 = vld [vmem:[#allocation171_spill] sm:$0xff]  ;;  %v18757_v29 = vld [vmem:[#allocation60_spill] sm:$0xff] }
 0x22a   :  { %v14982_v53 = vsub.f32 %v14660_v28, %v18751_v31  ;;  %10032 = vmatprep.subr.bf16.mxu0 %v10031_v23  ;;  %v18753_v50 = vand.u32 4294901760, %v14582_v45  ;;  %v18754_v16 = vand.u32 4294901760, %v18744_v20  ;;  %v10037_v28 = vpack.c.bf16 %v2094_v49, %v2082_v58 }
 0x22b   :  { %v18755_v23 = vand.u32 4294901760, %v14594_v15  ;;  %v2106_v9 = vand.u32 4294901760, %v2105_v27  ;;  %v2118_v52 = vand.u32 4294901760, %v2117_v61  ;;  %v2124_v17 = vand.u32 4294901760, %v2123_v38 }
 0x22c   :  { %v2141_v25 = vsub.f32 %v14582_v45, %v18753_v50  ;;  %v2147_v44 = vsub.f32 %v18744_v20, %v18754_v16  ;;  %v2136_v50 = vand.u32 4294901760, %v2135_v14  ;;  %v18758_v45 = vand.u32 4294901760, %v14669_v13 }
 0x22d   :  { %v2159_v18 = vsub.f32 %v14594_v15, %v18755_v23  ;;  %10034 = vmatpush1.bf16.msra.mxu0 %v10033_v35  ;;  %v18759_v58 = vand.u32 4294901760, %v14714_v21  ;;  %v10039_v23 = vpack.c.bf16 %v2112_v19, %v2100_v56  ;;  %v17555_v5 = vand.u32 4294901760, %v18761_v41  ;;  %v18771_v19 = vld [vmem:[#allocation180_spill] sm:$0xff] }
 0x22e   :  { %v15002_v16 = vsub.f32 %v14669_v13, %v18758_v45  ;;  %10036 = vmatprep.subr.bf16.mxu0 %v10035_v30  ;;  %v2130_v31 = vand.u32 4294901760, %v2129_v60  ;;  %v2142_v35 = vand.u32 4294901760, %v2141_v25  ;;  %v2148_v27 = vand.u32 4294901760, %v2147_v44  ;;  %v18765_v30 = vld [vmem:[#allocation68_spill] sm:$0xff] }
 0x22f   :  { %v15007_v49 = vsub.f32 %v14714_v21, %v18759_v58  ;;  %v18762_v38 = vand.u32 4294901760, %v14597_v33  ;;  %v2160_v14 = vand.u32 4294901760, %v2159_v18  ;;  %v18763_v45 = vand.u32 4294901760, %v18756_v0  ;;  %v18768_v58 = vld [vmem:[#allocation175_spill] sm:$0xff] }
 0x230   :  { %v18764_v15 = vand.u32 4294901760, %v18757_v29  ;;  %v18766_v56 = vand.u32 4294901760, %v14731_v10  ;;  %v10041_v60 = vpack.c.bf16 %v2118_v52, %v2106_v9  ;;  %v10043_v44 = vpack.c.bf16 %v2136_v50, %v2124_v17  ;;  %v9015_v9 = vpop.f32.mrb[64].mxu1 }
 0x231   :  { %18760 = vst [vmem:[#allocation108_spill] sm:$0xff] %v15007_v49  ;;  %v2153_v61 = vsub.f32 %v14597_v33, %v18762_v38  ;;  %v2165_v13 = vsub.f32 %v18756_v0, %v18763_v45  ;;  %10038 = vmatpush1.bf16.msra.mxu0 %v10037_v28  ;;  %v17556_v18 = vand.u32 4294901760, %v18768_v58  ;;  %v2183_v38 = vsub.f32 %v18761_v41, %v17555_v5  ;;  %v18769_v45 = vld [vmem:[#allocation177_spill] sm:$0xff] }
 0x232   :  { %v2171_v21 = vsub.f32 %v18757_v29, %v18764_v15  ;;  %v15023_v25 = vsub.f32 %v14731_v10, %v18766_v56  ;;  %10040 = vmatprep.subr.bf16.mxu0 %v10039_v23  ;;  %v18770_v15 = vld [vmem:[#allocation69_spill] sm:$0xff]  ;;  %v18772_v20 = vand.u32 4294901760, %v14756_v2  ;;  %v10045_v52 = vpack.c.bf16 %v2142_v35, %v2130_v31  ;;  %v9016_v29 = vpop.f32.mrb[65].mxu1 }
 0x233   :  { %v2154_v17 = vand.u32 4294901760, %v2153_v61  ;;  %v17558_v28 = vand.u32 4294901760, %v14681_v54  ;;  %v10047_v50 = vpack.c.bf16 %v2160_v14, %v2148_v27  ;;  %v2166_v23 = vand.u32 4294901760, %v2165_v13 }
 0x234   :  { %18767 = vst [vmem:[#allocation18_spill] sm:$0xff] %v15023_v25  ;;  %v15035_v10 = vsub.f32 %v14756_v2, %v18772_v20  ;;  %v2172_v56 = vand.u32 4294901760, %v2171_v21  ;;  %v18774_v5 = vand.u32 4294901760, %v18765_v30  ;;  %v2189_v33 = vsub.f32 %v18768_v58, %v17556_v18 }
 0x235   :  { %10042 = vmatpush1.bf16.msra.mxu0 %v10041_v60  ;;  %v9017_v31 = vadd.f32 %v9016_v29, %v9015_v9  ;;  %v2184_v35 = vand.u32 4294901760, %v2183_v38  ;;  %v18775_v27 = vand.u32 4294901760, %v18769_v45  ;;  %v18776_v14 = vand.u32 4294901760, %v18770_v15  ;;  %v9018_v9 = vpop.f32.mrb[66].mxu1 }
 0x236   :  { %18773 = vst [vmem:[#allocation124_spill] sm:$0xff] %v15035_v10  ;;  %v2177_v0 = vsub.f32 %v18765_v30, %v18774_v5  ;;  %10044 = vmatprep.subr.bf16.mxu0 %v10043_v44  ;;  %v18777_v13 = vand.u32 4294901760, %v18771_v19  ;;  %v2213_v60 = vsub.f32 %v14681_v54, %v17558_v28  ;;  %v9019_v2 = vpop.f32.mrb[67].mxu1  ;;  %v18779_v29 = vand.u32 4294901760, %v14685_v3 }
 0x237   :  { %v2195_v61 = vsub.f32 %v18769_v45, %v18775_v27  ;;  %v2207_v5 = vsub.f32 %v18770_v15, %v18776_v14  ;;  %v15061_v38 = vadd.f32 %v9017_v31, %v14862_v7  ;;  %v10049_v27 = vpack.c.bf16 %v2166_v23, %v2154_v17 }
 0x238   :  { %v2201_v21 = vsub.f32 %v18771_v19, %v18777_v13  ;;  %v2178_v18 = vand.u32 4294901760, %v2177_v0  ;;  %v2190_v13 = vand.u32 4294901760, %v2189_v33  ;;  %v18778_v19 = vand.u32 4294901760, %v14683_v48 }
 0x239   :  { %10046 = vmatpush1.bf16.msra.mxu0 %v10045_v52  ;;  %v2231_v44 = vsub.f32 %v14685_v3, %v18779_v29  ;;  %v9020_v7 = vadd.f32 %v9019_v2, %v9018_v9  ;;  %v10051_v31 = vpack.c.bf16 %v2184_v35, %v2172_v56  ;;  %v2196_v17 = vand.u32 4294901760, %v2195_v61 }
 0x23a   :  { %v2219_v28 = vsub.f32 %v14683_v48, %v18778_v19  ;;  %10048 = vmatprep.subr.bf16.mxu0 %v10047_v50  ;;  %v2208_v0 = vand.u32 4294901760, %v2207_v5  ;;  %v2202_v23 = vand.u32 4294901760, %v2201_v21  ;;  %v2214_v14 = vand.u32 4294901760, %v2213_v60  ;;  %v9021_v48 = vpop.f32.mrb[68].mxu1 }
 0x23b   :  { %v18780_v20 = vand.u32 4294901760, %v14697_v59  ;;  %v18781_v33 = vand.u32 4294901760, %v14699_v22  ;;  %v15078_v19 = vadd.f32 %v9020_v7, %v14887_v4  ;;  %v18782_v2 = vand.u32 4294901760, %v14881_v40  ;;  %v9022_v5 = vpop.f32.mrb[69].mxu1 }
 0x23c   :  { %v18783_v56 = vand.u32 4294901760, %v14934_v1  ;;  %v10053_v21 = vpack.c.bf16 %v2190_v13, %v2178_v18  ;;  %v2220_v60 = vand.u32 4294901760, %v2219_v28  ;;  %v2232_v29 = vand.u32 4294901760, %v2231_v44  ;;  %v9024_v18 = vpop.f32.mrb[70].mxu1 }
 0x23d   :  { %v2225_v52 = vsub.f32 %v14697_v59, %v18780_v20  ;;  %v2237_v54 = vsub.f32 %v14699_v22, %v18781_v33  ;;  %v2243_v50 = vsub.f32 %v14881_v40, %v18782_v2  ;;  %10050 = vmatpush1.bf16.msra.mxu0 %v10049_v27  ;;  %v9023_v4 = vadd.f32 %v9022_v5, %v9021_v48 }
 0x23e   :  { %v2255_v35 = vsub.f32 %v14934_v1, %v18783_v56  ;;  %v18784_v9 = vand.u32 4294901760, %v14761_v24  ;;  %10052 = vmatprep.subr.bf16.mxu0 %v10051_v31  ;;  %v10055_v33 = vpack.c.bf16 %v2208_v0, %v2196_v17  ;;  %v17572_v2 = vand.u32 4294901760, %v14982_v53  ;;  %v9025_v17 = vpop.f32.mrb[71].mxu1 }
 0x23f   :  { %v17571_v56 = vand.u32 4294901760, %v15002_v16  ;;  %v10057_v61 = vpack.c.bf16 %v2214_v14, %v2202_v23  ;;  %v2226_v1 = vand.u32 4294901760, %v2225_v52  ;;  %v2238_v20 = vand.u32 4294901760, %v2237_v54 }
 0x240   :  { %v15091_v7 = vsub.f32 %v14761_v24, %v18784_v9  ;;  %v15096_v27 = vadd.f32 %v9023_v4, %v14916_v43  ;;  %v2244_v28 = vand.u32 4294901760, %v2243_v50  ;;  %v2256_v48 = vand.u32 4294901760, %v2255_v35 }
 0x241   :  { %v18786_v44 = vand.u32 4294901760, %v14720_v32  ;;  %v18787_v13 = vand.u32 4294901760, %v14722_v37  ;;  %10054 = vmatpush1.bf16.msra.mxu0 %v10053_v21  ;;  %v10059_v0 = vpack.c.bf16 %v2232_v29, %v2220_v60  ;;  %v17570_v14 = vand.u32 4294901760, %v14745_v36 }
 0x242   :  { %18785 = vst [vmem:[#allocation187_spill] sm:$0xff] %v15091_v7  ;;  %v17569_v54 = vand.u32 4294901760, %v14773_v63  ;;  %v9026_v43 = vadd.f32 %v9025_v17, %v9024_v18  ;;  %10056 = vmatprep.subr.bf16.mxu0 %v10055_v33  ;;  %v2267_v23 = vsub.f32 %v14982_v53, %v17572_v2  ;;  %v2279_v52 = vsub.f32 %v15002_v16, %v17571_v56 }
 0x243   :  { %v2249_v24 = vsub.f32 %v14720_v32, %v18786_v44  ;;  %v2261_v31 = vsub.f32 %v14722_v37, %v18787_v13  ;;  %v17568_v50 = vand.u32 4294901760, %v15007_v49  ;;  %v17565_v35 = vand.u32 4294901760, %v15023_v25 }
 0x244   :  { %v15115_v5 = vadd.f32 %v9026_v43, %v14938_v34  ;;  %v10061_v21 = vpack.c.bf16 %v2238_v20, %v2226_v1  ;;  %v10063_v60 = vpack.c.bf16 %v2256_v48, %v2244_v28  ;;  %v2273_v9 = vsub.f32 %v14745_v36, %v17570_v14 }
 0x245   :  { %v2250_v29 = vand.u32 4294901760, %v2249_v24  ;;  %v2262_v4 = vand.u32 4294901760, %v2261_v31  ;;  %10058 = vmatpush1.bf16.msra.mxu0 %v10057_v61  ;;  %v2285_v33 = vsub.f32 %v14773_v63, %v17569_v54  ;;  %v17567_v18 = vand.u32 4294901760, %v15035_v10  ;;  %v18801_v54 = vld [vmem:[#allocation70_spill] sm:$0xff] }
 0x246   :  { %v17566_v44 = vand.u32 4294901760, %v15091_v7  ;;  %10060 = vmatprep.subr.bf16.mxu0 %v10059_v0  ;;  %v2268_v34 = vand.u32 4294901760, %v2267_v23  ;;  %v2280_v13 = vand.u32 4294901760, %v2279_v52  ;;  %v2291_v1 = vsub.f32 %v15007_v49, %v17568_v50 }
 0x247   :  { %v2303_v61 = vsub.f32 %v15023_v25, %v17565_v35  ;;  %v10065_v20 = vpack.c.bf16 %v2262_v4, %v2250_v29  ;;  %v2274_v28 = vand.u32 4294901760, %v2273_v9  ;;  %v2286_v48 = vand.u32 4294901760, %v2285_v33  ;;  %v9059_v9 = vpop.f32.mrb[72].mxu1 }
 0x248   :  { %v2297_v24 = vsub.f32 %v15035_v10, %v17567_v18  ;;  %v2309_v31 = vsub.f32 %v15091_v7, %v17566_v44  ;;  %v10067_v17 = vpack.c.bf16 %v2280_v13, %v2268_v34  ;;  %v2292_v0 = vand.u32 4294901760, %v2291_v1  ;;  %v9060_v33 = vpop.f32.mrb[73].mxu1  ;;  %v18788_v44 = vld [vmem:[#allocation198_spill] sm:$0xff]  ;;  %v18790_v1 = vld [vmem:[#allocation63_spill] sm:$0xff]  ;;  %v18800_v18 = vld [vmem:[#allocation77_spill] sm:$0xff] }
 0x249   :  { %10062 = vmatpush1.bf16.msra.mxu0 %v10061_v21  ;;  %v2304_v43 = vand.u32 4294901760, %v2303_v61  ;;  %v10069_v23 = vpack.c.bf16 %v2286_v48, %v2274_v28  ;;  %v10075_v4 = vpack.c.bf16 %v14227_v57, %v14222_v11  ;;  %v9061_v13 = vadd.f32 %v9060_v33, %v9059_v9  ;;  %v18791_v61 = vld [vmem:[#allocation59_spill] sm:$0xff] }
 0x24a   :  { %10064 = vmatprep.subr.bf16.mxu0 %v10063_v60  ;;  %v2298_v52 = vand.u32 4294901760, %v2297_v24  ;;  %v2310_v35 = vand.u32 4294901760, %v2309_v31  ;;  %v18789_v60 = vld [vmem:[#allocation61_spill] sm:$0xff]  ;;  %v9062_v48 = vpop.f32.mrb[74].mxu1  ;;  %v18792_v24 = vld [vmem:[#allocation104_spill] sm:$0xff]  ;;  %v18793_v31 = vld [vmem:[#allocation203_spill] sm:$0xff] }
 0x24b   :  { %v10071_v21 = vpack.c.bf16 %v2304_v43, %v2292_v0  ;;  %v10077_v34 = vpack.c.bf16 %v18789_v60, %v18788_v44  ;;  %v5496_v28 = vadd.f32 %v9061_v13, %v15061_v38  ;;  %v18798_v38 = vld [vmem:[#allocation45_spill] sm:$0xff] }
 0x24c   :  { %v10073_v29 = vpack.c.bf16 %v2310_v35, %v2298_v52  ;;  %v9063_v35 = vpop.f32.mrb[75].mxu1  ;;  %v18796_v52 = vld [vmem:[#allocation65_spill] sm:$0xff] }
 0x24d   :  { %10066 = vmatpush1.bf16.msra.mxu0 %v10065_v20  ;;  %v10079_v20 = vpack.c.bf16 %v18791_v61, %v18790_v1  ;;  %v9064_v43 = vadd.f32 %v9063_v35, %v9062_v48  ;;  %v18799_v13 = vld [vmem:[#allocation73_spill] sm:$0xff]  ;;  %v18802_v48 = vld [vmem:[#allocation78_spill] sm:$0xff] }
 0x24e   :  { %10068 = vmatprep.subr.bf16.mxu0 %v10067_v17  ;;  %v18794_v17 = vld [vmem:[#allocation204_spill] sm:$0xff]  ;;  %v9065_v9 = vpop.f32.mrb[76].mxu1  ;;  %v18803_v35 = vld [vmem:[#allocation86_spill] sm:$0xff] }
 0x24f   :  { %v10081_v0 = vpack.c.bf16 %v18794_v17, %v18793_v31  ;;  %v9066_v33 = vpop.f32.mrb[77].mxu1 }
 0x250   :  { %v9067_v50 = vadd.f32 %v9066_v33, %v9065_v9  ;;  %v18808_v33 = vld [vmem:[#allocation189_spill] sm:$0xff] }
 0x251   :  { %10070 = vmatpush1.bf16.msra.mxu0 %v10069_v23  ;;  %v18795_v23 = vld [vmem:[#allocation40_spill] sm:$0xff] }
 0x252   :  { %10072 = vmatprep.subr.bf16.mxu0 %v10071_v21  ;;  %v18797_v21 = vld [vmem:[#allocation66_spill] sm:$0xff]  ;;  %v5514_v14 = vadd.f32 %v9067_v50, %v15096_v27  ;;  %v9068_v56 = vpop.f32.mrb[78].mxu1  ;;  %v18809_v27 = vld [vmem:[#allocation101_spill] sm:$0xff] }
 0x253   :  { %v9069_v2 = vpop.f32.mrb[79].mxu1  ;;  %v10093_v50 = vpack.c.bf16 %v18809_v27, %v18708_v39 }
 0x255   :  { %10074 = vmatpush1.bf16.msra.mxu0 %v10073_v29  ;;  %v10083_v29 = vpack.c.bf16 %v18797_v21, %v18796_v52 }
 0x256   :  { %10076 = vmatprep.subr.bf16.mxu0 %v10075_v4  ;;  %v5505_v4 = vadd.f32 %v9064_v43, %v15078_v19  ;;  %v18804_v19 = vld [vmem:[#allocation91_spill] sm:$0xff] }
 0x257   :  { %v18805_v43 = vld [vmem:[#allocation87_spill] sm:$0xff] }
 0x258   :  { %2315 = vmatmul.mubr.f32.vlgmr.msra.gmra.mrb[0].mxu0 %v18792_v24  ;;  %v18807_v24 = vld [vmem:[#allocation153_spill] sm:$0xff] }
 0x259   :  { %10078 = vmatpush1.bf16.msra.mxu0 %v10077_v34  ;;  %2321 = vmatprep.mubr.f32.mxu0 %v18795_v23  ;;  %v10085_v34 = vpack.c.bf16 %v18800_v18, %v18799_v13  ;;  %v9070_v23 = vadd.f32 %v9069_v2, %v9068_v56  ;;  %v18813_v56 = vld [vmem:[#allocation116_spill] sm:$0xff] }
 0x25a   :  { %10080 = vmatprep.subr.bf16.mxu0 %v10079_v20  ;;  %v10087_v20 = vpack.c.bf16 %v18803_v35, %v18802_v48 }
 0x25b   :  { %v5523_v9 = vadd.f32 %v9070_v23, %v15115_v5  ;;  %v10099_v5 = vpack.c.bf16 %v18722_v12, %v18721_v8  ;;  %v10101_v23 = vpack.c.bf16 %v18726_v47, %v18725_v6  ;;  %v18818_v8 = vld [vmem:[#allocation47_spill] sm:$0xff]  ;;  %v18820_v47 = vld [vmem:[#allocation168_spill] sm:$0xff] }
 0x25c   :  { %2323 = vmatmul.mubr.f32.gmra.mrb[2].mxu0 %v18798_v38  ;;  %v18806_v38 = vld [vmem:[#allocation88_spill] sm:$0xff] }
 0x25d   :  { %10082 = vmatpush1.bf16.msra.mxu0 %v10081_v0  ;;  %2329 = vmatprep.mubr.f32.mxu0 %v18801_v54  ;;  %v10089_v0 = vpack.c.bf16 %v18806_v38, %v18805_v43  ;;  %v18812_v54 = vld [vmem:[#allocation115_spill] sm:$0xff] }
 0x25e   :  { %10084 = vmatprep.subr.bf16.mxu0 %v10083_v29  ;;  %v10091_v29 = vpack.c.bf16 %v18699_v42, %v18697_v51 }
 0x260   :  { %2331 = vmatmul.mubr.f32.gmra.mrb[4].mxu0 %v18804_v19  ;;  %v18810_v19 = vld [vmem:[#allocation152_spill] sm:$0xff] }
 0x261   :  { %10086 = vmatpush1.bf16.msra.mxu0 %v10085_v34  ;;  %2337 = vmatprep.mubr.f32.mxu0 %v18807_v24  ;;  %v18811_v34 = vld [vmem:[#allocation113_spill] sm:$0xff] }
 0x262   :  { %10088 = vmatprep.subr.bf16.mxu0 %v10087_v20  ;;  %v10095_v2 = vpack.c.bf16 %v18812_v54, %v18811_v34  ;;  %v18814_v20 = vld [vmem:[#allocation129_spill] sm:$0xff] }
 0x263   :  { %v10097_v24 = vpack.c.bf16 %v18814_v20, %v18813_v56 }
 0x264   :  { %2339 = vmatmul.mubr.f32.gmra.mrb[6].mxu0 %v18808_v33 }
 0x265   :  { %10090 = vmatpush1.bf16.msra.mxu0 %v10089_v0  ;;  %2539 = vmatprep.mubr.f32.mxu0 %v18810_v19  ;;  %v10103_v19 = vpack.c.bf16 %v18732_v62, %v18731_v46  ;;  %v10105_v0 = vpack.c.bf16 %v18739_v55, %v18737_v26  ;;  %v18821_v55 = vld [vmem:[#allocation57_spill] sm:$0xff] }
 0x266   :  { %10092 = vmatprep.subr.bf16.mxu0 %v10091_v29  ;;  %v18815_v29 = vld [vmem:[#allocation160_spill] sm:$0xff] }
 0x269   :  { %10094 = vmatpush1.bf16.msra.mxu0 %v10093_v50  ;;  %v18816_v50 = vld [vmem:[#allocation46_spill] sm:$0xff] }
 0x26a   :  { %10096 = vmatprep.subr.bf16.mxu0 %v10095_v2  ;;  %v10107_v33 = vpack.c.bf16 %v18816_v50, %v18815_v29  ;;  %v9103_v2 = vpop.f32.mrb[80].mxu1  ;;  %v18823_v50 = vld [vmem:[#allocation60_spill] sm:$0xff] }
 0x26b   :  { %v9104_v20 = vpop.f32.mrb[81].mxu1 }
 0x26c   :  { %v9105_v12 = vadd.f32 %v9104_v20, %v9103_v2 }
 0x26d   :  { %10098 = vmatpush1.bf16.msra.mxu0 %v10097_v24  ;;  %v18817_v24 = vld [vmem:[#allocation165_spill] sm:$0xff] }
 0x26e   :  { %10100 = vmatprep.subr.bf16.mxu0 %v10099_v5  ;;  %v10109_v56 = vpack.c.bf16 %v18818_v8, %v18817_v24  ;;  %v18819_v5 = vld [vmem:[#allocation167_spill] sm:$0xff]  ;;  %v5631_v62 = vadd.f32 %v9105_v12, %v5496_v28  ;;  %v10119_v12 = vpack.c.bf16 %v18770_v15, %v18769_v45 }
 0x26f   :  { %v10111_v6 = vpack.c.bf16 %v18820_v47, %v18819_v5 }
 0x271   :  { %10102 = vmatpush1.bf16.msra.mxu0 %v10101_v23  ;;  %v9106_v23 = vpop.f32.mrb[82].mxu1 }
 0x272   :  { %10104 = vmatprep.subr.bf16.mxu0 %v10103_v19  ;;  %v9107_v46 = vpop.f32.mrb[83].mxu1  ;;  %v18822_v19 = vld [vmem:[#allocation171_spill] sm:$0xff] }
 0x273   :  { %v10113_v26 = vpack.c.bf16 %v18822_v19, %v18821_v55  ;;  %v9108_v54 = vadd.f32 %v9107_v46, %v9106_v23  ;;  %v9109_v2 = vpop.f32.mrb[84].mxu1  ;;  %v18824_v46 = vld [vmem:[#allocation180_spill] sm:$0xff] }
 0x274   :  { %v9110_v29 = vpop.f32.mrb[85].mxu1 }
 0x275   :  { %10106 = vmatpush1.bf16.msra.mxu0 %v10105_v0  ;;  %v10115_v0 = vpack.c.bf16 %v18761_v41, %v18823_v50  ;;  %v5642_v20 = vadd.f32 %v9108_v54, %v5505_v4  ;;  %v9111_v47 = vadd.f32 %v9110_v29, %v9109_v2  ;;  %v18826_v54 = vld [vmem:[#allocation183_spill] sm:$0xff]  ;;  %v10125_v29 = vpack.c.bf16 %v14699_v22, %v14697_v59 }
 0x276   :  { %10108 = vmatprep.subr.bf16.mxu0 %v10107_v33  ;;  %v10117_v33 = vpack.c.bf16 %v18768_v58, %v18765_v30  ;;  %v10137_v2 = vpack.c.bf16 %v15091_v7, %v15035_v10 }
 0x277   :  { %v5653_v28 = vadd.f32 %v9111_v47, %v5514_v14  ;;  %v10131_v14 = vpack.c.bf16 %v15002_v16, %v14982_v53 }
 0x279   :  { %10110 = vmatpush1.bf16.msra.mxu0 %v10109_v56  ;;  %v9112_v56 = vpop.f32.mrb[86].mxu1 }
 0x27a   :  { %10112 = vmatprep.subr.bf16.mxu0 %v10111_v6  ;;  %v9113_v19 = vpop.f32.mrb[87].mxu1  ;;  %v18825_v6 = vld [vmem:[#allocation181_spill] sm:$0xff] }
 0x27b   :  { %v10121_v23 = vpack.c.bf16 %v18825_v6, %v18824_v46  ;;  %v9114_v41 = vadd.f32 %v9113_v19, %v9112_v56  ;;  %v18828_v19 = vpack.c.bf16 %v14722_v37, %v14720_v32 }
 0x27d   :  { %10114 = vmatpush1.bf16.msra.mxu0 %v10113_v26  ;;  %v10123_v26 = vpack.c.bf16 %v14685_v3, %v18826_v54  ;;  %v5664_v4 = vadd.f32 %v9114_v41, %v5523_v9  ;;  %v10135_v41 = vpack.c.bf16 %v15023_v25, %v15007_v49  ;;  %v18829_v9 = vpack.c.bf16 %v14773_v63, %v14745_v36  ;;  %v18833_v49 = vld [vmem:[#allocation67_spill] sm:$0xff]  ;;  %v18835_v63 = vld [vmem:[#allocation82_spill] sm:$0xff] }
 0x27e   :  { %10116 = vmatprep.subr.bf16.mxu0 %v10115_v0  ;;  %v18827_v0 = vld [vmem:[#allocation11_spill] sm:$0xff] }
 0x27f   :  { %v10127_v47 = vpack.c.bf16 %v18827_v0, %v14881_v40 }
 0x281   :  { %10118 = vmatpush1.bf16.msra.mxu0 %v10117_v33 }
 0x282   :  { %10120 = vmatprep.subr.bf16.mxu0 %v10119_v12 }
 0x285   :  { %10122 = vmatpush1.bf16.msra.mxu0 %v10121_v23  ;;  %v18830_v23 = vld [vmem:[#allocation23_spill] sm:$0xff] }
 0x286   :  { %10124 = vmatprep.subr.bf16.mxu0 %v10123_v26  ;;  %v9147_v33 = vpop.f32.mrb[88].mxu1 }
 0x287   :  { %v9148_v12 = vpop.f32.mrb[89].mxu1 }
 0x288   :  { %v9149_v56 = vadd.f32 %v9148_v12, %v9147_v33  ;;  %v18838_v12 = vld [vmem:[#allocation191_spill] sm:$0xff] }
 0x289   :  { %10126 = vmatpush1.bf16.msra.mxu0 %v10125_v29 }
 0x28a   :  { %10128 = vmatprep.subr.bf16.mxu0 %v10127_v47  ;;  %v5832_v26 = vadd.f32 %v9149_v56, %v5631_v62  ;;  %v9150_v29 = vpop.f32.mrb[90].mxu1  ;;  %v18831_v47 = vld [vmem:[#allocation119_spill] sm:$0xff]  ;;  %v18837_v62 = vld [vmem:[#allocation118_spill] sm:$0xff] }
 0x28d   :  { %10130 = vmatpush1.bf16.msra.mxu0 %v18828_v19  ;;  %v18832_v19 = vld [vmem:[#allocation26_spill] sm:$0xff] }
 0x28e   :  { %10132 = vmatprep.subr.bf16.mxu0 %v10131_v14  ;;  %v9151_v14 = vpop.f32.mrb[91].mxu1 }
 0x28f   :  { %v9152_v25 = vadd.f32 %v9151_v14, %v9150_v29  ;;  %v18839_v29 = vld [vmem:[#allocation134_spill] sm:$0xff] }
 0x291   :  { %10134 = vmatpush1.bf16.msra.mxu0 %v18829_v9  ;;  %v18834_v9 = vld [vmem:[#allocation32_spill] sm:$0xff]  ;;  %v5839_v7 = vadd.f32 %v9152_v25, %v5642_v20  ;;  %v18841_v25 = vld [vmem:[#allocation197_spill] sm:$0xff] }
 0x292   :  { %10136 = vmatprep.subr.bf16.mxu0 %v10135_v41  ;;  %v9153_v41 = vpop.f32.mrb[92].mxu1  ;;  %v18842_v20 = vld [vmem:[#allocation37_spill] sm:$0xff] }
 0x293   :  { %v9154_v10 = vpop.f32.mrb[93].mxu1 }
 0x294   :  { %v9155_v33 = vadd.f32 %v9154_v10, %v9153_v41  ;;  %v18844_v10 = vld [vmem:[#allocation38_spill] sm:$0xff]  ;;  %v18845_v41 = vld [vmem:[#allocation93_spill] sm:$0xff] }
 0x295   :  { %10138 = vmatpush1.bf16.msra.mxu0 %v10137_v2  ;;  %v18836_v2 = vld [vmem:[#allocation33_spill] sm:$0xff] }
 0x296   :  { %10140 = vmatprep.subr.bf16.mxu0 %v18830_v23  ;;  %v5846_v56 = vadd.f32 %v9155_v33, %v5653_v28  ;;  %v18847_v28 = vld [vmem:[#allocation50_spill] sm:$0xff]  ;;  %v18848_v33 = vld [vmem:[#allocation196_spill] sm:$0xff] }
 0x298   :  { %2542 = vmatmul.mubr.f32.vlgmr.msra.gmra.mrb[0].mxu0 %v18831_v47  ;;  %v9156_v47 = vpop.f32.mrb[94].mxu1 }
 0x299   :  { %10142 = vmatpush1.bf16.msra.mxu0 %v18832_v19  ;;  %2549 = vmatprep.mubr.f32.mxu0 %v18833_v49  ;;  %v9157_v19 = vpop.f32.mrb[95].mxu1  ;;  %v18840_v49 = vld [vmem:[#allocation192_spill] sm:$0xff] }
 0x29a   :  { %10144 = vmatprep.subr.bf16.mxu0 %v18834_v9  ;;  %v9158_v14 = vadd.f32 %v9157_v19, %v9156_v47  ;;  %v18843_v9 = vld [vmem:[#allocation202_spill] sm:$0xff]  ;;  %v18850_v19 = vld [vmem:[#allocation53_spill] sm:$0xff]  ;;  %v18851_v47 = vld [vmem:[#allocation75_spill] sm:$0xff] }
 0x29c   :  { %2552 = vmatmul.mubr.f32.gmra.mrb[2].mxu0 %v18835_v63  ;;  %v5853_v63 = vadd.f32 %v9158_v14, %v5664_v4  ;;  %v18853_v14 = vld [vmem:[#allocation102_spill] sm:$0xff] }
 0x29d   :  { %10146 = vmatpush1.bf16.msra.mxu0 %v18836_v2  ;;  %2559 = vmatprep.mubr.f32.mxu0 %v18837_v62  ;;  %v18846_v62 = vld [vmem:[#allocation49_spill] sm:$0xff] }
 0x29e   :  { %10148 = vmatprep.subr.bf16.mxu0 %v18838_v12  ;;  %v18857_v12 = vld [vmem:[#allocation162_spill] sm:$0xff] }
 0x2a0   :  { %2562 = vmatmul.mubr.f32.gmra.mrb[4].mxu0 %v18839_v29  ;;  %v18849_v29 = vld [vmem:[#allocation52_spill] sm:$0xff] }
 0x2a1   :  { %10150 = vmatpush1.bf16.msra.mxu0 %v18840_v49  ;;  %2569 = vmatprep.mubr.f32.mxu0 %v18841_v25  ;;  %v18852_v25 = vld [vmem:[#allocation150_spill] sm:$0xff]  ;;  %v18856_v49 = vld [vmem:[#allocation145_spill] sm:$0xff] }
 0x2a2   :  { %10152 = vmatprep.subr.bf16.mxu0 %v18842_v20 }
 0x2a4   :  { %2572 = vmatmul.mubr.f32.gmra.mrb[6].mxu0 %v18843_v9 }
 0x2a5   :  { %10154 = vmatpush1.bf16.msra.mxu0 %v18844_v10  ;;  %2709 = vmatprep.mubr.f32.mxu0 %v18845_v41  ;;  %v18854_v41 = vld [vmem:[#allocation110_spill] sm:$0xff] }
 0x2a6   :  { %10156 = vmatprep.subr.bf16.mxu0 %v18846_v62  ;;  %v9191_v4 = vpop.f32.mrb[96].mxu1 }
 0x2a7   :  { %v9192_v9 = vpop.f32.mrb[97].mxu1 }
 0x2a8   :  { %v9193_v10 = vadd.f32 %v9192_v9, %v9191_v4 }
 0x2a9   :  { %10158 = vmatpush1.bf16.msra.mxu0 %v18847_v28 }
 0x2aa   :  { %10160 = vmatprep.subr.bf16.mxu0 %v18848_v33  ;;  %v9194_v62 = vpop.f32.mrb[98].mxu1  ;;  %v15240_v20 = vadd.f32 %v9193_v10, %v5832_v26  ;;  %v18855_v33 = vld [vmem:[#allocation144_spill] sm:$0xff]  ;;  %v18859_v10 = vld [vmem:[#allocation169_spill] sm:$0xff] }
 0x2ab   :  { %v9195_v28 = vpop.f32.mrb[99].mxu1 }
 0x2ad   :  { %10162 = vmatpush1.bf16.msra.mxu0 %v18849_v29  ;;  %v9196_v29 = vadd.f32 %v9195_v28, %v9194_v62  ;;  %v18861_v28 = vld [vmem:[#allocation179_spill] sm:$0xff] }
 0x2ae   :  { %10164 = vmatprep.subr.bf16.mxu0 %v18850_v19  ;;  %v9197_v19 = vpop.f32.mrb[100].mxu1 }
 0x2b1   :  { %10166 = vmatpush1.bf16.msra.mxu0 %v18851_v47  ;;  %v15244_v47 = vadd.f32 %v9196_v29, %v5839_v7  ;;  %v18862_v7 = vld [vmem:[#allocation72_spill] sm:$0xff] }
 0x2b2   :  { %10168 = vmatprep.subr.bf16.mxu0 %v18852_v25  ;;  %v9198_v25 = vpop.f32.mrb[101].mxu1  ;;  %v18863_v29 = vld [vmem:[#allocation80_spill] sm:$0xff] }
 0x2b3   :  { %v9199_v2 = vadd.f32 %v9198_v25, %v9197_v19  ;;  %v9200_v4 = vpop.f32.mrb[102].mxu1  ;;  %v18864_v19 = vld [vmem:[#allocation185_spill] sm:$0xff]  ;;  %v18865_v25 = vld [vmem:[#allocation186_spill] sm:$0xff] }
 0x2b4   :  { %v9201_v26 = vpop.f32.mrb[103].mxu1 }
 0x2b5   :  { %10170 = vmatpush1.bf16.msra.mxu0 %v18853_v14  ;;  %v18858_v14 = vld [vmem:[#allocation164_spill] sm:$0xff]  ;;  %v15248_v9 = vadd.f32 %v9199_v2, %v5846_v56  ;;  %v18866_v2 = vld [vmem:[#allocation81_spill] sm:$0xff] }
 0x2b6   :  { %10172 = vmatprep.subr.bf16.mxu0 %v18854_v41  ;;  %v9202_v41 = vadd.f32 %v9201_v26, %v9200_v4  ;;  %v18867_v56 = vld [vmem:[#allocation92_spill] sm:$0xff]  ;;  %v18869_v4 = vand.u32 4294901760, %v14222_v11  ;;  %v18871_v26 = vld [vmem:[#allocation151_spill] sm:$0xff] }
 0x2b8   :  { %v15252_v62 = vadd.f32 %v9202_v41, %v5853_v63  ;;  %v18870_v63 = vand.u32 4294901760, %v14227_v57  ;;  %v18879_v57 = vld [vmem:[#allocation15_spill] sm:$0xff] }
 0x2b9   :  { %10174 = vmatpush1.bf16.msra.mxu0 %v18855_v33  ;;  %v18860_v33 = vld [vmem:[#allocation174_spill] sm:$0xff] }
 0x2ba   :  { %10176 = vmatprep.subr.bf16.mxu0 %v18856_v49  ;;  %v10203_v41 = vpack.c.bf16 %v18870_v63, %v18869_v4  ;;  %v17589_v4 = vand.u32 4294901760, %v18879_v57  ;;  %v18880_v63 = vld [vmem:[#allocation16_spill] sm:$0xff] }
 0x2bd   :  { %10178 = vmatpush1.bf16.msra.mxu0 %v18857_v12 }
 0x2be   :  { %10180 = vmatprep.subr.bf16.mxu0 %v18858_v14  ;;  %v18878_v14 = vld [vmem:[#allocation136_spill] sm:$0xff] }
 0x2c1   :  { %10182 = vmatpush1.bf16.msra.mxu0 %v18859_v10  ;;  %v18868_v10 = vld [vmem:[#allocation94_spill] sm:$0xff] }
 0x2c2   :  { %10184 = vmatprep.subr.bf16.mxu0 %v18860_v33  ;;  %v18877_v33 = vld [vmem:[#allocation10_spill] sm:$0xff] }
 0x2c3   :  { %v17587_v11 = vand.u32 4294901760, %v18877_v33 }
 0x2c5   :  { %10186 = vmatpush1.bf16.msra.mxu0 %v18861_v28  ;;  %v18876_v28 = vld [vmem:[#allocation8_spill] sm:$0xff] }
 0x2c6   :  { %10188 = vmatprep.subr.bf16.mxu0 %v18862_v7  ;;  %v18872_v7 = vand.u32 4294901760, %v18788_v44  ;;  %v18881_v44 = vand.u32 4294901760, %v18793_v31  ;;  %v18886_v31 = vand.u32 4294901760, %v18799_v13 }
 0x2c9   :  { %10190 = vmatpush1.bf16.msra.mxu0 %v18863_v29  ;;  %v18873_v29 = vand.u32 4294901760, %v18789_v60  ;;  %v18882_v60 = vand.u32 4294901760, %v18794_v17  ;;  %v18887_v17 = vand.u32 4294901760, %v18800_v18  ;;  %v18891_v18 = vld [vmem:[#allocation27_spill] sm:$0xff] }
 0x2ca   :  { %10192 = vmatprep.subr.bf16.mxu0 %v18864_v19 }
 0x2cb   :  { %v10205_v19 = vpack.c.bf16 %v18873_v29, %v18872_v7  ;;  %v10209_v7 = vpack.c.bf16 %v18882_v60, %v18881_v44  ;;  %v18884_v29 = vand.u32 4294901760, %v18796_v52 }
 0x2cd   :  { %10194 = vmatpush1.bf16.msra.mxu0 %v18865_v25  ;;  %v18874_v25 = vand.u32 4294901760, %v18790_v1  ;;  %v18883_v1 = vld [vmem:[#allocation107_spill] sm:$0xff] }
 0x2ce   :  { %10196 = vmatprep.subr.bf16.mxu0 %v18866_v2  ;;  %v18875_v2 = vand.u32 4294901760, %v18791_v61 }
 0x2d1   :  { %10198 = vmatpush1.bf16.msra.mxu0 %v18867_v56  ;;  %v10207_v56 = vpack.c.bf16 %v18875_v2, %v18874_v25  ;;  %v10213_v2 = vpack.c.bf16 %v18887_v17, %v18886_v31  ;;  %v3356_v31 = vand.u32 4294901760, %v18891_v18  ;;  %v18892_v17 = vld [vmem:[#allocation30_spill] sm:$0xff] }
 0x2d2   :  { %10200 = vmatprep.subr.bf16.mxu0 %v18868_v10  ;;  %v17588_v10 = vand.u32 4294901760, %v18876_v28 }
 0x2d4   :  { %v3327_v61 = vsub.f32 %v18876_v28, %v17588_v10  ;;  %v17593_v10 = vand.u32 4294901760, %v18892_v17 }
 0x2d5   :  { %10202 = vmatpush1.bf16.msra.mxu0 %v18871_v26  ;;  %v17590_v26 = vand.u32 4294901760, %v18880_v63 }
 0x2d6   :  { %10204 = vmatprep.subr.bf16.mxu0 %v10203_v41  ;;  %v3333_v41 = vsub.f32 %v18879_v57, %v17589_v4  ;;  %v3328_v60 = vand.u32 4294901760, %v3327_v61  ;;  %v18893_v4 = vld [vmem:[#allocation194_spill] sm:$0xff] }
 0x2d7   :  { %v3345_v44 = vsub.f32 %v18880_v63, %v17590_v26 }
 0x2d8   :  { %2713 = vmatmul.mubr.f32.vlgmr.msra.gmra.mrb[0].mxu0 %v18878_v14  ;;  %v3339_v14 = vsub.f32 %v18877_v33, %v17587_v11  ;;  %v18889_v11 = vld [vmem:[#allocation22_spill] sm:$0xff]  ;;  %v3334_v13 = vand.u32 4294901760, %v3333_v41  ;;  %v18894_v41 = vand.u32 4294901760, %v18802_v48  ;;  %v18897_v48 = vand.u32 4294901760, %v18805_v43 }
 0x2d9   :  { %10206 = vmatpush1.bf16.msra.mxu0 %v10205_v19  ;;  %2721 = vmatprep.mubr.f32.mxu0 %v18883_v1  ;;  %v18885_v19 = vand.u32 4294901760, %v18797_v21  ;;  %v18888_v1 = vld [vmem:[#allocation21_spill] sm:$0xff]  ;;  %v17592_v21 = vand.u32 4294901760, %v18889_v11  ;;  %v18903_v43 = vand.u32 4294901760, %v18708_v39  ;;  %v10347_v39 = vpack.c.bf16 %v18877_v33, %v18876_v28 }
 0x2da   :  { %10208 = vmatprep.subr.bf16.mxu0 %v10207_v56  ;;  %v3340_v56 = vand.u32 4294901760, %v3339_v14  ;;  %v17591_v52 = vand.u32 4294901760, %v18888_v1 }
 0x2db   :  { %v10211_v25 = vpack.c.bf16 %v18885_v19, %v18884_v29  ;;  %v18890_v29 = vld [vmem:[#allocation122_spill] sm:$0xff]  ;;  %v3346_v19 = vand.u32 4294901760, %v3345_v44  ;;  %v3363_v14 = vsub.f32 %v18889_v11, %v17592_v21  ;;  %v18895_v44 = vand.u32 4294901760, %v18803_v35 }
 0x2dc   :  { %2725 = vmatmul.mubr.f32.gmra.mrb[2].mxu0 %v18890_v29  ;;  %v15311_v12 = vpack.c.bf16 %v3340_v56, %v3328_v60  ;;  %v3351_v61 = vsub.f32 %v18888_v1, %v17591_v52  ;;  %v18896_v52 = vld [vmem:[#allocation201_spill] sm:$0xff]  ;;  %v18898_v35 = vand.u32 4294901760, %v18806_v38  ;;  %v18904_v38 = vand.u32 4294901760, %v18809_v27 }
 0x2dd   :  { %10210 = vmatpush1.bf16.msra.mxu0 %v10209_v7  ;;  %2733 = vmatprep.mubr.f32.mxu0 %v18893_v4  ;;  %v10215_v29 = vpack.c.bf16 %v18895_v44, %v18894_v41  ;;  %v15323_v26 = vpack.c.bf16 %v3346_v19, %v3334_v13  ;;  %v3357_v4 = vsub.f32 %v18891_v18, %v3356_v31  ;;  %v3364_v56 = vand.u32 4294901760, %v3363_v14  ;;  %v18899_v19 = vld [vmem:[#allocation206_spill] sm:$0xff] }
 0x2de   :  { %10212 = vmatprep.subr.bf16.mxu0 %v10211_v25  ;;  %v3369_v7 = vsub.f32 %v18892_v17, %v17593_v10  ;;  %v3352_v60 = vand.u32 4294901760, %v3351_v61  ;;  %v10217_v13 = vpack.c.bf16 %v18898_v35, %v18897_v48  ;;  %v18900_v44 = vand.u32 4294901760, %v18697_v51  ;;  %v18913_v35 = vld [vmem:[#allocation130_spill] sm:$0xff] }
 0x2df   :  { %v3358_v25 = vand.u32 4294901760, %v3357_v4  ;;  %v18901_v61 = vand.u32 4294901760, %v18699_v42  ;;  %v18905_v4 = vld [vmem:[#allocation71_spill] sm:$0xff]  ;;  %v18909_v42 = vld [vmem:[#allocation116_spill] sm:$0xff]  ;;  %v10349_v27 = vpack.c.bf16 %v18880_v63, %v18879_v57 }
 0x2e0   :  { %2737 = vmatmul.mubr.f32.gmra.mrb[4].mxu0 %v18896_v52  ;;  %v3370_v21 = vand.u32 4294901760, %v3369_v7  ;;  %v15337_v41 = vpack.c.bf16 %v3364_v56, %v3352_v60  ;;  %v18902_v52 = vld [vmem:[#allocation208_spill] sm:$0xff]  ;;  %v18907_v7 = vld [vmem:[#allocation115_spill] sm:$0xff]  ;;  %v18911_v56 = vld [vmem:[#allocation129_spill] sm:$0xff] }
 0x2e1   :  { %10214 = vmatpush1.bf16.msra.mxu0 %v10213_v2  ;;  %2745 = vmatprep.mubr.f32.mxu0 %v18899_v19  ;;  %v10219_v14 = vpack.c.bf16 %v18901_v61, %v18900_v44  ;;  %v10221_v2 = vpack.c.bf16 %v18904_v38, %v18903_v43  ;;  %v18908_v51 = vand.u32 4294901760, %v18907_v7  ;;  %v18915_v19 = vld [vmem:[#allocation132_spill] sm:$0xff]  ;;  %v18917_v61 = vld [vmem:[#allocation133_spill] sm:$0xff] }
 0x2e2   :  { %10216 = vmatprep.subr.bf16.mxu0 %v10215_v29  ;;  %v15343_v10 = vpack.c.bf16 %v3370_v21, %v3358_v25  ;;  %v18906_v29 = vand.u32 4294901760, %v18811_v34  ;;  %v18910_v21 = vand.u32 4294901760, %v18909_v42  ;;  %v18912_v25 = vand.u32 4294901760, %v18911_v56  ;;  %v18923_v7 = vld [vmem:[#allocation41_spill] sm:$0xff]  ;;  %v18925_v56 = vld [vmem:[#allocation159_spill] sm:$0xff] }
 0x2e3   :  { %v18916_v34 = vand.u32 4294901760, %v18915_v19  ;;  %v18929_v19 = vld [vmem:[#allocation160_spill] sm:$0xff] }
 0x2e4   :  { %2749 = vmatmul.mubr.f32.gmra.mrb[6].mxu0 %v18902_v52  ;;  %v10223_v60 = vpack.c.bf16 %v18908_v51, %v18906_v29  ;;  %v10225_v48 = vpack.c.bf16 %v18912_v25, %v18910_v21  ;;  %v18919_v52 = vld [vmem:[#allocation148_spill] sm:$0xff]  ;;  %v18924_v51 = vand.u32 4294901760, %v18923_v7  ;;  %v10353_v21 = vpack.c.bf16 %v18892_v17, %v18891_v18 }
 0x2e5   :  { %10218 = vmatpush1.bf16.msra.mxu0 %v10217_v13  ;;  %3012 = vmatprep.mubr.f32.mxu0 %v18905_v4  ;;  %v18914_v13 = vand.u32 4294901760, %v18913_v35  ;;  %v18920_v43 = vand.u32 4294901760, %v18919_v52  ;;  %v18926_v25 = vand.u32 4294901760, %v18925_v56  ;;  %v18933_v52 = vand.u32 4294901760, %v18817_v24 }
 0x2e6   :  { %10220 = vmatprep.subr.bf16.mxu0 %v10219_v14  ;;  %v18918_v14 = vand.u32 4294901760, %v18917_v61 }
 0x2e7   :  { %v10227_v44 = vpack.c.bf16 %v18916_v34, %v18914_v13  ;;  %v18930_v34 = vand.u32 4294901760, %v18929_v19 }
 0x2e8   :  { %v10229_v38 = vpack.c.bf16 %v18920_v43, %v18918_v14  ;;  %v18934_v43 = vand.u32 4294901760, %v18818_v8  ;;  %v18941_v8 = vand.u32 4294901760, %v18823_v50  ;;  %v18945_v50 = vand.u32 4294901760, %v18768_v58 }
 0x2e9   :  { %10222 = vmatpush1.bf16.msra.mxu0 %v10221_v2  ;;  %v18921_v2 = vld [vmem:[#allocation149_spill] sm:$0xff]  ;;  %v18949_v58 = vand.u32 4294901760, %v18825_v6  ;;  %v18954_v6 = vand.u32 4294901760, %v14881_v40  ;;  %v18961_v40 = vand.u32 4294901760, %v14722_v37  ;;  %v18969_v37 = vand.u32 4294901760, %v18892_v17 }
 0x2ea   :  { %10224 = vmatprep.subr.bf16.mxu0 %v10223_v60  ;;  %v18922_v29 = vand.u32 4294901760, %v18921_v2  ;;  %v10351_v60 = vpack.c.bf16 %v18889_v11, %v18888_v1  ;;  %v10237_v2 = vpack.c.bf16 %v18934_v43, %v18933_v52  ;;  %v19023_v17 = vld [vmem:[#allocation9_spill] sm:$0xff] }
 0x2ec   :  { %v10231_v42 = vpack.c.bf16 %v18924_v51, %v18922_v29  ;;  %v18936_v29 = vld [vmem:[#allocation168_spill] sm:$0xff] }
 0x2ed   :  { %10226 = vmatpush1.bf16.msra.mxu0 %v10225_v48  ;;  %v18927_v48 = vld [vmem:[#allocation42_spill] sm:$0xff]  ;;  %v18937_v7 = vand.u32 4294901760, %v18936_v29  ;;  %v18947_v29 = vand.u32 4294901760, %v18770_v15  ;;  %v18951_v15 = vand.u32 4294901760, %v14685_v3  ;;  %v18957_v3 = vand.u32 4294901760, %v18877_v33 }
 0x2ee   :  { %10228 = vmatprep.subr.bf16.mxu0 %v10227_v44  ;;  %v18928_v35 = vand.u32 4294901760, %v18927_v48  ;;  %v18931_v44 = vld [vmem:[#allocation46_spill] sm:$0xff] }
 0x2ef   :  { %v18932_v61 = vand.u32 4294901760, %v18931_v44 }
 0x2f0   :  { %v10233_v13 = vpack.c.bf16 %v18928_v35, %v18926_v25  ;;  %v18938_v35 = vand.u32 4294901760, %v18821_v55  ;;  %v18944_v55 = vand.u32 4294901760, %v18765_v30  ;;  %v18948_v30 = vand.u32 4294901760, %v18824_v46 }
 0x2f1   :  { %10230 = vmatpush1.bf16.msra.mxu0 %v10229_v38  ;;  %v10235_v14 = vpack.c.bf16 %v18932_v61, %v18930_v34  ;;  %v18935_v38 = vand.u32 4294901760, %v18819_v5  ;;  %v18942_v34 = vld [vmem:[#allocation173_spill] sm:$0xff] }
 0x2f2   :  { %10232 = vmatprep.subr.bf16.mxu0 %v10231_v42  ;;  %v18943_v5 = vand.u32 4294901760, %v18942_v34  ;;  %v10245_v43 = vpack.c.bf16 %v18945_v50, %v18944_v55  ;;  %v18963_v34 = vand.u32 4294901760, %v15002_v16  ;;  %v18970_v16 = vld [vmem:[#allocation108_spill] sm:$0xff] }
 0x2f3   :  { %v10239_v51 = vpack.c.bf16 %v18937_v7, %v18935_v38  ;;  %v10249_v7 = vpack.c.bf16 %v18949_v58, %v18948_v30  ;;  %v18971_v50 = vand.u32 4294901760, %v18970_v16  ;;  %v18976_v58 = vld [vmem:[#allocation187_spill] sm:$0xff]  ;;  %v19007_v16 = vld [vmem:[#allocation72_spill] sm:$0xff] }
 0x2f4   :  { %v10243_v44 = vpack.c.bf16 %v18943_v5, %v18941_v8 }
 0x2f5   :  { %10234 = vmatpush1.bf16.msra.mxu0 %v10233_v13  ;;  %v18939_v13 = vld [vmem:[#allocation171_spill] sm:$0xff] }
 0x2f6   :  { %10236 = vmatprep.subr.bf16.mxu0 %v10235_v14  ;;  %v9559_v56 = vpop.f32.mrb[104].mxu1  ;;  %v18940_v24 = vand.u32 4294901760, %v18939_v13 }
 0x2f7   :  { %v11163_v42 = vadd.f32 %v9559_v56, %v15244_v47  ;;  %v6586_v25 = vpop.f32.mrb[105].mxu1 }
 0x2f8   :  { %v11164_v48 = vadd.f32 %v6586_v25, %v15240_v20  ;;  %v10241_v19 = vpack.c.bf16 %v18940_v24, %v18938_v35  ;;  %v18953_v25 = vand.u32 4294901760, %v14699_v22  ;;  %v18958_v24 = vand.u32 4294901760, %v18879_v57  ;;  %v19022_v57 = vld [vmem:[#allocation121_spill] sm:$0xff] }
 0x2f9   :  { %10238 = vmatpush1.bf16.msra.mxu0 %v10237_v2  ;;  %v15415_v2 = vmax.f32 %v11163_v42, 0.0  ;;  %v18952_v42 = vand.u32 4294901760, %v14697_v59  ;;  %v18960_v22 = vand.u32 4294901760, %v14720_v32 }
 0x2fa   :  { %10240 = vmatprep.subr.bf16.mxu0 %v10239_v51  ;;  %v15405_v61 = vmax.f32 %v11164_v48, 0.0  ;;  %v9562_v14 = vpop.f32.mrb[106].mxu1  ;;  %v18955_v48 = vand.u32 4294901760, %v18827_v0  ;;  %v18962_v0 = vand.u32 4294901760, %v14982_v53  ;;  %v15481_v53 = vpack.c.bf16 %v18969_v37, %v3356_v31  ;;  %v18979_v31 = vld [vmem:[#allocation26_spill] sm:$0xff]  ;;  %v19006_v37 = vld [vmem:[#allocation179_spill] sm:$0xff] }
 0x2fb   :  { %v11165_v47 = vadd.f32 %v9562_v14, %v15252_v62  ;;  %v6598_v52 = vpop.f32.mrb[107].mxu1  ;;  %v18946_v62 = vand.u32 4294901760, %v18769_v45  ;;  %v18950_v45 = vand.u32 4294901760, %v18826_v54  ;;  %v10253_v46 = vpack.c.bf16 %v18953_v25, %v18952_v42  ;;  %v18982_v42 = vld [vmem:[#allocation45_spill] sm:$0xff] }
 0x2fc   :  { %v11166_v20 = vadd.f32 %v6598_v52, %v15248_v9  ;;  %6765 = vrot.lane.b32.xlu1 %v15405_v61, %s11358_s1  ;;  %v10255_v35 = vpack.c.bf16 %v18955_v48, %v18954_v6  ;;  %v18956_v54 = vand.u32 4294901760, %v18876_v28  ;;  %v10257_v8 = vpack.c.bf16 %v18961_v40, %v18960_v22  ;;  %v18983_v25 = vld [vmem:[#allocation33_spill] sm:$0xff]  ;;  %v18985_v6 = vld [vmem:[#allocation191_spill] sm:$0xff]  ;;  %v18993_v22 = vld [vmem:[#allocation50_spill] sm:$0xff] }
 0x2fd   :  { %10242 = vmatpush1.bf16.msra.mxu0 %v10241_v19  ;;  %v10247_v9 = vpack.c.bf16 %v18947_v29, %v18946_v62  ;;  %v15431_v51 = vmax.f32 %v11165_v47, 0.0  ;;  %v10251_v56 = vpack.c.bf16 %v18951_v15, %v18950_v45  ;;  %v18959_v19 = vand.u32 4294901760, %v18880_v63  ;;  %v18978_v45 = vld [vmem:[#allocation104_spill] sm:$0xff]  ;;  %v18986_v48 = vld [vmem:[#allocation91_spill] sm:$0xff] }
 0x2fe   :  { %10244 = vmatprep.subr.bf16.mxu0 %v10243_v44  ;;  %v15417_v38 = vmax.f32 %v11166_v20, 0.0  ;;  %v15451_v13 = vpack.c.bf16 %v18957_v3, %v18956_v54  ;;  %v10259_v5 = vpack.c.bf16 %v18963_v34, %v18962_v0  ;;  %v18964_v44 = vand.u32 4294901760, %v18888_v1  ;;  %v18967_v20 = vld [vmem:[#allocation5_spill] sm:$0xff]  ;;  %v18980_v15 = vld [vmem:[#allocation40_spill] sm:$0xff]  ;;  %v18997_v34 = vld [vmem:[#allocation75_spill] sm:$0xff] }
 0x2ff   :  { %v15457_v59 = vpack.c.bf16 %v18959_v19, %v18958_v24  ;;  %v18965_v14 = vand.u32 4294901760, %v18889_v11  ;;  %v18966_v52 = vand.u32 4294901760, %v14745_v36  ;;  %v18968_v32 = vand.u32 4294901760, %v18967_v20  ;;  %v18989_v54 = vld [vmem:[#allocation37_spill] sm:$0xff]  ;;  %v18991_v24 = vld [vmem:[#allocation38_spill] sm:$0xff]  ;;  %v18994_v40 = vld [vmem:[#allocation196_spill] sm:$0xff] }
 0x300   :  { %6769 = vrot.lane.b32.xlu0 %v15417_v38, %s11358_s1  ;;  %6767 = vrot.lane.b32.xlu1 %v15415_v2, %s11358_s1  ;;  %v18977_v36 = vand.u32 4294901760, %v18976_v58  ;;  %v18990_v3 = vld [vmem:[#allocation189_spill] sm:$0xff]  ;;  %v19003_v20 = vld [vmem:[#allocation164_spill] sm:$0xff]  ;;  %v19014_v58 = vld [vmem:[#allocation35_spill] sm:$0xff] }
 0x301   :  { %10246 = vmatpush1.bf16.msra.mxu0 %v10245_v43  ;;  %v15471_v47 = vpack.c.bf16 %v18965_v14, %v18964_v44  ;;  %v10261_v55 = vpack.c.bf16 %v18968_v32, %v18966_v52  ;;  %v18972_v43 = vld [vmem:[#allocation18_spill] sm:$0xff]  ;;  %v18992_v19 = vld [vmem:[#allocation49_spill] sm:$0xff]  ;;  %v19001_v52 = vld [vmem:[#allocation144_spill] sm:$0xff] }
 0x302   :  { %10248 = vmatprep.subr.bf16.mxu0 %v10247_v9  ;;  %v18973_v62 = vand.u32 4294901760, %v18972_v43  ;;  %v18974_v9 = vld [vmem:[#allocation124_spill] sm:$0xff]  ;;  %v18996_v0 = vld [vmem:[#allocation53_spill] sm:$0xff]  ;;  %v18999_v44 = vld [vmem:[#allocation102_spill] sm:$0xff] }
 0x303   :  { %v18975_v30 = vand.u32 4294901760, %v18974_v9  ;;  %v19000_v14 = vld [vmem:[#allocation110_spill] sm:$0xff]  ;;  %v19004_v32 = vld [vmem:[#allocation169_spill] sm:$0xff]  ;;  %v19013_v9 = vld [vmem:[#allocation24_spill] sm:$0xff] }
 0x304   :  { %6771 = vrot.lane.b32.xlu0 %v15431_v51, %s11358_s1  ;;  %v10263_v29 = vpack.c.bf16 %v18973_v62, %v18971_v50  ;;  %v19008_v50 = vld [vmem:[#allocation80_spill] sm:$0xff]  ;;  %v19009_v43 = vld [vmem:[#allocation185_spill] sm:$0xff]  ;;  %v19010_v62 = vld [vmem:[#allocation186_spill] sm:$0xff] }
 0x305   :  { %10250 = vmatpush1.bf16.msra.mxu0 %v10249_v7  ;;  %v10265_v7 = vpack.c.bf16 %v18977_v36, %v18975_v30  ;;  %v19015_v36 = vld [vmem:[#allocation34_spill] sm:$0xff] }
 0x306   :  { %10252 = vmatprep.subr.bf16.mxu0 %v10251_v56  ;;  %v18981_v56 = vld [vmem:[#allocation32_spill] sm:$0xff] }
 0x309   :  { %10254 = vmatpush1.bf16.msra.mxu0 %v10253_v46  ;;  %v18984_v46 = vld [vmem:[#allocation70_spill] sm:$0xff] }
 0x30a   :  { %10256 = vmatprep.subr.bf16.mxu0 %v10255_v35  ;;  %v18987_v35 = vld [vmem:[#allocation192_spill] sm:$0xff] }
 0x30d   :  { %10258 = vmatpush1.bf16.msra.mxu0 %v10257_v8  ;;  %v18995_v8 = vld [vmem:[#allocation52_spill] sm:$0xff] }
 0x30e   :  { %10260 = vmatprep.subr.bf16.mxu0 %v10259_v5  ;;  %v18998_v5 = vld [vmem:[#allocation150_spill] sm:$0xff] }
 0x311   :  { %10262 = vmatpush1.bf16.msra.mxu0 %v10261_v55  ;;  %v19005_v55 = vld [vmem:[#allocation174_spill] sm:$0xff] }
 0x312   :  { %10264 = vmatprep.subr.bf16.mxu0 %v10263_v29  ;;  %v19011_v29 = vld [vmem:[#allocation81_spill] sm:$0xff] }
 0x315   :  { %10266 = vmatpush1.bf16.msra.mxu0 %v10265_v7  ;;  %v15534_v7 = vsub.f32 %v19015_v36, %v19014_v58 }
 0x316   :  { %10268 = vmatprep.subr.bf16.mxu0 %v18830_v23  ;;  %v18988_v23 = vld [vmem:[#allocation153_spill] sm:$0xff] }
 0x318   :  { %3014 = vmatmul.mubr.f32.vlgmr.msra.gmra.mrb[0].mxu0 %v18978_v45 }
 0x319   :  { %10270 = vmatpush1.bf16.msra.mxu0 %v18979_v31  ;;  %3020 = vmatprep.mubr.f32.mxu0 %v18980_v15  ;;  %v19016_v31 = vld [vmem:[#allocation92_spill] sm:$0xff] }
 0x31a   :  { %10272 = vmatprep.subr.bf16.mxu0 %v18981_v56  ;;  %v19017_v56 = vld [vmem:[#allocation94_spill] sm:$0xff] }
 0x31c   :  { %3022 = vmatmul.mubr.f32.gmra.mrb[2].mxu0 %v18982_v42 }
 0x31d   :  { %10274 = vmatpush1.bf16.msra.mxu0 %v18983_v25  ;;  %3028 = vmatprep.mubr.f32.mxu0 %v18984_v46 }
 0x31e   :  { %10276 = vmatprep.subr.bf16.mxu0 %v18985_v6  ;;  %v19018_v6 = vld [vmem:[#allocation151_spill] sm:$0xff] }
 0x320   :  { %3030 = vmatmul.mubr.f32.gmra.mrb[4].mxu0 %v18986_v48 }
 0x321   :  { %10278 = vmatpush1.bf16.msra.mxu0 %v18987_v35  ;;  %3036 = vmatprep.mubr.f32.mxu0 %v18988_v23  ;;  %v3380_v35 = vand.u32 4294901760, %v15534_v7 }
 0x322   :  { %10280 = vmatprep.subr.bf16.mxu0 %v18989_v54 }
 0x324   :  { %3038 = vmatmul.mubr.f32.gmra.mrb[6].mxu0 %v18990_v3 }
 0x325   :  { %10282 = vmatpush1.bf16.msra.mxu0 %v18991_v24  ;;  %3173 = vmatprep.mubr.f32.mxu0 %v18905_v4  ;;  %v19002_v4 = vld [vmem:[#allocation162_spill] sm:$0xff]  ;;  %v3381_v24 = vsub.f32 %v15534_v7, %v3380_v35 }
 0x326   :  { %10284 = vmatprep.subr.bf16.mxu0 %v18992_v19 }
 0x329   :  { %10286 = vmatpush1.bf16.msra.mxu0 %v18993_v22  ;;  %v19033_v22 = vld [vmem:[#allocation117_spill] sm:$0xff] }
 0x32a   :  { %10288 = vmatprep.subr.bf16.mxu0 %v18994_v40 }
 0x32d   :  { %10290 = vmatpush1.bf16.msra.mxu0 %v18995_v8 }
 0x32e   :  { %10292 = vmatprep.subr.bf16.mxu0 %v18996_v0  ;;  %v19037_v0 = vld [vmem:[#allocation7_spill] sm:$0xff] }
 0x331   :  { %10294 = vmatpush1.bf16.msra.mxu0 %v18997_v34 }
 0x332   :  { %10296 = vmatprep.subr.bf16.mxu0 %v18998_v5 }
 0x335   :  { %10298 = vmatpush1.bf16.msra.mxu0 %v18999_v44  ;;  %v19038_v44 = vld [vmem:[#allocation184_spill] sm:$0xff] }
 0x336   :  { %10300 = vmatprep.subr.bf16.mxu0 %v19000_v14 }
 0x339   :  { %10302 = vmatpush1.bf16.msra.mxu0 %v19001_v52 }
 0x33a   :  { %10304 = vmatprep.subr.bf16.mxu0 %v18856_v49  ;;  %v19012_v49 = vld [vmem:[#allocation28_spill] sm:$0xff] }
 0x33b   :  { %v15530_v30 = vsub.f32 %v19013_v9, %v19012_v49 }
 0x33d   :  { %10306 = vmatpush1.bf16.msra.mxu0 %v19002_v4  ;;  %v3374_v25 = vand.u32 4294901760, %v15530_v30  ;;  %v19039_v4 = vld [vmem:[#allocation12_spill] sm:$0xff] }
 0x33e   :  { %10308 = vmatprep.subr.bf16.mxu0 %v19003_v20 }
 0x33f   :  { %v3375_v54 = vsub.f32 %v15530_v30, %v3374_v25 }
 0x341   :  { %10310 = vmatpush1.bf16.msra.mxu0 %v19004_v32  ;;  %v3376_v19 = vand.u32 4294901760, %v3375_v54 }
 0x342   :  { %10312 = vmatprep.subr.bf16.mxu0 %v19005_v55  ;;  %v19040_v55 = vld [vmem:[#allocation13_spill] sm:$0xff] }
 0x345   :  { %10314 = vmatpush1.bf16.msra.mxu0 %v19006_v37 }
 0x346   :  { %10316 = vmatprep.subr.bf16.mxu0 %v19007_v16 }
 0x349   :  { %10318 = vmatpush1.bf16.msra.mxu0 %v19008_v50  ;;  %v19041_v50 = vld [vmem:[#allocation17_spill] sm:$0xff] }
 0x34a   :  { %10320 = vmatprep.subr.bf16.mxu0 %v19009_v43 }
 0x34d   :  { %10322 = vmatpush1.bf16.msra.mxu0 %v19010_v62 }
 0x34e   :  { %10324 = vmatprep.subr.bf16.mxu0 %v19011_v29  ;;  %v19042_v29 = vld [vmem:[#allocation19_spill] sm:$0xff] }
 0x351   :  { %10326 = vmatpush1.bf16.msra.mxu0 %v19016_v31 }
 0x352   :  { %10328 = vmatprep.subr.bf16.mxu0 %v19017_v56 }
 0x355   :  { %10330 = vmatpush1.bf16.msra.mxu0 %v19018_v6 }
 0x356   :  { %10340 = vmatprep.subr.bf16.mxu0 %v15311_v12  ;;  %v3382_v12 = vand.u32 4294901760, %v3381_v24 }
 0x358   :  { %3175 = vmatmul.mubr.f32.vlgmr.msra.gmra.mrb[0].mxu0 %v18978_v45  ;;  %v19026_v45 = vld [vmem:[#allocation14_spill] sm:$0xff] }
 0x359   :  { %10342 = vmatpush1.bf16.msra.mxu0 %v15323_v26  ;;  %3181 = vmatprep.mubr.f32.mxu0 %v18980_v15  ;;  %v19019_v26 = vmov 0.0   ;;  %v19027_v15 = vld [vmem:[#allocation20_spill] sm:$0xff] }
 0x35a   :  { %10344 = vmatprep.subr.bf16.mxu0 %v15337_v41  ;;  %v19020_v41 = vld [vmem:[#allocation39_spill] sm:$0xff] }
 0x35c   :  { %3183 = vmatmul.mubr.f32.gmra.mrb[2].mxu0 %v18982_v42  ;;  %v19028_v42 = vld [vmem:[#allocation111_spill] sm:$0xff] }
 0x35d   :  { %3189 = vmatprep.mubr.f32.mxu0 %v18984_v46  ;;  %10346 = vmatpush1.bf16.msra.mxu0 %v15343_v10  ;;  %v19021_v10 = vld [vmem:[#allocation106_spill] sm:$0xff]  ;;  %v19029_v46 = vld [vmem:[#allocation29_spill] sm:$0xff] }
 0x35e   :  { %3377 = vmatprep.subr.mxu0 %v3376_v19 }
 0x360   :  { %3191 = vmatmul.mubr.f32.gmra.mrb[4].mxu0 %v18986_v48  ;;  %v19030_v48 = vld [vmem:[#allocation125_spill] sm:$0xff] }
 0x361   :  { %3197 = vmatprep.mubr.f32.mxu0 %v18988_v23  ;;  %3383 = vmatpush1.msra.mxu0 %v3382_v12  ;;  %v19031_v23 = vld [vmem:[#allocation139_spill] sm:$0xff] }
 0x362   :  { %10348 = vmatprep.subr.bf16.mxu0 %v10347_v39  ;;  %v19024_v39 = vld [vmem:[#allocation137_spill] sm:$0xff] }
 0x364   :  { %3199 = vmatmul.mubr.f32.gmra.mrb[6].mxu0 %v18990_v3  ;;  %v19032_v3 = vld [vmem:[#allocation44_spill] sm:$0xff] }
 0x365   :  { %3438 = vmatprep.mubr.f32.mxu0 %v19019_v26 }
 0x368   :  { %3440 = vmatmul.mubr.f32.vlgmr.msra.gmra.mrb[8].mxu0 %v19020_v41 }
 0x369   :  { %10350 = vmatpush1.bf16.msra.mxu0 %v10349_v27  ;;  %3445 = vmatprep.mubr.f32.mxu0 %v19019_v26 }
 0x36a   :  { %10352 = vmatprep.subr.bf16.mxu0 %v10351_v60 }
 0x36c   :  { %3447 = vmatmul.mubr.f32.gmra.mrb[10].mxu0 %v19021_v10 }
 0x36d   :  { %3452 = vmatprep.mubr.f32.mxu0 %v19019_v26  ;;  %10354 = vmatpush1.bf16.msra.mxu0 %v10353_v21  ;;  %v19025_v21 = vld [vmem:[#allocation43_spill] sm:$0xff] }
 0x36e   :  { %v15575_v33 = vpop.permute.xlu1 %6765  ;;  %3493 = vmatprep.subr.mxu0 %v15530_v30  ;;  %v19043_v30 = vld [vmem:[#allocation156_spill] sm:$0xff] }
 0x36f   :  { %v15580_v28 = vmax.f32 %v15405_v61, %v15575_v33 }
 0x370   :  { %3454 = vmatmul.mubr.f32.gmra.mrb[12].mxu0 %v19022_v57 }
 0x371   :  { %6798 = vrot.lane.b32.xlu0 %v15580_v28, %s11359_s29  ;;  %3459 = vmatprep.mubr.f32.mxu0 %v19019_v26 }
 0x372   :  { %v15586_v11 = vpop.permute.xlu0 %6769  ;;  %v15588_v63 = vpop.permute.xlu1 %6767  ;;  %3496 = vmatpush1.msra.mxu0 %v15534_v7 }
 0x373   :  { %v15593_v1 = vmax.f32 %v15417_v38, %v15586_v11  ;;  %v15597_v18 = vmax.f32 %v15415_v2, %v15588_v63  ;;  %10356 = vmatprep.subr.bf16.mxu0 %v19023_v17 }
 0x374   :  { %3461 = vmatmul.mubr.f32.gmra.mrb[14].mxu0 %v19024_v39 }
 0x375   :  { %6802 = vrot.lane.b32.xlu0 %v15593_v1, %s11359_s29  ;;  %6800 = vrot.lane.b32.xlu1 %v15597_v18, %s11359_s29 }
 0x376   :  { %v15605_v27 = vpop.permute.xlu0 %6771  ;;  %3551 = vmatprep.mubr.f32.mxu0 %v19019_v26 }
 0x377   :  { %v15610_v60 = vmax.f32 %v15431_v51, %v15605_v27 }
 0x378   :  { %3554 = vmatmul.mubr.f32.vlgmr.msra.gmra.mrb[8].mxu0 %v19025_v21 }
 0x379   :  { %6804 = vrot.lane.b32.xlu1 %v15610_v60, %s11359_s29  ;;  %10358 = vmatpush1.bf16.msra.mxu0 %v19026_v45 }
 0x37a   :  { %3559 = vmatprep.mubr.f32.mxu0 %v19019_v26  ;;  %10360 = vmatprep.subr.bf16.mxu0 %v19027_v15 }
 0x37c   :  { %3562 = vmatmul.mubr.f32.gmra.mrb[10].mxu0 %v19028_v42 }
 0x37d   :  { %3567 = vmatprep.mubr.f32.mxu0 %v19019_v26  ;;  %10362 = vmatpush1.bf16.msra.mxu0 %v19029_v46 }
 0x37e   :  { %3601 = vmatprep.subr.mxu0 %v19012_v49 }
 0x380   :  { %3570 = vmatmul.mubr.f32.gmra.mrb[12].mxu0 %v19030_v48 }
 0x381   :  { %3575 = vmatprep.mubr.f32.mxu0 %v19019_v26  ;;  %3603 = vmatpush1.msra.mxu0 %v19014_v58 }
 0x382   :  { %10364 = vmatprep.subr.bf16.mxu0 %v15451_v13  ;;  %v19034_v13 = vld [vmem:[#allocation127_spill] sm:$0xff] }
 0x384   :  { %3578 = vmatmul.mubr.f32.gmra.mrb[14].mxu0 %v19031_v23 }
 0x385   :  { %3658 = vmatprep.mubr.f32.mxu0 %v19019_v26 }
 0x388   :  { %3662 = vmatmul.mubr.f32.vlgmr.msra.gmra.mrb[8].mxu0 %v19032_v3 }
 0x389   :  { %10366 = vmatpush1.bf16.msra.mxu0 %v15457_v59  ;;  %3667 = vmatprep.mubr.f32.mxu0 %v19019_v26  ;;  %v19035_v59 = vld [vmem:[#allocation147_spill] sm:$0xff] }
 0x38a   :  { %10368 = vmatprep.subr.bf16.mxu0 %v15471_v47 }
 0x38c   :  { %3671 = vmatmul.mubr.f32.gmra.mrb[10].mxu0 %v19033_v22 }
 0x38d   :  { %3676 = vmatprep.mubr.f32.mxu0 %v19019_v26  ;;  %10370 = vmatpush1.bf16.msra.mxu0 %v15481_v53  ;;  %v19036_v53 = vld [vmem:[#allocation6_spill] sm:$0xff] }
 0x38e   :  { %3730 = vmatprep.subr.mxu0 %v3374_v25 }
 0x390   :  { %3680 = vmatmul.mubr.f32.gmra.mrb[12].mxu0 %v19034_v13 }
 0x391   :  { %3685 = vmatprep.mubr.f32.mxu0 %v19019_v26  ;;  %3734 = vmatpush1.msra.mxu0 %v3380_v35 }
 0x392   :  { %10372 = vmatprep.subr.bf16.mxu0 %v19023_v17 }
 0x394   :  { %3689 = vmatmul.mubr.f32.gmra.mrb[14].mxu0 %v19035_v59 }
 0x395   :  { %3789 = vmatprep.mubr.f32.mxu0 %v19019_v26 }
 0x398   :  { %3791 = vmatmul.mubr.f32.vlgmr.msra.gmra.mrb[8].mxu0 %v19020_v41 }
 0x399   :  { %10374 = vmatpush1.bf16.msra.mxu0 %v19026_v45  ;;  %3796 = vmatprep.mubr.f32.mxu0 %v19019_v26 }
 0x39a   :  { %10376 = vmatprep.subr.bf16.mxu0 %v19027_v15 }
 0x39c   :  { %3798 = vmatmul.mubr.f32.gmra.mrb[10].mxu0 %v19021_v10 }
 0x39d   :  { %3803 = vmatprep.mubr.f32.mxu0 %v19019_v26  ;;  %10378 = vmatpush1.bf16.msra.mxu0 %v19029_v46 }
 0x39e   :  { %3835 = vmatprep.subr.mxu0 %v19012_v49 }
 0x3a0   :  { %3805 = vmatmul.mubr.f32.gmra.mrb[12].mxu0 %v19022_v57 }
 0x3a1   :  { %3810 = vmatprep.mubr.f32.mxu0 %v19019_v26  ;;  %3837 = vmatpush1.msra.mxu0 %v19014_v58 }
 0x3a4   :  { %3812 = vmatmul.mubr.f32.gmra.mrb[14].mxu0 %v19024_v39 }
 0x3a5   :  { %3892 = vmatprep.mubr.f32.mxu0 %v19019_v26 }
 0x3a8   :  { %3894 = vmatmul.mubr.f32.vlgmr.msra.gmra.mrb[8].mxu0 %v19020_v41 }
 0x3a9   :  { %3899 = vmatprep.mubr.f32.mxu0 %v19019_v26 }
 0x3ac   :  { %3901 = vmatmul.mubr.f32.gmra.mrb[10].mxu0 %v19021_v10 }
 0x3ad   :  { %3906 = vmatprep.mubr.f32.mxu0 %v19019_v26 }
 0x3b0   :  { %3908 = vmatmul.mubr.f32.gmra.mrb[12].mxu0 %v19022_v57 }
 0x3b1   :  { %3913 = vmatprep.mubr.f32.mxu0 %v19019_v26 }
 0x3b4   :  { %3915 = vmatmul.mubr.f32.gmra.mrb[14].mxu0 %v19024_v39 }
 0x42b   :  { %v3176_v47 = vpop.f32.mrb[0].mxu0 }
 0x42c   :  { %v11147_v40 = vadd.f32 %v19036_v53, %v3176_v47  ;;  %v3178_v8 = vpop.f32.mrb[1].mxu0 }
 0x42d   :  { %v11149_v34 = vadd.f32 %v19037_v0, %v3178_v8 }
 0x42f   :  { %v3184_v5 = vpop.f32.mrb[2].mxu0 }
 0x430   :  { %v11151_v14 = vadd.f32 %v19038_v44, %v3184_v5  ;;  %v3186_v52 = vpop.f32.mrb[3].mxu0 }
 0x431   :  { %v11153_v20 = vadd.f32 %v19039_v4, %v3186_v52 }
 0x433   :  { %v3192_v32 = vpop.f32.mrb[4].mxu0 }
 0x434   :  { %v11155_v37 = vadd.f32 %v19040_v55, %v3192_v32  ;;  %v3194_v16 = vpop.f32.mrb[5].mxu0 }
 0x435   :  { %v11157_v43 = vadd.f32 %v19041_v50, %v3194_v16 }
 0x437   :  { %v3200_v62 = vpop.f32.mrb[6].mxu0 }
 0x438   :  { %v11159_v49 = vadd.f32 %v19042_v29, %v3200_v62  ;;  %v3202_v9 = vpop.f32.mrb[7].mxu0 }
 0x439   :  { %v11161_v58 = vadd.f32 %v19043_v30, %v3202_v9 }
 0x47b   :  { %v3895_v36 = vpop.f32.mrb[8].mxu0 }
 0x47c   :  { %v11148_v7 = vadd.f32 %v11147_v40, %v3895_v36  ;;  %v3897_v31 = vpop.f32.mrb[9].mxu0 }
 0x47d   :  { %v11150_v56 = vadd.f32 %v11149_v34, %v3897_v31 }
 0x47e   :  { %v15688_v48 = vmax.f32 %v11148_v7, 0.0 }
 0x47f   :  { %v6609_v25 = vmax.f32 %v11150_v56, 0.0  ;;  %v3902_v6 = vpop.f32.mrb[10].mxu0 }
 0x480   :  { %v11152_v35 = vadd.f32 %v11151_v14, %v3902_v6  ;;  %v3904_v54 = vpop.f32.mrb[11].mxu0 }
 0x481   :  { %v11154_v24 = vadd.f32 %v11153_v20, %v3904_v54  ;;  %6680 = vrot.lane.b32.xlu0 %v6609_v25, %s11358_s1 }
 0x483   :  { %v6612_v19 = vmax.f32 %v11154_v24, 0.0  ;;  %v3909_v12 = vpop.f32.mrb[12].mxu0 }
 0x484   :  { %v11156_v41 = vadd.f32 %v11155_v37, %v3909_v12  ;;  %v3911_v10 = vpop.f32.mrb[13].mxu0 }
 0x485   :  { %v11158_v57 = vadd.f32 %v11157_v43, %v3911_v10  ;;  %6682 = vrot.lane.b32.xlu1 %v6612_v19, %s11358_s1 }
 0x486   :  { %v15682_v46 = vmax.f32 %v11156_v41, 0.0 }
 0x487   :  { %v6615_v17 = vmax.f32 %v11158_v57, 0.0  ;;  %v3916_v39 = vpop.f32.mrb[14].mxu0 }
 0x488   :  { %v11160_v21 = vadd.f32 %v11159_v49, %v3916_v39  ;;  %v3918_v45 = vpop.f32.mrb[15].mxu0 }
 0x489   :  { %v11162_v15 = vadd.f32 %v11161_v58, %v3918_v45  ;;  %6684 = vrot.lane.b32.xlu0 %v6615_v17, %s11358_s1 }
 0x48a   :  { %v15690_v23 = vmax.f32 %v11160_v21, 0.0 }
 0x48b   :  { %v6618_v42 = vmax.f32 %v11162_v15, 0.0 }
 0x48d   :  { %6686 = vrot.lane.b32.xlu1 %v6618_v42, %s11358_s1  ;;  %6842 = vrot.lane.b32.xlu0 %v15417_v38, %s11359_s29  ;;  %v15696_v38 = vmax.f32 %v11152_v35, 0.0 }
 0x491   :  { %6844 = vrot.lane.b32.xlu1 %v15431_v51, %s11359_s29  ;;  %6838 = vrot.lane.b32.xlu0 %v15405_v61, %s11359_s29  ;;  %v6799_v61 = vpop.permute.xlu0 %6798 }
 0x495   :  { %6840 = vrot.lane.b32.xlu1 %v15415_v2, %s11359_s29  ;;  %6628 = vrot.lane.b32.xlu0 %v15682_v46, %s11358_s1  ;;  %v6801_v2 = vpop.permute.xlu1 %6800  ;;  %v6803_v51 = vpop.permute.xlu0 %6802 }
 0x499   :  { %6630 = vrot.lane.b32.xlu1 %v15690_v23, %s11358_s1  ;;  %6624 = vrot.lane.b32.xlu0 %v15688_v48, %s11358_s1  ;;  %v6805_v3 = vpop.permute.xlu1 %6804 }
 0x49d   :  { %6626 = vrot.lane.b32.xlu1 %v15696_v38, %s11358_s1  ;;  %s11363_s1 = smov 64  }
 0x4f3   :  { %v15700_v22 = vpop.permute.xlu0 %6680 }
 0x4f4   :  { %v6774_v8 = vsel %vm6773_vm2, %v15700_v22, %v15575_v33  ;;  %v6693_v34 = vmax.f32 %v6609_v25, %v15700_v22  ;;  %v6692_v56 = vmax.f32 %v15688_v48, %v15700_v22 }
 0x4f5   :  { %v6782_v5 = vmax.f32 %v6609_v25, %v6774_v8 }
 0x4f7   :  { %v15702_v13 = vpop.permute.xlu1 %6682  ;;  %v15723_v52 = vmax.f32 %v6782_v5, %v6799_v61  ;;  %v7070_v5 = vld [vmem:[%s16843_s2 + $0x80] sm:$0xff] }
 0x4f8   :  { %v6775_v14 = vsel %vm6773_vm2, %v15702_v13, %v15588_v63  ;;  %v6694_v10 = vmax.f32 %v15696_v38, %v15702_v13 }
 0x4f9   :  { %v6783_v33 = vmax.f32 %v6612_v19, %v6775_v14  ;;  %v7054_v14 = vld [vmem:[%s16843_s2] sm:$0xff] }
 0x4fb   :  { %v15704_v59 = vpop.permute.xlu0 %6684  ;;  %v15735_v20 = vmax.f32 %v6783_v33, %v6801_v2 }
 0x4fc   :  { %v6776_v4 = vsel %vm6773_vm2, %v15704_v59, %v15586_v11  ;;  %v15733_v63 = vmax.f32 %v6615_v17, %v15704_v59 }
 0x4ff   :  { %v15706_v47 = vpop.permute.xlu1 %6686  ;;  %v6843_v53 = vpop.permute.xlu0 %6842 }
 0x500   :  { %v6852_v40 = vmax.f32 %v15593_v1, %v6843_v53  ;;  %v15721_v1 = vmax.f32 %v6612_v19, %v15702_v13  ;;  %v6777_v32 = vsel %vm6773_vm2, %v15706_v47, %v15605_v27  ;;  %v15745_v11 = vmax.f32 %v6618_v42, %v15706_v47 }
 0x501   :  { %v6785_v37 = vmax.f32 %v6618_v42, %v6777_v32  ;;  %v6696_v42 = vmax.f32 %v15682_v46, %v15704_v59  ;;  %v6698_v22 = vmax.f32 %v15690_v23, %v15706_v47 }
 0x502   :  { %6862 = vrot.lane.b32.xlu0 %v6852_v40, %s11360_s30 }
 0x503   :  { %v6845_v0 = vpop.permute.xlu1 %6844  ;;  %v6839_v55 = vpop.permute.xlu0 %6838  ;;  %v6813_v62 = vmax.f32 %v6785_v37, %v6805_v3  ;;  %v7057_v37 = vld [vmem:[%s16843_s2 + $0x18] sm:$0xff] }
 0x504   :  { %v6853_v44 = vmax.f32 %v15610_v60, %v6845_v0  ;;  %v6784_v60 = vmax.f32 %v6615_v17, %v6776_v4  ;;  %v6850_v27 = vmax.f32 %v15580_v28, %v6839_v55  ;;  %v7111_v4 = vand.u32 4294901760, %v7054_v14 }
 0x506   :  { %6864 = vrot.lane.b32.xlu1 %v6853_v44, %s11360_s30  ;;  %6704 = vrot.lane.b32.xlu0 %v6693_v34, %s11359_s29  ;;  %v6812_v16 = vmax.f32 %v6784_v60, %v6803_v51  ;;  %v7071_v44 = vld [vmem:[%s16843_s2 + $0x88] sm:$0xff]  ;;  %v7073_v60 = vld [vmem:[%s16843_s2 + $0x98] sm:$0xff] }
 0x507   :  { %v6841_v50 = vpop.permute.xlu1 %6840  ;;  %v6629_v43 = vpop.permute.xlu0 %6628  ;;  %v7162_v33 = vand.u32 4294901760, %v7071_v44  ;;  %v7168_v55 = vand.u32 4294901760, %v7073_v60 }
 0x508   :  { %v6851_v49 = vmax.f32 %v15597_v18, %v6841_v50  ;;  %v15755_v9 = vmax.f32 %v15682_v46, %v6629_v43 }
 0x50a   :  { %6706 = vrot.lane.b32.xlu1 %v15721_v1, %s11359_s29  ;;  %6818 = vrot.lane.b32.xlu0 %v15723_v52, %s11360_s30 }
 0x50b   :  { %v6631_v29 = vpop.permute.xlu1 %6630  ;;  %v6625_v30 = vpop.permute.xlu0 %6624 }
 0x50c   :  { %v15761_v58 = vmax.f32 %v15690_v23, %v6631_v29  ;;  %v15764_v28 = vmax.f32 %v15688_v48, %v6625_v30  ;;  %v7075_v29 = vld [vmem:[%s16843_s2 + $0xa8] sm:$0xff] }
 0x50d   :  { %v7059_v30 = vld [vmem:[%s16843_s2 + $0x28] sm:$0xff] }
 0x50e   :  { %6820 = vrot.lane.b32.xlu1 %v15735_v20, %s11360_s30  ;;  %6708 = vrot.lane.b32.xlu0 %v15733_v63, %s11359_s29 }
 0x50f   :  { %v6627_v36 = vpop.permute.xlu1 %6626 }
 0x510   :  { %v15771_v18 = vmax.f32 %v15696_v38, %v6627_v36 }
 0x512   :  { %6710 = vrot.lane.b32.xlu1 %v15745_v11, %s11359_s29  ;;  %6822 = vrot.lane.b32.xlu0 %v6812_v16, %s11360_s30 }
 0x516   :  { %6824 = vrot.lane.b32.xlu1 %v6813_v62, %s11360_s30  ;;  %6858 = vrot.lane.b32.xlu0 %v6850_v27, %s11360_s30  ;;  %v15847_v27 = vsub.f32 %v7071_v44, %v7162_v33 }
 0x51a   :  { %6860 = vrot.lane.b32.xlu1 %v6851_v49, %s11360_s30  ;;  %6648 = vrot.lane.b32.xlu0 %v15755_v9, %s11359_s29  ;;  %v7058_v49 = vld [vmem:[%s16843_s2 + $0x20] sm:$0xff] }
 0x51e   :  { %6650 = vrot.lane.b32.xlu1 %v15761_v58, %s11359_s29  ;;  %6644 = vrot.lane.b32.xlu0 %v15764_v28, %s11359_s29 }
 0x522   :  { %6646 = vrot.lane.b32.xlu1 %v15771_v18, %s11359_s29  ;;  %6664 = vrot.lane.b32.xlu0 %v15682_v46, %s11360_s30  ;;  %s11364_s29 = smov 96  }
 0x526   :  { %6666 = vrot.lane.b32.xlu1 %v15690_v23, %s11360_s30  ;;  %6660 = vrot.lane.b32.xlu0 %v15688_v48, %s11360_s30 }
 0x52a   :  { %6662 = vrot.lane.b32.xlu1 %v15696_v38, %s11360_s30 }
 0x574   :  { %v6863_v7 = vpop.permute.xlu0 %6862 }
 0x575   :  { %v6872_v31 = vmax.f32 %v6812_v16, %v6863_v7  ;;  %v7074_v16 = vld [vmem:[%s16843_s2 + $0xa0] sm:$0xff] }
 0x577   :  { %6915 = vrot.lane.b32.xlu0 %v6872_v31, %s11361_s0 }
 0x578   :  { %v6865_v25 = vpop.permute.xlu1 %6864  ;;  %v6705_v6 = vpop.permute.xlu0 %6704 }
 0x579   :  { %v6873_v35 = vmax.f32 %v6813_v62, %v6865_v25  ;;  %v6716_v54 = vmax.f32 %v6692_v56, %v6705_v6  ;;  %v6717_v12 = vmax.f32 %v6693_v34, %v6705_v6  ;;  %v15849_v62 = vsub.f32 %v7054_v14, %v7111_v4  ;;  %v7076_v25 = vld [vmem:[%s16843_s2 + $0xb0] sm:$0xff] }
 0x57a   :  { %v15872_v6 = vsub.f32 %v7073_v60, %v7168_v55 }
 0x57b   :  { %6917 = vrot.lane.b32.xlu1 %v6873_v35, %s11361_s0  ;;  %6732 = vrot.lane.b32.xlu0 %v6716_v54, %s11360_s30 }
 0x57c   :  { %v6707_v24 = vpop.permute.xlu1 %6706  ;;  %v6819_v19 = vpop.permute.xlu0 %6818 }
 0x57d   :  { %v6830_v41 = vmax.f32 %v6716_v54, %v6819_v19  ;;  %v6718_v57 = vmax.f32 %v6694_v10, %v6707_v24  ;;  %v6831_v17 = vmax.f32 %v6717_v12, %v6819_v19  ;;  %v6719_v45 = vmax.f32 %v15721_v1, %v6707_v24  ;;  %v7077_v10 = vld [vmem:[%s16843_s2 + $0xb8] sm:$0xff] }
 0x57e   :  { %v7159_v1 = vand.u32 4294901760, %v7070_v5  ;;  %v7120_v54 = vand.u32 4294901760, %v7057_v37  ;;  %v7171_v24 = vand.u32 4294901760, %v7074_v16  ;;  %v7174_v19 = vand.u32 4294901760, %v7075_v29 }
 0x57f   :  { %6734 = vrot.lane.b32.xlu1 %v6717_v12, %s11360_s30  ;;  %6882 = vrot.lane.b32.xlu0 %v6830_v41, %s11362_s4  ;;  %v7123_v12 = vand.u32 4294901760, %v7058_v49  ;;  %v7126_v41 = vand.u32 4294901760, %v7059_v30 }
 0x580   :  { %v6821_v39 = vpop.permute.xlu1 %6820  ;;  %v6709_v21 = vpop.permute.xlu0 %6708  ;;  %v15843_v50 = vpack.c.bf16 %v7162_v33, %v7159_v1  ;;  %v15845_v43 = vsub.f32 %v7070_v5, %v7159_v1 }
 0x581   :  { %v6832_v15 = vmax.f32 %v6718_v57, %v6821_v39  ;;  %v6833_v48 = vmax.f32 %v6719_v45, %v6821_v39  ;;  %v6720_v38 = vmax.f32 %v6696_v42, %v6709_v21  ;;  %v6721_v51 = vmax.f32 %v15733_v63, %v6709_v21  ;;  %v7072_v63 = vld [vmem:[%s16843_s2 + $0x90] sm:$0xff]  ;;  %v7061_v42 = vld [vmem:[%s16843_s2 + $0x38] sm:$0xff] }
 0x582   :  { %v7165_v32 = vand.u32 4294901760, %v7072_v63  ;;  %19044 = vst [vmem:[#allocation188_spill] sm:$0xff] %v15843_v50  ;;  %10812 = vmatprep.subr.bf16.mxu1 %v15843_v50 }
 0x583   :  { %6884 = vrot.lane.b32.xlu1 %v6831_v17, %s11362_s4  ;;  %6736 = vrot.lane.b32.xlu0 %v6718_v57, %s11360_s30  ;;  %v7177_v57 = vand.u32 4294901760, %v7076_v25  ;;  %v7060_v17 = vld [vmem:[%s16843_s2 + $0x30] sm:$0xff] }
 0x584   :  { %v6823_v61 = vpop.permute.xlu0 %6822  ;;  %v6711_v2 = vpop.permute.xlu1 %6710  ;;  %v15864_v31 = vpack.c.bf16 %v7168_v55, %v7165_v32  ;;  %v15866_v56 = vsub.f32 %v7072_v63, %v7165_v32 }
 0x585   :  { %v6834_v3 = vmax.f32 %v6720_v38, %v6823_v61  ;;  %v6722_v46 = vmax.f32 %v6698_v22, %v6711_v2  ;;  %v6835_v13 = vmax.f32 %v6721_v51, %v6823_v61  ;;  %v6723_v53 = vmax.f32 %v15745_v11, %v6711_v2  ;;  %v7056_v11 = vld [vmem:[%s16843_s2 + $0x10] sm:$0xff] }
 0x586   :  { %19046 = vst [vmem:[#allocation31_spill] sm:$0xff] %v15864_v31  ;;  %v7117_v35 = vand.u32 4294901760, %v7056_v11  ;;  %v15897_v61 = vsub.f32 %v7058_v49, %v7123_v12  ;;  %v15899_v2 = vsub.f32 %v7059_v30, %v7126_v41  ;;  %v7129_v22 = vand.u32 4294901760, %v7060_v17 }
 0x587   :  { %6738 = vrot.lane.b32.xlu1 %v6719_v45, %s11360_s30  ;;  %6886 = vrot.lane.b32.xlu0 %v6832_v15, %s11362_s4  ;;  %v15886_v45 = vsub.f32 %v7057_v37, %v7120_v54  ;;  %v15888_v15 = vsub.f32 %v7074_v16, %v7171_v24 }
 0x588   :  { %v6825_v59 = vpop.permute.xlu1 %6824  ;;  %v6859_v8 = vpop.permute.xlu0 %6858  ;;  %v15882_v39 = vpack.c.bf16 %v7120_v54, %v7117_v35  ;;  %v15884_v21 = vsub.f32 %v7056_v11, %v7117_v35 }
 0x589   :  { %v6836_v40 = vmax.f32 %v6722_v46, %v6825_v59  ;;  %v6837_v23 = vmax.f32 %v6723_v53, %v6825_v59  ;;  %v6870_v47 = vmax.f32 %v15723_v52, %v6859_v8  ;;  %v7055_v52 = vld [vmem:[%s16843_s2 + $0x8] sm:$0xff]  ;;  %v19064_v26 = vand.u32 4294901760, %v15886_v45 }
 0x58a   :  { %19047 = vst [vmem:[#allocation83_spill] sm:$0xff] %v15882_v39 }
 0x58b   :  { %6888 = vrot.lane.b32.xlu1 %v6833_v48, %s11362_s4  ;;  %6740 = vrot.lane.b32.xlu0 %v6720_v38, %s11360_s30  ;;  %v15893_v48 = vpack.c.bf16 %v7174_v19, %v7171_v24  ;;  %v15895_v38 = vsub.f32 %v7075_v29, %v7174_v19 }
 0x58c   :  { %v6861_v0 = vpop.permute.xlu1 %6860 }
 0x58d   :  { %v6871_v34 = vmax.f32 %v15735_v20, %v6861_v0  ;;  %v7114_v20 = vand.u32 4294901760, %v7055_v52  ;;  %19048 = vst [vmem:[#allocation193_spill] sm:$0xff] %v15893_v48 }
 0x58f   :  { %6742 = vrot.lane.b32.xlu1 %v6721_v51, %s11360_s30  ;;  %6890 = vrot.lane.b32.xlu0 %v6834_v3, %s11362_s4  ;;  %v15860_v36 = vpack.c.bf16 %v7114_v20, %v7111_v4  ;;  %v15862_v7 = vsub.f32 %v7055_v52, %v7114_v20  ;;  %v7180_v51 = vand.u32 4294901760, %v7077_v10  ;;  %v15901_v3 = vsub.f32 %v7076_v25, %v7177_v57 }
 0x590   :  { %v6651_v0 = vpop.permute.xlu1 %6650 }
 0x591   :  { %19045 = vst [vmem:[#allocation25_spill] sm:$0xff] %v15860_v36  ;;  %10814 = vmatpush3.bf16.msra.mxu1 %v15860_v36  ;;  %v15907_v59 = vpack.c.bf16 %v7180_v51, %v7177_v57 }
 0x592   :  { %10816 = vmatprep.subr.bf16.mxu1 %v15864_v31 }
 0x593   :  { %6892 = vrot.lane.b32.xlu1 %v6835_v13, %s11362_s4  ;;  %6744 = vrot.lane.b32.xlu0 %v6722_v46, %s11360_s30  ;;  %v15904_v46 = vpack.c.bf16 %v7126_v41, %v7123_v12  ;;  %v7132_v13 = vand.u32 4294901760, %v7061_v42  ;;  %19050 = vst [vmem:[#allocation36_spill] sm:$0xff] %v15907_v59 }
 0x594   :  { %v6647_v5 = vpop.permute.xlu1 %6646 }
 0x595   :  { %10818 = vmatpush3.bf16.msra.mxu1 %v15882_v39  ;;  %19049 = vst [vmem:[#allocation195_spill] sm:$0xff] %v15904_v46  ;;  %v15913_v8 = vsub.f32 %v7061_v42, %v7132_v13 }
 0x596   :  { %10820 = vmatprep.subr.bf16.mxu1 %v15893_v48 }
 0x597   :  { %6746 = vrot.lane.b32.xlu1 %v6723_v53, %s11360_s30  ;;  %6894 = vrot.lane.b32.xlu0 %v6836_v40, %s11362_s4  ;;  %v15909_v53 = vsub.f32 %v7077_v10, %v7180_v51  ;;  %v15911_v40 = vsub.f32 %v7060_v17, %v7129_v22  ;;  %v6657_v51 = vmax.f32 %v15771_v18, %v6647_v5 }
 0x598   :  { %v6667_v14 = vpop.permute.xlu1 %6666 }
 0x599   :  { %10822 = vmatpush3.bf16.msra.mxu1 %v15904_v46 }
 0x59a   :  { %10824 = vmatprep.subr.bf16.mxu1 %v15907_v59 }
 0x59b   :  { %6896 = vrot.lane.b32.xlu1 %v6837_v23, %s11362_s4  ;;  %6911 = vrot.lane.b32.xlu0 %v6870_v47, %s11361_s0  ;;  %v15916_v23 = vpack.c.bf16 %v7132_v13, %v7129_v22  ;;  %v6649_v47 = vpop.permute.xlu0 %6648 }
 0x59c   :  { %v6663_v33 = vpop.permute.xlu1 %6662  ;;  %v6658_v49 = vmax.f32 %v15755_v9, %v6649_v47  ;;  %v6659_v47 = vmax.f32 %v15761_v58, %v6651_v0 }
 0x59d   :  { %19051 = vst [vmem:[#allocation84_spill] sm:$0xff] %v15916_v23  ;;  %10826 = vmatpush3.bf16.msra.mxu1 %v15916_v23  ;;  %v6673_v5 = vmax.f32 %v6657_v51, %v6663_v33 }
 0x59e   :  { %v6675_v18 = vmax.f32 %v6659_v47, %v6667_v14 }
 0x59f   :  { %6913 = vrot.lane.b32.xlu1 %v6871_v34, %s11361_s0  ;;  %v6645_v34 = vpop.permute.xlu0 %6644 }
 0x5a0   :  { %v6656_v12 = vmax.f32 %v15764_v28, %v6645_v34 }
 0x5a3   :  { %v6665_v44 = vpop.permute.xlu0 %6664 }
 0x5a4   :  { %v6674_v54 = vmax.f32 %v6658_v49, %v6665_v44 }
 0x5a7   :  { %v6661_v1 = vpop.permute.xlu0 %6660 }
 0x5a8   :  { %v6672_v13 = vmax.f32 %v6656_v12, %v6661_v1 }
 0x5e9   :  { %v6916_v52 = vpop.permute.xlu0 %6915 }
 0x5ed   :  { %v6918_v4 = vpop.permute.xlu1 %6917  ;;  %v6733_v63 = vpop.permute.xlu0 %6732 }
 0x5f1   :  { %v6735_v60 = vpop.permute.xlu1 %6734  ;;  %v6883_v20 = vpop.permute.xlu0 %6882 }
 0x5f2   :  { %v6749_v24 = vsel %vm6748_vm3, %v6733_v63, %v6735_v60 }
 0x5f3   :  { %v6757_v17 = vmax.f32 %v6656_v12, %v6749_v24 }
 0x5f5   :  { %v6885_v32 = vpop.permute.xlu1 %6884  ;;  %v6737_v55 = vpop.permute.xlu0 %6736 }
 0x5f9   :  { %v6739_v11 = vpop.permute.xlu1 %6738  ;;  %v6887_v37 = vpop.permute.xlu0 %6886 }
 0x5fa   :  { %v6750_v9 = vsel %vm6748_vm3, %v6737_v55, %v6739_v11  ;;  %v6899_v55 = vsel %vm6898_vm5, %v6883_v20, %v6885_v32 }
 0x5fb   :  { %v6758_v34 = vmax.f32 %v6657_v51, %v6750_v9 }
 0x5fd   :  { %v6889_v16 = vpop.permute.xlu1 %6888  ;;  %v6741_v29 = vpop.permute.xlu0 %6740 }
 0x5fe   :  { %v6900_v1 = vsel %vm6898_vm5, %v6887_v37, %v6889_v16 }
 0x601   :  { %v6743_v30 = vpop.permute.xlu1 %6742  ;;  %v6891_v25 = vpop.permute.xlu0 %6890 }
 0x602   :  { %v6751_v35 = vsel %vm6748_vm3, %v6741_v29, %v6743_v30  ;;  %v6924_v29 = vsel %vm6923_vm4, %v6672_v13, %v6757_v17 }
 0x603   :  { %v6759_v19 = vmax.f32 %v6658_v49, %v6751_v35 }
 0x605   :  { %v6893_v41 = vpop.permute.xlu1 %6892  ;;  %v6926_v10 = vsel %vm6923_vm4, %v6674_v54, %v6759_v19  ;;  %v6745_v57 = vpop.permute.xlu0 %6744 }
 0x606   :  { %v6901_v42 = vsel %vm6898_vm5, %v6891_v25, %v6893_v41  ;;  %v6925_v25 = vsel %vm6923_vm4, %v6673_v5, %v6758_v34  ;;  %v7078_v5 = vld [vmem:[%s16843_s2 + $0xc0] sm:$0xff] }
 0x607   :  { %v6931_v22 = vsel %vm6928_vm6, %v6926_v10, %v6901_v42  ;;  %v6930_v16 = vsel %vm6928_vm6, %v6925_v25, %v6900_v1  ;;  %v7079_v25 = vld [vmem:[%s16843_s2 + $0xc8] sm:$0xff] }
 0x608   :  { %v6936_v28 = vsel %vm6933_vm7, %v6931_v22, %v6916_v52  ;;  %v6929_v52 = vsel %vm6928_vm6, %v6924_v29, %v6899_v55 }
 0x609   :  { %v6747_v44 = vpop.permute.xlu1 %6746  ;;  %v6895_v63 = vpop.permute.xlu0 %6894  ;;  %v15932_v60 = vsel %vm6938_vm8, %v6936_v28, -inf  ;;  %v7007_v37 = vsel %vm6957_vm10, %v6936_v28, -inf  ;;  %v6998_v54 = vsel %vm6946_vm9, %v6936_v28, -inf }
 0x60a   :  { %v6752_v11 = vsel %vm6748_vm3, %v6745_v57, %v6747_v44 }
 0x60b   :  { %v6760_v49 = vmax.f32 %v6659_v47, %v6752_v11 }
 0x60d   :  { %v6897_v58 = vpop.permute.xlu1 %6896  ;;  %v6927_v0 = vsel %vm6923_vm4, %v6675_v18, %v6760_v49  ;;  %v6912_v30 = vpop.permute.xlu0 %6911 }
 0x60e   :  { %v6902_v20 = vsel %vm6898_vm5, %v6895_v63, %v6897_v58  ;;  %v6934_v32 = vsel %vm6933_vm7, %v6929_v52, %v6912_v30 }
 0x60f   :  { %v6932_v14 = vsel %vm6928_vm6, %v6927_v0, %v6902_v20  ;;  %v15945_v33 = vsel %vm6938_vm8, %v6934_v32, -inf  ;;  %v6947_v24 = vsel %vm6946_vm9, %v6934_v32, -inf  ;;  %v6958_v57 = vsel %vm6957_vm10, %v6934_v32, -inf }
 0x610   :  { %v6937_v35 = vsel %vm6933_vm7, %v6932_v14, %v6918_v4 }
 0x611   :  { %v6914_v19 = vpop.permute.xlu1 %6913  ;;  %v6999_v12 = vsel %vm6948_vm11, %v6937_v35, -inf  ;;  %v7008_v41 = vsel %vm6938_vm8, %v6937_v35, -inf  ;;  %v7016_v10 = vsel %vm6946_vm9, %v6937_v35, -inf }
 0x612   :  { %v6935_v17 = vsel %vm6933_vm7, %v6930_v16, %v6914_v19  ;;  %v7000_v9 = vmax.f32 %v6998_v54, %v6999_v12  ;;  %v7009_v42 = vmax.f32 %v7007_v37, %v7008_v41  ;;  %v7017_v13 = vrot.slane %v7016_v10, 4 }
 0x613   :  { %v6949_v51 = vsel %vm6948_vm11, %v6935_v17, -inf  ;;  %v6959_v4 = vsel %vm6938_vm8, %v6935_v17, -inf  ;;  %v6967_v22 = vsel %vm6946_vm9, %v6935_v17, -inf  ;;  %v7183_v37 = vand.u32 4294901760, %v7078_v5 }
 0x614   :  { %v6950_v28 = vmax.f32 %v6947_v24, %v6949_v51  ;;  %v6960_v47 = vmax.f32 %v6958_v57, %v6959_v4  ;;  %v6968_v34 = vrot.slane %v6967_v22, 4  ;;  %v7001_v44 = vrot.slane %v7000_v9, 4  ;;  %v7063_v51 = vld [vmem:[%s16843_s2 + $0x48] sm:$0xff] }
 0x615   :  { %v7010_v63 = vrot.slane %v7009_v42, 4  ;;  %v7018_v55 = vmax.f32 %v7016_v10, %v7017_v13  ;;  %v7186_v41 = vand.u32 4294901760, %v7079_v25 }
 0x616   :  { %v6951_v11 = vrot.slane %v6950_v28, 4  ;;  %v6961_v29 = vrot.slane %v6960_v47, 4  ;;  %v6969_v18 = vmax.f32 %v6967_v22, %v6968_v34  ;;  %v7002_v1 = vmax.f32 %v7000_v9, %v7001_v44 }
 0x617   :  { %v7011_v49 = vmax.f32 %v7009_v42, %v7010_v63  ;;  %v7019_v58 = vrot.slane %v7018_v55, 2  ;;  %v15966_v9 = vsub.f32 %v7078_v5, %v7183_v37  ;;  %v7062_v42 = vld [vmem:[%s16843_s2 + $0x40] sm:$0xff]  ;;  %v15974_v13 = vpack.c.bf16 %v7186_v41, %v7183_v37  ;;  %v7081_v63 = vld [vmem:[%s16843_s2 + $0xd8] sm:$0xff]  ;;  %v7064_v5 = vld [vmem:[%s16843_s2 + $0x50] sm:$0xff] }
 0x618   :  { %v6952_v0 = vmax.f32 %v6950_v28, %v6951_v11  ;;  %v6962_v52 = vmax.f32 %v6960_v47, %v6961_v29  ;;  %v6970_v30 = vrot.slane %v6969_v18, 2  ;;  %v7003_v32 = vrot.slane %v7002_v1, 2  ;;  %v7080_v28 = vld [vmem:[%s16843_s2 + $0xd0] sm:$0xff] }
 0x619   :  { %v7012_v20 = vrot.slane %v7011_v49, 2  ;;  %v7020_v14 = vmax.f32 %v7018_v55, %v7019_v58  ;;  %19052 = vst [vmem:[#allocation48_spill] sm:$0xff] %v15974_v13  ;;  %v15979_v44 = vsub.f32 %v7079_v25, %v7186_v41  ;;  %10828 = vmatprep.subr.bf16.mxu1 %v15974_v13  ;;  %v7135_v29 = vand.u32 4294901760, %v7062_v42  ;;  %v7083_v25 = vld [vmem:[%s16843_s2 + $0xe8] sm:$0xff] }
 0x61a   :  { %v6963_v16 = vrot.slane %v6962_v52, 2  ;;  %v6953_v35 = vrot.slane %v6952_v0, 2  ;;  %v6971_v54 = vmax.f32 %v6969_v18, %v6970_v30  ;;  %v7004_v19 = vmax.f32 %v7002_v1, %v7003_v32  ;;  %v7082_v30 = vld [vmem:[%s16843_s2 + $0xe0] sm:$0xff] }
 0x61b   :  { %v7013_v24 = vmax.f32 %v7011_v49, %v7012_v20  ;;  %v7021_v12 = vrot.slane %v7020_v14, 1  ;;  %v7138_v18 = vand.u32 4294901760, %v7063_v51  ;;  %v7065_v49 = vld [vmem:[%s16843_s2 + $0x58] sm:$0xff]  ;;  %v15999_v32 = vsub.f32 %v7062_v42, %v7135_v29 }
 0x61c   :  { %v6964_v10 = vmax.f32 %v6962_v52, %v6963_v16  ;;  %v6954_v57 = vmax.f32 %v6952_v0, %v6953_v35  ;;  %v6972_v17 = vrot.slane %v6971_v54, 1  ;;  %v7005_v22 = vrot.slane %v7004_v19, 1  ;;  %v7066_v16 = vld [vmem:[%s16843_s2 + $0x60] sm:$0xff] }
 0x61d   :  { %v7014_v4 = vrot.slane %v7013_v24, 1  ;;  %v7022_v0 = vmax.f32 %v7020_v14, %v7021_v12  ;;  %v7189_v52 = vand.u32 4294901760, %v7080_v28  ;;  %v15997_v20 = vpack.c.bf16 %v7138_v18, %v7135_v29  ;;  %v7067_v12 = vld [vmem:[%s16843_s2 + $0x68] sm:$0xff] }
 0x61e   :  { %v6965_v47 = vrot.slane %v6964_v10, 1  ;;  %v6955_v34 = vrot.slane %v6954_v57, 1  ;;  %v7006_v11 = vmax.f32 %v7004_v19, %v7005_v22  ;;  %v6973_v58 = vmax.f32 %v6971_v54, %v6972_v17 }
 0x61f   :  { %v7015_v55 = vmax.f32 %v7013_v24, %v7014_v4  ;;  %19053 = vst [vmem:[#allocation105_spill] sm:$0xff] %v15997_v20  ;;  %v16001_v37 = vsub.f32 %v7063_v51, %v7138_v18  ;;  %v7192_v14 = vand.u32 4294901760, %v7081_v63  ;;  %v16006_v54 = vsub.f32 %v7080_v28, %v7189_v52  ;;  %10830 = vmatpush3.bf16.msra.mxu1 %v15997_v20  ;;  %v7085_v51 = vld [vmem:[%s16843_s2 + $0xf8] sm:$0xff]  ;;  %v7068_v4 = vld [vmem:[%s16843_s2 + $0x70] sm:$0xff] }
 0x620   :  { %v6966_v1 = vmax.f32 %v6964_v10, %v6965_v47  ;;  %7024 = vrot.lane.b32.xlu0 %v7006_v11, %s11364_s29  ;;  %v6956_v35 = vmax.f32 %v6954_v57, %v6955_v34  ;;  %v7141_v24 = vand.u32 4294901760, %v7064_v5  ;;  %v7144_v19 = vand.u32 4294901760, %v7065_v49  ;;  %v7084_v57 = vld [vmem:[%s16843_s2 + $0xf0] sm:$0xff] }
 0x621   :  { %7028 = vrot.lane.b32.xlu1 %v7015_v55, %s11363_s1  ;;  %v16012_v41 = vpack.c.bf16 %v7192_v14, %v7189_v52  ;;  %v16014_v10 = vsub.f32 %v7081_v63, %v7192_v14  ;;  %v7195_v17 = vand.u32 4294901760, %v7082_v30  ;;  %v7198_v42 = vand.u32 4294901760, %v7083_v25  ;;  %v7069_v63 = vld [vmem:[%s16843_s2 + $0x78] sm:$0xff] }
 0x622   :  { %v16025_v22 = vpack.c.bf16 %v7144_v19, %v7141_v24  ;;  %v16027_v28 = vsub.f32 %v7064_v5, %v7141_v24  ;;  %v16029_v47 = vsub.f32 %v7065_v49, %v7144_v19  ;;  %v7147_v34 = vand.u32 4294901760, %v7066_v16 }
 0x623   :  { %19054 = vst [vmem:[#allocation199_spill] sm:$0xff] %v16012_v41  ;;  %v16034_v55 = vpack.c.bf16 %v7198_v42, %v7195_v17  ;;  %v16036_v11 = vsub.f32 %v7082_v30, %v7195_v17  ;;  %v16038_v29 = vsub.f32 %v7083_v25, %v7198_v42  ;;  %v7150_v18 = vand.u32 4294901760, %v7067_v12  ;;  %10832 = vmatprep.subr.bf16.mxu1 %v16012_v41 }
 0x624   :  { %19055 = vst [vmem:[#allocation200_spill] sm:$0xff] %v16025_v22  ;;  %6975 = vrot.lane.b32.xlu0 %v6956_v35, %s11364_s29  ;;  %v16041_v5 = vsub.f32 %v7066_v16, %v7147_v34  ;;  %v7201_v49 = vand.u32 4294901760, %v7084_v57  ;;  %v7204_v52 = vand.u32 4294901760, %v7085_v51  ;;  %v7153_v14 = vand.u32 4294901760, %v7068_v4  ;;  %10834 = vmatpush3.bf16.msra.mxu1 %v16025_v22 }
 0x625   :  { %6979 = vrot.lane.b32.xlu1 %v6966_v1, %s11363_s1  ;;  %19056 = vst [vmem:[#allocation51_spill] sm:$0xff] %v16034_v55  ;;  %v16044_v24 = vpack.c.bf16 %v7150_v18, %v7147_v34  ;;  %v16046_v1 = vsub.f32 %v7067_v12, %v7150_v18  ;;  %v7156_v35 = vand.u32 4294901760, %v7069_v63  ;;  %v17595_v30 = vand.u32 4294901760, %v15845_v43  ;;  %10836 = vmatprep.subr.bf16.mxu1 %v16034_v55 }
 0x626   :  { %v16050_v25 = vpack.c.bf16 %v7204_v52, %v7201_v49  ;;  %v16052_v19 = vsub.f32 %v7084_v57, %v7201_v49  ;;  %v16054_v16 = vsub.f32 %v7085_v51, %v7204_v52  ;;  %v16056_v17 = vsub.f32 %v7068_v4, %v7153_v14 }
 0x627   :  { %19057 = vst [vmem:[#allocation109_spill] sm:$0xff] %v16044_v24  ;;  %v16060_v42 = vpack.c.bf16 %v7156_v35, %v7153_v14  ;;  %v16062_v12 = vsub.f32 %v7069_v63, %v7156_v35  ;;  %v7338_v34 = vsub.f32 %v15845_v43, %v17595_v30  ;;  %v17594_v18 = vand.u32 4294901760, %v15847_v27 }
 0x628   :  { %19058 = vst [vmem:[#allocation62_spill] sm:$0xff] %v16050_v25  ;;  %19059 = vst [vmem:[#allocation120_spill] sm:$0xff] %v16052_v19  ;;  %7032 = vrot.lane.b32.xlu0 %v7022_v0, %s11360_s30  ;;  %v17597_v57 = vand.u32 4294901760, %v15849_v62  ;;  %v17600_v51 = vand.u32 4294901760, %v15862_v7  ;;  %v17607_v4 = vand.u32 4294901760, %v15866_v56  ;;  %10838 = vmatpush3.bf16.msra.mxu1 %v16044_v24  ;;  %v17611_v49 = vand.u32 4294901760, %v15884_v21 }
 0x629   :  { %19060 = vst [vmem:[#allocation64_spill] sm:$0xff] %v16054_v16  ;;  %19061 = vst [vmem:[#allocation123_spill] sm:$0xff] %v16056_v17  ;;  %6983 = vrot.lane.b32.xlu1 %v6973_v58, %s11360_s30  ;;  %v17610_v58 = vand.u32 4294901760, %v15872_v6  ;;  %v7339_v0 = vand.u32 4294901760, %v7338_v34  ;;  %v7345_v63 = vsub.f32 %v15847_v27, %v17594_v18  ;;  %10840 = vmatprep.subr.bf16.mxu1 %v16050_v25  ;;  %v17618_v25 = vand.u32 4294901760, %v15888_v15 }
 0x62a   :  { %19062 = vst [vmem:[#allocation74_spill] sm:$0xff] %v16060_v42  ;;  %19063 = vst [vmem:[#allocation141_spill] sm:$0xff] %v16062_v12  ;;  %v7226_v14 = vsub.f32 %v15849_v62, %v17597_v57  ;;  %v7233_v35 = vsub.f32 %v15862_v7, %v17600_v51  ;;  %v7352_v34 = vsub.f32 %v15866_v56, %v17607_v4  ;;  %v17642_v46 = vand.u32 4294901760, %v16038_v29 }
 0x62b   :  { %v7359_v18 = vsub.f32 %v15872_v6, %v17610_v58  ;;  %v7346_v30 = vand.u32 4294901760, %v7345_v63  ;;  %v7240_v52 = vsub.f32 %v15884_v21, %v17611_v49  ;;  %v7247_v57 = vsub.f32 %v15886_v45, %v19064_v26 }
 0x62c   :  { %v7227_v51 = vand.u32 4294901760, %v7226_v14  ;;  %v7234_v24 = vand.u32 4294901760, %v7233_v35  ;;  %v7353_v55 = vand.u32 4294901760, %v7352_v34  ;;  %10842 = vmatpush3.bf16.msra.mxu1 %v16060_v42  ;;  %v7366_v63 = vsub.f32 %v15888_v15, %v17618_v25 }
 0x62d   :  { %v7360_v22 = vand.u32 4294901760, %v7359_v18  ;;  %v10843_v4 = vpack.c.bf16 %v7346_v30, %v7339_v0  ;;  %v7241_v41 = vand.u32 4294901760, %v7240_v52  ;;  %v7248_v58 = vand.u32 4294901760, %v7247_v57 }
 0x62e   :  { %v16102_v49 = vpack.c.bf16 %v7234_v24, %v7227_v51  ;;  %v17615_v26 = vand.u32 4294901760, %v15895_v38  ;;  %v17614_v14 = vand.u32 4294901760, %v15897_v61  ;;  %v7367_v18 = vand.u32 4294901760, %v7366_v63 }
 0x62f   :  { %v16104_v20 = vpack.c.bf16 %v7360_v22, %v7353_v55  ;;  %10844 = vmatprep.subr.bf16.mxu1 %v10843_v4  ;;  %v16108_v35 = vpack.c.bf16 %v7248_v58, %v7241_v41  ;;  %v17616_v30 = vand.u32 4294901760, %v15899_v2  ;;  %v17617_v57 = vand.u32 4294901760, %v15901_v3 }
 0x630   :  { %v7373_v0 = vsub.f32 %v15895_v38, %v17615_v26  ;;  %v7254_v22 = vsub.f32 %v15897_v61, %v17614_v14  ;;  %v17621_v55 = vand.u32 4294901760, %v15909_v53  ;;  %v17626_v24 = vand.u32 4294901760, %v15911_v40 }
 0x631   :  { %v7261_v41 = vsub.f32 %v15899_v2, %v17616_v30  ;;  %v7380_v51 = vsub.f32 %v15901_v3, %v17617_v57  ;;  %v17627_v4 = vand.u32 4294901760, %v15913_v8  ;;  %v17628_v58 = vand.u32 4294901760, %v15966_v9 }
 0x632   :  { %v7374_v52 = vand.u32 4294901760, %v7373_v0  ;;  %v7255_v34 = vand.u32 4294901760, %v7254_v22  ;;  %v7387_v63 = vsub.f32 %v15909_v53, %v17621_v55  ;;  %v7268_v14 = vsub.f32 %v15911_v40, %v17626_v24 }
 0x633   :  { %v7262_v26 = vand.u32 4294901760, %v7261_v41  ;;  %v7381_v30 = vand.u32 4294901760, %v7380_v51  ;;  %v7275_v57 = vsub.f32 %v15913_v8, %v17627_v4  ;;  %v7394_v25 = vsub.f32 %v15966_v9, %v17628_v58 }
 0x634   :  { %v16140_v0 = vpack.c.bf16 %v7374_v52, %v7367_v18  ;;  %v7388_v22 = vand.u32 4294901760, %v7387_v63  ;;  %v7269_v42 = vand.u32 4294901760, %v7268_v14  ;;  %v17631_v55 = vand.u32 4294901760, %v15979_v44 }
 0x635   :  { %v16143_v13 = vpack.c.bf16 %v7262_v26, %v7255_v34  ;;  %v7276_v23 = vand.u32 4294901760, %v7275_v57  ;;  %v7395_v24 = vand.u32 4294901760, %v7394_v25  ;;  %v17629_v41 = vand.u32 4294901760, %v15999_v32 }
 0x636   :  { %v16146_v51 = vpack.c.bf16 %v7388_v22, %v7381_v30  ;;  %v7401_v4 = vsub.f32 %v15979_v44, %v17631_v55  ;;  %v17630_v58 = vand.u32 4294901760, %v16001_v37  ;;  %v17632_v18 = vand.u32 4294901760, %v16006_v54 }
 0x637   :  { %v16153_v52 = vpack.c.bf16 %v7276_v23, %v7269_v42  ;;  %v7282_v26 = vsub.f32 %v15999_v32, %v17629_v41  ;;  %v17635_v25 = vand.u32 4294901760, %v16014_v10  ;;  %v17640_v14 = vand.u32 4294901760, %v16027_v28 }
 0x638   :  { %v7402_v30 = vand.u32 4294901760, %v7401_v4  ;;  %v7289_v57 = vsub.f32 %v16001_v37, %v17630_v58  ;;  %v7408_v34 = vsub.f32 %v16006_v54, %v17632_v18  ;;  %v17641_v23 = vand.u32 4294901760, %v16029_v47 }
 0x639   :  { %v7283_v42 = vand.u32 4294901760, %v7282_v26  ;;  %v7415_v63 = vsub.f32 %v16014_v10, %v17635_v25  ;;  %v7296_v22 = vsub.f32 %v16027_v28, %v17640_v14  ;;  %v17644_v4 = vand.u32 4294901760, %v16036_v11 }
 0x63a   :  { %v16174_v41 = vpack.c.bf16 %v7402_v30, %v7395_v24  ;;  %v7290_v58 = vand.u32 4294901760, %v7289_v57  ;;  %v7409_v55 = vand.u32 4294901760, %v7408_v34  ;;  %v7303_v18 = vsub.f32 %v16029_v47, %v17641_v23 }
 0x63b   :  { %v7416_v59 = vand.u32 4294901760, %v7415_v63  ;;  %v7297_v26 = vand.u32 4294901760, %v7296_v22  ;;  %v7422_v25 = vsub.f32 %v16036_v11, %v17644_v4  ;;  %v17643_v24 = vand.u32 4294901760, %v16041_v5 }
 0x63c   :  { %v16183_v48 = vpack.c.bf16 %v7290_v58, %v7283_v42  ;;  %v7304_v14 = vand.u32 4294901760, %v7303_v18  ;;  %v17645_v30 = vand.u32 4294901760, %v16046_v1  ;;  %v7429_v63 = vsub.f32 %v16038_v29, %v17642_v46 }
 0x63d   :  { %v16187_v57 = vpack.c.bf16 %v7416_v59, %v7409_v55  ;;  %v7423_v34 = vand.u32 4294901760, %v7422_v25  ;;  %v17646_v22 = vand.u32 4294901760, %v16052_v19  ;;  %v7310_v58 = vsub.f32 %v16041_v5, %v17643_v24 }
 0x63e   :  { %v16193_v23 = vpack.c.bf16 %v7304_v14, %v7297_v26  ;;  %v7317_v18 = vsub.f32 %v16046_v1, %v17645_v30  ;;  %v17655_v59 = vand.u32 4294901760, %v16054_v16  ;;  %v7430_v55 = vand.u32 4294901760, %v7429_v63 }
 0x63f   :  { %v7436_v25 = vsub.f32 %v16052_v19, %v17646_v22  ;;  %v17653_v42 = vand.u32 4294901760, %v16056_v17  ;;  %v17654_v14 = vand.u32 4294901760, %v16062_v12  ;;  %v7311_v26 = vand.u32 4294901760, %v7310_v58 }
 0x640   :  { %v7318_v46 = vand.u32 4294901760, %v7317_v18  ;;  %v7443_v24 = vsub.f32 %v16054_v16, %v17655_v59  ;;  %v16210_v4 = vpack.c.bf16 %v7430_v55, %v7423_v34 }
 0x641   :  { %v7437_v30 = vand.u32 4294901760, %v7436_v25  ;;  %v7324_v63 = vsub.f32 %v16056_v17, %v17653_v42  ;;  %v7331_v22 = vsub.f32 %v16062_v12, %v17654_v14 }
 0x642   :  { %v16218_v39 = vpack.c.bf16 %v7318_v46, %v7311_v26  ;;  %v7444_v31 = vand.u32 4294901760, %v7443_v24  ;;  %v6940_v26 = vrot.slane %v15945_v33, 4 }
 0x643   :  { %v7325_v58 = vand.u32 4294901760, %v7324_v63  ;;  %v7332_v18 = vand.u32 4294901760, %v7331_v22  ;;  %v6992_v63 = vrot.slane %v15932_v60, 4 }
 0x644   :  { %v16224_v55 = vpack.c.bf16 %v7444_v31, %v7437_v30 }
 0x645   :  { %v16228_v42 = vpack.c.bf16 %v7332_v18, %v7325_v58  ;;  %v6993_v58 = vmax.f32 %v15932_v60, %v6992_v63  ;;  %v6941_v18 = vmax.f32 %v15945_v33, %v6940_v26 }
 0x647   :  { %v6994_v22 = vrot.slane %v6993_v58, 2  ;;  %v6942_v24 = vrot.slane %v6941_v18, 2 }
 0x649   :  { %v6995_v14 = vmax.f32 %v6993_v58, %v6994_v22  ;;  %v6943_v46 = vmax.f32 %v6941_v18, %v6942_v24 }
 0x64b   :  { %v6996_v25 = vrot.slane %v6995_v14, 1  ;;  %v6944_v31 = vrot.slane %v6943_v46, 1 }
 0x64d   :  { %v6997_v59 = vmax.f32 %v6995_v14, %v6996_v25  ;;  %v6945_v17 = vmax.f32 %v6943_v46, %v6944_v31 }
 0x692   :  { %v7025_v36 = vpop.permute.xlu0 %7024 }
 0x693   :  { %v7029_v34 = vpop.permute.xlu1 %7028  ;;  %v7035_v30 = vsel %vm6986_vm12, %v6997_v59, %v7025_v36 }
 0x694   :  { %v7036_v50 = vsel %vm6988_vm13, %v7025_v36, %v7029_v34  ;;  %v7042_v12 = vrot.slane %v7035_v30, 7 }
 0x695   :  { %v7043_v19 = vrot.slane %v7036_v50, 7 }
 0x696   :  { %v6976_v60 = vpop.permute.xlu0 %6975 }
 0x697   :  { %v6980_v16 = vpop.permute.xlu1 %6979  ;;  %v6987_v63 = vsel %vm6986_vm12, %v6945_v17, %v6976_v60 }
 0x698   :  { %v6989_v33 = vsel %vm6988_vm13, %v6976_v60, %v6980_v16  ;;  %v7050_v26 = vsel %vm255_vm0, %v6987_v63, %v7042_v12 }
 0x699   :  { %v7051_v24 = vsel %vm255_vm0, %v6989_v33, %v7043_v19  ;;  %v16264_v58 = vand.u32 4294901760, %v7050_v26  ;;  %v19082_v33 = vld [vmem:[#allocation141_spill] sm:$0xff] }
 0x69a   :  { %v16262_v22 = vand.u32 4294901760, %v7051_v24  ;;  %v7033_v25 = vpop.permute.xlu0 %7032 }
 0x69b   :  { %v6984_v14 = vpop.permute.xlu1 %6983  ;;  %v16268_v36 = vsub.f32 %v7050_v26, %v16264_v58  ;;  %v7037_v50 = vsel %vm6748_vm3, %v7029_v34, %v7033_v25  ;;  %v19080_v34 = vld [vmem:[#allocation120_spill] sm:$0xff]  ;;  %v19083_v26 = vld [vmem:[#allocation123_spill] sm:$0xff]  ;;  %v19086_v25 = vld [vmem:[#allocation25_spill] sm:$0xff] }
 0x69c   :  { %v7207_v59 = vsub.f32 %v7051_v24, %v16262_v22  ;;  %v7044_v46 = vrot.slane %v7037_v50, 7  ;;  %v6990_v12 = vsel %vm6748_vm3, %v6980_v16, %v6984_v14  ;;  %v19069_v16 = vpack.c.bf16 %v15895_v38, %v15888_v15  ;;  %v19085_v14 = vld [vmem:[#allocation188_spill] sm:$0xff]  ;;  %v19088_v50 = vld [vmem:[#allocation83_spill] sm:$0xff] }
 0x69d   :  { %v7214_v17 = vand.u32 4294901760, %v16268_v36  ;;  %v19084_v24 = vpack.c.bf16 %v19082_v33, %v19083_v26 }
 0x69e   :  { %v7208_v31 = vand.u32 4294901760, %v7207_v59  ;;  %v16274_v19 = vsel %vm255_vm0, %v6990_v12, %v7044_v46  ;;  %v19089_v46 = vld [vmem:[#allocation193_spill] sm:$0xff]  ;;  %v19090_v12 = vld [vmem:[#allocation195_spill] sm:$0xff] }
 0x69f   :  { %v7215_v30 = vsub.f32 %v16268_v36, %v7214_v17 }
 0x6a0   :  { %v7209_v18 = vsub.f32 %v7207_v59, %v7208_v31 }
 0x6a1   :  { %v7216_v60 = vand.u32 4294901760, %v7215_v30  ;;  %v19091_v30 = vld [vmem:[#allocation36_spill] sm:$0xff] }
 0x6a2   :  { %v7210_v63 = vand.u32 4294901760, %v7209_v18  ;;  %v19092_v18 = vld [vmem:[#allocation84_spill] sm:$0xff] }
 0x6a4   :  { %7211 = vmatprep.mubr.f32.mxu1 %v7210_v63  ;;  %v19094_v63 = vld [vmem:[#allocation105_spill] sm:$0xff] }
 0x6a5   :  { %7217 = vmatmul.mubr.f32.vlgmr.msra.gmra.mrb[108].mxu1 %v7216_v60  ;;  %v19093_v60 = vld [vmem:[#allocation48_spill] sm:$0xff] }
 0x6a6   :  { %10846 = vmatpush3.bf16.msra.mxu1 %v16102_v49  ;;  %7447 = vmatprep.mubr.f32.mxu1 %v16262_v22  ;;  %v19070_v49 = vpack.c.bf16 %v15899_v2, %v15897_v61 }
 0x6a7   :  { %10848 = vmatprep.subr.bf16.mxu1 %v16104_v20  ;;  %v19067_v20 = vpack.c.bf16 %v15872_v6, %v15866_v56 }
 0x6aa   :  { %10850 = vmatpush3.bf16.msra.mxu1 %v16108_v35  ;;  %v19071_v35 = vpack.c.bf16 %v15909_v53, %v15901_v3 }
 0x6ab   :  { %10852 = vmatprep.subr.bf16.mxu1 %v16140_v0  ;;  %v19072_v0 = vpack.c.bf16 %v15913_v8, %v15911_v40 }
 0x6ae   :  { %10854 = vmatpush3.bf16.msra.mxu1 %v16143_v13  ;;  %v19065_v13 = vpack.c.bf16 %v15847_v27, %v15845_v43 }
 0x6af   :  { %10856 = vmatprep.subr.bf16.mxu1 %v16146_v51  ;;  %v19074_v51 = vpack.c.bf16 %v16001_v37, %v15999_v32 }
 0x6b2   :  { %10858 = vmatpush3.bf16.msra.mxu1 %v16153_v52  ;;  %v19075_v52 = vpack.c.bf16 %v16014_v10, %v16006_v54 }
 0x6b3   :  { %10860 = vmatprep.subr.bf16.mxu1 %v16174_v41  ;;  %v19073_v41 = vpack.c.bf16 %v15979_v44, %v15966_v9 }
 0x6b6   :  { %10862 = vmatpush3.bf16.msra.mxu1 %v16183_v48  ;;  %v19066_v48 = vpack.c.bf16 %v15862_v7, %v15849_v62 }
 0x6b7   :  { %10864 = vmatprep.subr.bf16.mxu1 %v16187_v57  ;;  %v19078_v57 = vpack.c.bf16 %v16046_v1, %v16041_v5 }
 0x6ba   :  { %10866 = vmatpush3.bf16.msra.mxu1 %v16193_v23  ;;  %v19076_v23 = vpack.c.bf16 %v16029_v47, %v16027_v28 }
 0x6bb   :  { %10868 = vmatprep.subr.bf16.mxu1 %v16210_v4  ;;  %v19077_v4 = vpack.c.bf16 %v16038_v29, %v16036_v11 }
 0x6be   :  { %10870 = vmatpush3.bf16.msra.mxu1 %v16218_v39  ;;  %v19068_v39 = vpack.c.bf16 %v15886_v45, %v15884_v21 }
 0x6bf   :  { %10872 = vmatprep.subr.bf16.mxu1 %v16224_v55 }
 0x6c2   :  { %10874 = vmatpush3.bf16.msra.mxu1 %v16228_v42  ;;  %v19079_v42 = vld [vmem:[#allocation64_spill] sm:$0xff] }
 0x6c3   :  { %10876 = vmatprep.subr.bf16.mxu1 %v19065_v13  ;;  %v19081_v55 = vpack.c.bf16 %v19079_v42, %v19080_v34  ;;  %v19095_v13 = vld [vmem:[#allocation199_spill] sm:$0xff] }
 0x6c5   :  { %7449 = vmatmul.mubr.f32.vlgmr.msra.gmra.mrb[110].mxu1 %v16264_v58 }
 0x6c6   :  { %10878 = vmatpush3.bf16.msra.mxu1 %v19066_v48  ;;  %7584 = vmatprep.mubr.f32.mxu1 %v7207_v59  ;;  %v19087_v59 = vld [vmem:[#allocation31_spill] sm:$0xff]  ;;  %v19096_v48 = vld [vmem:[#allocation200_spill] sm:$0xff] }
 0x6c7   :  { %10880 = vmatprep.subr.bf16.mxu1 %v19067_v20  ;;  %v19098_v20 = vld [vmem:[#allocation109_spill] sm:$0xff] }
 0x6ca   :  { %10882 = vmatpush3.bf16.msra.mxu1 %v19068_v39  ;;  %v19099_v39 = vld [vmem:[#allocation62_spill] sm:$0xff] }
 0x6cb   :  { %10884 = vmatprep.subr.bf16.mxu1 %v19069_v16  ;;  %v19100_v16 = vand.u32 4294901760, %v15845_v43  ;;  %v19107_v43 = vand.u32 4294901760, %v15884_v21  ;;  %v19114_v21 = vand.u32 4294901760, %v15909_v53  ;;  %v19121_v53 = vand.u32 4294901760, %v16006_v54 }
 0x6cc   :  { %v19128_v54 = vand.u32 4294901760, %v16046_v1 }
 0x6ce   :  { %10886 = vmatpush3.bf16.msra.mxu1 %v19070_v49  ;;  %v19101_v49 = vand.u32 4294901760, %v15847_v27  ;;  %v19108_v27 = vand.u32 4294901760, %v15886_v45  ;;  %v19115_v45 = vand.u32 4294901760, %v15911_v40  ;;  %v19122_v40 = vand.u32 4294901760, %v16014_v10 }
 0x6cf   :  { %10888 = vmatprep.subr.bf16.mxu1 %v19071_v35  ;;  %v19129_v10 = vand.u32 4294901760, %v19080_v34 }
 0x6d0   :  { %v10939_v35 = vpack.c.bf16 %v19101_v49, %v19100_v16 }
 0x6d2   :  { %10890 = vmatpush3.bf16.msra.mxu1 %v19072_v0  ;;  %v19102_v0 = vld [vmem:[#allocation74_spill] sm:$0xff] }
 0x6d3   :  { %10892 = vmatprep.subr.bf16.mxu1 %v19073_v41  ;;  %v19103_v41 = vand.u32 4294901760, %v15849_v62  ;;  %v10945_v62 = vpack.c.bf16 %v19108_v27, %v19107_v43  ;;  %v7092_v27 = vld [vmem:[%s16843_s2 + $0x130] sm:$0xff] }
 0x6d6   :  { %10894 = vmatpush3.bf16.msra.mxu1 %v19074_v51  ;;  %v19104_v51 = vand.u32 4294901760, %v15862_v7  ;;  %v19109_v7 = vand.u32 4294901760, %v15888_v15  ;;  %v19116_v15 = vand.u32 4294901760, %v15913_v8  ;;  %v19123_v8 = vand.u32 4294901760, %v16027_v28 }
 0x6d7   :  { %10896 = vmatprep.subr.bf16.mxu1 %v19075_v52  ;;  %v19130_v28 = vand.u32 4294901760, %v19079_v42 }
 0x6d8   :  { %v10941_v52 = vpack.c.bf16 %v19104_v51, %v19103_v41  ;;  %v10953_v49 = vpack.c.bf16 %v19116_v15, %v19115_v45  ;;  %v10959_v51 = vpack.c.bf16 %v19122_v40, %v19121_v53 }
 0x6da   :  { %10898 = vmatpush3.bf16.msra.mxu1 %v19076_v23  ;;  %v19105_v23 = vand.u32 4294901760, %v15866_v56 }
 0x6db   :  { %10900 = vmatprep.subr.bf16.mxu1 %v19077_v4  ;;  %v19106_v4 = vand.u32 4294901760, %v15872_v6  ;;  %v19111_v6 = vand.u32 4294901760, %v15897_v61  ;;  %v19118_v61 = vand.u32 4294901760, %v15979_v44  ;;  %v19125_v44 = vand.u32 4294901760, %v16036_v11 }
 0x6dc   :  { %v19132_v11 = vand.u32 4294901760, %v19082_v33 }
 0x6de   :  { %10902 = vmatpush3.bf16.msra.mxu1 %v19078_v57  ;;  %v10943_v57 = vpack.c.bf16 %v19106_v4, %v19105_v23 }
 0x6df   :  { %10904 = vmatprep.subr.bf16.mxu1 %v19081_v55  ;;  %v19110_v55 = vand.u32 4294901760, %v15895_v38  ;;  %v19117_v38 = vand.u32 4294901760, %v15966_v9  ;;  %v19124_v9 = vand.u32 4294901760, %v16029_v47  ;;  %v19131_v47 = vand.u32 4294901760, %v19083_v26  ;;  %v7086_v26 = vld [vmem:[%s16843_s2 + $0x100] sm:$0xff] }
 0x6e1   :  { %v10947_v56 = vpack.c.bf16 %v19110_v55, %v19109_v7  ;;  %v10969_v43 = vpack.c.bf16 %v19132_v11, %v19131_v47  ;;  %v7991_v7 = vand.u32 4294901760, %v7092_v27 }
 0x6e2   :  { %10906 = vmatpush3.bf16.msra.mxu1 %v19084_v24  ;;  %v19113_v24 = vand.u32 4294901760, %v15901_v3  ;;  %v19120_v3 = vand.u32 4294901760, %v16001_v37  ;;  %v19127_v37 = vand.u32 4294901760, %v16041_v5 }
 0x6e3   :  { %10908 = vmatprep.subr.bf16.mxu1 %v19085_v14 }
 0x6e4   :  { %v10951_v16 = vpack.c.bf16 %v19114_v21, %v19113_v24  ;;  %v10965_v4 = vpack.c.bf16 %v19128_v54, %v19127_v37  ;;  %v16505_v21 = vld [vmem:[%s16843_s2 + $0x150] sm:$0xff] }
 0x6e5   :  { %7587 = vmatmul.mubr.f32.vlgmr.msra.gmra.mrb[112].mxu1 %v16268_v36  ;;  %v19112_v36 = vand.u32 4294901760, %v15899_v2  ;;  %v19119_v2 = vand.u32 4294901760, %v15999_v32  ;;  %v19126_v32 = vand.u32 4294901760, %v16038_v29  ;;  %v11365_v29 = vmov 1.0  }
 0x6e6   :  { %10910 = vmatpush3.bf16.msra.mxu1 %v19086_v25  ;;  %7691 = vmatprep.mubr.f32.mxu1 %v7208_v31  ;;  %v19097_v31 = vld [vmem:[#allocation51_spill] sm:$0xff]  ;;  %v7045_v5 = vrot.slane %v11365_v29, 7  ;;  %v8003_v15 = vand.u32 4294901760, %v16505_v21 }
 0x6e7   :  { %10912 = vmatprep.subr.bf16.mxu1 %v19087_v59  ;;  %v10957_v41 = vpack.c.bf16 %v19120_v3, %v19119_v2  ;;  %v10963_v23 = vpack.c.bf16 %v19126_v32, %v19125_v44  ;;  %v16530_v2 = vld [vmem:[%s16843_s2 + $0x168] sm:$0xff]  ;;  %v16533_v3 = vand.u32 4294901760, %v16274_v19 }
 0x6e8   :  { %v7053_v1 = vsel %vm255_vm0, 1.0, %v7045_v5  ;;  %v8012_v40 = vand.u32 4294901760, %v16530_v2 }
 0x6e9   :  { %v7105_v42 = vsel %vm7103_vm14, %v7053_v1, 0 }
 0x6ea   :  { %10914 = vmatpush3.bf16.msra.mxu1 %v19088_v50  ;;  %v16439_v34 = vand.u32 4294901760, %v7105_v42 }
 0x6eb   :  { %10916 = vmatprep.subr.bf16.mxu1 %v19089_v46 }
 0x6ee   :  { %10918 = vmatpush3.bf16.msra.mxu1 %v19090_v12 }
 0x6ef   :  { %10920 = vmatprep.subr.bf16.mxu1 %v19091_v30 }
 0x6f2   :  { %10922 = vmatpush3.bf16.msra.mxu1 %v19092_v18 }
 0x6f3   :  { %10924 = vmatprep.subr.bf16.mxu1 %v19093_v60 }
 0x6f6   :  { %10926 = vmatpush3.bf16.msra.mxu1 %v19094_v63 }
 0x6f7   :  { %10928 = vmatprep.subr.bf16.mxu1 %v19095_v13 }
 0x6fa   :  { %10930 = vmatpush3.bf16.msra.mxu1 %v19096_v48 }
 0x6fb   :  { %10932 = vmatprep.subr.bf16.mxu1 %v19097_v31 }
 0x6fe   :  { %10934 = vmatpush3.bf16.msra.mxu1 %v19098_v20 }
 0x6ff   :  { %10936 = vmatprep.subr.bf16.mxu1 %v19099_v39 }
 0x702   :  { %10938 = vmatpush3.bf16.msra.mxu1 %v19102_v0 }
 0x703   :  { %10940 = vmatprep.subr.bf16.mxu1 %v10939_v35  ;;  %v10955_v35 = vpack.c.bf16 %v19118_v61, %v19117_v38 }
 0x705   :  { %7695 = vmatmul.mubr.f32.vlgmr.msra.gmra.mrb[114].mxu1 %v7214_v17  ;;  %v10949_v17 = vpack.c.bf16 %v19112_v36, %v19111_v6  ;;  %v7095_v6 = vld [vmem:[%s16843_s2 + $0x148] sm:$0xff] }
 0x706   :  { %10942 = vmatpush3.bf16.msra.mxu1 %v10941_v52  ;;  %7861 = vmatprep.mubr.f32.mxu1 %v16262_v22  ;;  %v10961_v52 = vpack.c.bf16 %v19124_v9, %v19123_v8  ;;  %v8000_v24 = vand.u32 4294901760, %v7095_v6  ;;  %v16548_v9 = vld [vmem:[%s16843_s2 + $0x170] sm:$0xff] }
 0x707   :  { %10944 = vmatprep.subr.bf16.mxu1 %v10943_v57  ;;  %v10967_v57 = vpack.c.bf16 %v19130_v28, %v19129_v10  ;;  %v8015_v54 = vand.u32 4294901760, %v16548_v9  ;;  %v7102_v10 = vld [vmem:[%s16843_s2 + $0x180] sm:$0x1] }
 0x708   :  { %v16595_v1 = vsel %vm255_vm0, %v7102_v10, 0 }
 0x70a   :  { %10946 = vmatpush3.bf16.msra.mxu1 %v10945_v62  ;;  %v7093_v62 = vld [vmem:[%s16843_s2 + $0x138] sm:$0xff] }
 0x70b   :  { %10948 = vmatprep.subr.bf16.mxu1 %v10947_v56  ;;  %v7994_v55 = vand.u32 4294901760, %v7093_v62  ;;  %v7094_v56 = vld [vmem:[%s16843_s2 + $0x140] sm:$0xff] }
 0x70d   :  { %v16499_v36 = vpack.c.bf16 %v7994_v55, %v7991_v7 }
 0x70e   :  { %10950 = vmatpush3.bf16.msra.mxu1 %v10949_v17  ;;  %v7997_v17 = vand.u32 4294901760, %v7094_v56 }
 0x70f   :  { %10952 = vmatprep.subr.bf16.mxu1 %v10951_v16  ;;  %v16510_v16 = vld [vmem:[%s16843_s2 + $0x158] sm:$0xff] }
 0x710   :  { %v16513_v45 = vpack.c.bf16 %v8000_v24, %v7997_v17 }
 0x712   :  { %10954 = vmatpush3.bf16.msra.mxu1 %v10953_v49  ;;  %v8006_v49 = vand.u32 4294901760, %v16510_v16 }
 0x713   :  { %10956 = vmatprep.subr.bf16.mxu1 %v10955_v35  ;;  %v16525_v35 = vld [vmem:[%s16843_s2 + $0x160] sm:$0xff] }
 0x714   :  { %v8009_v53 = vand.u32 4294901760, %v16525_v35 }
 0x716   :  { %10958 = vmatpush3.bf16.msra.mxu1 %v10957_v41  ;;  %v16536_v41 = vpack.c.bf16 %v8006_v49, %v8003_v15  ;;  %v16566_v37 = vpack.c.bf16 %v8012_v40, %v8009_v53 }
 0x717   :  { %10960 = vmatprep.subr.bf16.mxu1 %v10959_v51 }
 0x71a   :  { %10962 = vmatpush3.bf16.msra.mxu1 %v10961_v52  ;;  %v16553_v52 = vld [vmem:[%s16843_s2 + $0x178] sm:$0xff] }
 0x71b   :  { %10964 = vmatprep.subr.bf16.mxu1 %v10963_v23  ;;  %v16559_v23 = vsub.f32 %v16274_v19, %v16533_v3 }
 0x71d   :  { %v8061_v29 = vand.u32 4294901760, %v16559_v23 }
 0x71e   :  { %10966 = vmatpush3.bf16.msra.mxu1 %v10965_v4  ;;  %v8018_v4 = vand.u32 4294901760, %v16553_v52 }
 0x71f   :  { %10968 = vmatprep.subr.bf16.mxu1 %v10967_v57 }
 0x720   :  { %v16592_v5 = vpack.c.bf16 %v8018_v4, %v8015_v54 }
 0x722   :  { %10970 = vmatpush3.bf16.msra.mxu1 %v10969_v43 }
 0x723   :  { %10972 = vmatprep.subr.bf16.mxu1 %v19085_v14  ;;  %v7087_v14 = vld [vmem:[%s16843_s2 + $0x108] sm:$0xff] }
 0x725   :  { %7863 = vmatmul.mubr.f32.vlgmr.msra.gmra.mrb[116].mxu1 %v16264_v58 }
 0x726   :  { %10974 = vmatpush3.bf16.msra.mxu1 %v19086_v25  ;;  %7965 = vmatprep.mubr.f32.mxu1 %v16262_v22  ;;  %v16444_v22 = vsub.f32 %v7105_v42, %v16439_v34  ;;  %v7973_v25 = vand.u32 4294901760, %v7086_v26 }
 0x727   :  { %10976 = vmatprep.subr.bf16.mxu1 %v19087_v59  ;;  %v7976_v59 = vand.u32 4294901760, %v7087_v14 }
 0x728   :  { %v8055_v33 = vand.u32 4294901760, %v16444_v22  ;;  %v16517_v38 = vsub.f32 %v7086_v26, %v7973_v25 }
 0x729   :  { %v16519_v61 = vsub.f32 %v7087_v14, %v7976_v59 }
 0x72a   :  { %10978 = vmatpush3.bf16.msra.mxu1 %v19088_v50  ;;  %v8056_v50 = vsub.f32 %v16444_v22, %v8055_v33  ;;  %v8072_v44 = vand.u32 4294901760, %v16517_v38 }
 0x72b   :  { %10980 = vmatprep.subr.bf16.mxu1 %v19089_v46  ;;  %v7088_v46 = vld [vmem:[%s16843_s2 + $0x110] sm:$0xff]  ;;  %v8079_v32 = vand.u32 4294901760, %v16519_v61 }
 0x72c   :  { %v8073_v19 = vsub.f32 %v16517_v38, %v8072_v44 }
 0x72d   :  { %v8080_v28 = vsub.f32 %v16519_v61, %v8079_v32 }
 0x72e   :  { %10982 = vmatpush3.bf16.msra.mxu1 %v19090_v12  ;;  %v7089_v12 = vld [vmem:[%s16843_s2 + $0x118] sm:$0xff]  ;;  %v8074_v42 = vand.u32 4294901760, %v8073_v19 }
 0x72f   :  { %10984 = vmatprep.subr.bf16.mxu1 %v19091_v30  ;;  %v16468_v30 = vpack.c.bf16 %v7976_v59, %v7973_v25  ;;  %v8081_v26 = vand.u32 4294901760, %v8080_v28  ;;  %v16604_v59 = vsub.f32 %v7092_v27, %v7991_v7 }
 0x732   :  { %10986 = vmatpush3.bf16.msra.mxu1 %v19092_v18  ;;  %v7979_v18 = vand.u32 4294901760, %v7088_v46 }
 0x733   :  { %10988 = vmatprep.subr.bf16.mxu1 %v19093_v60  ;;  %v7982_v60 = vand.u32 4294901760, %v7089_v12 }
 0x734   :  { %v16540_v51 = vsub.f32 %v7088_v46, %v7979_v18 }
 0x735   :  { %v16542_v8 = vsub.f32 %v7089_v12, %v7982_v60 }
 0x736   :  { %10990 = vmatpush3.bf16.msra.mxu1 %v19094_v63  ;;  %v8057_v63 = vand.u32 4294901760, %v8056_v50  ;;  %v8086_v57 = vand.u32 4294901760, %v16540_v51  ;;  %v16606_v50 = vsub.f32 %v7093_v62, %v7994_v55  ;;  %v8114_v55 = vand.u32 4294901760, %v16604_v59 }
 0x737   :  { %10992 = vmatprep.subr.bf16.mxu1 %v19095_v13  ;;  %v11366_v13 = vmov 0.0|0.0   ;;  %v8093_v47 = vand.u32 4294901760, %v16542_v8 }
 0x738   :  { %v8087_v14 = vsub.f32 %v16540_v51, %v8086_v57 }
 0x739   :  { %v8094_v25 = vsub.f32 %v16542_v8, %v8093_v47 }
 0x73a   :  { %10994 = vmatpush3.bf16.msra.mxu1 %v19096_v48  ;;  %v7090_v48 = vld [vmem:[%s16843_s2 + $0x120] sm:$0xff] }
 0x73b   :  { %10996 = vmatprep.subr.bf16.mxu1 %v19097_v31  ;;  %v7091_v31 = vld [vmem:[%s16843_s2 + $0x128] sm:$0xff]  ;;  %v8095_v27 = vand.u32 4294901760, %v8094_v25  ;;  %s11367_s2 = smov 118  }
 0x73e   :  { %10998 = vmatpush3.bf16.msra.mxu1 %v19098_v20  ;;  %v16479_v20 = vpack.c.bf16 %v7982_v60, %v7979_v18  ;;  %v8062_v18 = vsub.f32 %v16559_v23, %v8061_v29  ;;  %v16613_v60 = vsub.f32 %v7094_v56, %v7997_v17  ;;  %v8121_v56 = vand.u32 4294901760, %v16606_v50 }
 0x73f   :  { %11000 = vmatprep.subr.bf16.mxu1 %v19099_v39  ;;  %v7985_v39 = vand.u32 4294901760, %v7090_v48 }
 0x740   :  { %v8063_v17 = vand.u32 4294901760, %v8062_v18  ;;  %v8128_v19 = vand.u32 4294901760, %v16613_v60 }
 0x741   :  { %v16582_v11 = vsub.f32 %v7090_v48, %v7985_v39  ;;  %v16619_v48 = vsub.f32 %v7095_v6, %v8000_v24  ;;  %v16631_v6 = vsub.f32 %v16505_v21, %v8003_v15  ;;  %v16635_v24 = vsub.f32 %v16510_v16, %v8006_v49 }
 0x742   :  { %11002 = vmatpush3.bf16.msra.mxu1 %v19102_v0  ;;  %v7988_v0 = vand.u32 4294901760, %v7091_v31  ;;  %v8115_v21 = vsub.f32 %v16604_v59, %v8114_v55  ;;  %v8122_v16 = vsub.f32 %v16606_v50, %v8121_v56  ;;  %v16651_v15 = vsub.f32 %v16525_v35, %v8009_v53 }
 0x743   :  { %11003 = vmatprep.subr.bf16.mxu1 %v11366_v13  ;;  %v8100_v46 = vand.u32 4294901760, %v16582_v11  ;;  %v8135_v28 = vand.u32 4294901760, %v16619_v48  ;;  %v8129_v49 = vsub.f32 %v16613_v60, %v8128_v19  ;;  %v8142_v25 = vand.u32 4294901760, %v16631_v6 }
 0x744   :  { %v16584_v43 = vsub.f32 %v7091_v31, %v7988_v0  ;;  %v19133_v31 = vmov 0.0   ;;  %v8149_v18 = vand.u32 4294901760, %v16635_v24  ;;  %v8116_v53 = vand.u32 4294901760, %v8115_v21 }
 0x745   :  { %7967 = vmatmul.mubr.f32.vlgmr.msra.gmra.mrb[118].mxu1 %v16264_v58  ;;  %v16489_v58 = vpack.c.bf16 %v7988_v0, %v7985_v39  ;;  %v11028_v39 = vpack.c.bf16 %v8081_v26, %v8074_v42  ;;  %v8088_v0 = vand.u32 4294901760, %v8087_v14  ;;  %v8101_v62 = vsub.f32 %v16582_v11, %v8100_v46 }
 0x746   :  { %11005 = vmatpush1.bf16.msra.mxu1 %v16468_v30  ;;  %8058 = vmatprep.mubr.f32.mxu1 %v8057_v63  ;;  %v8107_v12 = vand.u32 4294901760, %v16584_v43  ;;  %v16617_v63 = vand.u32 4294901760, %v16595_v1  ;;  %v8136_v14 = vsub.f32 %v16619_v48, %v8135_v28 }
 0x747   :  { %11006 = vmatprep.subr.bf16.mxu1 %v11366_v13  ;;  %v11031_v10 = vpack.c.bf16 %v8095_v27, %v8088_v0  ;;  %v8102_v42 = vand.u32 4294901760, %v8101_v62  ;;  %v8123_v0 = vand.u32 4294901760, %v8122_v16  ;;  %v16670_v27 = vsub.f32 %v16548_v9, %v8015_v54 }
 0x748   :  { %v8108_v7 = vsub.f32 %v16584_v43, %v8107_v12  ;;  %v8130_v62 = vand.u32 4294901760, %v8129_v49  ;;  %v8156_v9 = vand.u32 4294901760, %v16651_v15 }
 0x74a   :  { %11008 = vmatpush1.bf16.msra.mxu1 %v16479_v20  ;;  %v8109_v26 = vand.u32 4294901760, %v8108_v7  ;;  %v8137_v7 = vand.u32 4294901760, %v8136_v14  ;;  %v8157_v16 = vsub.f32 %v16651_v15, %v8156_v9  ;;  %v16697_v14 = vsub.f32 %v16595_v1, %v16617_v63 }
 0x74b   :  { %11009 = vmatprep.subr.bf16.mxu1 %v11366_v13 }
 0x74c   :  { %v11034_v35 = vpack.c.bf16 %v8109_v26, %v8102_v42  ;;  %v11040_v42 = vpack.c.bf16 %v8137_v7, %v8130_v62 }
 0x74e   :  { %11011 = vmatpush1.bf16.msra.mxu1 %v16489_v58 }
 0x74f   :  { %11012 = vmatprep.subr.bf16.mxu1 %v11366_v13 }
 0x752   :  { %11014 = vmatpush1.bf16.msra.mxu1 %v16499_v36 }
 0x753   :  { %11015 = vmatprep.subr.bf16.mxu1 %v11366_v13 }
 0x756   :  { %11017 = vmatpush1.bf16.msra.mxu1 %v16513_v45 }
 0x757   :  { %11018 = vmatprep.subr.bf16.mxu1 %v11366_v13 }
 0x75a   :  { %11020 = vmatpush1.bf16.msra.mxu1 %v16536_v41 }
 0x75b   :  { %11021 = vmatprep.subr.bf16.mxu1 %v11366_v13 }
 0x75e   :  { %11023 = vmatpush1.bf16.msra.mxu1 %v16566_v37 }
 0x75f   :  { %11024 = vmatprep.subr.bf16.mxu1 %v11366_v13 }
 0x762   :  { %11026 = vmatpush1.bf16.msra.mxu1 %v16592_v5 }
 0x763   :  { %8020 = vmatprep.subr.mxu1 %v19133_v31 }
 0x766   :  { %8022 = vmatpush1.msra.mxu1 %v16617_v63 }
 0x767   :  { %8064 = vmatmul.mubr.f32.vlgmr.msra.gmra.mrb[120].mxu1 %v8063_v17  ;;  %11027 = vmatprep.subr.bf16.mxu1 %v11366_v13  ;;  %v8143_v17 = vsub.f32 %v16631_v6, %v8142_v25 }
 0x768   :  { %11029 = vmatpush1.bf16.msra.mxu1 %v11028_v39  ;;  %8219 = vmatprep.mubr.f32.mxu1 %v16439_v34  ;;  %v16664_v39 = vsub.f32 %v16530_v2, %v8012_v40  ;;  %v8150_v2 = vsub.f32 %v16635_v24, %v8149_v18  ;;  %v16681_v40 = vsub.f32 %v16553_v52, %v8018_v4  ;;  %v8170_v4 = vand.u32 4294901760, %v16670_v27 }
 0x769   :  { %11030 = vmatprep.subr.bf16.mxu1 %v11366_v13  ;;  %v8144_v26 = vand.u32 4294901760, %v8143_v17 }
 0x76a   :  { %v17666_v54 = vand.u32 4294901760, %v16664_v39  ;;  %v8151_v21 = vand.u32 4294901760, %v8150_v2  ;;  %v8177_v49 = vand.u32 4294901760, %v16681_v40  ;;  %v8171_v7 = vsub.f32 %v16670_v27, %v8170_v4 }
 0x76c   :  { %11032 = vmatpush1.bf16.msra.mxu1 %v11031_v10  ;;  %v11037_v10 = vpack.c.bf16 %v8123_v0, %v8116_v53  ;;  %v8164_v52 = vsub.f32 %v16664_v39, %v17666_v54  ;;  %v8158_v0 = vand.u32 4294901760, %v8157_v16  ;;  %v8178_v17 = vsub.f32 %v16681_v40, %v8177_v49 }
 0x76d   :  { %11033 = vmatprep.subr.bf16.mxu1 %v11366_v13  ;;  %v8172_v54 = vand.u32 4294901760, %v8171_v7 }
 0x76e   :  { %v8165_v62 = vand.u32 4294901760, %v8164_v52 }
 0x770   :  { %11035 = vmatpush1.bf16.msra.mxu1 %v11034_v35  ;;  %v11043_v35 = vpack.c.bf16 %v8151_v21, %v8144_v26  ;;  %v11046_v1 = vpack.c.bf16 %v8165_v62, %v8158_v0  ;;  %v8179_v26 = vand.u32 4294901760, %v8178_v17  ;;  %v11061_v0 = vpack.c.bf16 %v16606_v50, %v16604_v59 }
 0x771   :  { %11036 = vmatprep.subr.bf16.mxu1 %v11366_v13  ;;  %v11064_v62 = vpack.c.bf16 %v16619_v48, %v16613_v60 }
 0x772   :  { %v11049_v21 = vpack.c.bf16 %v8179_v26, %v8172_v54  ;;  %v11055_v54 = vpack.c.bf16 %v16542_v8, %v16540_v51 }
 0x774   :  { %11038 = vmatpush1.bf16.msra.mxu1 %v11037_v10 }
 0x775   :  { %11039 = vmatprep.subr.bf16.mxu1 %v11366_v13 }
 0x778   :  { %11041 = vmatpush1.bf16.msra.mxu1 %v11040_v42  ;;  %v9289_v53 = vpop.f32.mrb[108].mxu1  ;;  %v8184_v42 = vand.u32 4294901760, %v16697_v14 }
 0x779   :  { %v9290_v2 = vpop.f32.mrb[109].mxu1  ;;  %11042 = vmatprep.subr.bf16.mxu1 %v11366_v13 }
 0x77a   :  { %v9291_v10 = vadd.f32 %v9290_v2, %v9289_v53  ;;  %v8185_v16 = vsub.f32 %v16697_v14, %v8184_v42  ;;  %v11058_v53 = vpack.c.bf16 %v16584_v43, %v16582_v11  ;;  %v11121_v43 = vpack.c.bf16 %v8177_v49, %v8170_v4 }
 0x77c   :  { %11044 = vmatpush1.bf16.msra.mxu1 %v11043_v35  ;;  %v8186_v52 = vand.u32 4294901760, %v8185_v16  ;;  %v11052_v35 = vpack.c.bf16 %v16519_v61, %v16517_v38  ;;  %v11073_v16 = vpack.c.bf16 %v16681_v40, %v16670_v27  ;;  %v11106_v38 = vpack.c.bf16 %v8107_v12, %v8100_v46 }
 0x77d   :  { %11045 = vmatprep.subr.bf16.mxu1 %v11366_v13  ;;  %v11109_v61 = vpack.c.bf16 %v8121_v56, %v8114_v55 }
 0x780   :  { %11047 = vmatpush1.bf16.msra.mxu1 %v11046_v1  ;;  %v11067_v1 = vpack.c.bf16 %v16635_v24, %v16631_v6 }
 0x781   :  { %11048 = vmatprep.subr.bf16.mxu1 %v11366_v13 }
 0x784   :  { %11050 = vmatpush1.bf16.msra.mxu1 %v11049_v21  ;;  %v11070_v21 = vpack.c.bf16 %v16664_v39, %v16651_v15 }
 0x785   :  { %8181 = vmatprep.subr.mxu1 %v19133_v31 }
 0x788   :  { %8187 = vmatpush1.msra.mxu1 %v8186_v52 }
 0x789   :  { %8221 = vmatmul.mubr.f32.vlgmr.msra.gmra.mrb[120].mxu1 %v16533_v3  ;;  %11051 = vmatprep.subr.bf16.mxu1 %v11366_v13 }
 0x78a   :  { %11053 = vmatpush1.bf16.msra.mxu1 %v11052_v35  ;;  %8326 = vmatprep.mubr.f32.mxu1 %v16444_v22  ;;  %v11100_v22 = vpack.c.bf16 %v8079_v32, %v8072_v44  ;;  %v11112_v32 = vpack.c.bf16 %v8135_v28, %v8128_v19 }
 0x78b   :  { %11054 = vmatprep.subr.bf16.mxu1 %v11366_v13 }
 0x78e   :  { %11056 = vmatpush1.bf16.msra.mxu1 %v11055_v54 }
 0x78f   :  { %11057 = vmatprep.subr.bf16.mxu1 %v11366_v13 }
 0x792   :  { %11059 = vmatpush1.bf16.msra.mxu1 %v11058_v53 }
 0x793   :  { %11060 = vmatprep.subr.bf16.mxu1 %v11366_v13 }
 0x796   :  { %11062 = vmatpush1.bf16.msra.mxu1 %v11061_v0 }
 0x797   :  { %11063 = vmatprep.subr.bf16.mxu1 %v11366_v13 }
 0x798   :  { %v9324_v7 = vpop.f32.mrb[110].mxu1 }
 0x799   :  { %v9325_v17 = vpop.f32.mrb[111].mxu1 }
 0x79a   :  { %v9326_v2 = vadd.f32 %v9325_v17, %v9324_v7  ;;  %11065 = vmatpush1.bf16.msra.mxu1 %v11064_v62 }
 0x79b   :  { %11066 = vmatprep.subr.bf16.mxu1 %v11366_v13 }
 0x79c   :  { %v7451_v26 = vadd.f32 %v9326_v2, %v9291_v10 }
 0x79e   :  { %11068 = vmatpush1.bf16.msra.mxu1 %v11067_v1 }
 0x79f   :  { %11069 = vmatprep.subr.bf16.mxu1 %v11366_v13 }
 0x7a2   :  { %11071 = vmatpush1.bf16.msra.mxu1 %v11070_v21 }
 0x7a3   :  { %11072 = vmatprep.subr.bf16.mxu1 %v11366_v13 }
 0x7a6   :  { %11074 = vmatpush1.bf16.msra.mxu1 %v11073_v16 }
 0x7a7   :  { %8290 = vmatprep.subr.mxu1 %v19133_v31 }
 0x7aa   :  { %8293 = vmatpush1.msra.mxu1 %v16697_v14 }
 0x7ab   :  { %8329 = vmatmul.mubr.f32.vlgmr.msra.gmra.mrb[120].mxu1 %v16559_v23  ;;  %11075 = vmatprep.subr.bf16.mxu1 %v11366_v13 }
 0x7ac   :  { %11077 = vmatpush1.bf16.msra.mxu1 %v16468_v30  ;;  %8418 = vmatprep.mubr.f32.mxu1 %v8055_v33  ;;  %v11103_v33 = vpack.c.bf16 %v8093_v47, %v8086_v57  ;;  %v11115_v57 = vpack.c.bf16 %v8149_v18, %v8142_v25  ;;  %v19134_v47 = vand.u32 4294901760, %v16664_v39 }
 0x7ad   :  { %11078 = vmatprep.subr.bf16.mxu1 %v11366_v13 }
 0x7ae   :  { %v11118_v11 = vpack.c.bf16 %v19134_v47, %v8156_v9 }
 0x7b0   :  { %11080 = vmatpush1.bf16.msra.mxu1 %v16479_v20 }
 0x7b1   :  { %11081 = vmatprep.subr.bf16.mxu1 %v11366_v13 }
 0x7b4   :  { %11083 = vmatpush1.bf16.msra.mxu1 %v16489_v58 }
 0x7b5   :  { %11084 = vmatprep.subr.bf16.mxu1 %v11366_v13 }
 0x7b8   :  { %v9359_v10 = vpop.f32.mrb[112].mxu1  ;;  %11086 = vmatpush1.bf16.msra.mxu1 %v16499_v36 }
 0x7b9   :  { %v9360_v52 = vpop.f32.mrb[113].mxu1  ;;  %11087 = vmatprep.subr.bf16.mxu1 %v11366_v13 }
 0x7ba   :  { %v9361_v35 = vadd.f32 %v9360_v52, %v9359_v10 }
 0x7bc   :  { %v7589_v54 = vadd.f32 %v9361_v35, %v7451_v26  ;;  %11089 = vmatpush1.bf16.msra.mxu1 %v16513_v45 }
 0x7bd   :  { %11090 = vmatprep.subr.bf16.mxu1 %v11366_v13 }
 0x7c0   :  { %11092 = vmatpush1.bf16.msra.mxu1 %v16536_v41 }
 0x7c1   :  { %11093 = vmatprep.subr.bf16.mxu1 %v11366_v13 }
 0x7c4   :  { %11095 = vmatpush1.bf16.msra.mxu1 %v16566_v37 }
 0x7c5   :  { %11096 = vmatprep.subr.bf16.mxu1 %v11366_v13 }
 0x7c8   :  { %11098 = vmatpush1.bf16.msra.mxu1 %v16592_v5 }
 0x7c9   :  { %8382 = vmatprep.subr.mxu1 %v19133_v31 }
 0x7cc   :  { %8384 = vmatpush1.msra.mxu1 %v16617_v63 }
 0x7cd   :  { %8422 = vmatmul.mubr.f32.vlgmr.msra.gmra.mrb[120].mxu1 %v8061_v29  ;;  %11099 = vmatprep.subr.bf16.mxu1 %v11366_v13 }
 0x7ce   :  { %11101 = vmatpush1.bf16.msra.mxu1 %v11100_v22  ;;  %8543 = vmatprep.mubr.f32.mxu1 %v16439_v34 }
 0x7cf   :  { %11102 = vmatprep.subr.bf16.mxu1 %v11366_v13 }
 0x7d2   :  { %11104 = vmatpush1.bf16.msra.mxu1 %v11103_v33 }
 0x7d3   :  { %11105 = vmatprep.subr.bf16.mxu1 %v11366_v13 }
 0x7d6   :  { %11107 = vmatpush1.bf16.msra.mxu1 %v11106_v38 }
 0x7d7   :  { %11108 = vmatprep.subr.bf16.mxu1 %v11366_v13 }
 0x7d8   :  { %v9394_v51 = vpop.f32.mrb[114].mxu1 }
 0x7d9   :  { %v9395_v8 = vpop.f32.mrb[115].mxu1 }
 0x7da   :  { %v9396_v44 = vadd.f32 %v9395_v8, %v9394_v51  ;;  %11110 = vmatpush1.bf16.msra.mxu1 %v11109_v61 }
 0x7db   :  { %11111 = vmatprep.subr.bf16.mxu1 %v11366_v13 }
 0x7dc   :  { %v7697_v23 = vadd.f32 %v9396_v44, %v7589_v54 }
 0x7de   :  { %11113 = vmatpush1.bf16.msra.mxu1 %v11112_v32 }
 0x7df   :  { %11114 = vmatprep.subr.bf16.mxu1 %v11366_v13 }
 0x7e2   :  { %11116 = vmatpush1.bf16.msra.mxu1 %v11115_v57 }
 0x7e3   :  { %11117 = vmatprep.subr.bf16.mxu1 %v11366_v13 }
 0x7e6   :  { %11119 = vmatpush1.bf16.msra.mxu1 %v11118_v11 }
 0x7e7   :  { %11120 = vmatprep.subr.bf16.mxu1 %v11366_v13 }
 0x7ea   :  { %11122 = vmatpush1.bf16.msra.mxu1 %v11121_v43 }
 0x7eb   :  { %8507 = vmatprep.subr.mxu1 %v19133_v31 }
 0x7ee   :  { %8511 = vmatpush1.msra.mxu1 %v8184_v42 }
 0x7ef   :  { %8545 = vmatmul.mubr.f32.vlgmr.msra.gmra.mrb[120].mxu1 %v16533_v3  ;;  %11123 = vmatprep.subr.bf16.mxu1 %v11366_v13 }
 0x7f0   :  { %11125 = vmatpush1.bf16.msra.mxu1 %v16468_v30  ;;  %8632 = vmatprep.mubr.f32.mxu1 %v16439_v34 }
 0x7f1   :  { %11126 = vmatprep.subr.bf16.mxu1 %v11366_v13 }
 0x7f4   :  { %11128 = vmatpush1.bf16.msra.mxu1 %v16479_v20 }
 0x7f5   :  { %11129 = vmatprep.subr.bf16.mxu1 %v11366_v13 }
 0x7f8   :  { %v9429_v29 = vpop.f32.mrb[116].mxu1  ;;  %11131 = vmatpush1.bf16.msra.mxu1 %v16489_v58 }
 0x7f9   :  { %v9430_v59 = vpop.f32.mrb[117].mxu1  ;;  %11132 = vmatprep.subr.bf16.mxu1 %v11366_v13 }
 0x7fa   :  { %v9431_v50 = vadd.f32 %v9430_v59, %v9429_v29 }
 0x7fc   :  { %v7865_v46 = vadd.f32 %v9431_v50, %v7697_v23  ;;  %11134 = vmatpush1.bf16.msra.mxu1 %v16499_v36 }
 0x7fd   :  { %11135 = vmatprep.subr.bf16.mxu1 %v11366_v13 }
 0x800   :  { %11137 = vmatpush1.bf16.msra.mxu1 %v16513_v45 }
 0x801   :  { %11138 = vmatprep.subr.bf16.mxu1 %v11366_v13 }
 0x804   :  { %11140 = vmatpush1.bf16.msra.mxu1 %v16536_v41 }
 0x805   :  { %11141 = vmatprep.subr.bf16.mxu1 %v11366_v13 }
 0x808   :  { %11143 = vmatpush1.bf16.msra.mxu1 %v16566_v37 }
 0x809   :  { %11144 = vmatprep.subr.bf16.mxu1 %v11366_v13 }
 0x80c   :  { %11146 = vmatpush1.bf16.msra.mxu1 %v16592_v5 }
 0x80d   :  { %8598 = vmatprep.subr.mxu1 %v19133_v31 }
 0x810   :  { %8600 = vmatpush1.msra.mxu1 %v16617_v63 }
 0x811   :  { %8634 = vmatmul.mubr.f32.vlgmr.msra.gmra.mrb[120].mxu1 %v16533_v3 }
 0x818   :  { %v9464_v34 = vpop.f32.mrb[118].mxu1 }
 0x819   :  { %v9465_v30 = vpop.f32.mrb[119].mxu1 }
 0x81a   :  { %v9466_v20 = vadd.f32 %v9465_v30, %v9464_v34 }
 0x81c   :  { %v7969_v58 = vadd.f32 %v9466_v20, %v7865_v46 }
 0x8e4   :  { %v8635_v36 = vpop.f32.mrb[120].mxu1 }
 0x8e5   :  { %v11167_v45 = vadd.f32 %v8635_v36, %v7969_v58  ;;  %v8637_v41 = vpop.f32.mrb[121].mxu1 }
 0x8e7   :  { %v8639_v12 = vmax.f32 %v11167_v45, 0.0 }
 0x8e9   :  { %8641 = vrot.lane.b32.xlu0 %v8639_v12, %s11367_s2 }
 0x95b   :  { %v8642_v37 = vpop.permute.xlu0 %8641 }
 0x95c   :  { %v8644_v13 = vmax.f32 %v8639_v12, %v8642_v37 }
 0x95e   :  { %8646 = vrot.lane.b32.xlu1 %v8644_v13, %s11368_s19 }
 0x962   :  { %8655 = vrot.lane.b32.xlu1 %v8639_v12, %s11369_s20 }
 0x9d0   :  { %v8647_v5 = vpop.permute.xlu1 %8646 }
 0x9d1   :  { %v8649_v60 = vmax.f32 %v8644_v13, %v8647_v5 }
 0x9d3   :  { %8651 = vrot.lane.b32.xlu0 %v8649_v60, %s11370_s21 }
 0x9d4   :  { %v8656_v48 = vpop.permute.xlu1 %8655 }
 0xa45   :  { %v8652_v3 = vpop.permute.xlu0 %8651 }
 0xa46   :  { %v8654_v63 = vmax.f32 %v8649_v60, %v8652_v3 }
 0xa48   :  { %v8658_v31 = vmax.f32 %v8654_v63, %v8656_v48 }
 0xa4a   :  { %8660 = vst.msk [vmem:[#allocation2] sm:$0x3] %vm8659_vm15, %v8658_v31 }
 0xa4b   :  { %11344 = shalt.err (!%p11341_p4)
}
 0xa4c   :  { %s11345_s27 = scalar_lea.hbm %s16844_s3, 32 }
 0xa4d   :  { %p11346_p5 = scmp.ne.s32.totalorder %s16844_s3, %s11345_s27  ;;  %p11349_p6 = scmp.lt.u32.totalorder %s11345_s27, %s16844_s3 }
 0xa4f   :  { %p11351_p7 = pnand %p11349_p6, %p11346_p5 }
 0xa51   :  { %11354 = shalt.err (!%p11351_p7)
}
 0xa52   :  { %8670 = dma.vmem_to_hbm [thread:$0]  %s8668_s23, 32, %s16844_s3, [#allocation3]  }
 0xa53   :  { %11355 = dma.done.wait [#allocation3], 32  }
 0xa54   :  { %11356 = vsyncadd [#allocation3], 4294967264 }
 0xa55   :  { %8674 = vsyncpa [#allocation3], 1 }

</bundles_post_ra>
